<compile_context>
chip_gen: v7x
topology: tpu7x:2x2x1
jax: 0.10.0
libtpu: 0.0.40
codegen_flags: <defaults>
</compile_context>

<pallas_src>
import math
import functools

import numpy as np
import jax
import jax.numpy as jnp
from jax.experimental import pallas as pl
from jax.experimental.pallas import tpu as pltpu

BN_EPS = 1e-5
LEAD = 128                       # frame margin; must be >= Wp+1 (any CIFAR-scale width)
VMEM_LIMIT = 32 * 1024 * 1024    # explicit scoped-VMEM budget (safe on v5e/v6e/v7x)


def _roundup(a, b):
    return ((a + b - 1) // b) * b


def frame_geometry(H, W):
    """Per-image frame: [LEAD zeros | padded (H+2)x(W+2) activation, flattened | zeros]."""
    Hp, Wp = H + 2, W + 2
    assert Wp + 1 <= LEAD, "frame margin too small for this spatial width"
    Fo = _roundup(Hp * Wp, 128)          # lane-dense computed width (multiple of 128)
    F = Fo + 2 * LEAD                    # total frame width   (multiple of 128)
    return Hp, Wp, Fo, F


# ----------------------------------------------------------------------------
# Pallas kernel bodies
# ----------------------------------------------------------------------------
def _taps_patch(src_ref, Wp, Fo, extra=None):
    """In-kernel im2col: 9 statically shifted lane-slices of the frame, tap-major concat."""
    taps = []
    for kh in range(3):
        for kw in range(3):
            s = LEAD + (kh - 1) * Wp + (kw - 1)
            taps.append(src_ref[:, s:s + Fo])
    if extra is not None:
        taps.append(extra)
    return jnp.concatenate(taps, axis=0)


def _frame_block_kernel(x_ref, w1_ref, b1_ref, w2_ref, b2_ref, m_ref, o_ref, h_ref,
                        *, Wp, Fo):
    """Fused identity BasicBlock in frame layout; intermediate h stays in VMEM scratch."""
    Cout = w1_ref.shape[0]
    mask = m_ref[...]                                                  # (1, Fo) f32
    zeros_m = jnp.zeros((Cout, LEAD), jnp.bfloat16)

    # conv1 -> bn1 -> relu (channel gate folded into w1; gate>=0 so pre-relu fold is exact)
    patch1 = _taps_patch(x_ref, Wp, Fo)                                # (9*Cin, Fo) bf16
    h = jnp.dot(w1_ref[...], patch1, preferred_element_type=jnp.float32) + b1_ref[...]
    h = jnp.maximum(h, 0.0) * mask
    h_ref[:, LEAD:LEAD + Fo] = h.astype(jnp.bfloat16)
    h_ref[:, :LEAD] = zeros_m                                          # margins every step
    h_ref[:, LEAD + Fo:] = zeros_m                                     # (parallel-grid safe)

    # conv2 -> bn2 -> +identity shortcut -> relu
    patch2 = _taps_patch(h_ref, Wp, Fo)                                # (9*Cout, Fo) bf16
    y = jnp.dot(w2_ref[...], patch2, preferred_element_type=jnp.float32) + b2_ref[...]
    y = y + x_ref[:, LEAD:LEAD + Fo].astype(jnp.float32)
    y = jnp.maximum(y, 0.0) * mask
    o_ref[:, LEAD:LEAD + Fo] = y.astype(o_ref.dtype)
    o_ref[:, :LEAD] = zeros_m
    o_ref[:, LEAD + Fo:] = zeros_m


def _frame_conv_proj_kernel(x_ref, xs_ref, w_ref, b_ref, m_ref, o_ref, *, Wp, Fo):
    """conv2 (3x3, in-frame) + fused 1x1 projection shortcut: one concatenated MXU dot."""
    Cout = w_ref.shape[0]
    mask = m_ref[...]
    xs = xs_ref[:, LEAD:LEAD + Fo]                                     # strided shortcut input
    patch = _taps_patch(x_ref, Wp, Fo, extra=xs)                       # (9*Cmid + Cs, Fo)
    y = jnp.dot(w_ref[...], patch, preferred_element_type=jnp.float32) + b_ref[...]
    y = jnp.maximum(y, 0.0) * mask
    zeros_m = jnp.zeros((Cout, LEAD), o_ref.dtype)
    o_ref[:, LEAD:LEAD + Fo] = y.astype(o_ref.dtype)
    o_ref[:, :LEAD] = zeros_m
    o_ref[:, LEAD + Fo:] = zeros_m


def _matmul_kernel(w_ref, x_ref, b_ref, o_ref, *, relu):
    acc = jnp.dot(w_ref[...], x_ref[...], preferred_element_type=jnp.float32) + b_ref[...]
    if relu:
        acc = jnp.maximum(acc, 0.0)
    o_ref[...] = acc.astype(o_ref.dtype)


# ----------------------------------------------------------------------------
# pallas_call wrappers
# ----------------------------------------------------------------------------
def _choose_tm(Mpad):
    # Mpad is a multiple of 128; prefer >=2 grid steps (v7x megacore) with large tiles.
    for tm in (2048, 1024, 512, 256, 128):
        if Mpad % tm == 0 and Mpad // tm >= 2:
            return tm
    return Mpad


def matmul_conv(w, x, b, *, relu, out_dtype=jnp.bfloat16):
    """y(Cout, M) = act(w(Cout,K) @ x(K,M) + b); lane-dense, M padded to multiple of 128.
    Used only for the stem conv and the two stride-2 stage-entry convs."""
    Cout, K = w.shape
    M = x.shape[1]
    Mpad = _roundup(M, 128)
    if Mpad != M:
        x = jnp.pad(x, ((0, 0), (0, Mpad - M)))
    TM = _choose_tm(Mpad)
    nt = Mpad // TM
    w = w.astype(jnp.bfloat16)
    x = x.astype(jnp.bfloat16)
    b = b.reshape(Cout, 1).astype(jnp.float32)
    out = pl.pallas_call(
        functools.partial(_matmul_kernel, relu=relu),
        grid=(nt,),
        in_specs=[
            pl.BlockSpec((Cout, K), lambda i: (0, 0)),      # weight: VMEM-resident
            pl.BlockSpec((K, TM), lambda i: (0, i)),        # patch tile: pipelined
            pl.BlockSpec((Cout, 1), lambda i: (0, 0)),      # folded bias: resident
        ],
        out_specs=pl.BlockSpec((Cout, TM), lambda i: (0, i)),
        out_shape=jax.ShapeDtypeStruct((Cout, Mpad), out_dtype),
        compiler_params=pltpu.CompilerParams(
            dimension_semantics=("parallel",),
            vmem_limit_bytes=VMEM_LIMIT),
        cost_estimate=pl.CostEstimate(
            flops=2 * Cout * K * Mpad, transcendentals=0,
            bytes_accessed=2 * (Cout * K + K * Mpad + Cout * Mpad)),
    )(w, x, b)
    return out[:, :M]


def frame_block(xf, w1, b1, w2, b2, mask, *, H, W):
    """One fused identity BasicBlock; grid over images, weights/mask VMEM-resident."""
    Nb, Cin, F = xf.shape
    Cout = w1.shape[0]
    _, Wp, Fo, F2 = frame_geometry(H, W)
    assert F2 == F
    flops = Nb * 2 * Cout * Fo * (9 * Cin + 9 * Cout)
    bytes_accessed = 2 * Nb * F * (Cin + Cout) + 2 * (int(w1.size) + int(w2.size))
    return pl.pallas_call(
        functools.partial(_frame_block_kernel, Wp=Wp, Fo=Fo),
        grid=(Nb,),
        in_specs=[
            pl.BlockSpec((None, Cin, F), lambda n: (n, 0, 0)),   # per-image frame (pipelined)
            pl.BlockSpec((Cout, 9 * Cin), lambda n: (0, 0)),     # resident folded weights
            pl.BlockSpec((Cout, 1), lambda n: (0, 0)),
            pl.BlockSpec((Cout, 9 * Cout), lambda n: (0, 0)),
            pl.BlockSpec((Cout, 1), lambda n: (0, 0)),
            pl.BlockSpec((1, Fo), lambda n: (0, 0)),             # interior mask: resident
        ],
        out_specs=pl.BlockSpec((None, Cout, F), lambda n: (n, 0, 0)),
        out_shape=jax.ShapeDtypeStruct((Nb, Cout, F), jnp.bfloat16),
        scratch_shapes=[pltpu.VMEM((Cout, F), jnp.bfloat16)],    # intermediate h (in VMEM)
        compiler_params=pltpu.CompilerParams(
            dimension_semantics=("parallel",),
            vmem_limit_bytes=VMEM_LIMIT),
        cost_estimate=pl.CostEstimate(flops=int(flops), transcendentals=0,
                                      bytes_accessed=int(bytes_accessed)),
    )(xf, w1, b1, w2, b2, mask)


def frame_conv_proj(hf, xsf, wcat, b, mask, *, H, W):
    """conv2 + fused 1x1 projection shortcut + relu for the two strided stage-entry blocks."""
    Nb, Cmid, F = hf.shape
    Cs = xsf.shape[1]
    Cout = wcat.shape[0]
    _, Wp, Fo, F2 = frame_geometry(H, W)
    assert F2 == F
    flops = Nb * 2 * Cout * Fo * (9 * Cmid + Cs)
    bytes_accessed = 2 * Nb * F * (Cmid + Cs + Cout) + 2 * int(wcat.size)
    return pl.pallas_call(
        functools.partial(_frame_conv_proj_kernel, Wp=Wp, Fo=Fo),
        grid=(Nb,),
        in_specs=[
            pl.BlockSpec((None, Cmid, F), lambda n: (n, 0, 0)),
            pl.BlockSpec((None, Cs, F), lambda n: (n, 0, 0)),
            pl.BlockSpec((Cout, 9 * Cmid + Cs), lambda n: (0, 0)),
            pl.BlockSpec((Cout, 1), lambda n: (0, 0)),
            pl.BlockSpec((1, Fo), lambda n: (0, 0)),
        ],
        out_specs=pl.BlockSpec((None, Cout, F), lambda n: (n, 0, 0)),
        out_shape=jax.ShapeDtypeStruct((Nb, Cout, F), jnp.bfloat16),
        compiler_params=pltpu.CompilerParams(
            dimension_semantics=("parallel",),
            vmem_limit_bytes=VMEM_LIMIT),
        cost_estimate=pl.CostEstimate(flops=int(flops), transcendentals=0,
                                      bytes_accessed=int(bytes_accessed)),
    )(hf, xsf, wcat, b, mask)


# ----------------------------------------------------------------------------
# Frame pack/unpack + wrapper-side im2col (XLA glue inside the single jit)
# ----------------------------------------------------------------------------
def interior_mask(H, W):
    Hp, Wp, Fo, _ = frame_geometry(H, W)
    u = np.arange(Fo)
    i, j = u // Wp, u % Wp
    m = (u < Hp * Wp) & (i >= 1) & (i <= Hp - 2) & (j >= 1) & (j <= Wp - 2)
    return jnp.asarray(m.astype(np.float32)).reshape(1, Fo)


def pack_frame(x):
    """(C, Nb, H, W) -> (Nb, C, F) bf16 per-image frames (borders and margins zero)."""
    C, Nb, H, W = x.shape
    Hp, Wp, Fo, F = frame_geometry(H, W)
    xp = jnp.pad(x, ((0, 0), (0, 0), (1, 1), (1, 1)))
    flat = xp.reshape(C, Nb, Hp * Wp)
    flat = jnp.pad(flat, ((0, 0), (0, 0), (LEAD, F - LEAD - Hp * Wp)))
    return jnp.transpose(flat, (1, 0, 2)).astype(jnp.bfloat16)


def unpack_frame(xf, H, W):
    """(Nb, C, F) frames -> (C, Nb, H, W)."""
    Nb, C, _ = xf.shape
    Hp, Wp, _, _ = frame_geometry(H, W)
    core = xf[:, :, LEAD:LEAD + Hp * Wp].reshape(Nb, C, Hp, Wp)
    core = core[:, :, 1:Hp - 1, 1:Wp - 1]
    return jnp.transpose(core, (1, 0, 2, 3))


def im2col_3x3(x, stride):
    """(C, Nb, H, W) -> (9*C, Nb*Ho*Wo) tap-major patch matrix (stem / stride-2 convs only)."""
    C, Nb, H, W = x.shape
    xp = jnp.pad(x, ((0, 0), (0, 0), (1, 1), (1, 1)))
    Ho = (H - 1) // stride + 1
    Wo = (W - 1) // stride + 1
    taps = []
    for kh in range(3):
        for kw in range(3):
            taps.append(xp[:, :, kh:kh + stride * (Ho - 1) + 1:stride,
                               kw:kw + stride * (Wo - 1) + 1:stride])
    return jnp.concatenate(taps, axis=0).reshape(9 * C, Nb * Ho * Wo), (Nb, Ho, Wo)


# ----------------------------------------------------------------------------
# One-time parameter preparation (gate chain, BN/gate folding, weight re-layout)
# ----------------------------------------------------------------------------
def hard_concrete_gate(loga):
    # TODO(synk): SparseChannel source not provided; deterministic eval-mode hard-concrete
    #             gate z = clamp(sigmoid(loga)*(zeta-gamma)+gamma, 0, 1), gamma=-.1, zeta=1.1.
    gamma, zeta = -0.1, 1.1
    s = jax.nn.sigmoid(loga) * (zeta - gamma) + gamma
    return jnp.clip(s, 0.0, 1.0)


def _bn_scale(cout):
    # eval-mode BN with deterministic init: gamma=1, beta=0, running mean=0, var=1
    return jnp.full((cout,), 1.0 / math.sqrt(1.0 + BN_EPS), jnp.float32)


def _fold_conv3x3(w, scale, bias):
    """(Cout,Cin,3,3) -> (Cout, 9*Cin) tap-major matmul layout with BN/gate folded."""
    Cout, Cin = w.shape[0], w.shape[1]
    wm = jnp.transpose(w, (0, 2, 3, 1)).reshape(Cout, 9 * Cin)   # column = (kh,kw,cin)
    return ((wm * scale[:, None]).astype(jnp.bfloat16),
            bias.reshape(Cout, 1).astype(jnp.float32))


def prepare_params(params):
    """Gate chain + gate*BN folding + weight re-layout; depends only on params (run once)."""
    loga = jnp.ones((params['gens'][0][0].shape[1],), jnp.float32)
    logas = []
    for Wg, bg in params['gens']:
        loga = loga @ Wg.T + bg
        loga = math.log(100.0) * jnp.tanh(loga)
        logas.append(loga)
    gates = [hard_concrete_gate(l) for l in logas]

    prepared = {}
    c0 = params['conv1'].shape[0]
    w, b = _fold_conv3x3(params['conv1'], _bn_scale(c0) * gates[0],
                         jnp.zeros((c0,), jnp.float32))
    prepared['stem'] = {'w': w, 'b': b}

    blocks = []
    idx = 1
    for stage in params['stages']:
        for blk in stage:
            Cout, Cin = blk['w1'].shape[0], blk['w1'].shape[1]
            w1, b1 = _fold_conv3x3(blk['w1'], _bn_scale(Cout) * gates[idx],
                                   jnp.zeros((Cout,), jnp.float32))
            w2, b2 = _fold_conv3x3(blk['w2'], _bn_scale(Cout),
                                   jnp.zeros((Cout,), jnp.float32))
            p = {'w1': w1, 'b1': b1, 'b2': b2}
            if 'ws' in blk:
                ws = (blk['ws'].reshape(Cout, Cin) * _bn_scale(Cout)[:, None])
                p['wcat'] = jnp.concatenate([w2, ws.astype(jnp.bfloat16)], axis=1)
            else:
                p['w2'] = w2
            blocks.append(p)
            idx += 1
    prepared['blocks'] = blocks

    Wfc, bfc = params['fc']
    prepared['fc'] = (Wfc.astype(jnp.float32), bfc.astype(jnp.float32))
    return prepared


# ----------------------------------------------------------------------------
# Forward pass (single jit; mirrors ResNet56.forward)
# ----------------------------------------------------------------------------
@jax.jit
def resnet56_forward(prepared, x_nchw):
    Nb, _, H, W = x_nchw.shape
    x = jnp.transpose(x_nchw, (1, 0, 2, 3)).astype(jnp.bfloat16)      # (3, Nb, H, W)

    # stem: conv1 -> bn1 -> relu -> channel gate (all folded), then pack into frames
    cols, _ = im2col_3x3(x, 1)
    stem = prepared['stem']
    h = matmul_conv(stem['w'], cols, stem['b'], relu=True)            # (16, Nb*H*W)
    xf = pack_frame(h.reshape(stem['w'].shape[0], Nb, H, W))          # (Nb, 16, F)
    curH, curW = H, W

    # TODO(synk): `block` class source not provided; gated BasicBlock (expansion=1) assumed.
    for blk in prepared['blocks']:
        if 'wcat' in blk:
            # strided stage-entry block: conv1 (stride 2) via im2col + matmul kernel,
            # then fused in-frame conv2 + 1x1 projection shortcut + relu (one dot).
            xin = unpack_frame(xf, curH, curW)                        # (Cin, Nb, H, W)
            cols1, (_, Ho, Wo) = im2col_3x3(xin, 2)
            Cout = blk['w1'].shape[0]
            h1 = matmul_conv(blk['w1'], cols1, blk['b1'], relu=True)  # (Cout, Nb*Ho*Wo)
            hf = pack_frame(h1.reshape(Cout, Nb, Ho, Wo))
            xsf = pack_frame(xin[:, :, ::2, ::2])                     # strided shortcut input
            curH, curW = Ho, Wo
            xf = frame_conv_proj(hf, xsf, blk['wcat'], blk['b2'],
                                 interior_mask(curH, curW), H=curH, W=curW)
        else:
            # identity block: one fully fused pallas_call (frame in -> frame out)
            xf = frame_block(xf, blk['w1'], blk['b1'], blk['w2'], blk['b2'],
                             interior_mask(curH, curW), H=curH, W=curW)

    # global average pool + fc in plain XLA (a Pallas call here is pure dispatch overhead)
    feat = jnp.sum(xf.astype(jnp.float32), axis=-1) / float(curH * curW)   # (Nb, 64)
    Wfc, bfc = prepared['fc']
    return feat @ Wfc.T + bfc                                              # (Nb, classes)


# ----------------------------------------------------------------------------
# Deterministic parameter initialization (synthetic weights)
# ----------------------------------------------------------------------------
def conv_init(key, cout, cin, k):
    fan_in = cin * k * k
    return jax.random.normal(key, (cout, cin, k, k), jnp.float32) / math.sqrt(fan_in)


def linear_init(key, cin, cout, bias_mean=0.0):
    kw, kb = jax.random.split(key)
    W = jax.random.normal(kw, (cout, cin), jnp.float32) / math.sqrt(cin)
    b = bias_mean + 0.01 * jax.random.normal(kb, (cout,), jnp.float32)
    return W, b


def init_params(key, num_classes=10):
    params = {}
    k0, k1, k2, k3 = jax.random.split(key, 4)
    params['conv1'] = conv_init(k0, 16, 3, 3)

    in_out_forward = [(16, 16)] * 10 + [(16, 32)] + [(32, 32)] * 8 + [(32, 64)] + [(64, 64)] * 8
    gkeys = jax.random.split(k1, len(in_out_forward))
    params['gens'] = [linear_init(gk, ci, co, bias_mean=3.0)
                      for gk, (ci, co) in zip(gkeys, in_out_forward)]

    stage_cfg = [(16, 16, 9, 1), (16, 32, 9, 2), (32, 64, 9, 2)]   # ResNet56: [9, 9, 9]
    stages = []
    skey = k2
    for cin, cout, nb, stride in stage_cfg:
        blocks = []
        strides = [stride] + [1] * (nb - 1)
        bc_in = cin
        for s in strides:
            skey, ka, kb, kc = jax.random.split(skey, 4)
            blk = {'w1': conv_init(ka, cout, bc_in, 3),
                   'w2': conv_init(kb, cout, cout, 3)}
            if s != 1 or bc_in != cout:
                blk['ws'] = conv_init(kc, cout, bc_in, 1)
            blocks.append(blk)
            bc_in = cout
        stages.append(blocks)
    params['stages'] = stages
    params['fc'] = linear_init(k3, 64, num_classes, bias_mean=0.0)
    return params


if __name__ == "__main__":
    key = jax.random.PRNGKey(0)
    pkey, xkey = jax.random.split(key)
    params = init_params(pkey, num_classes=10)
    prepared = prepare_params(params)                  # one-time folding, off the hot path
    x = jax.random.normal(xkey, (2, 3, 16, 16), jnp.float32)   # NCHW, small CIFAR-like
    logits = resnet56_forward(prepared, x)
    jax.block_until_ready(logits)
    assert logits.shape == (2, 10)
    assert bool(jnp.all(jnp.isfinite(logits)))
    print("KERNEL_OK")
</pallas_src>

<mosaic_0001>
module attributes {stable_mosaic.version = 11 : i64} {
  func.func @_matmul_kernel(%arg0: i32, %arg1: memref<16x27xbf16, #tpu.memory_space<vmem>>, %arg2: memref<27x256xbf16, #tpu.memory_space<vmem>>, %arg3: memref<16x1xf32, #tpu.memory_space<vmem>>, %arg4: memref<16x256xbf16, #tpu.memory_space<vmem>>) attributes {dimension_semantics = [#tpu.dimension_semantics<parallel>], iteration_bounds = array<i64: 2>, scalar_prefetch = 0 : i64, scratch_operands = 0 : i64, tpu.core_type = #tpu.core_type<tc>, window_params = [{pipeline_mode = #tpu.pipeline_mode<synchronous>, transform_indices = @transform_0, window_bounds = array<i64: 16, 27>}, {transform_indices = @transform_1, window_bounds = array<i64: 27, 256>}, {pipeline_mode = #tpu.pipeline_mode<synchronous>, transform_indices = @transform_2, window_bounds = array<i64: 16, 1>}, {transform_indices = @transform_3, window_bounds = array<i64: 16, 256>}]} {
    %c0 = arith.constant 0 : index
    %c0_0 = arith.constant 0 : index
    %0 = vector.load %arg1[%c0, %c0_0] : memref<16x27xbf16, #tpu.memory_space<vmem>>, vector<16x27xbf16>
    %c0_1 = arith.constant 0 : index
    %c0_2 = arith.constant 0 : index
    %1 = vector.load %arg2[%c0_1, %c0_2] : memref<27x256xbf16, #tpu.memory_space<vmem>>, vector<27x256xbf16>
    %cst = arith.constant dense<0.000000e+00> : vector<16x256xf32>
    %2 = tpu.matmul %0, %1, %cst {dimension_numbers = #tpu.dot_dimension_numbers<[1], [0], [0], [1], [0, 0, 1, 1], [], []>} : vector<16x27xbf16>, vector<27x256xbf16>, vector<16x256xf32> -> vector<16x256xf32>
    %c0_3 = arith.constant 0 : index
    %c0_4 = arith.constant 0 : index
    %3 = vector.load %arg3[%c0_3, %c0_4] : memref<16x1xf32, #tpu.memory_space<vmem>>, vector<16x1xf32>
    %4 = vector.broadcast %3 : vector<16x1xf32> to vector<16x256xf32>
    %5 = arith.addf %2, %4 : vector<16x256xf32>
    %cst_5 = arith.constant 0.000000e+00 : f32
    %6 = vector.broadcast %cst_5 : f32 to vector<16x256xf32>
    %7 = arith.maximumf %5, %6 : vector<16x256xf32>
    %8 = arith.truncf %7 : vector<16x256xf32> to vector<16x256xbf16>
    %c0_6 = arith.constant 0 : index
    %c0_7 = arith.constant 0 : index
    %9 = vector.load %arg4[%c0_6, %c0_7] : memref<16x256xbf16, #tpu.memory_space<vmem>>, vector<16x256xbf16>
    tpu.vector_store %arg4[%c0_6, %c0_7], %8 {strides = array<i32>} : memref<16x256xbf16, #tpu.memory_space<vmem>>, vector<16x256xbf16>,
    return
  }
  func.func @transform_0(%arg0: i32) -> (i32, i32) {
    %c0_i32 = arith.constant 0 : i32
    %c0_i32_0 = arith.constant 0 : i32
    %c0_i32_1 = arith.constant 0 : i32
    return %c0_i32, %c0_i32_0 : i32, i32
  }
  func.func @transform_1(%arg0: i32) -> (i32, i32) {
    %c0_i32 = arith.constant 0 : i32
    %c0_i32_0 = arith.constant 0 : i32
    return %c0_i32, %arg0 : i32, i32
  }
  func.func @transform_2(%arg0: i32) -> (i32, i32) {
    %c0_i32 = arith.constant 0 : i32
    %c0_i32_0 = arith.constant 0 : i32
    %c0_i32_1 = arith.constant 0 : i32
    return %c0_i32, %c0_i32_0 : i32, i32
  }
  func.func @transform_3(%arg0: i32) -> (i32, i32) {
    %c0_i32 = arith.constant 0 : i32
    %c0_i32_0 = arith.constant 0 : i32
    return %c0_i32, %arg0 : i32, i32
  }
}

module attributes {stable_mosaic.version = 11 : i64} {
  func.func @_frame_block_kernel(%arg0: i32, %arg1: memref<1x16x640xbf16, #tpu.memory_space<vmem>>, %arg2: memref<16x144xbf16, #tpu.memory_space<vmem>>, %arg3: memref<16x1xf32, #tpu.memory_space<vmem>>, %arg4: memref<16x144xbf16, #tpu.memory_space<vmem>>, %arg5: memref<16x1xf32, #tpu.memory_space<vmem>>, %arg6: memref<1x384xf32, #tpu.memory_space<vmem>>, %arg7: memref<1x16x640xbf16, #tpu.memory_space<vmem>>, %arg8: memref<16x640xbf16, #tpu.memory_space<vmem>>) attributes {dimension_semantics = [#tpu.dimension_semantics<parallel>], iteration_bounds = array<i64: 2>, scalar_prefetch = 0 : i64, scratch_operands = 1 : i64, tpu.core_type = #tpu.core_type<tc>, window_params = [{transform_indices = @transform_0, window_bounds = array<i64: 1, 16, 640>}, {pipeline_mode = #tpu.pipeline_mode<synchronous>, transform_indices = @transform_1, window_bounds = array<i64: 16, 144>}, {pipeline_mode = #tpu.pipeline_mode<synchronous>, transform_indices = @transform_2, window_bounds = array<i64: 16, 1>}, {pipeline_mode = #tpu.pipeline_mode<synchronous>, transform_indices = @transform_3, window_bounds = array<i64: 16, 144>}, {pipeline_mode = #tpu.pipeline_mode<synchronous>, transform_indices = @transform_4, window_bounds = array<i64: 16, 1>}, {pipeline_mode = #tpu.pipeline_mode<synchronous>, transform_indices = @transform_5, window_bounds = array<i64: 1, 384>}, {transform_indices = @transform_6, window_bounds = array<i64: 1, 16, 640>}]} {
    %c0 = arith.constant 0 : index
    %c0_0 = arith.constant 0 : index
    %0 = vector.load %arg6[%c0, %c0_0] : memref<1x384xf32, #tpu.memory_space<vmem>>, vector<1x384xf32>
    %cst = arith.constant 0.000000e+00 : bf16
    %1 = vector.broadcast %cst : bf16 to vector<16x128xbf16>
    %c0_1 = arith.constant 0 : index
    %c0_2 = arith.constant 0 : index
    %c109 = arith.constant 109 : index
    %2 = vector.load %arg1[%c0_1, %c0_2, %c109] : memref<1x16x640xbf16, #tpu.memory_space<vmem>>, vector<1x16x384xbf16>
    %3 = vector.shape_cast %2 : vector<1x16x384xbf16> to vector<16x384xbf16>
    %c0_3 = arith.constant 0 : index
    %c0_4 = arith.constant 0 : index
    %c110 = arith.constant 110 : index
    %4 = vector.load %arg1[%c0_3, %c0_4, %c110] : memref<1x16x640xbf16, #tpu.memory_space<vmem>>, vector<1x16x384xbf16>
    %5 = vector.shape_cast %4 : vector<1x16x384xbf16> to vector<16x384xbf16>
    %c0_5 = arith.constant 0 : index
    %c0_6 = arith.constant 0 : index
    %c111 = arith.constant 111 : index
    %6 = vector.load %arg1[%c0_5, %c0_6, %c111] : memref<1x16x640xbf16, #tpu.memory_space<vmem>>, vector<1x16x384xbf16>
    %7 = vector.shape_cast %6 : vector<1x16x384xbf16> to vector<16x384xbf16>
    %c0_7 = arith.constant 0 : index
    %c0_8 = arith.constant 0 : index
    %c127 = arith.constant 127 : index
    %8 = vector.load %arg1[%c0_7, %c0_8, %c127] : memref<1x16x640xbf16, #tpu.memory_space<vmem>>, vector<1x16x384xbf16>
    %9 = vector.shape_cast %8 : vector<1x16x384xbf16> to vector<16x384xbf16>
    %c0_9 = arith.constant 0 : index
    %c0_10 = arith.constant 0 : index
    %c128 = arith.constant 128 : index
    %10 = vector.load %arg1[%c0_9, %c0_10, %c128] : memref<1x16x640xbf16, #tpu.memory_space<vmem>>, vector<1x16x384xbf16>
    %11 = vector.shape_cast %10 : vector<1x16x384xbf16> to vector<16x384xbf16>
    %c0_11 = arith.constant 0 : index
    %c0_12 = arith.constant 0 : index
    %c129 = arith.constant 129 : index
    %12 = vector.load %arg1[%c0_11, %c0_12, %c129] : memref<1x16x640xbf16, #tpu.memory_space<vmem>>, vector<1x16x384xbf16>
    %13 = vector.shape_cast %12 : vector<1x16x384xbf16> to vector<16x384xbf16>
    %c0_13 = arith.constant 0 : index
    %c0_14 = arith.constant 0 : index
    %c145 = arith.constant 145 : index
    %14 = vector.load %arg1[%c0_13, %c0_14, %c145] : memref<1x16x640xbf16, #tpu.memory_space<vmem>>, vector<1x16x384xbf16>
    %15 = vector.shape_cast %14 : vector<1x16x384xbf16> to vector<16x384xbf16>
    %c0_15 = arith.constant 0 : index
    %c0_16 = arith.constant 0 : index
    %c146 = arith.constant 146 : index
    %16 = vector.load %arg1[%c0_15, %c0_16, %c146] : memref<1x16x640xbf16, #tpu.memory_space<vmem>>, vector<1x16x384xbf16>
    %17 = vector.shape_cast %16 : vector<1x16x384xbf16> to vector<16x384xbf16>
    %c0_17 = arith.constant 0 : index
    %c0_18 = arith.constant 0 : index
    %c147 = arith.constant 147 : index
    %18 = vector.load %arg1[%c0_17, %c0_18, %c147] : memref<1x16x640xbf16, #tpu.memory_space<vmem>>, vector<1x16x384xbf16>
    %19 = vector.shape_cast %18 : vector<1x16x384xbf16> to vector<16x384xbf16>
    %20 = tpu.concatenate %3, %5, %7, %9, %11, %13, %15, %17, %19 in 0 : vector<16x384xbf16>, vector<16x384xbf16>, vector<16x384xbf16>, vector<16x384xbf16>, vector<16x384xbf16>, vector<16x384xbf16>, vector<16x384xbf16>, vector<16x384xbf16>, vector<16x384xbf16> -> vector<144x384xbf16>
    %c0_19 = arith.constant 0 : index
    %c0_20 = arith.constant 0 : index
    %21 = vector.load %arg2[%c0_19, %c0_20] : memref<16x144xbf16, #tpu.memory_space<vmem>>, vector<16x144xbf16>
    %cst_21 = arith.constant dense<0.000000e+00> : vector<16x384xf32>
    %22 = tpu.matmul %21, %20, %cst_21 {dimension_numbers = #tpu.dot_dimension_numbers<[1], [0], [0], [1], [0, 0, 1, 1], [], []>} : vector<16x144xbf16>, vector<144x384xbf16>, vector<16x384xf32> -> vector<16x384xf32>
    %c0_22 = arith.constant 0 : index
    %c0_23 = arith.constant 0 : index
    %23 = vector.load %arg3[%c0_22, %c0_23] : memref<16x1xf32, #tpu.memory_space<vmem>>, vector<16x1xf32>
    %24 = vector.broadcast %23 : vector<16x1xf32> to vector<16x384xf32>
    %25 = arith.addf %22, %24 : vector<16x384xf32>
    %cst_24 = arith.constant 0.000000e+00 : f32
    %26 = vector.broadcast %cst_24 : f32 to vector<16x384xf32>
    %27 = arith.maximumf %25, %26 : vector<16x384xf32>
    %28 = vector.broadcast %0 : vector<1x384xf32> to vector<16x384xf32>
    %29 = arith.mulf %27, %28 : vector<16x384xf32>
    %30 = arith.truncf %29 : vector<16x384xf32> to vector<16x384xbf16>
    %c0_25 = arith.constant 0 : index
    %c128_26 = arith.constant 128 : index
    %31 = vector.load %arg8[%c0_25, %c128_26] : memref<16x640xbf16, #tpu.memory_space<vmem>>, vector<16x384xbf16>
    tpu.vector_store %arg8[%c0_25, %c128_26], %30 {strides = array<i32>} : memref<16x640xbf16, #tpu.memory_space<vmem>>, vector<16x384xbf16>,
    %c0_27 = arith.constant 0 : index
    %c0_28 = arith.constant 0 : index
    %32 = vector.load %arg8[%c0_27, %c0_28] : memref<16x640xbf16, #tpu.memory_space<vmem>>, vector<16x128xbf16>
    tpu.vector_store %arg8[%c0_27, %c0_28], %1 {strides = array<i32>} : memref<16x640xbf16, #tpu.memory_space<vmem>>, vector<16x128xbf16>,
    %c0_29 = arith.constant 0 : index
    %c512 = arith.constant 512 : index
    %33 = vector.load %arg8[%c0_29, %c512] : memref<16x640xbf16, #tpu.memory_space<vmem>>, vector<16x128xbf16>
    tpu.vector_store %arg8[%c0_29, %c512], %1 {strides = array<i32>} : memref<16x640xbf16, #tpu.memory_space<vmem>>, vector<16x128xbf16>,
    %c0_30 = arith.constant 0 : index
    %c109_31 = arith.constant 109 : index
    %34 = vector.load %arg8[%c0_30, %c109_31] : memref<16x640xbf16, #tpu.memory_space<vmem>>, vector<16x384xbf16>
    %c0_32 = arith.constant 0 : index
    %c110_33 = arith.constant 110 : index
    %35 = vector.load %arg8[%c0_32, %c110_33] : memref<16x640xbf16, #tpu.memory_space<vmem>>, vector<16x384xbf16>
    %c0_34 = arith.constant 0 : index
    %c111_35 = arith.constant 111 : index
    %36 = vector.load %arg8[%c0_34, %c111_35] : memref<16x640xbf16, #tpu.memory_space<vmem>>, vector<16x384xbf16>
    %c0_36 = arith.constant 0 : index
    %c127_37 = arith.constant 127 : index
    %37 = vector.load %arg8[%c0_36, %c127_37] : memref<16x640xbf16, #tpu.memory_space<vmem>>, vector<16x384xbf16>
    %c0_38 = arith.constant 0 : index
    %c128_39 = arith.constant 128 : index
    %38 = vector.load %arg8[%c0_38, %c128_39] : memref<16x640xbf16, #tpu.memory_space<vmem>>, vector<16x384xbf16>
    %c0_40 = arith.constant 0 : index
    %c129_41 = arith.constant 129 : index
    %39 = vector.load %arg8[%c0_40, %c129_41] : memref<16x640xbf16, #tpu.memory_space<vmem>>, vector<16x384xbf16>
    %c0_42 = arith.constant 0 : index
    %c145_43 = arith.constant 145 : index
    %40 = vector.load %arg8[%c0_42, %c145_43] : memref<16x640xbf16, #tpu.memory_space<vmem>>, vector<16x384xbf16>
    %c0_44 = arith.constant 0 : index
    %c146_45 = arith.constant 146 : index
    %41 = vector.load %arg8[%c0_44, %c146_45] : memref<16x640xbf16, #tpu.memory_space<vmem>>, vector<16x384xbf16>
    %c0_46 = arith.constant 0 : index
    %c147_47 = arith.constant 147 : index
    %42 = vector.load %arg8[%c0_46, %c147_47] : memref<16x640xbf16, #tpu.memory_space<vmem>>, vector<16x384xbf16>
    %43 = tpu.concatenate %34, %35, %36, %37, %38, %39, %40, %41, %42 in 0 : vector<16x384xbf16>, vector<16x384xbf16>, vector<16x384xbf16>, vector<16x384xbf16>, vector<16x384xbf16>, vector<16x384xbf16>, vector<16x384xbf16>, vector<16x384xbf16>, vector<16x384xbf16> -> vector<144x384xbf16>
    %c0_48 = arith.constant 0 : index
    %c0_49 = arith.constant 0 : index
    %44 = vector.load %arg4[%c0_48, %c0_49] : memref<16x144xbf16, #tpu.memory_space<vmem>>, vector<16x144xbf16>
    %cst_50 = arith.constant dense<0.000000e+00> : vector<16x384xf32>
    %45 = tpu.matmul %44, %43, %cst_50 {dimension_numbers = #tpu.dot_dimension_numbers<[1], [0], [0], [1], [0, 0, 1, 1], [], []>} : vector<16x144xbf16>, vector<144x384xbf16>, vector<16x384xf32> -> vector<16x384xf32>
    %c0_51 = arith.constant 0 : index
    %c0_52 = arith.constant 0 : index
    %46 = vector.load %arg5[%c0_51, %c0_52] : memref<16x1xf32, #tpu.memory_space<vmem>>, vector<16x1xf32>
    %47 = vector.broadcast %46 : vector<16x1xf32> to vector<16x384xf32>
    %48 = arith.addf %45, %47 : vector<16x384xf32>
    %c0_53 = arith.constant 0 : index
    %c0_54 = arith.constant 0 : index
    %c128_55 = arith.constant 128 : index
    %49 = vector.load %arg1[%c0_53, %c0_54, %c128_55] : memref<1x16x640xbf16, #tpu.memory_space<vmem>>, vector<1x16x384xbf16>
    %50 = vector.shape_cast %49 : vector<1x16x384xbf16> to vector<16x384xbf16>
    %51 = arith.extf %50 : vector<16x384xbf16> to vector<16x384xf32>
    %52 = arith.addf %48, %51 : vector<16x384xf32>
    %cst_56 = arith.constant 0.000000e+00 : f32
    %53 = vector.broadcast %cst_56 : f32 to vector<16x384xf32>
    %54 = arith.maximumf %52, %53 : vector<16x384xf32>
    %55 = vector.broadcast %0 : vector<1x384xf32> to vector<16x384xf32>
    %56 = arith.mulf %54, %55 : vector<16x384xf32>
    %57 = arith.truncf %56 : vector<16x384xf32> to vector<16x384xbf16>
    %c0_57 = arith.constant 0 : index
    %c0_58 = arith.constant 0 : index
    %c128_59 = arith.constant 128 : index
    %58 = vector.load %arg7[%c0_57, %c0_58, %c128_59] : memref<1x16x640xbf16, #tpu.memory_space<vmem>>, vector<1x16x384xbf16>
    %59 = vector.shape_cast %58 : vector<1x16x384xbf16> to vector<16x384xbf16>
    %60 = vector.shape_cast %57 : vector<16x384xbf16> to vector<1x16x384xbf16>
    tpu.vector_store %arg7[%c0_57, %c0_58, %c128_59], %60 {strides = array<i32>} : memref<1x16x640xbf16, #tpu.memory_space<vmem>>, vector<1x16x384xbf16>,
    %c0_60 = arith.constant 0 : index
    %c0_61 = arith.constant 0 : index
    %c0_62 = arith.constant 0 : index
    %61 = vector.load %arg7[%c0_60, %c0_61, %c0_62] : memref<1x16x640xbf16, #tpu.memory_space<vmem>>, vector<1x16x128xbf16>
    %62 = vector.shape_cast %61 : vector<1x16x128xbf16> to vector<16x128xbf16>
    %63 = vector.shape_cast %1 : vector<16x128xbf16> to vector<1x16x128xbf16>
    tpu.vector_store %arg7[%c0_60, %c0_61, %c0_62], %63 {strides = array<i32>} : memref<1x16x640xbf16, #tpu.memory_space<vmem>>, vector<1x16x128xbf16>,
    %c0_63 = arith.constant 0 : index
    %c0_64 = arith.constant 0 : index
    %c512_65 = arith.constant 512 : index
    %64 = vector.load %arg7[%c0_63, %c0_64, %c512_65] : memref<1x16x640xbf16, #tpu.memory_space<vmem>>, vector<1x16x128xbf16>
    %65 = vector.shape_cast %64 : vector<1x16x128xbf16> to vector<16x128xbf16>
    %66 = vector.shape_cast %1 : vector<16x128xbf16> to vector<1x16x128xbf16>
    tpu.vector_store %arg7[%c0_63, %c0_64, %c512_65], %66 {strides = array<i32>} : memref<1x16x640xbf16, #tpu.memory_space<vmem>>, vector<1x16x128xbf16>,
    return
  }
  func.func @transform_0(%arg0: i32) -> (i32, i32, i32) {
    %c0_i32 = arith.constant 0 : i32
    %c0_i32_0 = arith.constant 0 : i32
    %c0_i32_1 = arith.constant 0 : i32
    return %arg0, %c0_i32, %c0_i32_0 : i32, i32, i32
  }
  func.func @transform_1(%arg0: i32) -> (i32, i32) {
    %c0_i32 = arith.constant 0 : i32
    %c0_i32_0 = arith.constant 0 : i32
    %c0_i32_1 = arith.constant 0 : i32
    return %c0_i32, %c0_i32_0 : i32, i32
  }
  func.func @transform_2(%arg0: i32) -> (i32, i32) {
    %c0_i32 = arith.constant 0 : i32
    %c0_i32_0 = arith.constant 0 : i32
    %c0_i32_1 = arith.constant 0 : i32
    return %c0_i32, %c0_i32_0 : i32, i32
  }
  func.func @transform_3(%arg0: i32) -> (i32, i32) {
    %c0_i32 = arith.constant 0 : i32
    %c0_i32_0 = arith.constant 0 : i32
    %c0_i32_1 = arith.constant 0 : i32
    return %c0_i32, %c0_i32_0 : i32, i32
  }
  func.func @transform_4(%arg0: i32) -> (i32, i32) {
    %c0_i32 = arith.constant 0 : i32
    %c0_i32_0 = arith.constant 0 : i32
    %c0_i32_1 = arith.constant 0 : i32
    return %c0_i32, %c0_i32_0 : i32, i32
  }
  func.func @transform_5(%arg0: i32) -> (i32, i32) {
    %c0_i32 = arith.constant 0 : i32
    %c0_i32_0 = arith.constant 0 : i32
    %c0_i32_1 = arith.constant 0 : i32
    return %c0_i32, %c0_i32_0 : i32, i32
  }
  func.func @transform_6(%arg0: i32) -> (i32, i32, i32) {
    %c0_i32 = arith.constant 0 : i32
    %c0_i32_0 = arith.constant 0 : i32
    %c0_i32_1 = arith.constant 0 : i32
    return %arg0, %c0_i32, %c0_i32_0 : i32, i32, i32
  }
}

module attributes {stable_mosaic.version = 11 : i64} {
  func.func @_matmul_kernel(%arg0: i32, %arg1: memref<32x144xbf16, #tpu.memory_space<vmem>>, %arg2: memref<144x128xbf16, #tpu.memory_space<vmem>>, %arg3: memref<32x1xf32, #tpu.memory_space<vmem>>, %arg4: memref<32x128xbf16, #tpu.memory_space<vmem>>) attributes {dimension_semantics = [#tpu.dimension_semantics<parallel>], iteration_bounds = array<i64: 1>, scalar_prefetch = 0 : i64, scratch_operands = 0 : i64, tpu.core_type = #tpu.core_type<tc>, window_params = [{pipeline_mode = #tpu.pipeline_mode<synchronous>, transform_indices = @transform_0, window_bounds = array<i64: 32, 144>}, {transform_indices = @transform_1, window_bounds = array<i64: 144, 128>}, {pipeline_mode = #tpu.pipeline_mode<synchronous>, transform_indices = @transform_2, window_bounds = array<i64: 32, 1>}, {transform_indices = @transform_3, window_bounds = array<i64: 32, 128>}]} {
    %c0 = arith.constant 0 : index
    %c0_0 = arith.constant 0 : index
    %0 = vector.load %arg1[%c0, %c0_0] : memref<32x144xbf16, #tpu.memory_space<vmem>>, vector<32x144xbf16>
    %c0_1 = arith.constant 0 : index
    %c0_2 = arith.constant 0 : index
    %1 = vector.load %arg2[%c0_1, %c0_2] : memref<144x128xbf16, #tpu.memory_space<vmem>>, vector<144x128xbf16>
    %cst = arith.constant dense<0.000000e+00> : vector<32x128xf32>
    %2 = tpu.matmul %0, %1, %cst {dimension_numbers = #tpu.dot_dimension_numbers<[1], [0], [0], [1], [0, 0, 1, 1], [], []>} : vector<32x144xbf16>, vector<144x128xbf16>, vector<32x128xf32> -> vector<32x128xf32>
    %c0_3 = arith.constant 0 : index
    %c0_4 = arith.constant 0 : index
    %3 = vector.load %arg3[%c0_3, %c0_4] : memref<32x1xf32, #tpu.memory_space<vmem>>, vector<32x1xf32>
    %4 = vector.broadcast %3 : vector<32x1xf32> to vector<32x128xf32>
    %5 = arith.addf %2, %4 : vector<32x128xf32>
    %cst_5 = arith.constant 0.000000e+00 : f32
    %6 = vector.broadcast %cst_5 : f32 to vector<32x128xf32>
    %7 = arith.maximumf %5, %6 : vector<32x128xf32>
    %8 = arith.truncf %7 : vector<32x128xf32> to vector<32x128xbf16>
    %c0_6 = arith.constant 0 : index
    %c0_7 = arith.constant 0 : index
    %9 = vector.load %arg4[%c0_6, %c0_7] : memref<32x128xbf16, #tpu.memory_space<vmem>>, vector<32x128xbf16>
    tpu.vector_store %arg4[%c0_6, %c0_7], %8 {strides = array<i32>} : memref<32x128xbf16, #tpu.memory_space<vmem>>, vector<32x128xbf16>,
    return
  }
  func.func @transform_0(%arg0: i32) -> (i32, i32) {
    %c0_i32 = arith.constant 0 : i32
    %c0_i32_0 = arith.constant 0 : i32
    %c0_i32_1 = arith.constant 0 : i32
    return %c0_i32, %c0_i32_0 : i32, i32
  }
  func.func @transform_1(%arg0: i32) -> (i32, i32) {
    %c0_i32 = arith.constant 0 : i32
    %c0_i32_0 = arith.constant 0 : i32
    return %c0_i32, %arg0 : i32, i32
  }
  func.func @transform_2(%arg0: i32) -> (i32, i32) {
    %c0_i32 = arith.constant 0 : i32
    %c0_i32_0 = arith.constant 0 : i32
    %c0_i32_1 = arith.constant 0 : i32
    return %c0_i32, %c0_i32_0 : i32, i32
  }
  func.func @transform_3(%arg0: i32) -> (i32, i32) {
    %c0_i32 = arith.constant 0 : i32
    %c0_i32_0 = arith.constant 0 : i32
    return %c0_i32, %arg0 : i32, i32
  }
}

module attributes {stable_mosaic.version = 11 : i64} {
  func.func @_frame_block_kernel(%arg0: i32, %arg1: memref<1x32x384xbf16, #tpu.memory_space<vmem>>, %arg2: memref<32x288xbf16, #tpu.memory_space<vmem>>, %arg3: memref<32x1xf32, #tpu.memory_space<vmem>>, %arg4: memref<32x288xbf16, #tpu.memory_space<vmem>>, %arg5: memref<32x1xf32, #tpu.memory_space<vmem>>, %arg6: memref<1x128xf32, #tpu.memory_space<vmem>>, %arg7: memref<1x32x384xbf16, #tpu.memory_space<vmem>>, %arg8: memref<32x384xbf16, #tpu.memory_space<vmem>>) attributes {dimension_semantics = [#tpu.dimension_semantics<parallel>], iteration_bounds = array<i64: 2>, scalar_prefetch = 0 : i64, scratch_operands = 1 : i64, tpu.core_type = #tpu.core_type<tc>, window_params = [{transform_indices = @transform_0, window_bounds = array<i64: 1, 32, 384>}, {pipeline_mode = #tpu.pipeline_mode<synchronous>, transform_indices = @transform_1, window_bounds = array<i64: 32, 288>}, {pipeline_mode = #tpu.pipeline_mode<synchronous>, transform_indices = @transform_2, window_bounds = array<i64: 32, 1>}, {pipeline_mode = #tpu.pipeline_mode<synchronous>, transform_indices = @transform_3, window_bounds = array<i64: 32, 288>}, {pipeline_mode = #tpu.pipeline_mode<synchronous>, transform_indices = @transform_4, window_bounds = array<i64: 32, 1>}, {pipeline_mode = #tpu.pipeline_mode<synchronous>, transform_indices = @transform_5, window_bounds = array<i64: 1, 128>}, {transform_indices = @transform_6, window_bounds = array<i64: 1, 32, 384>}]} {
    %c0 = arith.constant 0 : index
    %c0_0 = arith.constant 0 : index
    %0 = vector.load %arg6[%c0, %c0_0] : memref<1x128xf32, #tpu.memory_space<vmem>>, vector<1x128xf32>
    %cst = arith.constant 0.000000e+00 : bf16
    %1 = vector.broadcast %cst : bf16 to vector<32x128xbf16>
    %c0_1 = arith.constant 0 : index
    %c0_2 = arith.constant 0 : index
    %c117 = arith.constant 117 : index
    %2 = vector.load %arg1[%c0_1, %c0_2, %c117] : memref<1x32x384xbf16, #tpu.memory_space<vmem>>, vector<1x32x128xbf16>
    %3 = vector.shape_cast %2 : vector<1x32x128xbf16> to vector<32x128xbf16>
    %c0_3 = arith.constant 0 : index
    %c0_4 = arith.constant 0 : index
    %c118 = arith.constant 118 : index
    %4 = vector.load %arg1[%c0_3, %c0_4, %c118] : memref<1x32x384xbf16, #tpu.memory_space<vmem>>, vector<1x32x128xbf16>
    %5 = vector.shape_cast %4 : vector<1x32x128xbf16> to vector<32x128xbf16>
    %c0_5 = arith.constant 0 : index
    %c0_6 = arith.constant 0 : index
    %c119 = arith.constant 119 : index
    %6 = vector.load %arg1[%c0_5, %c0_6, %c119] : memref<1x32x384xbf16, #tpu.memory_space<vmem>>, vector<1x32x128xbf16>
    %7 = vector.shape_cast %6 : vector<1x32x128xbf16> to vector<32x128xbf16>
    %c0_7 = arith.constant 0 : index
    %c0_8 = arith.constant 0 : index
    %c127 = arith.constant 127 : index
    %8 = vector.load %arg1[%c0_7, %c0_8, %c127] : memref<1x32x384xbf16, #tpu.memory_space<vmem>>, vector<1x32x128xbf16>
    %9 = vector.shape_cast %8 : vector<1x32x128xbf16> to vector<32x128xbf16>
    %c0_9 = arith.constant 0 : index
    %c0_10 = arith.constant 0 : index
    %c128 = arith.constant 128 : index
    %10 = vector.load %arg1[%c0_9, %c0_10, %c128] : memref<1x32x384xbf16, #tpu.memory_space<vmem>>, vector<1x32x128xbf16>
    %11 = vector.shape_cast %10 : vector<1x32x128xbf16> to vector<32x128xbf16>
    %c0_11 = arith.constant 0 : index
    %c0_12 = arith.constant 0 : index
    %c129 = arith.constant 129 : index
    %12 = vector.load %arg1[%c0_11, %c0_12, %c129] : memref<1x32x384xbf16, #tpu.memory_space<vmem>>, vector<1x32x128xbf16>
    %13 = vector.shape_cast %12 : vector<1x32x128xbf16> to vector<32x128xbf16>
    %c0_13 = arith.constant 0 : index
    %c0_14 = arith.constant 0 : index
    %c137 = arith.constant 137 : index
    %14 = vector.load %arg1[%c0_13, %c0_14, %c137] : memref<1x32x384xbf16, #tpu.memory_space<vmem>>, vector<1x32x128xbf16>
    %15 = vector.shape_cast %14 : vector<1x32x128xbf16> to vector<32x128xbf16>
    %c0_15 = arith.constant 0 : index
    %c0_16 = arith.constant 0 : index
    %c138 = arith.constant 138 : index
    %16 = vector.load %arg1[%c0_15, %c0_16, %c138] : memref<1x32x384xbf16, #tpu.memory_space<vmem>>, vector<1x32x128xbf16>
    %17 = vector.shape_cast %16 : vector<1x32x128xbf16> to vector<32x128xbf16>
    %c0_17 = arith.constant 0 : index
    %c0_18 = arith.constant 0 : index
    %c139 = arith.constant 139 : index
    %18 = vector.load %arg1[%c0_17, %c0_18, %c139] : memref<1x32x384xbf16, #tpu.memory_space<vmem>>, vector<1x32x128xbf16>
    %19 = vector.shape_cast %18 : vector<1x32x128xbf16> to vector<32x128xbf16>
    %20 = tpu.concatenate %3, %5, %7, %9, %11, %13, %15, %17, %19 in 0 : vector<32x128xbf16>, vector<32x128xbf16>, vector<32x128xbf16>, vector<32x128xbf16>, vector<32x128xbf16>, vector<32x128xbf16>, vector<32x128xbf16>, vector<32x128xbf16>, vector<32x128xbf16> -> vector<288x128xbf16>
    %c0_19 = arith.constant 0 : index
    %c0_20 = arith.constant 0 : index
    %21 = vector.load %arg2[%c0_19, %c0_20] : memref<32x288xbf16, #tpu.memory_space<vmem>>, vector<32x288xbf16>
    %cst_21 = arith.constant dense<0.000000e+00> : vector<32x128xf32>
    %22 = tpu.matmul %21, %20, %cst_21 {dimension_numbers = #tpu.dot_dimension_numbers<[1], [0], [0], [1], [0, 0, 1, 1], [], []>} : vector<32x288xbf16>, vector<288x128xbf16>, vector<32x128xf32> -> vector<32x128xf32>
    %c0_22 = arith.constant 0 : index
    %c0_23 = arith.constant 0 : index
    %23 = vector.load %arg3[%c0_22, %c0_23] : memref<32x1xf32, #tpu.memory_space<vmem>>, vector<32x1xf32>
    %24 = vector.broadcast %23 : vector<32x1xf32> to vector<32x128xf32>
    %25 = arith.addf %22, %24 : vector<32x128xf32>
    %cst_24 = arith.constant 0.000000e+00 : f32
    %26 = vector.broadcast %cst_24 : f32 to vector<32x128xf32>
    %27 = arith.maximumf %25, %26 : vector<32x128xf32>
    %28 = vector.broadcast %0 : vector<1x128xf32> to vector<32x128xf32>
    %29 = arith.mulf %27, %28 : vector<32x128xf32>
    %30 = arith.truncf %29 : vector<32x128xf32> to vector<32x128xbf16>
    %c0_25 = arith.constant 0 : index
    %c128_26 = arith.constant 128 : index
    %31 = vector.load %arg8[%c0_25, %c128_26] : memref<32x384xbf16, #tpu.memory_space<vmem>>, vector<32x128xbf16>
    tpu.vector_store %arg8[%c0_25, %c128_26], %30 {strides = array<i32>} : memref<32x384xbf16, #tpu.memory_space<vmem>>, vector<32x128xbf16>,
    %c0_27 = arith.constant 0 : index
    %c0_28 = arith.constant 0 : index
    %32 = vector.load %arg8[%c0_27, %c0_28] : memref<32x384xbf16, #tpu.memory_space<vmem>>, vector<32x128xbf16>
    tpu.vector_store %arg8[%c0_27, %c0_28], %1 {strides = array<i32>} : memref<32x384xbf16, #tpu.memory_space<vmem>>, vector<32x128xbf16>,
    %c0_29 = arith.constant 0 : index
    %c256 = arith.constant 256 : index
    %33 = vector.load %arg8[%c0_29, %c256] : memref<32x384xbf16, #tpu.memory_space<vmem>>, vector<32x128xbf16>
    tpu.vector_store %arg8[%c0_29, %c256], %1 {strides = array<i32>} : memref<32x384xbf16, #tpu.memory_space<vmem>>, vector<32x128xbf16>,
    %c0_30 = arith.constant 0 : index
    %c117_31 = arith.constant 117 : index
    %34 = vector.load %arg8[%c0_30, %c117_31] : memref<32x384xbf16, #tpu.memory_space<vmem>>, vector<32x128xbf16>
    %c0_32 = arith.constant 0 : index
    %c118_33 = arith.constant 118 : index
    %35 = vector.load %arg8[%c0_32, %c118_33] : memref<32x384xbf16, #tpu.memory_space<vmem>>, vector<32x128xbf16>
    %c0_34 = arith.constant 0 : index
    %c119_35 = arith.constant 119 : index
    %36 = vector.load %arg8[%c0_34, %c119_35] : memref<32x384xbf16, #tpu.memory_space<vmem>>, vector<32x128xbf16>
    %c0_36 = arith.constant 0 : index
    %c127_37 = arith.constant 127 : index
    %37 = vector.load %arg8[%c0_36, %c127_37] : memref<32x384xbf16, #tpu.memory_space<vmem>>, vector<32x128xbf16>
    %c0_38 = arith.constant 0 : index
    %c128_39 = arith.constant 128 : index
    %38 = vector.load %arg8[%c0_38, %c128_39] : memref<32x384xbf16, #tpu.memory_space<vmem>>, vector<32x128xbf16>
    %c0_40 = arith.constant 0 : index
    %c129_41 = arith.constant 129 : index
    %39 = vector.load %arg8[%c0_40, %c129_41] : memref<32x384xbf16, #tpu.memory_space<vmem>>, vector<32x128xbf16>
    %c0_42 = arith.constant 0 : index
    %c137_43 = arith.constant 137 : index
    %40 = vector.load %arg8[%c0_42, %c137_43] : memref<32x384xbf16, #tpu.memory_space<vmem>>, vector<32x128xbf16>
    %c0_44 = arith.constant 0 : index
    %c138_45 = arith.constant 138 : index
    %41 = vector.load %arg8[%c0_44, %c138_45] : memref<32x384xbf16, #tpu.memory_space<vmem>>, vector<32x128xbf16>
    %c0_46 = arith.constant 0 : index
    %c139_47 = arith.constant 139 : index
    %42 = vector.load %arg8[%c0_46, %c139_47] : memref<32x384xbf16, #tpu.memory_space<vmem>>, vector<32x128xbf16>
    %43 = tpu.concatenate %34, %35, %36, %37, %38, %39, %40, %41, %42 in 0 : vector<32x128xbf16>, vector<32x128xbf16>, vector<32x128xbf16>, vector<32x128xbf16>, vector<32x128xbf16>, vector<32x128xbf16>, vector<32x128xbf16>, vector<32x128xbf16>, vector<32x128xbf16> -> vector<288x128xbf16>
    %c0_48 = arith.constant 0 : index
    %c0_49 = arith.constant 0 : index
    %44 = vector.load %arg4[%c0_48, %c0_49] : memref<32x288xbf16, #tpu.memory_space<vmem>>, vector<32x288xbf16>
    %cst_50 = arith.constant dense<0.000000e+00> : vector<32x128xf32>
    %45 = tpu.matmul %44, %43, %cst_50 {dimension_numbers = #tpu.dot_dimension_numbers<[1], [0], [0], [1], [0, 0, 1, 1], [], []>} : vector<32x288xbf16>, vector<288x128xbf16>, vector<32x128xf32> -> vector<32x128xf32>
    %c0_51 = arith.constant 0 : index
    %c0_52 = arith.constant 0 : index
    %46 = vector.load %arg5[%c0_51, %c0_52] : memref<32x1xf32, #tpu.memory_space<vmem>>, vector<32x1xf32>
    %47 = vector.broadcast %46 : vector<32x1xf32> to vector<32x128xf32>
    %48 = arith.addf %45, %47 : vector<32x128xf32>
    %c0_53 = arith.constant 0 : index
    %c0_54 = arith.constant 0 : index
    %c128_55 = arith.constant 128 : index
    %49 = vector.load %arg1[%c0_53, %c0_54, %c128_55] : memref<1x32x384xbf16, #tpu.memory_space<vmem>>, vector<1x32x128xbf16>
    %50 = vector.shape_cast %49 : vector<1x32x128xbf16> to vector<32x128xbf16>
    %51 = arith.extf %50 : vector<32x128xbf16> to vector<32x128xf32>
    %52 = arith.addf %48, %51 : vector<32x128xf32>
    %cst_56 = arith.constant 0.000000e+00 : f32
    %53 = vector.broadcast %cst_56 : f32 to vector<32x128xf32>
    %54 = arith.maximumf %52, %53 : vector<32x128xf32>
    %55 = vector.broadcast %0 : vector<1x128xf32> to vector<32x128xf32>
    %56 = arith.mulf %54, %55 : vector<32x128xf32>
    %57 = arith.truncf %56 : vector<32x128xf32> to vector<32x128xbf16>
    %c0_57 = arith.constant 0 : index
    %c0_58 = arith.constant 0 : index
    %c128_59 = arith.constant 128 : index
    %58 = vector.load %arg7[%c0_57, %c0_58, %c128_59] : memref<1x32x384xbf16, #tpu.memory_space<vmem>>, vector<1x32x128xbf16>
    %59 = vector.shape_cast %58 : vector<1x32x128xbf16> to vector<32x128xbf16>
    %60 = vector.shape_cast %57 : vector<32x128xbf16> to vector<1x32x128xbf16>
    tpu.vector_store %arg7[%c0_57, %c0_58, %c128_59], %60 {strides = array<i32>} : memref<1x32x384xbf16, #tpu.memory_space<vmem>>, vector<1x32x128xbf16>,
    %c0_60 = arith.constant 0 : index
    %c0_61 = arith.constant 0 : index
    %c0_62 = arith.constant 0 : index
    %61 = vector.load %arg7[%c0_60, %c0_61, %c0_62] : memref<1x32x384xbf16, #tpu.memory_space<vmem>>, vector<1x32x128xbf16>
    %62 = vector.shape_cast %61 : vector<1x32x128xbf16> to vector<32x128xbf16>
    %63 = vector.shape_cast %1 : vector<32x128xbf16> to vector<1x32x128xbf16>
    tpu.vector_store %arg7[%c0_60, %c0_61, %c0_62], %63 {strides = array<i32>} : memref<1x32x384xbf16, #tpu.memory_space<vmem>>, vector<1x32x128xbf16>,
    %c0_63 = arith.constant 0 : index
    %c0_64 = arith.constant 0 : index
    %c256_65 = arith.constant 256 : index
    %64 = vector.load %arg7[%c0_63, %c0_64, %c256_65] : memref<1x32x384xbf16, #tpu.memory_space<vmem>>, vector<1x32x128xbf16>
    %65 = vector.shape_cast %64 : vector<1x32x128xbf16> to vector<32x128xbf16>
    %66 = vector.shape_cast %1 : vector<32x128xbf16> to vector<1x32x128xbf16>
    tpu.vector_store %arg7[%c0_63, %c0_64, %c256_65], %66 {strides = array<i32>} : memref<1x32x384xbf16, #tpu.memory_space<vmem>>, vector<1x32x128xbf16>,
    return
  }
  func.func @transform_0(%arg0: i32) -> (i32, i32, i32) {
    %c0_i32 = arith.constant 0 : i32
    %c0_i32_0 = arith.constant 0 : i32
    %c0_i32_1 = arith.constant 0 : i32
    return %arg0, %c0_i32, %c0_i32_0 : i32, i32, i32
  }
  func.func @transform_1(%arg0: i32) -> (i32, i32) {
    %c0_i32 = arith.constant 0 : i32
    %c0_i32_0 = arith.constant 0 : i32
    %c0_i32_1 = arith.constant 0 : i32
    return %c0_i32, %c0_i32_0 : i32, i32
  }
  func.func @transform_2(%arg0: i32) -> (i32, i32) {
    %c0_i32 = arith.constant 0 : i32
    %c0_i32_0 = arith.constant 0 : i32
    %c0_i32_1 = arith.constant 0 : i32
    return %c0_i32, %c0_i32_0 : i32, i32
  }
  func.func @transform_3(%arg0: i32) -> (i32, i32) {
    %c0_i32 = arith.constant 0 : i32
    %c0_i32_0 = arith.constant 0 : i32
    %c0_i32_1 = arith.constant 0 : i32
    return %c0_i32, %c0_i32_0 : i32, i32
  }
  func.func @transform_4(%arg0: i32) -> (i32, i32) {
    %c0_i32 = arith.constant 0 : i32
    %c0_i32_0 = arith.constant 0 : i32
    %c0_i32_1 = arith.constant 0 : i32
    return %c0_i32, %c0_i32_0 : i32, i32
  }
  func.func @transform_5(%arg0: i32) -> (i32, i32) {
    %c0_i32 = arith.constant 0 : i32
    %c0_i32_0 = arith.constant 0 : i32
    %c0_i32_1 = arith.constant 0 : i32
    return %c0_i32, %c0_i32_0 : i32, i32
  }
  func.func @transform_6(%arg0: i32) -> (i32, i32, i32) {
    %c0_i32 = arith.constant 0 : i32
    %c0_i32_0 = arith.constant 0 : i32
    %c0_i32_1 = arith.constant 0 : i32
    return %arg0, %c0_i32, %c0_i32_0 : i32, i32, i32
  }
}

module attributes {stable_mosaic.version = 11 : i64} {
  func.func @_frame_conv_proj_kernel(%arg0: i32, %arg1: memref<1x32x384xbf16, #tpu.memory_space<vmem>>, %arg2: memref<1x16x384xbf16, #tpu.memory_space<vmem>>, %arg3: memref<32x304xbf16, #tpu.memory_space<vmem>>, %arg4: memref<32x1xf32, #tpu.memory_space<vmem>>, %arg5: memref<1x128xf32, #tpu.memory_space<vmem>>, %arg6: memref<1x32x384xbf16, #tpu.memory_space<vmem>>) attributes {dimension_semantics = [#tpu.dimension_semantics<parallel>], iteration_bounds = array<i64: 2>, scalar_prefetch = 0 : i64, scratch_operands = 0 : i64, tpu.core_type = #tpu.core_type<tc>, window_params = [{transform_indices = @transform_0, window_bounds = array<i64: 1, 32, 384>}, {transform_indices = @transform_1, window_bounds = array<i64: 1, 16, 384>}, {pipeline_mode = #tpu.pipeline_mode<synchronous>, transform_indices = @transform_2, window_bounds = array<i64: 32, 304>}, {pipeline_mode = #tpu.pipeline_mode<synchronous>, transform_indices = @transform_3, window_bounds = array<i64: 32, 1>}, {pipeline_mode = #tpu.pipeline_mode<synchronous>, transform_indices = @transform_4, window_bounds = array<i64: 1, 128>}, {transform_indices = @transform_5, window_bounds = array<i64: 1, 32, 384>}]} {
    %c0 = arith.constant 0 : index
    %c0_0 = arith.constant 0 : index
    %0 = vector.load %arg5[%c0, %c0_0] : memref<1x128xf32, #tpu.memory_space<vmem>>, vector<1x128xf32>
    %c0_1 = arith.constant 0 : index
    %c0_2 = arith.constant 0 : index
    %c128 = arith.constant 128 : index
    %1 = vector.load %arg2[%c0_1, %c0_2, %c128] : memref<1x16x384xbf16, #tpu.memory_space<vmem>>, vector<1x16x128xbf16>
    %2 = vector.shape_cast %1 : vector<1x16x128xbf16> to vector<16x128xbf16>
    %c0_3 = arith.constant 0 : index
    %c0_4 = arith.constant 0 : index
    %c117 = arith.constant 117 : index
    %3 = vector.load %arg1[%c0_3, %c0_4, %c117] : memref<1x32x384xbf16, #tpu.memory_space<vmem>>, vector<1x32x128xbf16>
    %4 = vector.shape_cast %3 : vector<1x32x128xbf16> to vector<32x128xbf16>
    %c0_5 = arith.constant 0 : index
    %c0_6 = arith.constant 0 : index
    %c118 = arith.constant 118 : index
    %5 = vector.load %arg1[%c0_5, %c0_6, %c118] : memref<1x32x384xbf16, #tpu.memory_space<vmem>>, vector<1x32x128xbf16>
    %6 = vector.shape_cast %5 : vector<1x32x128xbf16> to vector<32x128xbf16>
    %c0_7 = arith.constant 0 : index
    %c0_8 = arith.constant 0 : index
    %c119 = arith.constant 119 : index
    %7 = vector.load %arg1[%c0_7, %c0_8, %c119] : memref<1x32x384xbf16, #tpu.memory_space<vmem>>, vector<1x32x128xbf16>
    %8 = vector.shape_cast %7 : vector<1x32x128xbf16> to vector<32x128xbf16>
    %c0_9 = arith.constant 0 : index
    %c0_10 = arith.constant 0 : index
    %c127 = arith.constant 127 : index
    %9 = vector.load %arg1[%c0_9, %c0_10, %c127] : memref<1x32x384xbf16, #tpu.memory_space<vmem>>, vector<1x32x128xbf16>
    %10 = vector.shape_cast %9 : vector<1x32x128xbf16> to vector<32x128xbf16>
    %c0_11 = arith.constant 0 : index
    %c0_12 = arith.constant 0 : index
    %c128_13 = arith.constant 128 : index
    %11 = vector.load %arg1[%c0_11, %c0_12, %c128_13] : memref<1x32x384xbf16, #tpu.memory_space<vmem>>, vector<1x32x128xbf16>
    %12 = vector.shape_cast %11 : vector<1x32x128xbf16> to vector<32x128xbf16>
    %c0_14 = arith.constant 0 : index
    %c0_15 = arith.constant 0 : index
    %c129 = arith.constant 129 : index
    %13 = vector.load %arg1[%c0_14, %c0_15, %c129] : memref<1x32x384xbf16, #tpu.memory_space<vmem>>, vector<1x32x128xbf16>
    %14 = vector.shape_cast %13 : vector<1x32x128xbf16> to vector<32x128xbf16>
    %c0_16 = arith.constant 0 : index
    %c0_17 = arith.constant 0 : index
    %c137 = arith.constant 137 : index
    %15 = vector.load %arg1[%c0_16, %c0_17, %c137] : memref<1x32x384xbf16, #tpu.memory_space<vmem>>, vector<1x32x128xbf16>
    %16 = vector.shape_cast %15 : vector<1x32x128xbf16> to vector<32x128xbf16>
    %c0_18 = arith.constant 0 : index
    %c0_19 = arith.constant 0 : index
    %c138 = arith.constant 138 : index
    %17 = vector.load %arg1[%c0_18, %c0_19, %c138] : memref<1x32x384xbf16, #tpu.memory_space<vmem>>, vector<1x32x128xbf16>
    %18 = vector.shape_cast %17 : vector<1x32x128xbf16> to vector<32x128xbf16>
    %c0_20 = arith.constant 0 : index
    %c0_21 = arith.constant 0 : index
    %c139 = arith.constant 139 : index
    %19 = vector.load %arg1[%c0_20, %c0_21, %c139] : memref<1x32x384xbf16, #tpu.memory_space<vmem>>, vector<1x32x128xbf16>
    %20 = vector.shape_cast %19 : vector<1x32x128xbf16> to vector<32x128xbf16>
    %21 = tpu.concatenate %4, %6, %8, %10, %12, %14, %16, %18, %20, %2 in 0 : vector<32x128xbf16>, vector<32x128xbf16>, vector<32x128xbf16>, vector<32x128xbf16>, vector<32x128xbf16>, vector<32x128xbf16>, vector<32x128xbf16>, vector<32x128xbf16>, vector<32x128xbf16>, vector<16x128xbf16> -> vector<304x128xbf16>
    %c0_22 = arith.constant 0 : index
    %c0_23 = arith.constant 0 : index
    %22 = vector.load %arg3[%c0_22, %c0_23] : memref<32x304xbf16, #tpu.memory_space<vmem>>, vector<32x304xbf16>
    %cst = arith.constant dense<0.000000e+00> : vector<32x128xf32>
    %23 = tpu.matmul %22, %21, %cst {dimension_numbers = #tpu.dot_dimension_numbers<[1], [0], [0], [1], [0, 0, 1, 1], [], []>} : vector<32x304xbf16>, vector<304x128xbf16>, vector<32x128xf32> -> vector<32x128xf32>
    %c0_24 = arith.constant 0 : index
    %c0_25 = arith.constant 0 : index
    %24 = vector.load %arg4[%c0_24, %c0_25] : memref<32x1xf32, #tpu.memory_space<vmem>>, vector<32x1xf32>
    %25 = vector.broadcast %24 : vector<32x1xf32> to vector<32x128xf32>
    %26 = arith.addf %23, %25 : vector<32x128xf32>
    %cst_26 = arith.constant 0.000000e+00 : f32
    %27 = vector.broadcast %cst_26 : f32 to vector<32x128xf32>
    %28 = arith.maximumf %26, %27 : vector<32x128xf32>
    %29 = vector.broadcast %0 : vector<1x128xf32> to vector<32x128xf32>
    %30 = arith.mulf %28, %29 : vector<32x128xf32>
    %cst_27 = arith.constant 0.000000e+00 : bf16
    %31 = vector.broadcast %cst_27 : bf16 to vector<32x128xbf16>
    %32 = arith.truncf %30 : vector<32x128xf32> to vector<32x128xbf16>
    %c0_28 = arith.constant 0 : index
    %c0_29 = arith.constant 0 : index
    %c128_30 = arith.constant 128 : index
    %33 = vector.load %arg6[%c0_28, %c0_29, %c128_30] : memref<1x32x384xbf16, #tpu.memory_space<vmem>>, vector<1x32x128xbf16>
    %34 = vector.shape_cast %33 : vector<1x32x128xbf16> to vector<32x128xbf16>
    %35 = vector.shape_cast %32 : vector<32x128xbf16> to vector<1x32x128xbf16>
    tpu.vector_store %arg6[%c0_28, %c0_29, %c128_30], %35 {strides = array<i32>} : memref<1x32x384xbf16, #tpu.memory_space<vmem>>, vector<1x32x128xbf16>,
    %c0_31 = arith.constant 0 : index
    %c0_32 = arith.constant 0 : index
    %c0_33 = arith.constant 0 : index
    %36 = vector.load %arg6[%c0_31, %c0_32, %c0_33] : memref<1x32x384xbf16, #tpu.memory_space<vmem>>, vector<1x32x128xbf16>
    %37 = vector.shape_cast %36 : vector<1x32x128xbf16> to vector<32x128xbf16>
    %38 = vector.shape_cast %31 : vector<32x128xbf16> to vector<1x32x128xbf16>
    tpu.vector_store %arg6[%c0_31, %c0_32, %c0_33], %38 {strides = array<i32>} : memref<1x32x384xbf16, #tpu.memory_space<vmem>>, vector<1x32x128xbf16>,
    %c0_34 = arith.constant 0 : index
    %c0_35 = arith.constant 0 : index
    %c256 = arith.constant 256 : index
    %39 = vector.load %arg6[%c0_34, %c0_35, %c256] : memref<1x32x384xbf16, #tpu.memory_space<vmem>>, vector<1x32x128xbf16>
    %40 = vector.shape_cast %39 : vector<1x32x128xbf16> to vector<32x128xbf16>
    %41 = vector.shape_cast %31 : vector<32x128xbf16> to vector<1x32x128xbf16>
    tpu.vector_store %arg6[%c0_34, %c0_35, %c256], %41 {strides = array<i32>} : memref<1x32x384xbf16, #tpu.memory_space<vmem>>, vector<1x32x128xbf16>,
    return
  }
  func.func @transform_0(%arg0: i32) -> (i32, i32, i32) {
    %c0_i32 = arith.constant 0 : i32
    %c0_i32_0 = arith.constant 0 : i32
    %c0_i32_1 = arith.constant 0 : i32
    return %arg0, %c0_i32, %c0_i32_0 : i32, i32, i32
  }
  func.func @transform_1(%arg0: i32) -> (i32, i32, i32) {
    %c0_i32 = arith.constant 0 : i32
    %c0_i32_0 = arith.constant 0 : i32
    %c0_i32_1 = arith.constant 0 : i32
    return %arg0, %c0_i32, %c0_i32_0 : i32, i32, i32
  }
  func.func @transform_2(%arg0: i32) -> (i32, i32) {
    %c0_i32 = arith.constant 0 : i32
    %c0_i32_0 = arith.constant 0 : i32
    %c0_i32_1 = arith.constant 0 : i32
    return %c0_i32, %c0_i32_0 : i32, i32
  }
  func.func @transform_3(%arg0: i32) -> (i32, i32) {
    %c0_i32 = arith.constant 0 : i32
    %c0_i32_0 = arith.constant 0 : i32
    %c0_i32_1 = arith.constant 0 : i32
    return %c0_i32, %c0_i32_0 : i32, i32
  }
  func.func @transform_4(%arg0: i32) -> (i32, i32) {
    %c0_i32 = arith.constant 0 : i32
    %c0_i32_0 = arith.constant 0 : i32
    %c0_i32_1 = arith.constant 0 : i32
    return %c0_i32, %c0_i32_0 : i32, i32
  }
  func.func @transform_5(%arg0: i32) -> (i32, i32, i32) {
    %c0_i32 = arith.constant 0 : i32
    %c0_i32_0 = arith.constant 0 : i32
    %c0_i32_1 = arith.constant 0 : i32
    return %arg0, %c0_i32, %c0_i32_0 : i32, i32, i32
  }
}

module attributes {stable_mosaic.version = 11 : i64} {
  func.func @_matmul_kernel(%arg0: i32, %arg1: memref<64x288xbf16, #tpu.memory_space<vmem>>, %arg2: memref<288x128xbf16, #tpu.memory_space<vmem>>, %arg3: memref<64x1xf32, #tpu.memory_space<vmem>>, %arg4: memref<64x128xbf16, #tpu.memory_space<vmem>>) attributes {dimension_semantics = [#tpu.dimension_semantics<parallel>], iteration_bounds = array<i64: 1>, scalar_prefetch = 0 : i64, scratch_operands = 0 : i64, tpu.core_type = #tpu.core_type<tc>, window_params = [{pipeline_mode = #tpu.pipeline_mode<synchronous>, transform_indices = @transform_0, window_bounds = array<i64: 64, 288>}, {transform_indices = @transform_1, window_bounds = array<i64: 288, 128>}, {pipeline_mode = #tpu.pipeline_mode<synchronous>, transform_indices = @transform_2, window_bounds = array<i64: 64, 1>}, {transform_indices = @transform_3, window_bounds = array<i64: 64, 128>}]} {
    %c0 = arith.constant 0 : index
    %c0_0 = arith.constant 0 : index
    %0 = vector.load %arg1[%c0, %c0_0] : memref<64x288xbf16, #tpu.memory_space<vmem>>, vector<64x288xbf16>
    %c0_1 = arith.constant 0 : index
    %c0_2 = arith.constant 0 : index
    %1 = vector.load %arg2[%c0_1, %c0_2] : memref<288x128xbf16, #tpu.memory_space<vmem>>, vector<288x128xbf16>
    %cst = arith.constant dense<0.000000e+00> : vector<64x128xf32>
    %2 = tpu.matmul %0, %1, %cst {dimension_numbers = #tpu.dot_dimension_numbers<[1], [0], [0], [1], [0, 0, 1, 1], [], []>} : vector<64x288xbf16>, vector<288x128xbf16>, vector<64x128xf32> -> vector<64x128xf32>
    %c0_3 = arith.constant 0 : index
    %c0_4 = arith.constant 0 : index
    %3 = vector.load %arg3[%c0_3, %c0_4] : memref<64x1xf32, #tpu.memory_space<vmem>>, vector<64x1xf32>
    %4 = vector.broadcast %3 : vector<64x1xf32> to vector<64x128xf32>
    %5 = arith.addf %2, %4 : vector<64x128xf32>
    %cst_5 = arith.constant 0.000000e+00 : f32
    %6 = vector.broadcast %cst_5 : f32 to vector<64x128xf32>
    %7 = arith.maximumf %5, %6 : vector<64x128xf32>
    %8 = arith.truncf %7 : vector<64x128xf32> to vector<64x128xbf16>
    %c0_6 = arith.constant 0 : index
    %c0_7 = arith.constant 0 : index
    %9 = vector.load %arg4[%c0_6, %c0_7] : memref<64x128xbf16, #tpu.memory_space<vmem>>, vector<64x128xbf16>
    tpu.vector_store %arg4[%c0_6, %c0_7], %8 {strides = array<i32>} : memref<64x128xbf16, #tpu.memory_space<vmem>>, vector<64x128xbf16>,
    return
  }
  func.func @transform_0(%arg0: i32) -> (i32, i32) {
    %c0_i32 = arith.constant 0 : i32
    %c0_i32_0 = arith.constant 0 : i32
    %c0_i32_1 = arith.constant 0 : i32
    return %c0_i32, %c0_i32_0 : i32, i32
  }
  func.func @transform_1(%arg0: i32) -> (i32, i32) {
    %c0_i32 = arith.constant 0 : i32
    %c0_i32_0 = arith.constant 0 : i32
    return %c0_i32, %arg0 : i32, i32
  }
  func.func @transform_2(%arg0: i32) -> (i32, i32) {
    %c0_i32 = arith.constant 0 : i32
    %c0_i32_0 = arith.constant 0 : i32
    %c0_i32_1 = arith.constant 0 : i32
    return %c0_i32, %c0_i32_0 : i32, i32
  }
  func.func @transform_3(%arg0: i32) -> (i32, i32) {
    %c0_i32 = arith.constant 0 : i32
    %c0_i32_0 = arith.constant 0 : i32
    return %c0_i32, %arg0 : i32, i32
  }
}

module attributes {stable_mosaic.version = 11 : i64} {
  func.func @_frame_block_kernel(%arg0: i32, %arg1: memref<1x64x384xbf16, #tpu.memory_space<vmem>>, %arg2: memref<64x576xbf16, #tpu.memory_space<vmem>>, %arg3: memref<64x1xf32, #tpu.memory_space<vmem>>, %arg4: memref<64x576xbf16, #tpu.memory_space<vmem>>, %arg5: memref<64x1xf32, #tpu.memory_space<vmem>>, %arg6: memref<1x128xf32, #tpu.memory_space<vmem>>, %arg7: memref<1x64x384xbf16, #tpu.memory_space<vmem>>, %arg8: memref<64x384xbf16, #tpu.memory_space<vmem>>) attributes {dimension_semantics = [#tpu.dimension_semantics<parallel>], iteration_bounds = array<i64: 2>, scalar_prefetch = 0 : i64, scratch_operands = 1 : i64, tpu.core_type = #tpu.core_type<tc>, window_params = [{transform_indices = @transform_0, window_bounds = array<i64: 1, 64, 384>}, {pipeline_mode = #tpu.pipeline_mode<synchronous>, transform_indices = @transform_1, window_bounds = array<i64: 64, 576>}, {pipeline_mode = #tpu.pipeline_mode<synchronous>, transform_indices = @transform_2, window_bounds = array<i64: 64, 1>}, {pipeline_mode = #tpu.pipeline_mode<synchronous>, transform_indices = @transform_3, window_bounds = array<i64: 64, 576>}, {pipeline_mode = #tpu.pipeline_mode<synchronous>, transform_indices = @transform_4, window_bounds = array<i64: 64, 1>}, {pipeline_mode = #tpu.pipeline_mode<synchronous>, transform_indices = @transform_5, window_bounds = array<i64: 1, 128>}, {transform_indices = @transform_6, window_bounds = array<i64: 1, 64, 384>}]} {
    %c0 = arith.constant 0 : index
    %c0_0 = arith.constant 0 : index
    %0 = vector.load %arg6[%c0, %c0_0] : memref<1x128xf32, #tpu.memory_space<vmem>>, vector<1x128xf32>
    %cst = arith.constant 0.000000e+00 : bf16
    %1 = vector.broadcast %cst : bf16 to vector<64x128xbf16>
    %c0_1 = arith.constant 0 : index
    %c0_2 = arith.constant 0 : index
    %c121 = arith.constant 121 : index
    %2 = vector.load %arg1[%c0_1, %c0_2, %c121] : memref<1x64x384xbf16, #tpu.memory_space<vmem>>, vector<1x64x128xbf16>
    %3 = vector.shape_cast %2 : vector<1x64x128xbf16> to vector<64x128xbf16>
    %c0_3 = arith.constant 0 : index
    %c0_4 = arith.constant 0 : index
    %c122 = arith.constant 122 : index
    %4 = vector.load %arg1[%c0_3, %c0_4, %c122] : memref<1x64x384xbf16, #tpu.memory_space<vmem>>, vector<1x64x128xbf16>
    %5 = vector.shape_cast %4 : vector<1x64x128xbf16> to vector<64x128xbf16>
    %c0_5 = arith.constant 0 : index
    %c0_6 = arith.constant 0 : index
    %c123 = arith.constant 123 : index
    %6 = vector.load %arg1[%c0_5, %c0_6, %c123] : memref<1x64x384xbf16, #tpu.memory_space<vmem>>, vector<1x64x128xbf16>
    %7 = vector.shape_cast %6 : vector<1x64x128xbf16> to vector<64x128xbf16>
    %c0_7 = arith.constant 0 : index
    %c0_8 = arith.constant 0 : index
    %c127 = arith.constant 127 : index
    %8 = vector.load %arg1[%c0_7, %c0_8, %c127] : memref<1x64x384xbf16, #tpu.memory_space<vmem>>, vector<1x64x128xbf16>
    %9 = vector.shape_cast %8 : vector<1x64x128xbf16> to vector<64x128xbf16>
    %c0_9 = arith.constant 0 : index
    %c0_10 = arith.constant 0 : index
    %c128 = arith.constant 128 : index
    %10 = vector.load %arg1[%c0_9, %c0_10, %c128] : memref<1x64x384xbf16, #tpu.memory_space<vmem>>, vector<1x64x128xbf16>
    %11 = vector.shape_cast %10 : vector<1x64x128xbf16> to vector<64x128xbf16>
    %c0_11 = arith.constant 0 : index
    %c0_12 = arith.constant 0 : index
    %c129 = arith.constant 129 : index
    %12 = vector.load %arg1[%c0_11, %c0_12, %c129] : memref<1x64x384xbf16, #tpu.memory_space<vmem>>, vector<1x64x128xbf16>
    %13 = vector.shape_cast %12 : vector<1x64x128xbf16> to vector<64x128xbf16>
    %c0_13 = arith.constant 0 : index
    %c0_14 = arith.constant 0 : index
    %c133 = arith.constant 133 : index
    %14 = vector.load %arg1[%c0_13, %c0_14, %c133] : memref<1x64x384xbf16, #tpu.memory_space<vmem>>, vector<1x64x128xbf16>
    %15 = vector.shape_cast %14 : vector<1x64x128xbf16> to vector<64x128xbf16>
    %c0_15 = arith.constant 0 : index
    %c0_16 = arith.constant 0 : index
    %c134 = arith.constant 134 : index
    %16 = vector.load %arg1[%c0_15, %c0_16, %c134] : memref<1x64x384xbf16, #tpu.memory_space<vmem>>, vector<1x64x128xbf16>
    %17 = vector.shape_cast %16 : vector<1x64x128xbf16> to vector<64x128xbf16>
    %c0_17 = arith.constant 0 : index
    %c0_18 = arith.constant 0 : index
    %c135 = arith.constant 135 : index
    %18 = vector.load %arg1[%c0_17, %c0_18, %c135] : memref<1x64x384xbf16, #tpu.memory_space<vmem>>, vector<1x64x128xbf16>
    %19 = vector.shape_cast %18 : vector<1x64x128xbf16> to vector<64x128xbf16>
    %20 = tpu.concatenate %3, %5, %7, %9, %11, %13, %15, %17, %19 in 0 : vector<64x128xbf16>, vector<64x128xbf16>, vector<64x128xbf16>, vector<64x128xbf16>, vector<64x128xbf16>, vector<64x128xbf16>, vector<64x128xbf16>, vector<64x128xbf16>, vector<64x128xbf16> -> vector<576x128xbf16>
    %c0_19 = arith.constant 0 : index
    %c0_20 = arith.constant 0 : index
    %21 = vector.load %arg2[%c0_19, %c0_20] : memref<64x576xbf16, #tpu.memory_space<vmem>>, vector<64x576xbf16>
    %cst_21 = arith.constant dense<0.000000e+00> : vector<64x128xf32>
    %22 = tpu.matmul %21, %20, %cst_21 {dimension_numbers = #tpu.dot_dimension_numbers<[1], [0], [0], [1], [0, 0, 1, 1], [], []>} : vector<64x576xbf16>, vector<576x128xbf16>, vector<64x128xf32> -> vector<64x128xf32>
    %c0_22 = arith.constant 0 : index
    %c0_23 = arith.constant 0 : index
    %23 = vector.load %arg3[%c0_22, %c0_23] : memref<64x1xf32, #tpu.memory_space<vmem>>, vector<64x1xf32>
    %24 = vector.broadcast %23 : vector<64x1xf32> to vector<64x128xf32>
    %25 = arith.addf %22, %24 : vector<64x128xf32>
    %cst_24 = arith.constant 0.000000e+00 : f32
    %26 = vector.broadcast %cst_24 : f32 to vector<64x128xf32>
    %27 = arith.maximumf %25, %26 : vector<64x128xf32>
    %28 = vector.broadcast %0 : vector<1x128xf32> to vector<64x128xf32>
    %29 = arith.mulf %27, %28 : vector<64x128xf32>
    %30 = arith.truncf %29 : vector<64x128xf32> to vector<64x128xbf16>
    %c0_25 = arith.constant 0 : index
    %c128_26 = arith.constant 128 : index
    %31 = vector.load %arg8[%c0_25, %c128_26] : memref<64x384xbf16, #tpu.memory_space<vmem>>, vector<64x128xbf16>
    tpu.vector_store %arg8[%c0_25, %c128_26], %30 {strides = array<i32>} : memref<64x384xbf16, #tpu.memory_space<vmem>>, vector<64x128xbf16>,
    %c0_27 = arith.constant 0 : index
    %c0_28 = arith.constant 0 : index
    %32 = vector.load %arg8[%c0_27, %c0_28] : memref<64x384xbf16, #tpu.memory_space<vmem>>, vector<64x128xbf16>
    tpu.vector_store %arg8[%c0_27, %c0_28], %1 {strides = array<i32>} : memref<64x384xbf16, #tpu.memory_space<vmem>>, vector<64x128xbf16>,
    %c0_29 = arith.constant 0 : index
    %c256 = arith.constant 256 : index
    %33 = vector.load %arg8[%c0_29, %c256] : memref<64x384xbf16, #tpu.memory_space<vmem>>, vector<64x128xbf16>
    tpu.vector_store %arg8[%c0_29, %c256], %1 {strides = array<i32>} : memref<64x384xbf16, #tpu.memory_space<vmem>>, vector<64x128xbf16>,
    %c0_30 = arith.constant 0 : index
    %c121_31 = arith.constant 121 : index
    %34 = vector.load %arg8[%c0_30, %c121_31] : memref<64x384xbf16, #tpu.memory_space<vmem>>, vector<64x128xbf16>
    %c0_32 = arith.constant 0 : index
    %c122_33 = arith.constant 122 : index
    %35 = vector.load %arg8[%c0_32, %c122_33] : memref<64x384xbf16, #tpu.memory_space<vmem>>, vector<64x128xbf16>
    %c0_34 = arith.constant 0 : index
    %c123_35 = arith.constant 123 : index
    %36 = vector.load %arg8[%c0_34, %c123_35] : memref<64x384xbf16, #tpu.memory_space<vmem>>, vector<64x128xbf16>
    %c0_36 = arith.constant 0 : index
    %c127_37 = arith.constant 127 : index
    %37 = vector.load %arg8[%c0_36, %c127_37] : memref<64x384xbf16, #tpu.memory_space<vmem>>, vector<64x128xbf16>
    %c0_38 = arith.constant 0 : index
    %c128_39 = arith.constant 128 : index
    %38 = vector.load %arg8[%c0_38, %c128_39] : memref<64x384xbf16, #tpu.memory_space<vmem>>, vector<64x128xbf16>
    %c0_40 = arith.constant 0 : index
    %c129_41 = arith.constant 129 : index
    %39 = vector.load %arg8[%c0_40, %c129_41] : memref<64x384xbf16, #tpu.memory_space<vmem>>, vector<64x128xbf16>
    %c0_42 = arith.constant 0 : index
    %c133_43 = arith.constant 133 : index
    %40 = vector.load %arg8[%c0_42, %c133_43] : memref<64x384xbf16, #tpu.memory_space<vmem>>, vector<64x128xbf16>
    %c0_44 = arith.constant 0 : index
    %c134_45 = arith.constant 134 : index
    %41 = vector.load %arg8[%c0_44, %c134_45] : memref<64x384xbf16, #tpu.memory_space<vmem>>, vector<64x128xbf16>
    %c0_46 = arith.constant 0 : index
    %c135_47 = arith.constant 135 : index
    %42 = vector.load %arg8[%c0_46, %c135_47] : memref<64x384xbf16, #tpu.memory_space<vmem>>, vector<64x128xbf16>
    %43 = tpu.concatenate %34, %35, %36, %37, %38, %39, %40, %41, %42 in 0 : vector<64x128xbf16>, vector<64x128xbf16>, vector<64x128xbf16>, vector<64x128xbf16>, vector<64x128xbf16>, vector<64x128xbf16>, vector<64x128xbf16>, vector<64x128xbf16>, vector<64x128xbf16> -> vector<576x128xbf16>
    %c0_48 = arith.constant 0 : index
    %c0_49 = arith.constant 0 : index
    %44 = vector.load %arg4[%c0_48, %c0_49] : memref<64x576xbf16, #tpu.memory_space<vmem>>, vector<64x576xbf16>
    %cst_50 = arith.constant dense<0.000000e+00> : vector<64x128xf32>
    %45 = tpu.matmul %44, %43, %cst_50 {dimension_numbers = #tpu.dot_dimension_numbers<[1], [0], [0], [1], [0, 0, 1, 1], [], []>} : vector<64x576xbf16>, vector<576x128xbf16>, vector<64x128xf32> -> vector<64x128xf32>
    %c0_51 = arith.constant 0 : index
    %c0_52 = arith.constant 0 : index
    %46 = vector.load %arg5[%c0_51, %c0_52] : memref<64x1xf32, #tpu.memory_space<vmem>>, vector<64x1xf32>
    %47 = vector.broadcast %46 : vector<64x1xf32> to vector<64x128xf32>
    %48 = arith.addf %45, %47 : vector<64x128xf32>
    %c0_53 = arith.constant 0 : index
    %c0_54 = arith.constant 0 : index
    %c128_55 = arith.constant 128 : index
    %49 = vector.load %arg1[%c0_53, %c0_54, %c128_55] : memref<1x64x384xbf16, #tpu.memory_space<vmem>>, vector<1x64x128xbf16>
    %50 = vector.shape_cast %49 : vector<1x64x128xbf16> to vector<64x128xbf16>
    %51 = arith.extf %50 : vector<64x128xbf16> to vector<64x128xf32>
    %52 = arith.addf %48, %51 : vector<64x128xf32>
    %cst_56 = arith.constant 0.000000e+00 : f32
    %53 = vector.broadcast %cst_56 : f32 to vector<64x128xf32>
    %54 = arith.maximumf %52, %53 : vector<64x128xf32>
    %55 = vector.broadcast %0 : vector<1x128xf32> to vector<64x128xf32>
    %56 = arith.mulf %54, %55 : vector<64x128xf32>
    %57 = arith.truncf %56 : vector<64x128xf32> to vector<64x128xbf16>
    %c0_57 = arith.constant 0 : index
    %c0_58 = arith.constant 0 : index
    %c128_59 = arith.constant 128 : index
    %58 = vector.load %arg7[%c0_57, %c0_58, %c128_59] : memref<1x64x384xbf16, #tpu.memory_space<vmem>>, vector<1x64x128xbf16>
    %59 = vector.shape_cast %58 : vector<1x64x128xbf16> to vector<64x128xbf16>
    %60 = vector.shape_cast %57 : vector<64x128xbf16> to vector<1x64x128xbf16>
    tpu.vector_store %arg7[%c0_57, %c0_58, %c128_59], %60 {strides = array<i32>} : memref<1x64x384xbf16, #tpu.memory_space<vmem>>, vector<1x64x128xbf16>,
    %c0_60 = arith.constant 0 : index
    %c0_61 = arith.constant 0 : index
    %c0_62 = arith.constant 0 : index
    %61 = vector.load %arg7[%c0_60, %c0_61, %c0_62] : memref<1x64x384xbf16, #tpu.memory_space<vmem>>, vector<1x64x128xbf16>
    %62 = vector.shape_cast %61 : vector<1x64x128xbf16> to vector<64x128xbf16>
    %63 = vector.shape_cast %1 : vector<64x128xbf16> to vector<1x64x128xbf16>
    tpu.vector_store %arg7[%c0_60, %c0_61, %c0_62], %63 {strides = array<i32>} : memref<1x64x384xbf16, #tpu.memory_space<vmem>>, vector<1x64x128xbf16>,
    %c0_63 = arith.constant 0 : index
    %c0_64 = arith.constant 0 : index
    %c256_65 = arith.constant 256 : index
    %64 = vector.load %arg7[%c0_63, %c0_64, %c256_65] : memref<1x64x384xbf16, #tpu.memory_space<vmem>>, vector<1x64x128xbf16>
    %65 = vector.shape_cast %64 : vector<1x64x128xbf16> to vector<64x128xbf16>
    %66 = vector.shape_cast %1 : vector<64x128xbf16> to vector<1x64x128xbf16>
    tpu.vector_store %arg7[%c0_63, %c0_64, %c256_65], %66 {strides = array<i32>} : memref<1x64x384xbf16, #tpu.memory_space<vmem>>, vector<1x64x128xbf16>,
    return
  }
  func.func @transform_0(%arg0: i32) -> (i32, i32, i32) {
    %c0_i32 = arith.constant 0 : i32
    %c0_i32_0 = arith.constant 0 : i32
    %c0_i32_1 = arith.constant 0 : i32
    return %arg0, %c0_i32, %c0_i32_0 : i32, i32, i32
  }
  func.func @transform_1(%arg0: i32) -> (i32, i32) {
    %c0_i32 = arith.constant 0 : i32
    %c0_i32_0 = arith.constant 0 : i32
    %c0_i32_1 = arith.constant 0 : i32
    return %c0_i32, %c0_i32_0 : i32, i32
  }
  func.func @transform_2(%arg0: i32) -> (i32, i32) {
    %c0_i32 = arith.constant 0 : i32
    %c0_i32_0 = arith.constant 0 : i32
    %c0_i32_1 = arith.constant 0 : i32
    return %c0_i32, %c0_i32_0 : i32, i32
  }
  func.func @transform_3(%arg0: i32) -> (i32, i32) {
    %c0_i32 = arith.constant 0 : i32
    %c0_i32_0 = arith.constant 0 : i32
    %c0_i32_1 = arith.constant 0 : i32
    return %c0_i32, %c0_i32_0 : i32, i32
  }
  func.func @transform_4(%arg0: i32) -> (i32, i32) {
    %c0_i32 = arith.constant 0 : i32
    %c0_i32_0 = arith.constant 0 : i32
    %c0_i32_1 = arith.constant 0 : i32
    return %c0_i32, %c0_i32_0 : i32, i32
  }
  func.func @transform_5(%arg0: i32) -> (i32, i32) {
    %c0_i32 = arith.constant 0 : i32
    %c0_i32_0 = arith.constant 0 : i32
    %c0_i32_1 = arith.constant 0 : i32
    return %c0_i32, %c0_i32_0 : i32, i32
  }
  func.func @transform_6(%arg0: i32) -> (i32, i32, i32) {
    %c0_i32 = arith.constant 0 : i32
    %c0_i32_0 = arith.constant 0 : i32
    %c0_i32_1 = arith.constant 0 : i32
    return %arg0, %c0_i32, %c0_i32_0 : i32, i32, i32
  }
}

module attributes {stable_mosaic.version = 11 : i64} {
  func.func @_frame_conv_proj_kernel(%arg0: i32, %arg1: memref<1x64x384xbf16, #tpu.memory_space<vmem>>, %arg2: memref<1x32x384xbf16, #tpu.memory_space<vmem>>, %arg3: memref<64x608xbf16, #tpu.memory_space<vmem>>, %arg4: memref<64x1xf32, #tpu.memory_space<vmem>>, %arg5: memref<1x128xf32, #tpu.memory_space<vmem>>, %arg6: memref<1x64x384xbf16, #tpu.memory_space<vmem>>) attributes {dimension_semantics = [#tpu.dimension_semantics<parallel>], iteration_bounds = array<i64: 2>, scalar_prefetch = 0 : i64, scratch_operands = 0 : i64, tpu.core_type = #tpu.core_type<tc>, window_params = [{transform_indices = @transform_0, window_bounds = array<i64: 1, 64, 384>}, {transform_indices = @transform_1, window_bounds = array<i64: 1, 32, 384>}, {pipeline_mode = #tpu.pipeline_mode<synchronous>, transform_indices = @transform_2, window_bounds = array<i64: 64, 608>}, {pipeline_mode = #tpu.pipeline_mode<synchronous>, transform_indices = @transform_3, window_bounds = array<i64: 64, 1>}, {pipeline_mode = #tpu.pipeline_mode<synchronous>, transform_indices = @transform_4, window_bounds = array<i64: 1, 128>}, {transform_indices = @transform_5, window_bounds = array<i64: 1, 64, 384>}]} {
    %c0 = arith.constant 0 : index
    %c0_0 = arith.constant 0 : index
    %0 = vector.load %arg5[%c0, %c0_0] : memref<1x128xf32, #tpu.memory_space<vmem>>, vector<1x128xf32>
    %c0_1 = arith.constant 0 : index
    %c0_2 = arith.constant 0 : index
    %c128 = arith.constant 128 : index
    %1 = vector.load %arg2[%c0_1, %c0_2, %c128] : memref<1x32x384xbf16, #tpu.memory_space<vmem>>, vector<1x32x128xbf16>
    %2 = vector.shape_cast %1 : vector<1x32x128xbf16> to vector<32x128xbf16>
    %c0_3 = arith.constant 0 : index
    %c0_4 = arith.constant 0 : index
    %c121 = arith.constant 121 : index
    %3 = vector.load %arg1[%c0_3, %c0_4, %c121] : memref<1x64x384xbf16, #tpu.memory_space<vmem>>, vector<1x64x128xbf16>
    %4 = vector.shape_cast %3 : vector<1x64x128xbf16> to vector<64x128xbf16>
    %c0_5 = arith.constant 0 : index
    %c0_6 = arith.constant 0 : index
    %c122 = arith.constant 122 : index
    %5 = vector.load %arg1[%c0_5, %c0_6, %c122] : memref<1x64x384xbf16, #tpu.memory_space<vmem>>, vector<1x64x128xbf16>
    %6 = vector.shape_cast %5 : vector<1x64x128xbf16> to vector<64x128xbf16>
    %c0_7 = arith.constant 0 : index
    %c0_8 = arith.constant 0 : index
    %c123 = arith.constant 123 : index
    %7 = vector.load %arg1[%c0_7, %c0_8, %c123] : memref<1x64x384xbf16, #tpu.memory_space<vmem>>, vector<1x64x128xbf16>
    %8 = vector.shape_cast %7 : vector<1x64x128xbf16> to vector<64x128xbf16>
    %c0_9 = arith.constant 0 : index
    %c0_10 = arith.constant 0 : index
    %c127 = arith.constant 127 : index
    %9 = vector.load %arg1[%c0_9, %c0_10, %c127] : memref<1x64x384xbf16, #tpu.memory_space<vmem>>, vector<1x64x128xbf16>
    %10 = vector.shape_cast %9 : vector<1x64x128xbf16> to vector<64x128xbf16>
    %c0_11 = arith.constant 0 : index
    %c0_12 = arith.constant 0 : index
    %c128_13 = arith.constant 128 : index
    %11 = vector.load %arg1[%c0_11, %c0_12, %c128_13] : memref<1x64x384xbf16, #tpu.memory_space<vmem>>, vector<1x64x128xbf16>
    %12 = vector.shape_cast %11 : vector<1x64x128xbf16> to vector<64x128xbf16>
    %c0_14 = arith.constant 0 : index
    %c0_15 = arith.constant 0 : index
    %c129 = arith.constant 129 : index
    %13 = vector.load %arg1[%c0_14, %c0_15, %c129] : memref<1x64x384xbf16, #tpu.memory_space<vmem>>, vector<1x64x128xbf16>
    %14 = vector.shape_cast %13 : vector<1x64x128xbf16> to vector<64x128xbf16>
    %c0_16 = arith.constant 0 : index
    %c0_17 = arith.constant 0 : index
    %c133 = arith.constant 133 : index
    %15 = vector.load %arg1[%c0_16, %c0_17, %c133] : memref<1x64x384xbf16, #tpu.memory_space<vmem>>, vector<1x64x128xbf16>
    %16 = vector.shape_cast %15 : vector<1x64x128xbf16> to vector<64x128xbf16>
    %c0_18 = arith.constant 0 : index
    %c0_19 = arith.constant 0 : index
    %c134 = arith.constant 134 : index
    %17 = vector.load %arg1[%c0_18, %c0_19, %c134] : memref<1x64x384xbf16, #tpu.memory_space<vmem>>, vector<1x64x128xbf16>
    %18 = vector.shape_cast %17 : vector<1x64x128xbf16> to vector<64x128xbf16>
    %c0_20 = arith.constant 0 : index
    %c0_21 = arith.constant 0 : index
    %c135 = arith.constant 135 : index
    %19 = vector.load %arg1[%c0_20, %c0_21, %c135] : memref<1x64x384xbf16, #tpu.memory_space<vmem>>, vector<1x64x128xbf16>
    %20 = vector.shape_cast %19 : vector<1x64x128xbf16> to vector<64x128xbf16>
    %21 = tpu.concatenate %4, %6, %8, %10, %12, %14, %16, %18, %20, %2 in 0 : vector<64x128xbf16>, vector<64x128xbf16>, vector<64x128xbf16>, vector<64x128xbf16>, vector<64x128xbf16>, vector<64x128xbf16>, vector<64x128xbf16>, vector<64x128xbf16>, vector<64x128xbf16>, vector<32x128xbf16> -> vector<608x128xbf16>
    %c0_22 = arith.constant 0 : index
    %c0_23 = arith.constant 0 : index
    %22 = vector.load %arg3[%c0_22, %c0_23] : memref<64x608xbf16, #tpu.memory_space<vmem>>, vector<64x608xbf16>
    %cst = arith.constant dense<0.000000e+00> : vector<64x128xf32>
    %23 = tpu.matmul %22, %21, %cst {dimension_numbers = #tpu.dot_dimension_numbers<[1], [0], [0], [1], [0, 0, 1, 1], [], []>} : vector<64x608xbf16>, vector<608x128xbf16>, vector<64x128xf32> -> vector<64x128xf32>
    %c0_24 = arith.constant 0 : index
    %c0_25 = arith.constant 0 : index
    %24 = vector.load %arg4[%c0_24, %c0_25] : memref<64x1xf32, #tpu.memory_space<vmem>>, vector<64x1xf32>
    %25 = vector.broadcast %24 : vector<64x1xf32> to vector<64x128xf32>
    %26 = arith.addf %23, %25 : vector<64x128xf32>
    %cst_26 = arith.constant 0.000000e+00 : f32
    %27 = vector.broadcast %cst_26 : f32 to vector<64x128xf32>
    %28 = arith.maximumf %26, %27 : vector<64x128xf32>
    %29 = vector.broadcast %0 : vector<1x128xf32> to vector<64x128xf32>
    %30 = arith.mulf %28, %29 : vector<64x128xf32>
    %cst_27 = arith.constant 0.000000e+00 : bf16
    %31 = vector.broadcast %cst_27 : bf16 to vector<64x128xbf16>
    %32 = arith.truncf %30 : vector<64x128xf32> to vector<64x128xbf16>
    %c0_28 = arith.constant 0 : index
    %c0_29 = arith.constant 0 : index
    %c128_30 = arith.constant 128 : index
    %33 = vector.load %arg6[%c0_28, %c0_29, %c128_30] : memref<1x64x384xbf16, #tpu.memory_space<vmem>>, vector<1x64x128xbf16>
    %34 = vector.shape_cast %33 : vector<1x64x128xbf16> to vector<64x128xbf16>
    %35 = vector.shape_cast %32 : vector<64x128xbf16> to vector<1x64x128xbf16>
    tpu.vector_store %arg6[%c0_28, %c0_29, %c128_30], %35 {strides = array<i32>} : memref<1x64x384xbf16, #tpu.memory_space<vmem>>, vector<1x64x128xbf16>,
    %c0_31 = arith.constant 0 : index
    %c0_32 = arith.constant 0 : index
    %c0_33 = arith.constant 0 : index
    %36 = vector.load %arg6[%c0_31, %c0_32, %c0_33] : memref<1x64x384xbf16, #tpu.memory_space<vmem>>, vector<1x64x128xbf16>
    %37 = vector.shape_cast %36 : vector<1x64x128xbf16> to vector<64x128xbf16>
    %38 = vector.shape_cast %31 : vector<64x128xbf16> to vector<1x64x128xbf16>
    tpu.vector_store %arg6[%c0_31, %c0_32, %c0_33], %38 {strides = array<i32>} : memref<1x64x384xbf16, #tpu.memory_space<vmem>>, vector<1x64x128xbf16>,
    %c0_34 = arith.constant 0 : index
    %c0_35 = arith.constant 0 : index
    %c256 = arith.constant 256 : index
    %39 = vector.load %arg6[%c0_34, %c0_35, %c256] : memref<1x64x384xbf16, #tpu.memory_space<vmem>>, vector<1x64x128xbf16>
    %40 = vector.shape_cast %39 : vector<1x64x128xbf16> to vector<64x128xbf16>
    %41 = vector.shape_cast %31 : vector<64x128xbf16> to vector<1x64x128xbf16>
    tpu.vector_store %arg6[%c0_34, %c0_35, %c256], %41 {strides = array<i32>} : memref<1x64x384xbf16, #tpu.memory_space<vmem>>, vector<1x64x128xbf16>,
    return
  }
  func.func @transform_0(%arg0: i32) -> (i32, i32, i32) {
    %c0_i32 = arith.constant 0 : i32
    %c0_i32_0 = arith.constant 0 : i32
    %c0_i32_1 = arith.constant 0 : i32
    return %arg0, %c0_i32, %c0_i32_0 : i32, i32, i32
  }
  func.func @transform_1(%arg0: i32) -> (i32, i32, i32) {
    %c0_i32 = arith.constant 0 : i32
    %c0_i32_0 = arith.constant 0 : i32
    %c0_i32_1 = arith.constant 0 : i32
    return %arg0, %c0_i32, %c0_i32_0 : i32, i32, i32
  }
  func.func @transform_2(%arg0: i32) -> (i32, i32) {
    %c0_i32 = arith.constant 0 : i32
    %c0_i32_0 = arith.constant 0 : i32
    %c0_i32_1 = arith.constant 0 : i32
    return %c0_i32, %c0_i32_0 : i32, i32
  }
  func.func @transform_3(%arg0: i32) -> (i32, i32) {
    %c0_i32 = arith.constant 0 : i32
    %c0_i32_0 = arith.constant 0 : i32
    %c0_i32_1 = arith.constant 0 : i32
    return %c0_i32, %c0_i32_0 : i32, i32
  }
  func.func @transform_4(%arg0: i32) -> (i32, i32) {
    %c0_i32 = arith.constant 0 : i32
    %c0_i32_0 = arith.constant 0 : i32
    %c0_i32_1 = arith.constant 0 : i32
    return %c0_i32, %c0_i32_0 : i32, i32
  }
  func.func @transform_5(%arg0: i32) -> (i32, i32, i32) {
    %c0_i32 = arith.constant 0 : i32
    %c0_i32_0 = arith.constant 0 : i32
    %c0_i32_1 = arith.constant 0 : i32
    return %arg0, %c0_i32, %c0_i32_0 : i32, i32, i32
  }
}

</mosaic_0001>

<bundles_post_ra>
// kernel: resnet56_forward.30
= control target key start
LH: loop header
LB: loop body
LE: loop exit
PB: predicated region body
PF: predicated region fallthrough
CT: control target
= control target key end

     0   :  { %s540_s12 = smov 0   ;;  %s542_s13 = smov 0   ;;  %s613_s0 = inlined_call_operand.vmem [shape: bf16[16,27], index: 0, kind: input, shape index: {}]   ;;  %s614_s1 = inlined_call_operand.vmem [shape: bf16[27,512], index: 1, kind: input, shape index: {}]   ;;  %s615_s2 = inlined_call_operand.vmem [shape: f32[16,1], index: 2, kind: input, shape index: {}]   ;;  %s616_s3 = inlined_call_operand.vmem [shape: bf16[16,512], index: 3, kind: output, shape index: {}]  }
   0x1   :  { %s544_s14 = smov 0  }
   0x2 LB: > { %s433_s15 = sadd.s32 4294967295, %s516_s14   ;;  %s557_s16 = sadd.s32 1, %s516_s14   ;;  %s516_s14 = sphi %s544_s14, %s620_s14   ;;  %s512_s13 = sphi %s542_s13, %s619_s13   ;;  %s508_s12 = sphi %s540_s12, %s618_s12  }
   0x3   : > { %s38_s17 = ssub.s32 %s516_s14, %s557_s16  ;;  %s41_s18 = sadd.s32 1, %s512_s13 }
   0x4   : > { %p39_p0 = scmp.eq.s32.totalorder %s38_s17, 0  ;;  %p48_p1 = scmp.ne.s32.totalorder %s512_s13, %s508_s12 }
   0x5   : > { %p49_p2 = scmp.eq.s32.totalorder %s516_s14, 0  ;;  %p99_p3 = scmp.eq.s32.totalorder %s433_s15, 1 }
   0x6   : > { %s568_s19 = scalar_select %p39_p0, %s512_s13, %s41_s18  }
   0x7   : > { %p50_p4 = por %p49_p2, %p48_p1  ;;  %p570_p5 = por %p99_p3, %p48_p1 }
   0x8   : > { %p436_p6 = scmp.ge.s32.totalorder %s516_s14, 2 }
   0xa   : > { %127 = sbr.rel (%p436_p6) target bundleno = 24 (0x18), region = 24 }
  0x11   : > { %130 = sbr.rel (!%p50_p4) target bundleno = 24 (0x18), region = 28  ;;  %s132_s21 = sand.u32 (%p50_p4), 1, %s512_s13  }
  0x12   : > { %s456_s22 = sshll.u32 (%p50_p4), %s516_s14, 3  ;;  %s437_s23 = sshll.u32 (%p50_p4), %s132_s21, 5 }
  0x13   : > { %s137_s26 = scalar_lea.vmem (%p50_p4), %s614_s1, %s456_s22  ;;  %s134_s27 = scalar_lea.vmem (%p50_p4), [#allocation2], %s437_s23 }
  0x14   : > { %v171_v0 = vld [vmem:[%s137_s26] sm:$0xff] (%p50_p4)  ;;  %v173_v1 = vld [vmem:[%s137_s26 + $0x10] sm:$0xff] (%p50_p4) }
  0x15   : > { %v175_v2 = vld [vmem:[%s137_s26 + $0x20] sm:$0xff] (%p50_p4)  ;;  %172 = vst [vmem:[%s134_s27] sm:$0xff] (%p50_p4), %v171_v0  ;;  %174 = vst [vmem:[%s134_s27 + $0x8] sm:$0xff] (%p50_p4), %v173_v1  ;;  %v177_v3 = vld [vmem:[%s137_s26 + $0x30] sm:$0xff] (%p50_p4) }
  0x16   : > { %176 = vst [vmem:[%s134_s27 + $0x10] sm:$0xff] (%p50_p4), %v175_v2  ;;  %178 = vst [vmem:[%s134_s27 + $0x18] sm:$0xff] (%p50_p4), %v177_v3 }
  0x18 PF: > { %p440_p7 = scmp.ge.s32.totalorder %s516_s14, 1  ;;  %p183_p8 = scmp.lt.s32.totalorder %s516_s14, 3 }
  0x1a   : > { %p184_p9 = pnand %p440_p7, %p183_p8 }
  0x1b   : > { %s190_s28 = sand.u32 (!%p184_p9), 1, %s508_s12   ;;  %vm260_vm0 = vcmask (!%p184_p9), 1044480   ;;  %vm261_vm1 = vcmask (!%p184_p9), 1045504   ;;  %v518_v4 = vmov (!%p184_p9), 65535   ;;  %v519_v6 = vmov (!%p184_p9), 0   ;;  %v221_v7 = vld [vmem:[%s615_s2] sm:$0xff] (!%p184_p9) }
  0x1c   : > { %187 = sbr.rel (%p184_p9) target bundleno = 269 (0x10d), region = 66  ;;  %s441_s29 = sshll.u32 (!%p184_p9), %s190_s28, 5  ;;  %v262_v5 = vsel (!%p184_p9), %vm260_vm0, 4294967295, %v518_v4  ;;  %302 = vmatprep.mubr.bf16.mxu0 (!%p184_p9), %v519_v6  ;;  %486 = vset.pattern.permute.xlu0 (!%p184_p9), %v519_v6  ;;  %v222_v8 = vld [vmem:[%s615_s2 + $0x8] sm:$0xff] (!%p184_p9)  ;;  %v493_v16 = vld [vmem:[%s613_s0] sm:$0xff] (!%p184_p9)   ;;  %vm256_vm2 = vcmask (!%p184_p9), 220160  }
  0x1d   : > { %s192_s7 = scalar_lea.vmem (!%p184_p9), [#allocation2], %s441_s29  ;;  %225 = vperm.xlu0 (!%p184_p9), %486, %v221_v7   ;;  %v263_v11 = vsel (!%p184_p9), %vm261_vm1, %v262_v5, 0  ;;  %s442_s10 = sshll.u32 (!%p184_p9), %s190_s28, 4 }
  0x1e   : > { %v487_v9 = vld [vmem:[%s192_s7 + $0x4] ss:$8 sps:$4 sm:$0xff] (!%p184_p9)   ;;  %v489_v10 = vld [vmem:[%s192_s7] ss:$8 sps:$4 sm:$0xff] (!%p184_p9)   ;;  %s211_s11 = scalar_lea.vmem (!%p184_p9), [#allocation3], %s442_s10 }
  0x1f   : > { %270 = vmatprep.subr.bf16.mxu0 (!%p184_p9), %v487_v9  ;;  %v490_v12 = vld [vmem:[%s192_s7 + $0x14] ss:$8 sps:$4 sm:$0x3f] (!%p184_p9)   ;;  %v492_v13 = vld [vmem:[%s192_s7 + $0x10] ss:$8 sps:$4 sm:$0x3f] (!%p184_p9)  }
  0x20   : > { %271 = vmatpush1.bf16.msra.mxu0 (!%p184_p9), %v489_v10  ;;  %v268_v14 = vand.u32 (!%p184_p9), %v490_v12, %v263_v11  ;;  %v265_v15 = vand.u32 (!%p184_p9), %v492_v13, %v263_v11 }
  0x21   : > { %230 = vperm.xlu0 (!%p184_p9), %486, %v222_v8  }
  0x22   : > { %272 = vmatprep.subr.bf16.mxu0 (!%p184_p9), %v268_v14 }
  0x23   : > { %s459_s12 = sshll.u32 (%p570_p5), %s433_s15, 3 }
  0x24   : > { %273 = vmatpush1.bf16.msra.mxu0 %v265_v15  ;;  %s340_s21 = scalar_lea.vmem (%p570_p5), %s616_s3, %s459_s12 }
  0x27   : > { %448 = vmatmul.mubr.msk.bf16.vlgmr.msra.gmra.mrb[0].mxu0 %vm256_vm2, %v493_v16 }
  0x9c   : > { %v226_v17 = vpop.permute.xlu0 %225 }
  0xa0   : > { %v231_v21 = vpop.permute.xlu0 %230 }
  0xfa   : > { %v304_v18 = vpop.f32.mrb[0].mxu0 }
  0xfb   : > { %v305_v19 = vadd.f32 %v304_v18, %v226_v17  ;;  %v306_v20 = vpop.f32.mrb[1].mxu0 }
  0xfc   : > { %v307_v22 = vadd.f32 %v306_v20, %v226_v17  ;;  %v308_v23 = vpop.f32.mrb[2].mxu0 }
  0xfd   : > { %v313_v24 = vmax.f32 %v305_v19, 0.0  ;;  %v309_v25 = vadd.f32 %v308_v23, %v231_v21  ;;  %v310_v26 = vpop.f32.mrb[3].mxu0 }
  0xfe   : > { %v314_v27 = vmax.f32 %v307_v22, 0.0  ;;  %v311_v28 = vadd.f32 %v310_v26, %v231_v21  ;;  %337 = sbr.rel (!%p570_p5) target bundleno = 269 (0x10d), region = 74 }
  0xff   : > { %v315_v29 = vmax.f32 %v309_v25, 0.0 }
 0x100   : > { %v457_v30 = vpack.c.bf16 %v314_v27, %v313_v24  ;;  %v316_v31 = vmax.f32 %v311_v28, 0.0 }
 0x102   : > { %329 = vst [vmem:[%s211_s11] sm:$0xff] %v457_v30  ;;  %v458_v32 = vpack.c.bf16 %v316_v31, %v315_v29 }
 0x104   : > { %330 = vst [vmem:[%s211_s11 + $0x8] sm:$0xff] %v458_v32 }
 0x109   : > { %v370_v33 = vld [vmem:[%s211_s11] sm:$0xff] }
 0x10a   : > { %371 = vst [vmem:[%s340_s21] sm:$0xff] %v370_v33 }
 0x10b   : > { %v372_v34 = vld [vmem:[%s211_s11 + $0x8] sm:$0xff] }
 0x10c   : > { %373 = vst [vmem:[%s340_s21 + $0x10] sm:$0xff] %v372_v34 }
 0x10d PF: > { %p10_p10 = scmp.ge.s32.totalorder %s557_s16, 4   ;;  %s618_s12 = smov %s512_s13 }
 0x10e   : > { %s619_s13 = smov %s568_s19  ;;  %s620_s14 = smov %s557_s16 }
 0x10f   :  { %12 = sbr.rel (!%p10_p10) target bundleno = 2 (0x2), region = 143 }

// kernel: resnet56_forward.31
= control target key start
LH: loop header
LB: loop body
LE: loop exit
PB: predicated region body
PF: predicated region fallthrough
CT: control target
= control target key end

     0   :  { %s1255_s21 = smov 0   ;;  %s1689_s0 = inlined_call_operand.vmem [shape: bf16[2,16,640], index: 0, kind: input, shape index: {}]   ;;  %s1690_s1 = inlined_call_operand.vmem [shape: bf16[16,144], index: 1, kind: input, shape index: {}]   ;;  %s1691_s2 = inlined_call_operand.vmem [shape: f32[16,1], index: 2, kind: input, shape index: {}]   ;;  %s1692_s3 = inlined_call_operand.vmem [shape: bf16[16,144], index: 3, kind: input, shape index: {}]   ;;  %s1693_s4 = inlined_call_operand.vmem [shape: f32[16,1], index: 4, kind: input, shape index: {}]   ;;  %s1694_s5 = inlined_call_operand.vmem [shape: f32[1,384], index: 5, kind: input, shape index: {}]   ;;  %s1695_s6 = inlined_call_operand.vmem [shape: bf16[2,16,640], index: 6, kind: output, shape index: {}]  }
   0x1 LB: > { %s1126_s22 = sadd.s32 4294967295, %s1208_s21   ;;  %p1130_p0 = scmp.ge.s32.totalorder %s1208_s21, 1  ;;  %s1208_s21 = sphi %s1255_s21, %s16_s21  }
   0x2   : > { %p212_p1 = scmp.lt.s32.totalorder %s1208_s21, 3 }
   0x4   : > { %p213_p2 = pnand %p1130_p0, %p212_p1 }
   0x5   : > { %p242_p3 = scmp.lt.s32.totalorder (!%p213_p2), %s1126_s22, 1  ;;  %s1210_s27 = smov (!%p213_p2), 127   ;;  %v1219_v9 = vmov (!%p213_p2), 0   ;;  %vm290_vm0 = vcmask (!%p213_p2), 1039360   ;;  %vm302_vm1 = vcmask (!%p213_p2), 1031168   ;;  %vm314_vm2 = vcmask (!%p213_p2), 900096  }
   0x6   : > { %216 = sbr.rel (%p213_p2) target bundleno = 1094 (0x446), region = 44  ;;  %s1211_s28 = smov (!%p213_p2), 126   ;;  %601 = vmatprep.subr.bf16.mxu1 (!%p213_p2), %v1219_v9  ;;  %1181 = vset.pattern.permute.xlu1 (!%p213_p2), %v1219_v9  ;;  %vm337_vm3 = vcmask (!%p213_p2), 891904   ;;  %vm364_vm4 = vcmask (!%p213_p2), 883712   ;;  %vm376_vm5 = vcmask (!%p213_p2), 752640   ;;  %vm388_vm6 = vcmask (!%p213_p2), 744448  }
   0x7   : > { %s1212_s29 = smov (!%p213_p2), 110   ;;  %s1213_s30 = smov (!%p213_p2), 109   ;;  %1182 = vset.pattern.permute.xlu0 (!%p213_p2), %v1219_v9  ;;  %vm499_vm7 = vcmask (!%p213_p2), 154624   ;;  %v1198_v60 = vld [vmem:[%s1690_s1 + $0x4] ss:$8 sps:$4 sm:$0xff] (!%p213_p2)   ;;  %vm554_vm8 = vcmask (!%p213_p2), 130048  }
   0x8   : > { %s1214_s7 = smov (!%p213_p2), 108   ;;  %s1215_s8 = smov (!%p213_p2), 92   ;;  %1147 = vmatprep.mubr.msk.bf16.mxu1 (!%p213_p2), %vm554_vm8, %v1198_v60  ;;  %1146 = vmatprep.mubr.msk.bf16.mxu0 (!%p213_p2), %vm554_vm8, %v1198_v60  ;;  %vm400_vm9 = vcmask (!%p213_p2), 736256  }
   0x9   : > { %s1216_s9 = smov (!%p213_p2), 91   ;;  %s1217_s10 = smov (!%p213_p2), 90  }
   0xa   : > { %s1218_s11 = smov (!%p213_p2), 19  }
   0xd   : > { %s1697_s22 = smov (!%p242_p3, %s1126_s22), 1 }
   0xe   : > { %s1162_s23 = smul.u32 40, %s1697_s22 }
  0x10   : > { %s1271_s26 = scalar_lea.vmem %s1689_s0, %s1162_s23 }
  0x11   : > { %v1183_v0 = vld [vmem:[%s1271_s26 + $0xc] ss:$20 sps:$4 sm:$0xff]   ;;  %v1185_v1 = vld [vmem:[%s1271_s26 + $0x4] ss:$20 sps:$4 sm:$0xff]   ;;  %v1187_v3 = vld [vmem:[%s1271_s26 + $0x8] ss:$20 sps:$4 sm:$0xff]  }
  0x12   : > { %288 = vrot.lane.b32.xlu1 %v1183_v0, %s1210_s27  ;;  %v1188_v2 = vld [vmem:[%s1271_s26] ss:$20 sps:$4 sm:$0xff]   ;;  %284 = vrot.lane.b32.xlu0 %v1185_v1, %s1210_s27  ;;  %v1191_v4 = vld [vmem:[%s1271_s26 + $0x8] ss:$20 sps:$4 sm:$0xff]  }
  0x13   : > { %v1189_v5 = vld [vmem:[%s1271_s26 + $0x4] ss:$20 sps:$4 sm:$0xff]   ;;  %v1192_v6 = vld [vmem:[%s1271_s26 + $0xc] ss:$20 sps:$4 sm:$0xff]  }
  0x14   : > { %v1193_v7 = vld [vmem:[%s1271_s26 + $0xc] ss:$20 sps:$4 sm:$0xff]   ;;  %v1195_v8 = vld [vmem:[%s1271_s26 + $0x10] ss:$20 sps:$4 sm:$0xff]  }
  0x16   : > { %282 = vrot.lane.b32.xlu1 %v1188_v2, %s1210_s27  ;;  %286 = vrot.lane.b32.xlu0 %v1187_v3, %s1210_s27 }
  0x1a   : > { %298 = vrot.lane.b32.xlu1 %v1187_v3, %s1211_s28  ;;  %296 = vrot.lane.b32.xlu0 %v1185_v1, %s1211_s28 }
  0x1e   : > { %294 = vrot.lane.b32.xlu1 %v1188_v2, %s1211_s28  ;;  %300 = vrot.lane.b32.xlu0 %v1183_v0, %s1211_s28 }
  0x22   : > { %310 = vrot.lane.b32.xlu1 %v1187_v3, %s1212_s29  ;;  %308 = vrot.lane.b32.xlu0 %v1185_v1, %s1212_s29 }
  0x26   : > { %306 = vrot.lane.b32.xlu1 %v1188_v2, %s1212_s29  ;;  %312 = vrot.lane.b32.xlu0 %v1183_v0, %s1212_s29 }
  0x2a   : > { %333 = vrot.lane.b32.xlu1 %v1191_v4, %s1213_s30  ;;  %331 = vrot.lane.b32.xlu0 %v1189_v5, %s1213_s30 }
  0x2e   : > { %356 = vrot.lane.b32.xlu1 %v1189_v5, %s1214_s7  ;;  %335 = vrot.lane.b32.xlu0 %v1192_v6, %s1213_s30 }
  0x32   : > { %360 = vrot.lane.b32.xlu1 %v1193_v7, %s1214_s7  ;;  %358 = vrot.lane.b32.xlu0 %v1191_v4, %s1214_s7 }
  0x36   : > { %368 = vrot.lane.b32.xlu1 %v1189_v5, %s1215_s8  ;;  %362 = vrot.lane.b32.xlu0 %v1195_v8, %s1214_s7 }
  0x3a   : > { %372 = vrot.lane.b32.xlu1 %v1193_v7, %s1215_s8  ;;  %370 = vrot.lane.b32.xlu0 %v1191_v4, %s1215_s8 }
  0x3e   : > { %380 = vrot.lane.b32.xlu1 %v1189_v5, %s1216_s9  ;;  %374 = vrot.lane.b32.xlu0 %v1195_v8, %s1215_s8 }
  0x42   : > { %384 = vrot.lane.b32.xlu1 %v1193_v7, %s1216_s9  ;;  %382 = vrot.lane.b32.xlu0 %v1191_v4, %s1216_s9 }
  0x46   : > { %392 = vrot.lane.b32.xlu1 %v1189_v5, %s1217_s10  ;;  %386 = vrot.lane.b32.xlu0 %v1195_v8, %s1216_s9 }
  0x4a   : > { %396 = vrot.lane.b32.xlu1 %v1193_v7, %s1217_s10  ;;  %394 = vrot.lane.b32.xlu0 %v1191_v4, %s1217_s10  ;;  %v407_v7 = vld [vmem:[%s1691_s2 + $0x8] sm:$0xff] }
  0x4e   : > { %429 = vrot.lane.b32.xlu1 %v1185_v1, %s1218_s11  ;;  %398 = vrot.lane.b32.xlu0 %v1195_v8, %s1217_s10 }
  0x52   : > { %427 = vrot.lane.b32.xlu1 %v1188_v2, %s1218_s11  ;;  %431 = vrot.lane.b32.xlu0 %v1187_v3, %s1218_s11 }
  0x56   : > { %433 = vrot.lane.b32.xlu0 %v1183_v0, %s1218_s11 }
  0x84   : > { %v289_v10 = vpop.permute.xlu1 %288  ;;  %v285_v11 = vpop.permute.xlu0 %284 }
  0x85   : > { %441 = vrot.lane.b32.xlu0 %v289_v10, %s1218_s11 }
  0x88   : > { %v283_v12 = vpop.permute.xlu1 %282  ;;  %v287_v13 = vpop.permute.xlu0 %286 }
  0x89   : > { %v293_v28 = vsel %vm290_vm0, %v287_v13, %v289_v10  ;;  %v292_v38 = vsel %vm290_vm0, %v285_v11, %v287_v13  ;;  %v291_v42 = vsel %vm290_vm0, %v283_v12, %v285_v11  ;;  %v406_v10 = vld [vmem:[%s1691_s2] sm:$0xff] }
  0x8c   : > { %v299_v14 = vpop.permute.xlu1 %298  ;;  %v297_v15 = vpop.permute.xlu0 %296 }
  0x8d   : > { %v304_v46 = vsel %vm302_vm1, %v297_v15, %v299_v14 }
  0x90   : > { %v295_v16 = vpop.permute.xlu1 %294  ;;  %v301_v17 = vpop.permute.xlu0 %300 }
  0x91   : > { %449 = vrot.lane.b32.xlu0 %v301_v17, %s1218_s11  ;;  %v305_v31 = vsel %vm302_vm1, %v299_v14, %v301_v17  ;;  %v303_v50 = vsel %vm302_vm1, %v295_v16, %v297_v15 }
  0x94   : > { %v1322_v18 = vpop.permute.xlu1 %310  ;;  %v1324_v19 = vpop.permute.xlu0 %308 }
  0x95   : > { %v316_v55 = vsel %vm314_vm2, %v1324_v19, %v1322_v18 }
  0x98   : > { %v1326_v20 = vpop.permute.xlu1 %306  ;;  %v313_v21 = vpop.permute.xlu0 %312 }
  0x99   : > { %457 = vrot.lane.b32.xlu0 %v313_v21, %s1218_s11  ;;  %v317_v34 = vsel %vm314_vm2, %v1322_v18, %v313_v21  ;;  %v315_v61 = vsel %vm314_vm2, %v1326_v20, %v1324_v19 }
  0x9c   : > { %v1329_v22 = vpop.permute.xlu1 %333  ;;  %v1331_v23 = vpop.permute.xlu0 %331 }
  0x9d   : > { %459 = vrot.lane.b32.xlu1 %v1331_v23, %s1218_s11  ;;  %v338_v2 = vsel %vm337_vm3, %v1331_v23, %v1329_v22 }
  0xa0   : > { %v1335_v24 = vpop.permute.xlu1 %356  ;;  %v336_v25 = vpop.permute.xlu0 %335 }
  0xa1   : > { %465 = vrot.lane.b32.xlu0 %v336_v25, %s1218_s11  ;;  %467 = vrot.lane.b32.xlu1 %v1335_v24, %s1218_s11  ;;  %v339_v37 = vsel %vm337_vm3, %v1329_v22, %v336_v25 }
  0xa4   : > { %v361_v26 = vpop.permute.xlu1 %360  ;;  %v1340_v27 = vpop.permute.xlu0 %358 }
  0xa5   : > { %439 = vrot.lane.b32.xlu0 %v293_v28, %s1218_s11  ;;  %v366_v41 = vsel %vm364_vm4, %v1340_v27, %v361_v26  ;;  %v365_v3 = vsel %vm364_vm4, %v1335_v24, %v1340_v27 }
  0xa8   : > { %v1344_v29 = vpop.permute.xlu1 %368  ;;  %v363_v30 = vpop.permute.xlu0 %362 }
  0xa9   : > { %475 = vrot.lane.b32.xlu1 %v1344_v29, %s1218_s11  ;;  %447 = vrot.lane.b32.xlu0 %v305_v31, %s1218_s11  ;;  %v367_v44 = vsel %vm364_vm4, %v361_v26, %v363_v30 }
  0xac   : > { %v373_v32 = vpop.permute.xlu1 %372  ;;  %v1350_v33 = vpop.permute.xlu0 %370 }
  0xad   : > { %455 = vrot.lane.b32.xlu0 %v317_v34, %s1218_s11  ;;  %v378_v48 = vsel %vm376_vm5, %v1350_v33, %v373_v32  ;;  %v377_v5 = vsel %vm376_vm5, %v1344_v29, %v1350_v33 }
  0xb0   : > { %v1355_v35 = vpop.permute.xlu1 %380  ;;  %v375_v36 = vpop.permute.xlu0 %374 }
  0xb1   : > { %483 = vrot.lane.b32.xlu1 %v1355_v35, %s1218_s11  ;;  %463 = vrot.lane.b32.xlu0 %v339_v37, %s1218_s11  ;;  %v379_v52 = vsel %vm376_vm5, %v373_v32, %v375_v36 }
  0xb4   : > { %v385_v39 = vpop.permute.xlu1 %384  ;;  %v383_v40 = vpop.permute.xlu0 %382 }
  0xb5   : > { %437 = vrot.lane.b32.xlu1 %v292_v38, %s1218_s11  ;;  %471 = vrot.lane.b32.xlu0 %v366_v41, %s1218_s11  ;;  %v390_v54 = vsel %vm388_vm6, %v383_v40, %v385_v39  ;;  %v389_v6 = vsel %vm388_vm6, %v1355_v35, %v383_v40 }
  0xb8   : > { %v393_v43 = vpop.permute.xlu1 %392  ;;  %v387_v45 = vpop.permute.xlu0 %386 }
  0xb9   : > { %435 = vrot.lane.b32.xlu1 %v291_v42, %s1218_s11  ;;  %473 = vrot.lane.b32.xlu0 %v367_v44, %s1218_s11  ;;  %v391_v62 = vsel %vm388_vm6, %v385_v39, %v387_v45 }
  0xbc   : > { %v397_v47 = vpop.permute.xlu1 %396  ;;  %v395_v49 = vpop.permute.xlu0 %394 }
  0xbd   : > { %445 = vrot.lane.b32.xlu1 %v304_v46, %s1218_s11  ;;  %479 = vrot.lane.b32.xlu0 %v378_v48, %s1218_s11  ;;  %v402_v1 = vsel %vm400_vm9, %v395_v49, %v397_v47  ;;  %v401_v8 = vsel %vm400_vm9, %v393_v43, %v395_v49 }
  0xc0   : > { %v430_v51 = vpop.permute.xlu1 %429  ;;  %v399_v53 = vpop.permute.xlu0 %398 }
  0xc1   : > { %443 = vrot.lane.b32.xlu1 %v303_v50, %s1218_s11  ;;  %481 = vrot.lane.b32.xlu0 %v379_v52, %s1218_s11  ;;  %v403_v4 = vsel %vm400_vm9, %v397_v47, %v399_v53 }
  0xc4   : > { %v428_v56 = vpop.permute.xlu1 %427  ;;  %v432_v57 = vpop.permute.xlu0 %431 }
  0xc5   : > { %453 = vrot.lane.b32.xlu1 %v316_v55, %s1218_s11  ;;  %v500_v58 = vsel %vm499_vm7, %v428_v56, %v430_v51  ;;  %487 = vrot.lane.b32.xlu0 %v390_v54, %s1218_s11  ;;  %v501_v59 = vsel %vm499_vm7, %v430_v51, %v432_v57 }
  0xc6   : > { %558 = vmatprep.subr.bf16.mxu0 %v501_v59 }
  0xc7   : > { %559 = vmatpush1.bf16.msra.mxu0 %v500_v58 }
  0xc8   : > { %v434_v63 = vpop.permute.xlu0 %433 }
  0xc9   : > { %451 = vrot.lane.b32.xlu1 %v315_v61, %s1218_s11  ;;  %489 = vrot.lane.b32.xlu0 %v391_v62, %s1218_s11  ;;  %v502_v0 = vsel %vm499_vm7, %v432_v57, %v434_v63  ;;  %v1196_v57 = vld [vmem:[%s1690_s1] ss:$8 sps:$4 sm:$0xff]  }
  0xca   : > { %602 = vmatpush1.bf16.msra.mxu1 %v502_v0 }
  0xcb   : > { %603 = vmatprep.subr.bf16.mxu1 %v1219_v9 }
  0xcd   : > { %461 = vrot.lane.b32.xlu1 %v338_v2, %s1218_s11  ;;  %495 = vrot.lane.b32.xlu0 %v402_v1, %s1218_s11 }
  0xd1   : > { %469 = vrot.lane.b32.xlu1 %v365_v3, %s1218_s11  ;;  %497 = vrot.lane.b32.xlu0 %v403_v4, %s1218_s11  ;;  %v649_v4 = vlaneseq }
  0xd5   : > { %477 = vrot.lane.b32.xlu1 %v377_v5, %s1218_s11  ;;  %415 = vperm.xlu0 %1182, %v407_v7   ;;  %v650_v5 = vshrl.u32 %v649_v4, 7 }
  0xd7   : > { %v659_v7 = vsub.s32 2, %v650_v5 }
  0xd9   : > { %485 = vrot.lane.b32.xlu1 %v389_v6, %s1218_s11  ;;  %741 = vrot.lane.b32.xlu0 %v1219_v9, %s1214_s7 }
  0xdd   : > { %493 = vrot.lane.b32.xlu1 %v401_v8, %s1218_s11  ;;  %752 = vrot.lane.b32.xlu0 %v1219_v9, %s1215_s8 }
  0xe1   : > { %491 = vrot.lane.b32.xlu1 %v393_v43, %s1218_s11  ;;  %763 = vrot.lane.b32.xlu0 %v1219_v9, %s1216_s9 }
  0xe5   : > { %410 = vperm.xlu1 %1181, %v406_v10   ;;  %v253_v10 = vld [vmem:[%s1694_s5] sm:$0x7] }
  0xe9   : > { %690 = vrot.lane.b32.xlu1 %v1219_v9, %s1210_s27 }
  0xed   : > { %701 = vrot.lane.b32.xlu1 %v1219_v9, %s1211_s28 }
  0xf1   : > { %712 = vrot.lane.b32.xlu1 %v1219_v9, %s1212_s29 }
  0xf7   : > { %v442_v11 = vpop.permute.xlu0 %441 }
 0x103   : > { %v450_v12 = vpop.permute.xlu0 %449 }
 0x10b   : > { %v458_v13 = vpop.permute.xlu0 %457 }
 0x10f   : > { %v460_v15 = vpop.permute.xlu1 %459 }
 0x113   : > { %v466_v14 = vpop.permute.xlu0 %465  ;;  %v468_v18 = vpop.permute.xlu1 %467 }
 0x117   : > { %v440_v16 = vpop.permute.xlu0 %439 }
 0x118   : > { %v505_v17 = vsel %vm499_vm7, %v440_v16, %v442_v11 }
 0x119   : > { %604 = vmatpush1.bf16.msra.mxu1 %v505_v17 }
 0x11a   : > { %605 = vmatprep.subr.bf16.mxu1 %v1219_v9 }
 0x11b   : > { %v448_v19 = vpop.permute.xlu0 %447  ;;  %v1444_v21 = vpop.permute.xlu1 %475 }
 0x11c   : > { %v508_v20 = vsel %vm499_vm7, %v448_v19, %v450_v12 }
 0x11d   : > { %606 = vmatpush1.bf16.msra.mxu1 %v508_v20 }
 0x11e   : > { %607 = vmatprep.subr.bf16.mxu1 %v1219_v9 }
 0x11f   : > { %v456_v22 = vpop.permute.xlu0 %455 }
 0x120   : > { %v511_v23 = vsel %vm499_vm7, %v456_v22, %v458_v13 }
 0x121   : > { %608 = vmatpush1.bf16.msra.mxu1 %v511_v23  ;;  %v651_v23 = vsub.s32 0, %v650_v5 }
 0x122   : > { %609 = vmatprep.subr.bf16.mxu1 %v1219_v9 }
 0x123   : > { %v1448_v24 = vpop.permute.xlu1 %483  ;;  %v464_v25 = vpop.permute.xlu0 %463 }
 0x124   : > { %v514_v26 = vsel %vm499_vm7, %v464_v25, %v466_v14 }
 0x125   : > { %610 = vmatpush1.bf16.msra.mxu1 %v514_v26 }
 0x126   : > { %611 = vmatprep.subr.bf16.mxu1 %v1219_v9 }
 0x127   : > { %v438_v27 = vpop.permute.xlu1 %437  ;;  %v472_v28 = vpop.permute.xlu0 %471 }
 0x128   : > { %v504_v29 = vsel %vm499_vm7, %v438_v27, %v440_v16 }
 0x129   : > { %560 = vmatprep.subr.bf16.mxu0 %v504_v29 }
 0x12b   : > { %v436_v30 = vpop.permute.xlu1 %435  ;;  %v474_v31 = vpop.permute.xlu0 %473 }
 0x12c   : > { %v503_v32 = vsel %vm499_vm7, %v436_v30, %v438_v27  ;;  %v517_v33 = vsel %vm499_vm7, %v472_v28, %v474_v31  ;;  %v1493_v31 = vrot.slane %v253_v10, %v651_v23 }
 0x12d   : > { %561 = vmatpush1.bf16.msra.mxu0 %v503_v32  ;;  %612 = vmatpush1.bf16.msra.mxu1 %v517_v33 }
 0x12e   : > { %613 = vmatprep.subr.bf16.mxu1 %v1219_v9 }
 0x12f   : > { %v446_v34 = vpop.permute.xlu1 %445  ;;  %v480_v35 = vpop.permute.xlu0 %479 }
 0x130   : > { %v507_v36 = vsel %vm499_vm7, %v446_v34, %v448_v19 }
 0x131   : > { %562 = vmatprep.subr.bf16.mxu0 %v507_v36 }
 0x133   : > { %v444_v37 = vpop.permute.xlu1 %443  ;;  %v482_v38 = vpop.permute.xlu0 %481 }
 0x134   : > { %v506_v39 = vsel %vm499_vm7, %v444_v37, %v446_v34  ;;  %v520_v40 = vsel %vm499_vm7, %v480_v35, %v482_v38 }
 0x135   : > { %563 = vmatpush1.bf16.msra.mxu0 %v506_v39  ;;  %614 = vmatpush1.bf16.msra.mxu1 %v520_v40 }
 0x136   : > { %615 = vmatprep.subr.bf16.mxu1 %v1219_v9 }
 0x137   : > { %v454_v41 = vpop.permute.xlu1 %453  ;;  %v488_v42 = vpop.permute.xlu0 %487 }
 0x138   : > { %v510_v43 = vsel %vm499_vm7, %v454_v41, %v456_v22 }
 0x139   : > { %564 = vmatprep.subr.bf16.mxu0 %v510_v43 }
 0x13b   : > { %v452_v44 = vpop.permute.xlu1 %451  ;;  %v490_v45 = vpop.permute.xlu0 %489 }
 0x13c   : > { %v509_v46 = vsel %vm499_vm7, %v452_v44, %v454_v41  ;;  %v523_v47 = vsel %vm499_vm7, %v488_v42, %v490_v45 }
 0x13d   : > { %565 = vmatpush1.bf16.msra.mxu0 %v509_v46  ;;  %616 = vmatpush1.bf16.msra.mxu1 %v523_v47 }
 0x13e   : > { %617 = vmatprep.subr.bf16.mxu1 %v1219_v9 }
 0x13f   : > { %v462_v48 = vpop.permute.xlu1 %461  ;;  %v496_v49 = vpop.permute.xlu0 %495 }
 0x140   : > { %v513_v50 = vsel %vm499_vm7, %v462_v48, %v464_v25  ;;  %v512_v51 = vsel %vm499_vm7, %v460_v15, %v462_v48  ;;  %v1485_v15 = vrot.slane %v253_v10, %v659_v7  ;;  %v655_v25 = vsub.s32 1, %v650_v5 }
 0x141   : > { %566 = vmatprep.subr.bf16.mxu0 %v513_v50 }
 0x142   : > { %567 = vmatpush1.bf16.msra.mxu0 %v512_v51 }
 0x143   : > { %v470_v52 = vpop.permute.xlu1 %469  ;;  %v498_v53 = vpop.permute.xlu0 %497 }
 0x144   : > { %v516_v54 = vsel %vm499_vm7, %v470_v52, %v472_v28  ;;  %v515_v55 = vsel %vm499_vm7, %v468_v18, %v470_v52  ;;  %v526_v56 = vsel %vm499_vm7, %v496_v49, %v498_v53 }
 0x145   : > { %568 = vmatprep.subr.bf16.mxu0 %v516_v54  ;;  %618 = vmatpush1.bf16.msra.mxu1 %v526_v56 }
 0x146   : > { %569 = vmatpush1.bf16.msra.mxu0 %v515_v55  ;;  %974 = vmatprep.subr.bf16.mxu1 %v1219_v9 }
 0x147   : > { %v478_v58 = vpop.permute.xlu1 %477 }
 0x148   : > { %v519_v59 = vsel %vm499_vm7, %v478_v58, %v480_v35  ;;  %v518_v60 = vsel %vm499_vm7, %v1444_v21, %v478_v58  ;;  %634 = vmatmul.mubr.bf16.vlgmr.msra.gmra.mrb[0].mxu1 %v1196_v57  ;;  %v1495_v35 = vrot.slane %v253_v10, %v655_v25 }
 0x149   : > { %570 = vmatprep.subr.bf16.mxu0 %v519_v59 }
 0x14a   : > { %571 = vmatpush1.bf16.msra.mxu0 %v518_v60 }
 0x14b   : > { %v486_v61 = vpop.permute.xlu1 %485 }
 0x14c   : > { %v522_v62 = vsel %vm499_vm7, %v486_v61, %v488_v42  ;;  %v521_v63 = vsel %vm499_vm7, %v1448_v24, %v486_v61 }
 0x14d   : > { %572 = vmatprep.subr.bf16.mxu0 %v522_v62 }
 0x14e   : > { %573 = vmatpush1.bf16.msra.mxu0 %v521_v63 }
 0x14f   : > { %v494_v0 = vpop.permute.xlu1 %493 }
 0x150   : > { %v525_v1 = vsel %vm499_vm7, %v494_v0, %v496_v49 }
 0x151   : > { %574 = vmatprep.subr.bf16.mxu0 %v525_v1 }
 0x153   : > { %v492_v2 = vpop.permute.xlu1 %491 }
 0x154   : > { %v524_v3 = vsel %vm499_vm7, %v492_v2, %v494_v0  ;;  %v416_v11 = vpop.permute.xlu0 %415 }
 0x155   : > { %575 = vmatpush1.bf16.msra.mxu0 %v524_v3 }
 0x158   : > { %591 = vmatmul.mubr.bf16.vlgmr.msra.gmra.mrb[0].mxu0 %v1196_v57  ;;  %v742_v45 = vpop.permute.xlu0 %741 }
 0x15c   : > { %v753_v47 = vpop.permute.xlu0 %752 }
 0x160   : > { %v764_v49 = vpop.permute.xlu0 %763 }
 0x164   : > { %v411_v6 = vpop.permute.xlu1 %410 }
 0x168   : > { %v691_v46 = vpop.permute.xlu1 %690 }
 0x16c   : > { %v702_v48 = vpop.permute.xlu1 %701 }
 0x170   : > { %v713_v50 = vpop.permute.xlu1 %712 }
 0x21b   : > { %v635_v8 = vpop.f32.mrb[0].mxu1 }
 0x21c   : > { %v636_v12 = vadd.f32 %v635_v8, %v411_v6  ;;  %v637_v13 = vpop.f32.mrb[1].mxu1 }
 0x21d   : > { %v638_v14 = vpop.f32.mrb[2].mxu1 }
 0x21e   : > { %v644_v16 = vmax.f32 %v636_v12, 0.0  ;;  %v639_v17 = vadd.f32 %v638_v14, %v416_v11  ;;  %v640_v18 = vpop.f32.mrb[3].mxu1 }
 0x220   : > { %v647_v19 = vmax.f32 %v639_v17, 0.0  ;;  %v666_v20 = vmul.f32 %v1485_v15, %v644_v16 }
 0x222   : > { %v669_v21 = vmul.f32 %v1485_v15, %v647_v19 }
 0x224   : > { %v672_v22 = vpack.c.bf16 %v669_v21, %v666_v20 }
 0x226   : > { %739 = vrot.lane.b32.xlu1 %v672_v22, %s1214_s7  ;;  %696 = vrot.lane.b32.xlu0 %v672_v22, %s1210_s27 }
 0x22a   : > { %750 = vrot.lane.b32.xlu1 %v672_v22, %s1215_s8  ;;  %707 = vrot.lane.b32.xlu0 %v672_v22, %s1211_s28 }
 0x22b   : > { %v592_v24 = vpop.f32.mrb[0].mxu0 }
 0x22c   : > { %v593_v26 = vadd.f32 %v592_v24, %v411_v6  ;;  %v594_v27 = vpop.f32.mrb[1].mxu0 }
 0x22d   : > { %v595_v28 = vadd.f32 %v594_v27, %v411_v6  ;;  %v596_v29 = vpop.f32.mrb[2].mxu0 }
 0x22e   : > { %v642_v30 = vmax.f32 %v593_v26, 0.0  ;;  %v597_v32 = vadd.f32 %v596_v29, %v416_v11  ;;  %v598_v33 = vpop.f32.mrb[3].mxu0  ;;  %761 = vrot.lane.b32.xlu1 %v672_v22, %s1216_s9  ;;  %718 = vrot.lane.b32.xlu0 %v672_v22, %s1212_s29 }
 0x22f   : > { %v643_v34 = vmax.f32 %v595_v28, 0.0  ;;  %v599_v36 = vadd.f32 %v598_v33, %v416_v11 }
 0x230   : > { %v645_v37 = vmax.f32 %v597_v32, 0.0  ;;  %v664_v39 = vmul.f32 %v1493_v31, %v642_v30 }
 0x231   : > { %v646_v38 = vmax.f32 %v599_v36, 0.0  ;;  %v665_v41 = vmul.f32 %v1495_v35, %v643_v34  ;;  %v1199_v34 = vld [vmem:[%s1692_s3 + $0x4] ss:$8 sps:$4 sm:$0xff]  }
 0x232   : > { %v667_v40 = vmul.f32 %v1493_v31, %v645_v37  ;;  %727 = vrot.lane.b32.xlu0 %v672_v22, %s1213_s30  ;;  %1151 = vmatprep.mubr.msk.bf16.mxu1 %vm554_vm8, %v1199_v34 }
 0x233   : > { %v668_v42 = vmul.f32 %v1495_v35, %v646_v38  ;;  %1150 = vmatprep.mubr.msk.bf16.mxu0 %vm554_vm8, %v1199_v34 }
 0x234   : > { %v670_v43 = vpack.c.bf16 %v667_v40, %v664_v39 }
 0x235   : > { %v671_v44 = vpack.c.bf16 %v668_v42, %v665_v41 }
 0x236   : > { %692 = vrot.lane.b32.xlu1 %v670_v43, %s1210_s27  ;;  %703 = vrot.lane.b32.xlu0 %v670_v43, %s1211_s28 }
 0x23a   : > { %735 = vrot.lane.b32.xlu1 %v670_v43, %s1214_s7  ;;  %714 = vrot.lane.b32.xlu0 %v670_v43, %s1212_s29 }
 0x23e   : > { %746 = vrot.lane.b32.xlu1 %v670_v43, %s1215_s8  ;;  %723 = vrot.lane.b32.xlu0 %v670_v43, %s1213_s30 }
 0x242   : > { %757 = vrot.lane.b32.xlu1 %v670_v43, %s1216_s9  ;;  %774 = vrot.lane.b32.xlu0 %v1219_v9, %s1217_s10 }
 0x246   : > { %768 = vrot.lane.b32.xlu1 %v670_v43, %s1217_s10  ;;  %808 = vrot.lane.b32.xlu0 %v672_v22, %s1218_s11 }
 0x24a   : > { %694 = vrot.lane.b32.xlu1 %v671_v44, %s1210_s27  ;;  %737 = vrot.lane.b32.xlu0 %v671_v44, %s1214_s7 }
 0x24e   : > { %705 = vrot.lane.b32.xlu1 %v671_v44, %s1211_s28  ;;  %748 = vrot.lane.b32.xlu0 %v671_v44, %s1215_s8 }
 0x252   : > { %716 = vrot.lane.b32.xlu1 %v671_v44, %s1212_s29  ;;  %759 = vrot.lane.b32.xlu0 %v671_v44, %s1216_s9 }
 0x256   : > { %725 = vrot.lane.b32.xlu1 %v671_v44, %s1213_s30  ;;  %770 = vrot.lane.b32.xlu0 %v671_v44, %s1217_s10 }
 0x25a   : > { %772 = vrot.lane.b32.xlu1 %v672_v22, %s1217_s10  ;;  %806 = vrot.lane.b32.xlu0 %v671_v44, %s1218_s11  ;;  %v782_v44 = vld [vmem:[%s1693_s4 + $0x8] sm:$0xff]  ;;  %s1623_s10 = scalar_lea.vmem %s1695_s6, %s1162_s23 }
 0x25b   : > { %1067 = vst [vmem:[%s1623_s10] sm:$0xf] %v1219_v9  ;;  %1068 = vst [vmem:[%s1623_s10 + $0x14] sm:$0xf] %v1219_v9 }
 0x25c   : > { %1069 = vst [vmem:[%s1623_s10 + $0x10] sm:$0xf] %v1219_v9  ;;  %1070 = vst [vmem:[%s1623_s10 + $0x24] sm:$0xf] %v1219_v9 }
 0x25e   : > { %804 = vrot.lane.b32.xlu1 %v670_v43, %s1218_s11 }
 0x262   : > { %802 = vrot.lane.b32.xlu1 %v1219_v9, %s1218_s11 }
 0x298   : > { %v697_v51 = vpop.permute.xlu0 %696  ;;  %v740_v52 = vpop.permute.xlu1 %739 }
 0x299   : > { %816 = vrot.lane.b32.xlu0 %v697_v51, %s1218_s11  ;;  %v745_v59 = vsel %vm364_vm4, %v740_v52, %v742_v45 }
 0x29c   : > { %v708_v53 = vpop.permute.xlu0 %707  ;;  %v751_v54 = vpop.permute.xlu1 %750 }
 0x29d   : > { %824 = vrot.lane.b32.xlu0 %v708_v53, %s1218_s11  ;;  %v756_v62 = vsel %vm376_vm5, %v751_v54, %v753_v47 }
 0x2a0   : > { %v719_v55 = vpop.permute.xlu0 %718  ;;  %v1531_v56 = vpop.permute.xlu1 %761 }
 0x2a1   : > { %832 = vrot.lane.b32.xlu0 %v719_v55, %s1218_s11  ;;  %v767_v1 = vsel %vm388_vm6, %v1531_v56, %v764_v49 }
 0x2a4   : > { %v728_v57 = vpop.permute.xlu0 %727 }
 0x2a5   : > { %840 = vrot.lane.b32.xlu0 %v728_v57, %s1218_s11 }
 0x2a8   : > { %v693_v58 = vpop.permute.xlu1 %692  ;;  %v704_v60 = vpop.permute.xlu0 %703 }
 0x2a9   : > { %848 = vrot.lane.b32.xlu0 %v745_v59, %s1218_s11  ;;  %v698_v12 = vsel %vm290_vm0, %v691_v46, %v693_v58  ;;  %v709_v17 = vsel %vm302_vm1, %v702_v48, %v704_v60  ;;  %v781_v48 = vld [vmem:[%s1693_s4] sm:$0xff] }
 0x2ac   : > { %v1536_v61 = vpop.permute.xlu1 %735  ;;  %v715_v63 = vpop.permute.xlu0 %714 }
 0x2ad   : > { %856 = vrot.lane.b32.xlu0 %v756_v62, %s1218_s11  ;;  %v720_v21 = vsel %vm314_vm2, %v713_v50, %v715_v63 }
 0x2b0   : > { %v1540_v0 = vpop.permute.xlu1 %746  ;;  %v724_v2 = vpop.permute.xlu0 %723 }
 0x2b1   : > { %834 = vrot.lane.b32.xlu1 %v724_v2, %s1218_s11  ;;  %864 = vrot.lane.b32.xlu0 %v767_v1, %s1218_s11 }
 0x2b4   : > { %v1546_v3 = vpop.permute.xlu1 %757  ;;  %v775_v4 = vpop.permute.xlu0 %774 }
 0x2b5   : > { %842 = vrot.lane.b32.xlu1 %v1536_v61, %s1218_s11 }
 0x2b8   : > { %v1550_v5 = vpop.permute.xlu1 %768  ;;  %v809_v6 = vpop.permute.xlu0 %808 }
 0x2b9   : > { %850 = vrot.lane.b32.xlu1 %v1540_v0, %s1218_s11 }
 0x2bc   : > { %v695_v7 = vpop.permute.xlu1 %694  ;;  %v738_v8 = vpop.permute.xlu0 %737 }
 0x2bd   : > { %v700_v10 = vsel %vm290_vm0, %v695_v7, %v697_v51  ;;  %858 = vrot.lane.b32.xlu1 %v1546_v3, %s1218_s11  ;;  %v744_v25 = vsel %vm364_vm4, %v738_v8, %v740_v52  ;;  %v699_v26 = vsel %vm290_vm0, %v693_v58, %v695_v7  ;;  %v743_v42 = vsel %vm364_vm4, %v1536_v61, %v738_v8 }
 0x2be   : > { %814 = vrot.lane.b32.xlu0 %v700_v10, %s1218_s11 }
 0x2c0   : > { %v706_v11 = vpop.permute.xlu1 %705  ;;  %v749_v13 = vpop.permute.xlu0 %748 }
 0x2c1   : > { %v711_v14 = vsel %vm302_vm1, %v706_v11, %v708_v53  ;;  %810 = vrot.lane.b32.xlu1 %v698_v12, %s1218_s11  ;;  %v755_v30 = vsel %vm376_vm5, %v749_v13, %v751_v54  ;;  %v710_v32 = vsel %vm302_vm1, %v704_v60, %v706_v11  ;;  %v754_v45 = vsel %vm376_vm5, %v1540_v0, %v749_v13 }
 0x2c2   : > { %822 = vrot.lane.b32.xlu0 %v711_v14, %s1218_s11 }
 0x2c4   : > { %v717_v16 = vpop.permute.xlu1 %716  ;;  %v760_v18 = vpop.permute.xlu0 %759 }
 0x2c5   : > { %v722_v19 = vsel %vm314_vm2, %v717_v16, %v719_v55  ;;  %818 = vrot.lane.b32.xlu1 %v709_v17, %s1218_s11  ;;  %v766_v37 = vsel %vm388_vm6, %v760_v18, %v1531_v56  ;;  %v721_v38 = vsel %vm314_vm2, %v715_v63, %v717_v16  ;;  %v765_v46 = vsel %vm388_vm6, %v1546_v3, %v760_v18 }
 0x2c6   : > { %830 = vrot.lane.b32.xlu0 %v722_v19, %s1218_s11 }
 0x2c8   : > { %v726_v20 = vpop.permute.xlu1 %725  ;;  %v771_v22 = vpop.permute.xlu0 %770 }
 0x2c9   : > { %v730_v23 = vsel %vm337_vm3, %v726_v20, %v728_v57  ;;  %826 = vrot.lane.b32.xlu1 %v720_v21, %s1218_s11  ;;  %v729_v40 = vsel %vm337_vm3, %v724_v2, %v726_v20  ;;  %v776_v47 = vsel %vm400_vm9, %v1550_v5, %v771_v22 }
 0x2ca   : > { %838 = vrot.lane.b32.xlu0 %v730_v23, %s1218_s11 }
 0x2cc   : > { %v773_v24 = vpop.permute.xlu1 %772  ;;  %v807_v27 = vpop.permute.xlu0 %806 }
 0x2cd   : > { %v876_v28 = vsel %vm499_vm7, %v807_v27, %v809_v6  ;;  %812 = vrot.lane.b32.xlu1 %v699_v26, %s1218_s11  ;;  %v777_v41 = vsel %vm400_vm9, %v771_v22, %v773_v24  ;;  %v778_v43 = vsel %vm400_vm9, %v773_v24, %v775_v4 }
 0x2ce   : > { %846 = vrot.lane.b32.xlu0 %v744_v25, %s1218_s11  ;;  %975 = vmatpush1.bf16.msra.mxu1 %v876_v28 }
 0x2cf   : > { %976 = vmatprep.subr.bf16.mxu1 %v1219_v9 }
 0x2d0   : > { %v805_v29 = vpop.permute.xlu1 %804 }
 0x2d1   : > { %v875_v33 = vsel %vm499_vm7, %v805_v29, %v807_v27  ;;  %820 = vrot.lane.b32.xlu1 %v710_v32, %s1218_s11 }
 0x2d2   : > { %854 = vrot.lane.b32.xlu0 %v755_v30, %s1218_s11  ;;  %931 = vmatprep.subr.bf16.mxu0 %v875_v33 }
 0x2d4   : > { %v803_v36 = vpop.permute.xlu1 %802 }
 0x2d5   : > { %v874_v39 = vsel %vm499_vm7, %v803_v36, %v805_v29  ;;  %828 = vrot.lane.b32.xlu1 %v721_v38, %s1218_s11 }
 0x2d6   : > { %862 = vrot.lane.b32.xlu0 %v766_v37, %s1218_s11  ;;  %932 = vmatpush1.bf16.msra.mxu0 %v874_v39 }
 0x2d9   : > { %836 = vrot.lane.b32.xlu1 %v729_v40, %s1218_s11 }
 0x2da   : > { %870 = vrot.lane.b32.xlu0 %v777_v41, %s1218_s11 }
 0x2dd   : > { %844 = vrot.lane.b32.xlu1 %v743_v42, %s1218_s11 }
 0x2de   : > { %872 = vrot.lane.b32.xlu0 %v778_v43, %s1218_s11 }
 0x2e1   : > { %852 = vrot.lane.b32.xlu1 %v754_v45, %s1218_s11  ;;  %v1016_v45 = vld [vmem:[%s1271_s26 + $0xc] ss:$20 sps:$4 sm:$0xff]  }
 0x2e2   : > { %790 = vperm.xlu0 %1182, %v782_v44  }
 0x2e5   : > { %860 = vrot.lane.b32.xlu1 %v765_v46, %s1218_s11  ;;  %v1021_v46 = vunpack.c.l.bf16 %v1016_v45 }
 0x2e9   : > { %868 = vrot.lane.b32.xlu1 %v776_v47, %s1218_s11 }
 0x2ed   : > { %866 = vrot.lane.b32.xlu1 %v1550_v5, %s1218_s11 }
 0x2f1   : > { %785 = vperm.xlu1 %1181, %v781_v48  }
 0x30b   : > { %v817_v49 = vpop.permute.xlu0 %816 }
 0x30f   : > { %v825_v50 = vpop.permute.xlu0 %824 }
 0x313   : > { %v833_v51 = vpop.permute.xlu0 %832 }
 0x317   : > { %v841_v52 = vpop.permute.xlu0 %840 }
 0x31b   : > { %v849_v53 = vpop.permute.xlu0 %848 }
 0x31f   : > { %v857_v55 = vpop.permute.xlu0 %856 }
 0x323   : > { %v835_v54 = vpop.permute.xlu1 %834  ;;  %v865_v57 = vpop.permute.xlu0 %864 }
 0x327   : > { %v843_v56 = vpop.permute.xlu1 %842 }
 0x32b   : > { %v1633_v58 = vpop.permute.xlu1 %850 }
 0x32f   : > { %v1635_v59 = vpop.permute.xlu1 %858 }
 0x330   : > { %v815_v60 = vpop.permute.xlu0 %814 }
 0x331   : > { %v879_v61 = vsel %vm499_vm7, %v815_v60, %v817_v49 }
 0x332   : > { %977 = vmatpush1.bf16.msra.mxu1 %v879_v61 }
 0x333   : > { %978 = vmatprep.subr.bf16.mxu1 %v1219_v9  ;;  %v811_v62 = vpop.permute.xlu1 %810 }
 0x334   : > { %v823_v63 = vpop.permute.xlu0 %822 }
 0x335   : > { %v882_v0 = vsel %vm499_vm7, %v823_v63, %v825_v50 }
 0x336   : > { %979 = vmatpush1.bf16.msra.mxu1 %v882_v0  ;;  %v1015_v0 = vld [vmem:[%s1271_s26 + $0x4] sm:$0xff] }
 0x337   : > { %980 = vmatprep.subr.bf16.mxu1 %v1219_v9  ;;  %v819_v1 = vpop.permute.xlu1 %818 }
 0x338   : > { %v831_v2 = vpop.permute.xlu0 %830 }
 0x339   : > { %v885_v3 = vsel %vm499_vm7, %v831_v2, %v833_v51  ;;  %v1024_v51 = vunpack.c.h.bf16 %v1016_v45 }
 0x33a   : > { %981 = vmatpush1.bf16.msra.mxu1 %v885_v3 }
 0x33b   : > { %982 = vmatprep.subr.bf16.mxu1 %v1219_v9  ;;  %v827_v4 = vpop.permute.xlu1 %826 }
 0x33c   : > { %v839_v5 = vpop.permute.xlu0 %838 }
 0x33d   : > { %v888_v6 = vsel %vm499_vm7, %v839_v5, %v841_v52 }
 0x33e   : > { %983 = vmatpush1.bf16.msra.mxu1 %v888_v6 }
 0x33f   : > { %984 = vmatprep.subr.bf16.mxu1 %v1219_v9  ;;  %v813_v7 = vpop.permute.xlu1 %812 }
 0x340   : > { %v847_v8 = vpop.permute.xlu0 %846  ;;  %v877_v10 = vsel %vm499_vm7, %v811_v62, %v813_v7  ;;  %v878_v12 = vsel %vm499_vm7, %v813_v7, %v815_v60 }
 0x341   : > { %v891_v11 = vsel %vm499_vm7, %v847_v8, %v849_v53  ;;  %933 = vmatprep.subr.bf16.mxu0 %v878_v12 }
 0x342   : > { %985 = vmatpush1.bf16.msra.mxu1 %v891_v11  ;;  %934 = vmatpush1.bf16.msra.mxu0 %v877_v10 }
 0x343   : > { %986 = vmatprep.subr.bf16.mxu1 %v1219_v9  ;;  %v821_v13 = vpop.permute.xlu1 %820 }
 0x344   : > { %v855_v14 = vpop.permute.xlu0 %854  ;;  %v880_v16 = vsel %vm499_vm7, %v819_v1, %v821_v13  ;;  %v881_v18 = vsel %vm499_vm7, %v821_v13, %v823_v63  ;;  %v1017_v1 = vld [vmem:[%s1271_s26 + $0x18] sm:$0xff] }
 0x345   : > { %v894_v17 = vsel %vm499_vm7, %v855_v14, %v857_v55  ;;  %935 = vmatprep.subr.bf16.mxu0 %v881_v18  ;;  %v1022_v7 = vunpack.c.l.bf16 %v1017_v1  ;;  %v1023_v11 = vunpack.c.h.bf16 %v1017_v1 }
 0x346   : > { %987 = vmatpush1.bf16.msra.mxu1 %v894_v17  ;;  %936 = vmatpush1.bf16.msra.mxu0 %v880_v16 }
 0x347   : > { %988 = vmatprep.subr.bf16.mxu1 %v1219_v9  ;;  %v829_v19 = vpop.permute.xlu1 %828 }
 0x348   : > { %v863_v20 = vpop.permute.xlu0 %862  ;;  %v883_v21 = vsel %vm499_vm7, %v827_v4, %v829_v19  ;;  %v884_v23 = vsel %vm499_vm7, %v829_v19, %v831_v2  ;;  %v1019_v2 = vunpack.c.l.bf16 %v1015_v0  ;;  %v1020_v4 = vunpack.c.h.bf16 %v1015_v0 }
 0x349   : > { %v897_v22 = vsel %vm499_vm7, %v863_v20, %v865_v57  ;;  %937 = vmatprep.subr.bf16.mxu0 %v884_v23 }
 0x34a   : > { %989 = vmatpush1.bf16.msra.mxu1 %v897_v22  ;;  %938 = vmatpush1.bf16.msra.mxu0 %v883_v21 }
 0x34b   : > { %990 = vmatprep.subr.bf16.mxu1 %v1219_v9  ;;  %v837_v24 = vpop.permute.xlu1 %836  ;;  %v1201_v9 = vld [vmem:[%s1692_s3] ss:$8 sps:$4 sm:$0xff]  }
 0x34c   : > { %v871_v25 = vpop.permute.xlu0 %870  ;;  %v886_v26 = vsel %vm499_vm7, %v835_v54, %v837_v24  ;;  %v887_v27 = vsel %vm499_vm7, %v837_v24, %v839_v5 }
 0x34d   : > { %939 = vmatprep.subr.bf16.mxu0 %v887_v27 }
 0x34e   : > { %940 = vmatpush1.bf16.msra.mxu0 %v886_v26 }
 0x34f   : > { %v845_v28 = vpop.permute.xlu1 %844 }
 0x350   : > { %v873_v29 = vpop.permute.xlu0 %872  ;;  %v889_v30 = vsel %vm499_vm7, %v843_v56, %v845_v28  ;;  %v890_v33 = vsel %vm499_vm7, %v845_v28, %v847_v8 }
 0x351   : > { %v900_v32 = vsel %vm499_vm7, %v871_v25, %v873_v29  ;;  %941 = vmatprep.subr.bf16.mxu0 %v890_v33 }
 0x352   : > { %991 = vmatpush1.bf16.msra.mxu1 %v900_v32  ;;  %942 = vmatpush1.bf16.msra.mxu0 %v889_v30 }
 0x353   : > { %v853_v34 = vpop.permute.xlu1 %852 }
 0x354   : > { %v892_v36 = vsel %vm499_vm7, %v1633_v58, %v853_v34  ;;  %v893_v37 = vsel %vm499_vm7, %v853_v34, %v855_v14 }
 0x355   : > { %1007 = vmatmul.mubr.bf16.vlgmr.msra.gmra.mrb[4].mxu1 %v1201_v9  ;;  %943 = vmatprep.subr.bf16.mxu0 %v893_v37 }
 0x356   : > { %944 = vmatpush1.bf16.msra.mxu0 %v892_v36 }
 0x357   : > { %v861_v38 = vpop.permute.xlu1 %860 }
 0x358   : > { %v895_v39 = vsel %vm499_vm7, %v1635_v59, %v861_v38  ;;  %v896_v40 = vsel %vm499_vm7, %v861_v38, %v863_v20 }
 0x359   : > { %945 = vmatprep.subr.bf16.mxu0 %v896_v40 }
 0x35a   : > { %946 = vmatpush1.bf16.msra.mxu0 %v895_v39 }
 0x35b   : > { %v869_v41 = vpop.permute.xlu1 %868 }
 0x35c   : > { %v899_v42 = vsel %vm499_vm7, %v869_v41, %v871_v25 }
 0x35d   : > { %947 = vmatprep.subr.bf16.mxu0 %v899_v42 }
 0x35f   : > { %v867_v43 = vpop.permute.xlu1 %866 }
 0x360   : > { %v898_v44 = vsel %vm499_vm7, %v867_v43, %v869_v41 }
 0x361   : > { %948 = vmatpush1.bf16.msra.mxu0 %v898_v44  ;;  %v791_v52 = vpop.permute.xlu0 %790 }
 0x364   : > { %964 = vmatmul.mubr.bf16.vlgmr.msra.gmra.mrb[4].mxu0 %v1201_v9 }
 0x370   : > { %v786_v47 = vpop.permute.xlu1 %785 }
 0x428   : > { %v1008_v48 = vpop.f32.mrb[4].mxu1 }
 0x429   : > { %v1009_v49 = vadd.f32 %v1008_v48, %v786_v47  ;;  %v1010_v50 = vpop.f32.mrb[5].mxu1 }
 0x42a   : > { %v1011_v53 = vpop.f32.mrb[6].mxu1 }
 0x42b   : > { %v1027_v54 = vadd.f32 %v1021_v46, %v1009_v49  ;;  %v1012_v55 = vadd.f32 %v1011_v53, %v791_v52  ;;  %v1013_v56 = vpop.f32.mrb[7].mxu1 }
 0x42d   : > { %v1033_v57 = vmax.f32 %v1027_v54, 0.0  ;;  %v1030_v58 = vadd.f32 %v1024_v51, %v1012_v55 }
 0x42f   : > { %v1039_v59 = vmul.f32 %v1033_v57, %v1485_v15  ;;  %v1036_v60 = vmax.f32 %v1030_v58, 0.0 }
 0x431   : > { %v1159_v61 = vpack.c.bf16 %v1039_v59, %v1039_v59  ;;  %v1042_v62 = vmul.f32 %v1036_v60, %v1485_v15 }
 0x433   : > { %1064 = vst [vmem:[%s1623_s10 + $0xc] sm:$0xf] %v1159_v61  ;;  %v1161_v63 = vpack.c.bf16 %v1042_v62, %v1042_v62 }
 0x435   : > { %1066 = vst [vmem:[%s1623_s10 + $0x20] sm:$0xf] %v1161_v63 }
 0x437   : > { %v965_v3 = vpop.f32.mrb[4].mxu0 }
 0x438   : > { %v966_v5 = vadd.f32 %v965_v3, %v786_v47  ;;  %v967_v6 = vpop.f32.mrb[5].mxu0 }
 0x439   : > { %v968_v8 = vadd.f32 %v967_v6, %v786_v47  ;;  %v969_v10 = vpop.f32.mrb[6].mxu0 }
 0x43a   : > { %v1025_v12 = vadd.f32 %v1019_v2, %v966_v5  ;;  %v970_v13 = vadd.f32 %v969_v10, %v791_v52  ;;  %v971_v14 = vpop.f32.mrb[7].mxu0 }
 0x43b   : > { %v1026_v15 = vadd.f32 %v1020_v4, %v968_v8  ;;  %v972_v16 = vadd.f32 %v971_v14, %v791_v52 }
 0x43c   : > { %v1031_v17 = vmax.f32 %v1025_v12, 0.0  ;;  %v1028_v18 = vadd.f32 %v1022_v7, %v970_v13 }
 0x43d   : > { %v1032_v19 = vmax.f32 %v1026_v15, 0.0  ;;  %v1029_v20 = vadd.f32 %v1023_v11, %v972_v16 }
 0x43e   : > { %v1037_v21 = vmul.f32 %v1031_v17, %v1493_v31  ;;  %v1034_v22 = vmax.f32 %v1028_v18, 0.0 }
 0x43f   : > { %v1038_v23 = vmul.f32 %v1032_v19, %v1495_v35  ;;  %v1035_v24 = vmax.f32 %v1029_v20, 0.0 }
 0x440   : > { %v1040_v25 = vmul.f32 %v1034_v22, %v1493_v31 }
 0x441   : > { %v1158_v26 = vpack.c.bf16 %v1038_v23, %v1037_v21  ;;  %v1041_v27 = vmul.f32 %v1035_v24, %v1495_v35 }
 0x443   : > { %1063 = vst [vmem:[%s1623_s10 + $0x4] sm:$0xff] %v1158_v26  ;;  %v1160_v28 = vpack.c.bf16 %v1041_v27, %v1040_v25 }
 0x445   : > { %1065 = vst [vmem:[%s1623_s10 + $0x18] sm:$0xff] %v1160_v28 }
 0x446 PF: > { %s16_s21 = sadd.s32 1, %s1208_s21  }
 0x447   : > { %p13_p4 = scmp.ge.s32.totalorder %s16_s21, 4  }
 0x449   :  { %15 = sbr.rel (!%p13_p4) target bundleno = 1 (0x1), region = 74 }

// kernel: resnet56_forward.40
= control target key start
LH: loop header
LB: loop body
LE: loop exit
PB: predicated region body
PF: predicated region fallthrough
CT: control target
= control target key end

     0   :  { %v287_v0 = vmov 0   ;;  %vm133_vm0 = vcmask 130048   ;;  %s365_s1 = inlined_call_operand.vmem [shape: bf16[144,128], index: 1, kind: input, shape index: {}]   ;;  %s366_s0 = inlined_call_operand.vmem [shape: bf16[32,144], index: 0, kind: input, shape index: {}]   ;;  %s367_s2 = inlined_call_operand.vmem [shape: f32[32,1], index: 2, kind: input, shape index: {}]   ;;  %s368_s3 = inlined_call_operand.vmem [shape: bf16[32,128], index: 3, kind: output, shape index: {}]  }
   0x1   :  { %140 = vmatprep.subr.bf16.mxu0 %v287_v0  ;;  %251 = vmatprep.subr.bf16.mxu1 %v287_v0  ;;  %v272_v1 = vld [vmem:[%s365_s1] sm:$0xff]   ;;  %v273_v2 = vld [vmem:[%s365_s1 + $0x8] sm:$0xff]   ;;  %v274_v3 = vld [vmem:[%s365_s1 + $0x10] sm:$0xff]  }
   0x2   :  { %271 = vset.pattern.permute.xlu1 %v287_v0  ;;  %270 = vset.pattern.permute.xlu0 %v287_v0  ;;  %v275_v4 = vld [vmem:[%s365_s1 + $0x18] sm:$0xff]   ;;  %v283_v5 = vld [vmem:[%s366_s0 + $0x4] ss:$8 sps:$4 sm:$0xff]   ;;  %v39_v7 = vld [vmem:[%s367_s2 + $0x10] sm:$0xff] }
   0x3   :  { %141 = vmatpush1.bf16.msra.mxu0 %v272_v1  ;;  %260 = vmatpush1.bf16.msra.mxu1 %v272_v1  ;;  %v286_v6 = vld [vmem:[%s366_s0 + $0x14] ss:$8 sps:$4 sm:$0xff]   ;;  %v37_v8 = vld [vmem:[%s367_s2] sm:$0xff]  ;;  %v38_v11 = vld [vmem:[%s367_s2 + $0x8] sm:$0xff] }
   0x4   :  { %142 = vmatprep.subr.bf16.mxu0 %v287_v0  ;;  %252 = vmatprep.subr.bf16.mxu1 %v287_v0  ;;  %v40_v9 = vld [vmem:[%s367_s2 + $0x18] sm:$0xff]  ;;  %v276_v10 = vld [vmem:[%s365_s1 + $0x20] sm:$0xff]   ;;  %v277_v12 = vld [vmem:[%s365_s1 + $0x28] sm:$0xff]  }
   0x5   :  { %230 = vmatprep.mubr.msk.bf16.mxu0 %vm133_vm0, %v283_v5  ;;  %53 = vperm.xlu1 %271, %v39_v7   ;;  %v278_v13 = vld [vmem:[%s365_s1 + $0x30] sm:$0xff]   ;;  %v279_v14 = vld [vmem:[%s365_s1 + $0x38] sm:$0xff]   ;;  %v280_v15 = vld [vmem:[%s365_s1 + $0x40] sm:$0xff]  }
   0x6   :  { %231 = vmatprep.mubr.msk.bf16.mxu1 %vm133_vm0, %v286_v6  ;;  %43 = vperm.xlu0 %270, %v37_v8   ;;  %v281_v16 = vld [vmem:[%s366_s0] ss:$8 sps:$4 sm:$0xff]   ;;  %v284_v17 = vld [vmem:[%s366_s0 + $0x10] ss:$8 sps:$4 sm:$0xff]  }
   0x7   :  { %143 = vmatpush1.bf16.msra.mxu0 %v273_v2  ;;  %261 = vmatpush1.bf16.msra.mxu1 %v273_v2 }
   0x8   :  { %144 = vmatprep.subr.bf16.mxu0 %v287_v0  ;;  %253 = vmatprep.subr.bf16.mxu1 %v287_v0 }
   0x9   :  { %58 = vperm.xlu1 %271, %v40_v9  }
   0xa   :  { %48 = vperm.xlu0 %270, %v38_v11  }
   0xb   :  { %145 = vmatpush1.bf16.msra.mxu0 %v274_v3  ;;  %262 = vmatpush1.bf16.msra.mxu1 %v274_v3 }
   0xc   :  { %146 = vmatprep.subr.bf16.mxu0 %v287_v0  ;;  %254 = vmatprep.subr.bf16.mxu1 %v287_v0 }
   0xf   :  { %147 = vmatpush1.bf16.msra.mxu0 %v275_v4  ;;  %263 = vmatpush1.bf16.msra.mxu1 %v275_v4 }
  0x10   :  { %148 = vmatprep.subr.bf16.mxu0 %v287_v0  ;;  %255 = vmatprep.subr.bf16.mxu1 %v287_v0 }
  0x13   :  { %149 = vmatpush1.bf16.msra.mxu0 %v276_v10  ;;  %264 = vmatpush1.bf16.msra.mxu1 %v276_v10 }
  0x14   :  { %150 = vmatprep.subr.bf16.mxu0 %v287_v0  ;;  %256 = vmatprep.subr.bf16.mxu1 %v287_v0 }
  0x17   :  { %151 = vmatpush1.bf16.msra.mxu0 %v277_v12  ;;  %265 = vmatpush1.bf16.msra.mxu1 %v277_v12 }
  0x18   :  { %152 = vmatprep.subr.bf16.mxu0 %v287_v0  ;;  %257 = vmatprep.subr.bf16.mxu1 %v287_v0 }
  0x1b   :  { %153 = vmatpush1.bf16.msra.mxu0 %v278_v13  ;;  %266 = vmatpush1.bf16.msra.mxu1 %v278_v13 }
  0x1c   :  { %154 = vmatprep.subr.bf16.mxu0 %v287_v0  ;;  %258 = vmatprep.subr.bf16.mxu1 %v287_v0 }
  0x1f   :  { %155 = vmatpush1.bf16.msra.mxu0 %v279_v14  ;;  %267 = vmatpush1.bf16.msra.mxu1 %v279_v14 }
  0x20   :  { %156 = vmatprep.subr.bf16.mxu0 %v287_v0  ;;  %259 = vmatprep.subr.bf16.mxu1 %v287_v0 }
  0x23   :  { %157 = vmatpush1.bf16.msra.mxu0 %v280_v15  ;;  %268 = vmatpush1.bf16.msra.mxu1 %v280_v15 }
  0x26   :  { %173 = vmatmul.mubr.bf16.vlgmr.msra.gmra.mrb[0].mxu0 %v281_v16  ;;  %181 = vmatmul.mubr.bf16.vlgmr.msra.gmra.mrb[0].mxu1 %v284_v17 }
  0x84   :  { %v54_v18 = vpop.permute.xlu1 %53 }
  0x85   :  { %v44_v19 = vpop.permute.xlu0 %43 }
  0x88   :  { %v59_v20 = vpop.permute.xlu1 %58 }
  0x89   :  { %v49_v21 = vpop.permute.xlu0 %48 }
  0xf9   :  { %v174_v22 = vpop.f32.mrb[0].mxu0  ;;  %v182_v23 = vpop.f32.mrb[0].mxu1 }
  0xfa   :  { %v175_v24 = vadd.f32 %v174_v22, %v44_v19  ;;  %v183_v25 = vadd.f32 %v182_v23, %v54_v18  ;;  %v176_v26 = vpop.f32.mrb[1].mxu0  ;;  %v184_v27 = vpop.f32.mrb[1].mxu1 }
  0xfb   :  { %v177_v28 = vpop.f32.mrb[2].mxu0  ;;  %v185_v29 = vpop.f32.mrb[2].mxu1 }
  0xfc   :  { %v178_v30 = vadd.f32 %v177_v28, %v49_v21  ;;  %v186_v31 = vadd.f32 %v185_v29, %v59_v20  ;;  %v179_v32 = vpop.f32.mrb[3].mxu0  ;;  %v187_v33 = vpop.f32.mrb[3].mxu1  ;;  %v189_v34 = vmax.f32 %v175_v24, 0.0  ;;  %v191_v35 = vmax.f32 %v183_v25, 0.0 }
  0xfe   :  { %v190_v36 = vmax.f32 %v178_v30, 0.0  ;;  %v192_v37 = vmax.f32 %v186_v31, 0.0 }
 0x100   :  { %v243_v38 = vpack.c.bf16 %v190_v36, %v189_v34  ;;  %v248_v39 = vpack.c.bf16 %v192_v37, %v191_v35 }
 0x102   :  { %244 = vst [vmem:[%s368_s3] sm:$0xff] %v243_v38   ;;  %250 = vst [vmem:[%s368_s3 + $0x8] sm:$0xff] %v248_v39  }

// kernel: resnet56_forward.41
= control target key start
LH: loop header
LB: loop body
LE: loop exit
PB: predicated region body
PF: predicated region fallthrough
CT: control target
= control target key end

     0   :  { %s947_s18 = smov 0   ;;  %s1091_s0 = inlined_call_operand.vmem [shape: bf16[2,32,384], index: 0, kind: input, shape index: {}]   ;;  %s1092_s1 = inlined_call_operand.vmem [shape: bf16[2,16,384], index: 1, kind: input, shape index: {}]   ;;  %s1093_s2 = inlined_call_operand.vmem [shape: bf16[32,304], index: 2, kind: input, shape index: {}]   ;;  %s1094_s3 = inlined_call_operand.vmem [shape: f32[32,1], index: 3, kind: input, shape index: {}]   ;;  %s1095_s4 = inlined_call_operand.vmem [shape: f32[1,128], index: 4, kind: input, shape index: {}]   ;;  %s1096_s5 = inlined_call_operand.vmem [shape: bf16[2,32,384], index: 5, kind: output, shape index: {}]  }
   0x1 LB: > { %s773_s19 = sadd.s32 4294967295, %s905_s18   ;;  %p777_p0 = scmp.ge.s32.totalorder %s905_s18, 1  ;;  %s905_s18 = sphi %s947_s18, %s15_s18  }
   0x2   : > { %p197_p1 = scmp.lt.s32.totalorder %s905_s18, 3 }
   0x4   : > { %p198_p2 = pnand %p777_p0, %p197_p1 }
   0x5   : > { %p230_p3 = scmp.lt.s32.totalorder (!%p198_p2), %s773_s19, 1  ;;  %s907_s25 = smov (!%p198_p2), 116   ;;  %vm285_vm0 = vcmask (!%p198_p2), 1039360   ;;  %vm348_vm1 = vcmask (!%p198_p2), 949248   ;;  %vm296_vm2 = vcmask (!%p198_p2), 1031168   ;;  %vm359_vm3 = vcmask (!%p198_p2), 883712  }
   0x6   : > { %201 = sbr.rel (%p198_p2) target bundleno = 561 (0x231), region = 40  ;;  %s908_s26 = smov (!%p198_p2), 117   ;;  %vm307_vm4 = vcmask (!%p198_p2), 965632   ;;  %v893_v43 = vld [vmem:[%s1093_s2 + $0x4] ss:$12 sps:$4 sm:$0xff] (!%p198_p2)   ;;  %vm370_vm5 = vcmask (!%p198_p2), 875520  }
   0x7   : > { %s909_s30 = smov (!%p198_p2), 127   ;;  %s910_s6 = smov (!%p198_p2), 108   ;;  %598 = vmatprep.mubr.bf16.mxu0 (!%p198_p2), %v893_v43  ;;  %vm381_vm6 = vcmask (!%p198_p2), 867328   ;;  %v897_v53 = vld [vmem:[%s1093_s2 + $0x8] ss:$12 sps:$4 sm:$0xff] (!%p198_p2)   ;;  %vm559_vm7 = vcmask (!%p198_p2), 392192  }
   0x8   : > { %s911_s7 = smov (!%p198_p2), 126   ;;  %s912_s8 = smov (!%p198_p2), 107   ;;  %850 = vmatprep.mubr.msk.bf16.mxu1 (!%p198_p2), %vm559_vm7, %v897_v53  ;;  %v916_v57 = vmov (!%p198_p2), 0   ;;  %v399_v59 = vld [vmem:[%s1094_s3] sm:$0xff] (!%p198_p2)  ;;  %v400_v60 = vld [vmem:[%s1094_s3 + $0x8] sm:$0xff] (!%p198_p2)  ;;  %v402_v61 = vld [vmem:[%s1094_s3 + $0x18] sm:$0xff] (!%p198_p2) }
   0x9   : > { %s913_s9 = smov (!%p198_p2), 118   ;;  %s914_s10 = smov (!%p198_p2), 106   ;;  %874 = vset.pattern.permute.xlu0 (!%p198_p2), %v916_v57  ;;  %875 = vset.pattern.permute.xlu1 (!%p198_p2), %v916_v57  ;;  %v401_v62 = vld [vmem:[%s1094_s3 + $0x10] sm:$0xff] (!%p198_p2)  ;;  %vm523_vm8 = vcmask (!%p198_p2), 89088   ;;  %v898_v53 = vld [vmem:[%s1093_s2 + $0x20] ss:$12 sps:$4 sm:$0xff] (!%p198_p2)  }
   0xa   : > { %s915_s11 = smov (!%p198_p2), 11  }
   0xd   : > { %s1098_s19 = smov (!%p230_p3, %s773_s19), 1 }
   0xe   : > { %s854_s20 = smul.u32 48, %s1098_s19 }
   0xf   : > { %s855_s24 = smul.u32 24, %s1098_s19 }
  0x10   : > { %s234_s23 = scalar_lea.vmem %s1091_s0, %s854_s20  ;;  %s1063_s12 = scalar_lea.vmem %s1096_s5, %s854_s20 }
  0x11   : > { %v876_v0 = vld [vmem:[%s234_s23 + $0x4] ss:$12 sps:$4 sm:$0xff]   ;;  %v879_v2 = vld [vmem:[%s234_s23 + $0x8] ss:$12 sps:$4 sm:$0xff]   ;;  %s968_s29 = scalar_lea.vmem %s1092_s1, %s855_s24  ;;  %v883_v5 = vld [vmem:[%s234_s23] ss:$12 sps:$4 sm:$0xff]  }
  0x12   : > { %v878_v1 = vld [vmem:[%s234_s23 + $0x4] ss:$12 sps:$4 sm:$0xff]   ;;  %340 = vrot.lane.b32.xlu1 %v876_v0, %s907_s25  ;;  %v880_v3 = vld [vmem:[%s234_s23 + $0x1c] ss:$12 sps:$4 sm:$0xff]   ;;  %v884_v6 = vld [vmem:[%s234_s23 + $0x20] ss:$12 sps:$4 sm:$0xff]  }
  0x13   : > { %320 = vrot.lane.b32.xlu0 %v878_v1, %s908_s26  ;;  %v881_v4 = vld [vmem:[%s234_s23 + $0x4] ss:$12 sps:$4 sm:$0xff]   ;;  %v886_v7 = vld [vmem:[%s234_s23 + $0x1c] ss:$12 sps:$4 sm:$0xff]   ;;  %698 = vst [vmem:[%s1063_s12] sm:$0xf] %v916_v57 }
  0x14   : > { %v887_v8 = vld [vmem:[%s234_s23 + $0x1c] ss:$12 sps:$4 sm:$0xff]   ;;  %v889_v9 = vld [vmem:[%s234_s23 + $0x18] ss:$12 sps:$4 sm:$0xff]   ;;  %699 = vst [vmem:[%s1063_s12 + $0xc] sm:$0xf] %v916_v57 }
  0x15   : > { %v890_v10 = vld [vmem:[%s968_s29 + $0x4] ss:$12 sps:$4 sm:$0xff]   ;;  %700 = vst [vmem:[%s1063_s12 + $0x18] sm:$0xf] %v916_v57  ;;  %701 = vst [vmem:[%s1063_s12 + $0x24] sm:$0xf] %v916_v57 }
  0x16   : > { %342 = vrot.lane.b32.xlu1 %v879_v2, %s907_s25  ;;  %702 = vst [vmem:[%s1063_s12 + $0x8] sm:$0xf] %v916_v57  ;;  %703 = vst [vmem:[%s1063_s12 + $0x14] sm:$0xf] %v916_v57 }
  0x17   : > { %322 = vrot.lane.b32.xlu0 %v880_v3, %s908_s26  ;;  %704 = vst [vmem:[%s1063_s12 + $0x20] sm:$0xf] %v916_v57  ;;  %705 = vst [vmem:[%s1063_s12 + $0x2c] sm:$0xf] %v916_v57 }
  0x1a   : > { %279 = vrot.lane.b32.xlu1 %v881_v4, %s909_s30 }
  0x1b   : > { %277 = vrot.lane.b32.xlu0 %v883_v5, %s909_s30 }
  0x1e   : > { %346 = vrot.lane.b32.xlu1 %v884_v6, %s907_s25 }
  0x1f   : > { %344 = vrot.lane.b32.xlu0 %v886_v7, %s907_s25 }
  0x22   : > { %283 = vrot.lane.b32.xlu1 %v887_v8, %s909_s30 }
  0x23   : > { %281 = vrot.lane.b32.xlu0 %v889_v9, %s909_s30 }
  0x26   : > { %353 = vrot.lane.b32.xlu1 %v879_v2, %s910_s6 }
  0x27   : > { %351 = vrot.lane.b32.xlu0 %v876_v0, %s910_s6 }
  0x2a   : > { %290 = vrot.lane.b32.xlu1 %v881_v4, %s911_s7 }
  0x2b   : > { %288 = vrot.lane.b32.xlu0 %v883_v5, %s911_s7 }
  0x2e   : > { %357 = vrot.lane.b32.xlu1 %v884_v6, %s910_s6 }
  0x2f   : > { %355 = vrot.lane.b32.xlu0 %v886_v7, %s910_s6 }
  0x32   : > { %294 = vrot.lane.b32.xlu1 %v887_v8, %s911_s7 }
  0x33   : > { %292 = vrot.lane.b32.xlu0 %v889_v9, %s911_s7 }
  0x36   : > { %364 = vrot.lane.b32.xlu1 %v879_v2, %s912_s8 }
  0x37   : > { %362 = vrot.lane.b32.xlu0 %v876_v0, %s912_s8 }
  0x3a   : > { %301 = vrot.lane.b32.xlu1 %v881_v4, %s913_s9 }
  0x3b   : > { %299 = vrot.lane.b32.xlu0 %v883_v5, %s913_s9 }
  0x3e   : > { %368 = vrot.lane.b32.xlu1 %v884_v6, %s912_s8 }
  0x3f   : > { %366 = vrot.lane.b32.xlu0 %v886_v7, %s912_s8 }
  0x42   : > { %305 = vrot.lane.b32.xlu1 %v887_v8, %s913_s9 }
  0x43   : > { %303 = vrot.lane.b32.xlu0 %v889_v9, %s913_s9 }
  0x46   : > { %375 = vrot.lane.b32.xlu1 %v879_v2, %s914_s10 }
  0x47   : > { %373 = vrot.lane.b32.xlu0 %v876_v0, %s914_s10 }
  0x4a   : > { %379 = vrot.lane.b32.xlu1 %v884_v6, %s914_s10 }
  0x4b   : > { %377 = vrot.lane.b32.xlu0 %v886_v7, %s914_s10 }
  0x4e   : > { %453 = vrot.lane.b32.xlu1 %v883_v5, %s915_s11 }
  0x4f   : > { %389 = vrot.lane.b32.xlu0 %v890_v10, %s908_s26 }
  0x52   : > { %459 = vrot.lane.b32.xlu1 %v887_v8, %s915_s11 }
  0x53   : > { %455 = vrot.lane.b32.xlu0 %v881_v4, %s915_s11 }
  0x57   : > { %457 = vrot.lane.b32.xlu0 %v889_v9, %s915_s11 }
  0x84   : > { %v341_v11 = vpop.permute.xlu1 %340 }
  0x85   : > { %v321_v12 = vpop.permute.xlu0 %320 }
  0x86   : > { %485 = vrot.lane.b32.xlu1 %v321_v12, %s915_s11 }
  0x88   : > { %v343_v13 = vpop.permute.xlu1 %342 }
  0x89   : > { %v323_v14 = vpop.permute.xlu0 %322  ;;  %v349_v37 = vsel %vm348_vm1, %v341_v11, %v343_v13 }
  0x8a   : > { %489 = vrot.lane.b32.xlu1 %v341_v11, %s915_s11  ;;  %487 = vrot.lane.b32.xlu0 %v323_v14, %s915_s11 }
  0x8c   : > { %v280_v15 = vpop.permute.xlu1 %279 }
  0x8d   : > { %v278_v16 = vpop.permute.xlu0 %277 }
  0x8e   : > { %463 = vrot.lane.b32.xlu0 %v280_v15, %s915_s11  ;;  %v286_v36 = vsel %vm285_vm0, %v278_v16, %v280_v15 }
  0x90   : > { %v347_v17 = vpop.permute.xlu1 %346 }
  0x91   : > { %v345_v18 = vpop.permute.xlu0 %344 }
  0x92   : > { %493 = vrot.lane.b32.xlu1 %v345_v18, %s915_s11  ;;  %v350_v39 = vsel %vm348_vm1, %v345_v18, %v347_v17 }
  0x94   : > { %v284_v19 = vpop.permute.xlu1 %283 }
  0x95   : > { %v282_v20 = vpop.permute.xlu0 %281  ;;  %467 = vrot.lane.b32.xlu0 %v284_v19, %s915_s11 }
  0x96   : > { %v287_v38 = vsel %vm285_vm0, %v282_v20, %v284_v19 }
  0x98   : > { %v354_v21 = vpop.permute.xlu1 %353 }
  0x99   : > { %v352_v22 = vpop.permute.xlu0 %351 }
  0x9a   : > { %497 = vrot.lane.b32.xlu1 %v352_v22, %s915_s11  ;;  %v360_v41 = vsel %vm359_vm3, %v352_v22, %v354_v21 }
  0x9c   : > { %v291_v23 = vpop.permute.xlu1 %290 }
  0x9d   : > { %v289_v24 = vpop.permute.xlu0 %288  ;;  %471 = vrot.lane.b32.xlu0 %v291_v23, %s915_s11 }
  0x9e   : > { %v297_v40 = vsel %vm296_vm2, %v289_v24, %v291_v23 }
  0xa0   : > { %v358_v25 = vpop.permute.xlu1 %357 }
  0xa1   : > { %v356_v26 = vpop.permute.xlu0 %355 }
  0xa2   : > { %501 = vrot.lane.b32.xlu1 %v356_v26, %s915_s11  ;;  %v361_v44 = vsel %vm359_vm3, %v356_v26, %v358_v25 }
  0xa4   : > { %v295_v27 = vpop.permute.xlu1 %294 }
  0xa5   : > { %v293_v28 = vpop.permute.xlu0 %292  ;;  %475 = vrot.lane.b32.xlu0 %v295_v27, %s915_s11 }
  0xa6   : > { %v298_v42 = vsel %vm296_vm2, %v293_v28, %v295_v27 }
  0xa8   : > { %v365_v29 = vpop.permute.xlu1 %364 }
  0xa9   : > { %v363_v30 = vpop.permute.xlu0 %362 }
  0xaa   : > { %505 = vrot.lane.b32.xlu1 %v363_v30, %s915_s11  ;;  %v371_v47 = vsel %vm370_vm5, %v363_v30, %v365_v29 }
  0xac   : > { %v302_v31 = vpop.permute.xlu1 %301 }
  0xad   : > { %v300_v32 = vpop.permute.xlu0 %299  ;;  %479 = vrot.lane.b32.xlu0 %v302_v31, %s915_s11 }
  0xae   : > { %v308_v46 = vsel %vm307_vm4, %v300_v32, %v302_v31 }
  0xb0   : > { %v369_v33 = vpop.permute.xlu1 %368 }
  0xb1   : > { %v367_v34 = vpop.permute.xlu0 %366 }
  0xb2   : > { %509 = vrot.lane.b32.xlu1 %v367_v34, %s915_s11  ;;  %v372_v51 = vsel %vm370_vm5, %v367_v34, %v369_v33 }
  0xb4   : > { %v306_v35 = vpop.permute.xlu1 %305 }
  0xb5   : > { %483 = vrot.lane.b32.xlu0 %v306_v35, %s915_s11  ;;  %v304_v45 = vpop.permute.xlu0 %303 }
  0xb6   : > { %461 = vrot.lane.b32.xlu1 %v286_v36, %s915_s11  ;;  %v309_v48 = vsel %vm307_vm4, %v304_v45, %v306_v35  ;;  %v894_v45 = vld [vmem:[%s1093_s2 + $0x1c] ss:$12 sps:$4 sm:$0xff]  }
  0xb8   : > { %v376_v49 = vpop.permute.xlu1 %375 }
  0xb9   : > { %491 = vrot.lane.b32.xlu0 %v349_v37, %s915_s11  ;;  %v374_v50 = vpop.permute.xlu0 %373 }
  0xba   : > { %465 = vrot.lane.b32.xlu1 %v287_v38, %s915_s11  ;;  %v382_v52 = vsel %vm381_vm6, %v374_v50, %v376_v49 }
  0xbc   : > { %v380_v54 = vpop.permute.xlu1 %379 }
  0xbd   : > { %495 = vrot.lane.b32.xlu0 %v350_v39, %s915_s11  ;;  %v378_v55 = vpop.permute.xlu0 %377 }
  0xbe   : > { %469 = vrot.lane.b32.xlu1 %v297_v40, %s915_s11  ;;  %v383_v56 = vsel %vm381_vm6, %v378_v55, %v380_v54 }
  0xc0   : > { %v454_v63 = vpop.permute.xlu1 %453 }
  0xc1   : > { %499 = vrot.lane.b32.xlu0 %v360_v41, %s915_s11  ;;  %v390_v58 = vpop.permute.xlu0 %389 }
  0xc2   : > { %473 = vrot.lane.b32.xlu1 %v298_v42, %s915_s11 }
  0xc4   : > { %v460_v1 = vpop.permute.xlu1 %459 }
  0xc5   : > { %503 = vrot.lane.b32.xlu0 %v361_v44, %s915_s11  ;;  %v456_v0 = vpop.permute.xlu0 %455  ;;  %v891_v44 = vld [vmem:[%s1093_s2] ss:$12 sps:$4 sm:$0xff]  }
  0xc6   : > { %477 = vrot.lane.b32.xlu1 %v308_v46, %s915_s11  ;;  %v524_v3 = vsel %vm523_vm8, %v454_v63, %v456_v0 }
  0xc9   : > { %507 = vrot.lane.b32.xlu0 %v371_v47, %s915_s11  ;;  %v458_v2 = vpop.permute.xlu0 %457 }
  0xca   : > { %481 = vrot.lane.b32.xlu1 %v309_v48, %s915_s11  ;;  %v525_v5 = vsel %vm523_vm8, %v458_v2, %v460_v1 }
  0xcd   : > { %511 = vrot.lane.b32.xlu0 %v372_v51, %s915_s11 }
  0xce   : > { %513 = vrot.lane.b32.xlu1 %v374_v50, %s915_s11 }
  0xd1   : > { %515 = vrot.lane.b32.xlu0 %v382_v52, %s915_s11  ;;  %v896_v52 = vld [vmem:[%s1093_s2 + $0x18] ss:$12 sps:$4 sm:$0xff]  }
  0xd2   : > { %517 = vrot.lane.b32.xlu1 %v378_v55, %s915_s11 }
  0xd5   : > { %519 = vrot.lane.b32.xlu0 %v383_v56, %s915_s11 }
  0xd6   : > { %521 = vrot.lane.b32.xlu1 %v390_v58, %s915_s11 }
  0xd9   : > { %405 = vperm.xlu0 %874, %v399_v59  }
  0xda   : > { %410 = vperm.xlu1 %875, %v400_v60  }
  0xdd   : > { %420 = vperm.xlu0 %874, %v402_v61  }
  0xde   : > { %415 = vperm.xlu1 %875, %v401_v62  }
  0xf8   : > { %v486_v4 = vpop.permute.xlu1 %485 }
  0xf9   : > { %811 = vmatprep.subr.bf16.mxu0 %v486_v4 }
  0xfa   : > { %812 = vmatpush3.bf16.msra.mxu0 %v524_v3 }
  0xfc   : > { %v488_v6 = vpop.permute.xlu0 %487  ;;  %v490_v7 = vpop.permute.xlu1 %489 }
  0xfd   : > { %813 = vmatprep.subr.bf16.mxu0 %v488_v6 }
  0xfe   : > { %814 = vmatpush3.bf16.msra.mxu0 %v525_v5 }
 0x100   : > { %v464_v9 = vpop.permute.xlu0 %463 }
 0x104   : > { %v494_v8 = vpop.permute.xlu1 %493 }
 0x107   : > { %v468_v11 = vpop.permute.xlu0 %467 }
 0x10c   : > { %v498_v10 = vpop.permute.xlu1 %497 }
 0x10f   : > { %v472_v13 = vpop.permute.xlu0 %471 }
 0x114   : > { %v502_v12 = vpop.permute.xlu1 %501 }
 0x117   : > { %v476_v15 = vpop.permute.xlu0 %475 }
 0x11c   : > { %v506_v14 = vpop.permute.xlu1 %505 }
 0x11f   : > { %v480_v16 = vpop.permute.xlu0 %479 }
 0x124   : > { %v510_v17 = vpop.permute.xlu1 %509 }
 0x127   : > { %v484_v18 = vpop.permute.xlu0 %483 }
 0x128   : > { %v462_v19 = vpop.permute.xlu1 %461 }
 0x129   : > { %v526_v23 = vsel %vm523_vm8, %v462_v19, %v464_v9 }
 0x12b   : > { %v492_v20 = vpop.permute.xlu0 %491 }
 0x12c   : > { %v466_v21 = vpop.permute.xlu1 %465  ;;  %v532_v22 = vsel %vm523_vm8, %v490_v7, %v492_v20 }
 0x12d   : > { %815 = vmatprep.subr.bf16.mxu0 %v532_v22  ;;  %v527_v27 = vsel %vm523_vm8, %v466_v21, %v468_v11 }
 0x12e   : > { %816 = vmatpush3.bf16.msra.mxu0 %v526_v23 }
 0x12f   : > { %v496_v24 = vpop.permute.xlu0 %495 }
 0x130   : > { %v470_v25 = vpop.permute.xlu1 %469  ;;  %v533_v26 = vsel %vm523_vm8, %v494_v8, %v496_v24 }
 0x131   : > { %817 = vmatprep.subr.bf16.mxu0 %v533_v26  ;;  %v528_v31 = vsel %vm523_vm8, %v470_v25, %v472_v13 }
 0x132   : > { %818 = vmatpush3.bf16.msra.mxu0 %v527_v27 }
 0x133   : > { %v500_v28 = vpop.permute.xlu0 %499 }
 0x134   : > { %v474_v29 = vpop.permute.xlu1 %473  ;;  %v534_v30 = vsel %vm523_vm8, %v498_v10, %v500_v28 }
 0x135   : > { %819 = vmatprep.subr.bf16.mxu0 %v534_v30  ;;  %v529_v35 = vsel %vm523_vm8, %v474_v29, %v476_v15  ;;  %v800_v15 = vld [vmem:[%s1095_s4] ss:$0 sm:$0xff] }
 0x136   : > { %820 = vmatpush3.bf16.msra.mxu0 %v528_v31 }
 0x137   : > { %v504_v32 = vpop.permute.xlu0 %503 }
 0x138   : > { %v478_v33 = vpop.permute.xlu1 %477  ;;  %v535_v34 = vsel %vm523_vm8, %v502_v12, %v504_v32 }
 0x139   : > { %821 = vmatprep.subr.bf16.mxu0 %v535_v34  ;;  %v530_v39 = vsel %vm523_vm8, %v478_v33, %v480_v16 }
 0x13a   : > { %822 = vmatpush3.bf16.msra.mxu0 %v529_v35 }
 0x13b   : > { %v508_v36 = vpop.permute.xlu0 %507 }
 0x13c   : > { %v482_v37 = vpop.permute.xlu1 %481  ;;  %v536_v38 = vsel %vm523_vm8, %v506_v14, %v508_v36 }
 0x13d   : > { %823 = vmatprep.subr.bf16.mxu0 %v536_v38  ;;  %v531_v43 = vsel %vm523_vm8, %v482_v37, %v484_v18 }
 0x13e   : > { %824 = vmatpush3.bf16.msra.mxu0 %v530_v39 }
 0x13f   : > { %v512_v40 = vpop.permute.xlu0 %511 }
 0x140   : > { %v537_v41 = vsel %vm523_vm8, %v510_v17, %v512_v40  ;;  %v514_v42 = vpop.permute.xlu1 %513 }
 0x141   : > { %825 = vmatprep.subr.bf16.mxu0 %v537_v41 }
 0x142   : > { %826 = vmatpush3.bf16.msra.mxu0 %v531_v43 }
 0x143   : > { %v516_v46 = vpop.permute.xlu0 %515 }
 0x144   : > { %v538_v47 = vsel %vm523_vm8, %v514_v42, %v516_v46  ;;  %v518_v48 = vpop.permute.xlu1 %517 }
 0x145   : > { %599 = vmatmul.mubr.bf16.vlgmr.msra.gmra.mrb[0].mxu0 %v891_v44  ;;  %844 = vmatprep.subr.bf16.mxu1 %v538_v47 }
 0x146   : > { %845 = vmatpush3.bf16.msra.mxu1 %v538_v47  ;;  %606 = vmatprep.mubr.bf16.mxu0 %v894_v45 }
 0x147   : > { %v520_v49 = vpop.permute.xlu0 %519 }
 0x148   : > { %v539_v50 = vsel %vm523_vm8, %v518_v48, %v520_v49  ;;  %v522_v51 = vpop.permute.xlu1 %521 }
 0x149   : > { %846 = vmatprep.subr.bf16.mxu1 %v539_v50 }
 0x14a   : > { %847 = vmatpush3.bf16.msra.mxu1 %v539_v50 }
 0x14b   : > { %848 = vmatprep.subr.bf16.mxu1 %v522_v51 }
 0x14d   : > { %607 = vmatmul.mubr.bf16.gmra.mrb[4].mxu0 %v896_v52 }
 0x14e   : > { %849 = vmatpush3.bf16.msra.mxu1 %v522_v51 }
 0x151   : > { %851 = vmatmul.mubr.msk.bf16.vlgmr.msra.gmra.mrb[0].mxu1 %vm559_vm7, %v898_v53 }
 0x158   : > { %v406_v63 = vpop.permute.xlu0 %405 }
 0x159   : > { %v411_v61 = vpop.permute.xlu1 %410 }
 0x15c   : > { %v421_v9 = vpop.permute.xlu0 %420 }
 0x15d   : > { %v416_v3 = vpop.permute.xlu1 %415 }
 0x218   : > { %v827_v54 = vpop.f32.mrb[0].mxu0 }
 0x219   : > { %v828_v55 = vpop.f32.mrb[1].mxu0 }
 0x21a   : > { %v829_v56 = vadd.f32 %v828_v55, %v827_v54  ;;  %v830_v58 = vpop.f32.mrb[2].mxu0 }
 0x21b   : > { %v831_v59 = vpop.f32.mrb[3].mxu0 }
 0x21c   : > { %v832_v60 = vadd.f32 %v831_v59, %v830_v58  ;;  %v601_v5 = vadd.f32 %v829_v56, %v406_v63 }
 0x21e   : > { %v604_v10 = vadd.f32 %v832_v60, %v411_v61 }
 0x220   : > { %v833_v62 = vpop.f32.mrb[4].mxu0 }
 0x221   : > { %v834_v0 = vpop.f32.mrb[5].mxu0 }
 0x222   : > { %v835_v1 = vadd.f32 %v834_v0, %v833_v62  ;;  %v836_v2 = vpop.f32.mrb[6].mxu0 }
 0x223   : > { %v837_v4 = vpop.f32.mrb[7].mxu0 }
 0x224   : > { %v838_v6 = vadd.f32 %v837_v4, %v836_v2  ;;  %v609_v7 = vadd.f32 %v835_v1, %v416_v3  ;;  %v852_v8 = vpop.f32.mrb[0].mxu1 }
 0x225   : > { %v649_v57 = vpop.f32.mrb[1].mxu1 }
 0x226   : > { %v658_v11 = vadd.f32 %v852_v8, %v609_v7  ;;  %v650_v12 = vadd.f32 %v649_v57, %v601_v5  ;;  %v612_v13 = vadd.f32 %v838_v6, %v421_v9  ;;  %v853_v14 = vpop.f32.mrb[2].mxu1 }
 0x227   : > { %v652_v16 = vpop.f32.mrb[3].mxu1 }
 0x228   : > { %v666_v17 = vmax.f32 %v658_v11, 0.0  ;;  %v664_v18 = vmax.f32 %v650_v12, 0.0  ;;  %v661_v19 = vadd.f32 %v853_v14, %v612_v13  ;;  %v653_v20 = vadd.f32 %v652_v16, %v604_v10 }
 0x22a   : > { %v676_v21 = vmul.f32 %v800_v15, %v666_v17  ;;  %v674_v22 = vmul.f32 %v800_v15, %v664_v18  ;;  %v667_v23 = vmax.f32 %v661_v19, 0.0  ;;  %v665_v24 = vmax.f32 %v653_v20, 0.0 }
 0x22c   : > { %v809_v25 = vpack.c.bf16 %v676_v21, %v676_v21  ;;  %v807_v26 = vpack.c.bf16 %v674_v22, %v674_v22  ;;  %v677_v27 = vmul.f32 %v800_v15, %v667_v23  ;;  %v675_v28 = vmul.f32 %v800_v15, %v665_v24 }
 0x22e   : > { %696 = vst [vmem:[%s1063_s12 + $0x1c] sm:$0xf] %v809_v25  ;;  %694 = vst [vmem:[%s1063_s12 + $0x4] sm:$0xf] %v807_v26  ;;  %v810_v29 = vpack.c.bf16 %v677_v27, %v677_v27  ;;  %v808_v30 = vpack.c.bf16 %v675_v28, %v675_v28 }
 0x230   : > { %697 = vst [vmem:[%s1063_s12 + $0x28] sm:$0xf] %v810_v29  ;;  %695 = vst [vmem:[%s1063_s12 + $0x10] sm:$0xf] %v808_v30 }
 0x231 PF: > { %s15_s18 = sadd.s32 1, %s905_s18  }
 0x232   : > { %p12_p4 = scmp.ge.s32.totalorder %s15_s18, 4  }
 0x234   :  { %14 = sbr.rel (!%p12_p4) target bundleno = 1 (0x1), region = 73 }

// kernel: resnet56_forward.42
= control target key start
LH: loop header
LB: loop body
LE: loop exit
PB: predicated region body
PF: predicated region fallthrough
CT: control target
= control target key end

     0   :  { %s1410_s21 = smov 0   ;;  %s1737_s0 = inlined_call_operand.vmem [shape: bf16[2,32,384], index: 0, kind: input, shape index: {}]   ;;  %s1738_s1 = inlined_call_operand.vmem [shape: bf16[32,288], index: 1, kind: input, shape index: {}]   ;;  %s1739_s2 = inlined_call_operand.vmem [shape: f32[32,1], index: 2, kind: input, shape index: {}]   ;;  %s1740_s3 = inlined_call_operand.vmem [shape: bf16[32,288], index: 3, kind: input, shape index: {}]   ;;  %s1741_s4 = inlined_call_operand.vmem [shape: f32[32,1], index: 4, kind: input, shape index: {}]   ;;  %s1742_s5 = inlined_call_operand.vmem [shape: f32[1,128], index: 5, kind: input, shape index: {}]   ;;  %s1743_s6 = inlined_call_operand.vmem [shape: bf16[2,32,384], index: 6, kind: output, shape index: {}]  }
   0x1 LB: > { %s1142_s22 = sadd.s32 4294967295, %s1363_s21   ;;  %p1146_p0 = scmp.ge.s32.totalorder %s1363_s21, 1  ;;  %s1363_s21 = sphi %s1410_s21, %s16_s21  }
   0x2   : > { %p212_p1 = scmp.lt.s32.totalorder %s1363_s21, 3 }
   0x4   : > { %p213_p2 = pnand %p1146_p0, %p212_p1 }
   0x5   : > { %p242_p3 = scmp.lt.s32.totalorder (!%p213_p2), %s1142_s22, 1  ;;  %s1365_s27 = smov (!%p213_p2), 116   ;;  %vm290_vm0 = vcmask (!%p213_p2), 1039360   ;;  %vm353_vm1 = vcmask (!%p213_p2), 949248   ;;  %vm301_vm2 = vcmask (!%p213_p2), 1031168   ;;  %vm364_vm3 = vcmask (!%p213_p2), 883712  }
   0x6   : > { %216 = sbr.rel (%p213_p2) target bundleno = 1080 (0x438), region = 44  ;;  %s1366_s28 = smov (!%p213_p2), 117   ;;  %vm312_vm4 = vcmask (!%p213_p2), 965632   ;;  %v1343_v42 = vld [vmem:[%s1738_s1 + $0x4] ss:$12 sps:$4 sm:$0xff] (!%p213_p2)   ;;  %vm375_vm5 = vcmask (!%p213_p2), 875520  }
   0x7   : > { %s1367_s29 = smov (!%p213_p2), 127   ;;  %s1368_s30 = smov (!%p213_p2), 108   ;;  %593 = vmatprep.mubr.bf16.mxu0 (!%p213_p2), %v1343_v42  ;;  %v1346_v50 = vld [vmem:[%s1738_s1 + $0x8] ss:$12 sps:$4 sm:$0xff] (!%p213_p2)   ;;  %vm554_vm6 = vcmask (!%p213_p2), 261120   ;;  %vm386_vm7 = vcmask (!%p213_p2), 867328  }
   0x8   : > { %s1369_s7 = smov (!%p213_p2), 126   ;;  %s1370_s8 = smov (!%p213_p2), 107   ;;  %1254 = vmatprep.mubr.msk.bf16.mxu1 (!%p213_p2), %vm554_vm6, %v1346_v50  ;;  %v1374_v53 = vmov (!%p213_p2), 0   ;;  %v397_v57 = vld [vmem:[%s1739_s2] sm:$0xff] (!%p213_p2)  ;;  %v398_v58 = vld [vmem:[%s1739_s2 + $0x8] sm:$0xff] (!%p213_p2)  ;;  %v400_v59 = vld [vmem:[%s1739_s2 + $0x18] sm:$0xff] (!%p213_p2) }
   0x9   : > { %s1371_s9 = smov (!%p213_p2), 118   ;;  %s1372_s10 = smov (!%p213_p2), 106   ;;  %1286 = vset.pattern.permute.xlu1 (!%p213_p2), %v1374_v53  ;;  %1285 = vset.pattern.permute.xlu0 (!%p213_p2), %v1374_v53  ;;  %v399_v60 = vld [vmem:[%s1739_s2 + $0x10] sm:$0xff] (!%p213_p2)  ;;  %vm519_vm8 = vcmask (!%p213_p2), 89088   ;;  %v1341_v42 = vld [vmem:[%s1738_s1] ss:$12 sps:$4 sm:$0xff] (!%p213_p2)  }
   0xa   : > { %s1373_s11 = smov (!%p213_p2), 11   ;;  %v1348_v50 = vld [vmem:[%s1738_s1 + $0x20] ss:$12 sps:$4 sm:$0xff] (!%p213_p2)  }
   0xd   : > { %s1745_s22 = smov (!%p242_p3, %s1142_s22), 1 }
   0xe   : > { %s1266_s23 = smul.u32 48, %s1745_s22 }
  0x10   : > { %s1426_s26 = scalar_lea.vmem %s1737_s0, %s1266_s23 }
  0x11   : > { %v1327_v0 = vld [vmem:[%s1426_s26 + $0x4] ss:$12 sps:$4 sm:$0xff]   ;;  %v1330_v2 = vld [vmem:[%s1426_s26 + $0x8] ss:$12 sps:$4 sm:$0xff]   ;;  %v1334_v5 = vld [vmem:[%s1426_s26] ss:$12 sps:$4 sm:$0xff]  }
  0x12   : > { %v1329_v1 = vld [vmem:[%s1426_s26 + $0x4] ss:$12 sps:$4 sm:$0xff]   ;;  %345 = vrot.lane.b32.xlu1 %v1327_v0, %s1365_s27  ;;  %v1331_v3 = vld [vmem:[%s1426_s26 + $0x1c] ss:$12 sps:$4 sm:$0xff]   ;;  %v1335_v6 = vld [vmem:[%s1426_s26 + $0x20] ss:$12 sps:$4 sm:$0xff]  }
  0x13   : > { %325 = vrot.lane.b32.xlu0 %v1329_v1, %s1366_s28  ;;  %v1332_v4 = vld [vmem:[%s1426_s26 + $0x4] ss:$12 sps:$4 sm:$0xff]   ;;  %v1337_v7 = vld [vmem:[%s1426_s26 + $0x1c] ss:$12 sps:$4 sm:$0xff]  }
  0x14   : > { %v1338_v8 = vld [vmem:[%s1426_s26 + $0x1c] ss:$12 sps:$4 sm:$0xff]   ;;  %v1340_v9 = vld [vmem:[%s1426_s26 + $0x18] ss:$12 sps:$4 sm:$0xff]  }
  0x16   : > { %347 = vrot.lane.b32.xlu1 %v1330_v2, %s1365_s27 }
  0x17   : > { %327 = vrot.lane.b32.xlu0 %v1331_v3, %s1366_s28 }
  0x1a   : > { %284 = vrot.lane.b32.xlu1 %v1332_v4, %s1367_s29 }
  0x1b   : > { %282 = vrot.lane.b32.xlu0 %v1334_v5, %s1367_s29 }
  0x1e   : > { %351 = vrot.lane.b32.xlu1 %v1335_v6, %s1365_s27 }
  0x1f   : > { %349 = vrot.lane.b32.xlu0 %v1337_v7, %s1365_s27 }
  0x22   : > { %288 = vrot.lane.b32.xlu1 %v1338_v8, %s1367_s29 }
  0x23   : > { %286 = vrot.lane.b32.xlu0 %v1340_v9, %s1367_s29 }
  0x26   : > { %358 = vrot.lane.b32.xlu1 %v1330_v2, %s1368_s30 }
  0x27   : > { %356 = vrot.lane.b32.xlu0 %v1327_v0, %s1368_s30 }
  0x2a   : > { %295 = vrot.lane.b32.xlu1 %v1332_v4, %s1369_s7 }
  0x2b   : > { %293 = vrot.lane.b32.xlu0 %v1334_v5, %s1369_s7 }
  0x2e   : > { %362 = vrot.lane.b32.xlu1 %v1335_v6, %s1368_s30 }
  0x2f   : > { %360 = vrot.lane.b32.xlu0 %v1337_v7, %s1368_s30 }
  0x32   : > { %299 = vrot.lane.b32.xlu1 %v1338_v8, %s1369_s7 }
  0x33   : > { %297 = vrot.lane.b32.xlu0 %v1340_v9, %s1369_s7 }
  0x36   : > { %369 = vrot.lane.b32.xlu1 %v1330_v2, %s1370_s8 }
  0x37   : > { %367 = vrot.lane.b32.xlu0 %v1327_v0, %s1370_s8 }
  0x3a   : > { %306 = vrot.lane.b32.xlu1 %v1332_v4, %s1371_s9 }
  0x3b   : > { %304 = vrot.lane.b32.xlu0 %v1334_v5, %s1371_s9 }
  0x3e   : > { %373 = vrot.lane.b32.xlu1 %v1335_v6, %s1370_s8 }
  0x3f   : > { %371 = vrot.lane.b32.xlu0 %v1337_v7, %s1370_s8 }
  0x42   : > { %310 = vrot.lane.b32.xlu1 %v1338_v8, %s1371_s9 }
  0x43   : > { %308 = vrot.lane.b32.xlu0 %v1340_v9, %s1371_s9 }
  0x46   : > { %380 = vrot.lane.b32.xlu1 %v1330_v2, %s1372_s10 }
  0x47   : > { %378 = vrot.lane.b32.xlu0 %v1327_v0, %s1372_s10 }
  0x4a   : > { %384 = vrot.lane.b32.xlu1 %v1335_v6, %s1372_s10 }
  0x4b   : > { %382 = vrot.lane.b32.xlu0 %v1337_v7, %s1372_s10 }
  0x4e   : > { %453 = vrot.lane.b32.xlu1 %v1332_v4, %s1373_s11 }
  0x4f   : > { %451 = vrot.lane.b32.xlu0 %v1334_v5, %s1373_s11 }
  0x52   : > { %455 = vrot.lane.b32.xlu1 %v1340_v9, %s1373_s11 }
  0x53   : > { %457 = vrot.lane.b32.xlu0 %v1338_v8, %s1373_s11 }
  0x84   : > { %v346_v10 = vpop.permute.xlu1 %345 }
  0x85   : > { %v326_v11 = vpop.permute.xlu0 %325 }
  0x86   : > { %483 = vrot.lane.b32.xlu0 %v326_v11, %s1373_s11 }
  0x88   : > { %v348_v12 = vpop.permute.xlu1 %347 }
  0x89   : > { %v328_v13 = vpop.permute.xlu0 %327  ;;  %v354_v36 = vsel %vm353_vm1, %v346_v10, %v348_v12 }
  0x8a   : > { %485 = vrot.lane.b32.xlu1 %v328_v13, %s1373_s11  ;;  %487 = vrot.lane.b32.xlu0 %v346_v10, %s1373_s11 }
  0x8c   : > { %v285_v14 = vpop.permute.xlu1 %284 }
  0x8d   : > { %v283_v15 = vpop.permute.xlu0 %282 }
  0x8e   : > { %461 = vrot.lane.b32.xlu1 %v285_v14, %s1373_s11  ;;  %v291_v35 = vsel %vm290_vm0, %v283_v15, %v285_v14 }
  0x90   : > { %v352_v16 = vpop.permute.xlu1 %351 }
  0x91   : > { %v350_v17 = vpop.permute.xlu0 %349 }
  0x92   : > { %491 = vrot.lane.b32.xlu0 %v350_v17, %s1373_s11  ;;  %v355_v38 = vsel %vm353_vm1, %v350_v17, %v352_v16 }
  0x94   : > { %v289_v18 = vpop.permute.xlu1 %288 }
  0x95   : > { %v287_v19 = vpop.permute.xlu0 %286  ;;  %465 = vrot.lane.b32.xlu1 %v289_v18, %s1373_s11 }
  0x96   : > { %v292_v37 = vsel %vm290_vm0, %v287_v19, %v289_v18 }
  0x98   : > { %v359_v20 = vpop.permute.xlu1 %358 }
  0x99   : > { %v357_v21 = vpop.permute.xlu0 %356 }
  0x9a   : > { %495 = vrot.lane.b32.xlu0 %v357_v21, %s1373_s11  ;;  %v365_v40 = vsel %vm364_vm3, %v357_v21, %v359_v20 }
  0x9c   : > { %v296_v22 = vpop.permute.xlu1 %295 }
  0x9d   : > { %v294_v23 = vpop.permute.xlu0 %293  ;;  %469 = vrot.lane.b32.xlu1 %v296_v22, %s1373_s11 }
  0x9e   : > { %v302_v39 = vsel %vm301_vm2, %v294_v23, %v296_v22 }
  0xa0   : > { %v363_v24 = vpop.permute.xlu1 %362 }
  0xa1   : > { %v361_v25 = vpop.permute.xlu0 %360 }
  0xa2   : > { %499 = vrot.lane.b32.xlu0 %v361_v25, %s1373_s11  ;;  %v366_v43 = vsel %vm364_vm3, %v361_v25, %v363_v24 }
  0xa4   : > { %v300_v26 = vpop.permute.xlu1 %299 }
  0xa5   : > { %v298_v27 = vpop.permute.xlu0 %297  ;;  %473 = vrot.lane.b32.xlu1 %v300_v26, %s1373_s11 }
  0xa6   : > { %v303_v41 = vsel %vm301_vm2, %v298_v27, %v300_v26 }
  0xa8   : > { %v370_v28 = vpop.permute.xlu1 %369 }
  0xa9   : > { %v368_v29 = vpop.permute.xlu0 %367 }
  0xaa   : > { %503 = vrot.lane.b32.xlu0 %v368_v29, %s1373_s11  ;;  %v376_v46 = vsel %vm375_vm5, %v368_v29, %v370_v28 }
  0xac   : > { %v307_v30 = vpop.permute.xlu1 %306 }
  0xad   : > { %v305_v31 = vpop.permute.xlu0 %304  ;;  %477 = vrot.lane.b32.xlu1 %v307_v30, %s1373_s11 }
  0xae   : > { %v313_v45 = vsel %vm312_vm4, %v305_v31, %v307_v30 }
  0xb0   : > { %v374_v32 = vpop.permute.xlu1 %373 }
  0xb1   : > { %v372_v33 = vpop.permute.xlu0 %371 }
  0xb2   : > { %507 = vrot.lane.b32.xlu0 %v372_v33, %s1373_s11  ;;  %v377_v51 = vsel %vm375_vm5, %v372_v33, %v374_v32 }
  0xb4   : > { %v311_v34 = vpop.permute.xlu1 %310 }
  0xb5   : > { %481 = vrot.lane.b32.xlu1 %v311_v34, %s1373_s11  ;;  %v309_v44 = vpop.permute.xlu0 %308 }
  0xb6   : > { %459 = vrot.lane.b32.xlu0 %v291_v35, %s1373_s11  ;;  %v314_v47 = vsel %vm312_vm4, %v309_v44, %v311_v34 }
  0xb8   : > { %v381_v48 = vpop.permute.xlu1 %380 }
  0xb9   : > { %489 = vrot.lane.b32.xlu1 %v354_v36, %s1373_s11  ;;  %v379_v49 = vpop.permute.xlu0 %378 }
  0xba   : > { %463 = vrot.lane.b32.xlu0 %v292_v37, %s1373_s11  ;;  %v387_v52 = vsel %vm386_vm7, %v379_v49, %v381_v48 }
  0xbc   : > { %v385_v54 = vpop.permute.xlu1 %384 }
  0xbd   : > { %493 = vrot.lane.b32.xlu1 %v355_v38, %s1373_s11  ;;  %v383_v55 = vpop.permute.xlu0 %382 }
  0xbe   : > { %467 = vrot.lane.b32.xlu0 %v302_v39, %s1373_s11  ;;  %v388_v56 = vsel %vm386_vm7, %v383_v55, %v385_v54 }
  0xc0   : > { %v454_v62 = vpop.permute.xlu1 %453 }
  0xc1   : > { %497 = vrot.lane.b32.xlu1 %v365_v40, %s1373_s11  ;;  %v452_v61 = vpop.permute.xlu0 %451 }
  0xc2   : > { %471 = vrot.lane.b32.xlu0 %v303_v41, %s1373_s11  ;;  %v520_v1 = vsel %vm519_vm8, %v452_v61, %v454_v62 }
  0xc4   : > { %v456_v0 = vpop.permute.xlu1 %455 }
  0xc5   : > { %501 = vrot.lane.b32.xlu1 %v366_v43, %s1373_s11  ;;  %v458_v63 = vpop.permute.xlu0 %457  ;;  %v1344_v43 = vld [vmem:[%s1738_s1 + $0x1c] ss:$12 sps:$4 sm:$0xff]  }
  0xc6   : > { %475 = vrot.lane.b32.xlu0 %v313_v45, %s1373_s11  ;;  %v521_v3 = vsel %vm519_vm8, %v456_v0, %v458_v63 }
  0xc9   : > { %505 = vrot.lane.b32.xlu1 %v376_v46, %s1373_s11 }
  0xca   : > { %479 = vrot.lane.b32.xlu0 %v314_v47, %s1373_s11 }
  0xcd   : > { %509 = vrot.lane.b32.xlu1 %v377_v51, %s1373_s11 }
  0xce   : > { %511 = vrot.lane.b32.xlu0 %v379_v49, %s1373_s11  ;;  %v1347_v49 = vld [vmem:[%s1738_s1 + $0x18] ss:$12 sps:$4 sm:$0xff]  }
  0xd1   : > { %513 = vrot.lane.b32.xlu1 %v387_v52, %s1373_s11 }
  0xd2   : > { %515 = vrot.lane.b32.xlu0 %v383_v55, %s1373_s11 }
  0xd5   : > { %517 = vrot.lane.b32.xlu1 %v388_v56, %s1373_s11 }
  0xd6   : > { %403 = vperm.xlu0 %1285, %v397_v57  }
  0xd9   : > { %408 = vperm.xlu1 %1286, %v398_v58  }
  0xda   : > { %418 = vperm.xlu0 %1285, %v400_v59  }
  0xdd   : > { %413 = vperm.xlu1 %1286, %v399_v60  }
  0xde   : > { %1288 = vrot.lane.b32.xlu0 %v1374_v53, %s1365_s27 }
  0xe1   : > { %1293 = vrot.lane.b32.xlu1 %v1374_v53, %s1367_s29 }
  0xe2   : > { %1298 = vrot.lane.b32.xlu0 %v1374_v53, %s1368_s30 }
  0xe5   : > { %1303 = vrot.lane.b32.xlu1 %v1374_v53, %s1369_s7 }
  0xf8   : > { %v484_v2 = vpop.permute.xlu0 %483 }
  0xf9   : > { %1186 = vmatprep.subr.bf16.mxu0 %v484_v2 }
  0xfa   : > { %1187 = vmatpush3.bf16.msra.mxu0 %v520_v1 }
  0xfc   : > { %v486_v4 = vpop.permute.xlu1 %485  ;;  %v488_v5 = vpop.permute.xlu0 %487 }
  0xfd   : > { %1188 = vmatprep.subr.bf16.mxu0 %v486_v4 }
  0xfe   : > { %1189 = vmatpush3.bf16.msra.mxu0 %v521_v3 }
 0x100   : > { %v462_v7 = vpop.permute.xlu1 %461 }
 0x104   : > { %v492_v6 = vpop.permute.xlu0 %491 }
 0x107   : > { %v466_v9 = vpop.permute.xlu1 %465 }
 0x10c   : > { %v496_v8 = vpop.permute.xlu0 %495 }
 0x10f   : > { %v470_v11 = vpop.permute.xlu1 %469 }
 0x114   : > { %v500_v10 = vpop.permute.xlu0 %499 }
 0x117   : > { %v474_v13 = vpop.permute.xlu1 %473 }
 0x11c   : > { %v504_v12 = vpop.permute.xlu0 %503 }
 0x11f   : > { %v478_v14 = vpop.permute.xlu1 %477 }
 0x124   : > { %v508_v15 = vpop.permute.xlu0 %507 }
 0x127   : > { %v482_v16 = vpop.permute.xlu1 %481 }
 0x128   : > { %v460_v17 = vpop.permute.xlu0 %459 }
 0x129   : > { %v522_v21 = vsel %vm519_vm8, %v460_v17, %v462_v7 }
 0x12b   : > { %v490_v18 = vpop.permute.xlu1 %489 }
 0x12c   : > { %v464_v19 = vpop.permute.xlu0 %463  ;;  %v528_v20 = vsel %vm519_vm8, %v488_v5, %v490_v18 }
 0x12d   : > { %1190 = vmatprep.subr.bf16.mxu0 %v528_v20  ;;  %v523_v25 = vsel %vm519_vm8, %v464_v19, %v466_v9 }
 0x12e   : > { %1191 = vmatpush3.bf16.msra.mxu0 %v522_v21 }
 0x12f   : > { %v494_v22 = vpop.permute.xlu1 %493 }
 0x130   : > { %v468_v23 = vpop.permute.xlu0 %467  ;;  %v529_v24 = vsel %vm519_vm8, %v492_v6, %v494_v22 }
 0x131   : > { %1192 = vmatprep.subr.bf16.mxu0 %v529_v24  ;;  %v524_v29 = vsel %vm519_vm8, %v468_v23, %v470_v11 }
 0x132   : > { %1193 = vmatpush3.bf16.msra.mxu0 %v523_v25 }
 0x133   : > { %v498_v26 = vpop.permute.xlu1 %497 }
 0x134   : > { %v472_v27 = vpop.permute.xlu0 %471  ;;  %v530_v28 = vsel %vm519_vm8, %v496_v8, %v498_v26 }
 0x135   : > { %1194 = vmatprep.subr.bf16.mxu0 %v530_v28  ;;  %v525_v33 = vsel %vm519_vm8, %v472_v27, %v474_v13  ;;  %v1577_v13 = vld [vmem:[%s1742_s5] ss:$0 sm:$0xff] }
 0x136   : > { %1195 = vmatpush3.bf16.msra.mxu0 %v524_v29 }
 0x137   : > { %v502_v30 = vpop.permute.xlu1 %501 }
 0x138   : > { %v476_v31 = vpop.permute.xlu0 %475  ;;  %v531_v32 = vsel %vm519_vm8, %v500_v10, %v502_v30 }
 0x139   : > { %1196 = vmatprep.subr.bf16.mxu0 %v531_v32  ;;  %v526_v37 = vsel %vm519_vm8, %v476_v31, %v478_v14 }
 0x13a   : > { %1197 = vmatpush3.bf16.msra.mxu0 %v525_v33 }
 0x13b   : > { %v506_v34 = vpop.permute.xlu1 %505 }
 0x13c   : > { %v480_v35 = vpop.permute.xlu0 %479  ;;  %v532_v36 = vsel %vm519_vm8, %v504_v12, %v506_v34 }
 0x13d   : > { %1198 = vmatprep.subr.bf16.mxu0 %v532_v36  ;;  %v527_v41 = vsel %vm519_vm8, %v480_v35, %v482_v16 }
 0x13e   : > { %1199 = vmatpush3.bf16.msra.mxu0 %v526_v37 }
 0x13f   : > { %v510_v38 = vpop.permute.xlu1 %509 }
 0x140   : > { %v533_v39 = vsel %vm519_vm8, %v508_v15, %v510_v38  ;;  %v512_v40 = vpop.permute.xlu0 %511 }
 0x141   : > { %1200 = vmatprep.subr.bf16.mxu0 %v533_v39 }
 0x142   : > { %1201 = vmatpush3.bf16.msra.mxu0 %v527_v41 }
 0x143   : > { %v514_v44 = vpop.permute.xlu1 %513 }
 0x144   : > { %v534_v45 = vsel %vm519_vm8, %v512_v40, %v514_v44  ;;  %v516_v46 = vpop.permute.xlu0 %515 }
 0x145   : > { %594 = vmatmul.mubr.bf16.vlgmr.msra.gmra.mrb[0].mxu0 %v1341_v42  ;;  %1250 = vmatprep.subr.bf16.mxu1 %v534_v45 }
 0x146   : > { %1251 = vmatpush3.bf16.msra.mxu1 %v534_v45  ;;  %601 = vmatprep.mubr.bf16.mxu0 %v1344_v43 }
 0x147   : > { %v518_v47 = vpop.permute.xlu1 %517 }
 0x148   : > { %v535_v48 = vsel %vm519_vm8, %v516_v46, %v518_v47 }
 0x149   : > { %1252 = vmatprep.subr.bf16.mxu1 %v535_v48 }
 0x14a   : > { %1253 = vmatpush3.bf16.msra.mxu1 %v535_v48 }
 0x14d   : > { %602 = vmatmul.mubr.bf16.gmra.mrb[4].mxu0 %v1347_v49  ;;  %1255 = vmatmul.mubr.msk.bf16.vlgmr.msra.gmra.mrb[0].mxu1 %vm554_vm6, %v1348_v50 }
 0x155   : > { %v404_v58 = vpop.permute.xlu0 %403 }
 0x158   : > { %v409_v54 = vpop.permute.xlu1 %408 }
 0x159   : > { %v419_v14 = vpop.permute.xlu0 %418 }
 0x15c   : > { %v414_v61 = vpop.permute.xlu1 %413 }
 0x15d   : > { %v1289_v28 = vpop.permute.xlu0 %1288 }
 0x15e   : > { %v1290_v37 = vunpack.i.l.bf16 %v1289_v28 }
 0x160   : > { %v1294_v27 = vpop.permute.xlu1 %1293 }
 0x161   : > { %v1299_v30 = vpop.permute.xlu0 %1298  ;;  %v1295_v41 = vunpack.i.l.bf16 %v1294_v27 }
 0x162   : > { %v1300_v42 = vunpack.i.l.bf16 %v1299_v30 }
 0x164   : > { %v1304_v29 = vpop.permute.xlu1 %1303 }
 0x165   : > { %v1305_v47 = vunpack.i.l.bf16 %v1304_v29 }
 0x218   : > { %v1202_v51 = vpop.f32.mrb[0].mxu0 }
 0x219   : > { %v1203_v52 = vpop.f32.mrb[1].mxu0 }
 0x21a   : > { %v1204_v55 = vadd.f32 %v1203_v52, %v1202_v51  ;;  %v1205_v56 = vpop.f32.mrb[2].mxu0 }
 0x21b   : > { %v1206_v57 = vpop.f32.mrb[3].mxu0 }
 0x21c   : > { %v1207_v59 = vadd.f32 %v1206_v57, %v1205_v56  ;;  %v596_v60 = vadd.f32 %v1204_v55, %v404_v58  ;;  %v1291_v55 = vunpack.i.h.bf16 %v1289_v28 }
 0x21e   : > { %v599_v2 = vadd.f32 %v1207_v59, %v409_v54  ;;  %v1296_v54 = vunpack.i.h.bf16 %v1294_v27 }
 0x220   : > { %v1208_v62 = vpop.f32.mrb[4].mxu0  ;;  %v1256_v63 = vpop.f32.mrb[0].mxu1 }
 0x221   : > { %v1209_v0 = vpop.f32.mrb[5].mxu0  ;;  %v644_v1 = vpop.f32.mrb[1].mxu1 }
 0x222   : > { %v1210_v3 = vadd.f32 %v1209_v0, %v1208_v62  ;;  %v645_v4 = vadd.f32 %v644_v1, %v596_v60  ;;  %v1211_v5 = vpop.f32.mrb[6].mxu0  ;;  %v1257_v6 = vpop.f32.mrb[2].mxu1  ;;  %v1306_v62 = vunpack.i.h.bf16 %v1304_v29 }
 0x223   : > { %v1212_v7 = vpop.f32.mrb[7].mxu0  ;;  %v647_v8 = vpop.f32.mrb[3].mxu1 }
 0x224   : > { %v604_v9 = vadd.f32 %v1210_v3, %v414_v61  ;;  %v659_v10 = vmax.f32 %v645_v4, 0.0  ;;  %v1213_v11 = vadd.f32 %v1212_v7, %v1211_v5  ;;  %v648_v12 = vadd.f32 %v647_v8, %v599_v2  ;;  %v1351_v4 = vld [vmem:[%s1740_s3 + $0x4] ss:$12 sps:$4 sm:$0xff]  }
 0x225   : > { %973 = vmatprep.mubr.bf16.mxu1 %v1351_v4  ;;  %v1349_v4 = vld [vmem:[%s1740_s3] ss:$12 sps:$4 sm:$0xff]  }
 0x226   : > { %v653_v15 = vadd.f32 %v1256_v63, %v604_v9  ;;  %v607_v16 = vadd.f32 %v1213_v11, %v419_v14  ;;  %v660_v17 = vmax.f32 %v648_v12, 0.0  ;;  %v669_v19 = vmul.f32 %v1577_v13, %v659_v10  ;;  %v1355_v12 = vld [vmem:[%s1740_s3 + $0x8] ss:$12 sps:$4 sm:$0xff]  }
 0x227   : > { %v1301_v63 = vunpack.i.h.bf16 %v1299_v30  ;;  %1262 = vmatprep.mubr.msk.bf16.mxu0 %vm554_vm6, %v1355_v12  ;;  %v1354_v12 = vld [vmem:[%s1740_s3 + $0x18] ss:$12 sps:$4 sm:$0xff]  }
 0x228   : > { %v661_v18 = vmax.f32 %v653_v15, 0.0  ;;  %v656_v20 = vadd.f32 %v1257_v6, %v607_v16  ;;  %v670_v21 = vmul.f32 %v1577_v13, %v660_v17 }
 0x22a   : > { %v662_v22 = vmax.f32 %v656_v20, 0.0  ;;  %v673_v23 = vpack.c.bf16 %v670_v21, %v669_v19  ;;  %v671_v24 = vmul.f32 %v1577_v13, %v661_v18  ;;  %v779_v18 = vld [vmem:[%s1741_s4] sm:$0xff]  ;;  %v781_v20 = vld [vmem:[%s1741_s4 + $0x10] sm:$0xff]  ;;  %v780_v21 = vld [vmem:[%s1741_s4 + $0x8] sm:$0xff] }
 0x22c   : > { %v672_v25 = vmul.f32 %v1577_v13, %v662_v22  ;;  %695 = vrot.lane.b32.xlu0 %v673_v23, %s1367_s29  ;;  %723 = vrot.lane.b32.xlu1 %v673_v23, %s1366_s28  ;;  %v782_v22 = vld [vmem:[%s1741_s4 + $0x18] sm:$0xff] }
 0x22e   : > { %v674_v26 = vpack.c.bf16 %v672_v25, %v671_v24 }
 0x230   : > { %705 = vrot.lane.b32.xlu0 %v673_v23, %s1369_s7  ;;  %731 = vrot.lane.b32.xlu1 %v673_v23, %s1365_s27 }
 0x234   : > { %741 = vrot.lane.b32.xlu1 %v673_v23, %s1368_s30  ;;  %725 = vrot.lane.b32.xlu0 %v674_v26, %s1366_s28 }
 0x238   : > { %751 = vrot.lane.b32.xlu1 %v673_v23, %s1370_s8  ;;  %1308 = vrot.lane.b32.xlu0 %v1374_v53, %s1370_s8 }
 0x23c   : > { %735 = vrot.lane.b32.xlu1 %v674_v26, %s1365_s27  ;;  %699 = vrot.lane.b32.xlu0 %v674_v26, %s1367_s29  ;;  %s1706_s29 = scalar_lea.vmem %s1743_s6, %s1266_s23 }
 0x23d   : > { %1079 = vst [vmem:[%s1706_s29] sm:$0xf] %v1374_v53  ;;  %1080 = vst [vmem:[%s1706_s29 + $0xc] sm:$0xf] %v1374_v53 }
 0x23e   : > { %1081 = vst [vmem:[%s1706_s29 + $0x18] sm:$0xf] %v1374_v53  ;;  %1082 = vst [vmem:[%s1706_s29 + $0x24] sm:$0xf] %v1374_v53 }
 0x23f   : > { %1083 = vst [vmem:[%s1706_s29 + $0x8] sm:$0xf] %v1374_v53  ;;  %1084 = vst [vmem:[%s1706_s29 + $0x14] sm:$0xf] %v1374_v53 }
 0x240   : > { %1313 = vrot.lane.b32.xlu1 %v1374_v53, %s1371_s9  ;;  %715 = vrot.lane.b32.xlu0 %v673_v23, %s1371_s9  ;;  %1085 = vst [vmem:[%s1706_s29 + $0x20] sm:$0xf] %v1374_v53  ;;  %1086 = vst [vmem:[%s1706_s29 + $0x2c] sm:$0xf] %v1374_v53 }
 0x244   : > { %745 = vrot.lane.b32.xlu1 %v674_v26, %s1368_s30  ;;  %709 = vrot.lane.b32.xlu0 %v674_v26, %s1369_s7 }
 0x248   : > { %761 = vrot.lane.b32.xlu1 %v673_v23, %s1372_s10  ;;  %1318 = vrot.lane.b32.xlu0 %v1374_v53, %s1372_s10 }
 0x24c   : > { %755 = vrot.lane.b32.xlu1 %v674_v26, %s1370_s8  ;;  %719 = vrot.lane.b32.xlu0 %v674_v26, %s1371_s9 }
 0x250   : > { %835 = vrot.lane.b32.xlu1 %v673_v23, %s1373_s11  ;;  %1323 = vrot.lane.b32.xlu0 %v1374_v53, %s1373_s11 }
 0x254   : > { %765 = vrot.lane.b32.xlu1 %v674_v26, %s1372_s10 }
 0x258   : > { %839 = vrot.lane.b32.xlu1 %v674_v26, %s1373_s11 }
 0x29e   : > { %v724_v31 = vpop.permute.xlu1 %723  ;;  %v696_v32 = vpop.permute.xlu0 %695 }
 0x29f   : > { %865 = vrot.lane.b32.xlu0 %v724_v31, %s1373_s11  ;;  %v701_v43 = vsel %vm290_vm0, %v1295_v41, %v696_v32 }
 0x2a2   : > { %v732_v33 = vpop.permute.xlu1 %731  ;;  %v706_v34 = vpop.permute.xlu0 %705 }
 0x2a3   : > { %869 = vrot.lane.b32.xlu1 %v732_v33, %s1373_s11  ;;  %843 = vrot.lane.b32.xlu0 %v696_v32, %s1373_s11  ;;  %v739_v38 = vsel %vm353_vm1, %v732_v33, %v1290_v37  ;;  %v711_v48 = vsel %vm301_vm2, %v1305_v47, %v706_v34 }
 0x2a6   : > { %v742_v35 = vpop.permute.xlu1 %741  ;;  %v726_v36 = vpop.permute.xlu0 %725 }
 0x2a7   : > { %877 = vrot.lane.b32.xlu1 %v742_v35, %s1373_s11  ;;  %851 = vrot.lane.b32.xlu0 %v706_v34, %s1373_s11  ;;  %v749_v44 = vsel %vm364_vm3, %v742_v35, %v1300_v42 }
 0x2aa   : > { %v752_v39 = vpop.permute.xlu1 %751  ;;  %v1309_v40 = vpop.permute.xlu0 %1308 }
 0x2ab   : > { %885 = vrot.lane.b32.xlu1 %v752_v39, %s1373_s11  ;;  %871 = vrot.lane.b32.xlu0 %v739_v38, %s1373_s11  ;;  %v1310_v56 = vunpack.i.l.bf16 %v1309_v40  ;;  %v1311_v7 = vunpack.i.h.bf16 %v1309_v40 }
 0x2ad   : > { %v759_v61 = vsel %vm375_vm5, %v752_v39, %v1310_v56 }
 0x2ae   : > { %v736_v45 = vpop.permute.xlu1 %735  ;;  %v700_v46 = vpop.permute.xlu0 %699 }
 0x2af   : > { %841 = vrot.lane.b32.xlu1 %v701_v43, %s1373_s11  ;;  %879 = vrot.lane.b32.xlu0 %v749_v44, %s1373_s11  ;;  %v740_v57 = vsel %vm353_vm1, %v736_v45, %v1291_v55  ;;  %v702_v58 = vsel %vm290_vm0, %v1296_v54, %v700_v46 }
 0x2b2   : > { %v1314_v49 = vpop.permute.xlu1 %1313  ;;  %v716_v50 = vpop.permute.xlu0 %715 }
 0x2b3   : > { %849 = vrot.lane.b32.xlu1 %v711_v48, %s1373_s11  ;;  %867 = vrot.lane.b32.xlu0 %v726_v36, %s1373_s11  ;;  %v1315_v59 = vunpack.i.l.bf16 %v1314_v49  ;;  %v1316_v8 = vunpack.i.h.bf16 %v1314_v49 }
 0x2b5   : > { %v721_v60 = vsel %vm312_vm4, %v1315_v59, %v716_v50 }
 0x2b6   : > { %v746_v51 = vpop.permute.xlu1 %745  ;;  %v710_v52 = vpop.permute.xlu0 %709 }
 0x2b7   : > { %873 = vrot.lane.b32.xlu1 %v736_v45, %s1373_s11  ;;  %847 = vrot.lane.b32.xlu0 %v700_v46, %s1373_s11  ;;  %v750_v2 = vsel %vm364_vm3, %v746_v51, %v1301_v63  ;;  %v712_v3 = vsel %vm301_vm2, %v1306_v62, %v710_v52 }
 0x2ba   : > { %v762_v0 = vpop.permute.xlu1 %761  ;;  %v1319_v1 = vpop.permute.xlu0 %1318 }
 0x2bb   : > { %881 = vrot.lane.b32.xlu1 %v746_v51, %s1373_s11  ;;  %855 = vrot.lane.b32.xlu0 %v710_v52, %s1373_s11  ;;  %v1320_v14 = vunpack.i.l.bf16 %v1319_v1  ;;  %v1321_v15 = vunpack.i.h.bf16 %v1319_v1 }
 0x2bd   : > { %v769_v17 = vsel %vm386_vm7, %v762_v0, %v1320_v14  ;;  %v1356_v14 = vld [vmem:[%s1740_s3 + $0x20] ss:$12 sps:$4 sm:$0xff]  }
 0x2be   : > { %v756_v5 = vpop.permute.xlu1 %755  ;;  %v720_v6 = vpop.permute.xlu0 %719 }
 0x2bf   : > { %845 = vrot.lane.b32.xlu1 %v702_v58, %s1373_s11  ;;  %875 = vrot.lane.b32.xlu0 %v740_v57, %s1373_s11  ;;  %v760_v9 = vsel %vm375_vm5, %v756_v5, %v1311_v7  ;;  %v722_v10 = vsel %vm312_vm4, %v1316_v8, %v720_v6 }
 0x2c2   : > { %v836_v11 = vpop.permute.xlu1 %835  ;;  %v1324_v23 = vpop.permute.xlu0 %1323 }
 0x2c3   : > { %857 = vrot.lane.b32.xlu1 %v721_v60, %s1373_s11  ;;  %887 = vrot.lane.b32.xlu0 %v759_v61, %s1373_s11  ;;  %v1325_v24 = vunpack.i.l.bf16 %v1324_v23  ;;  %v1326_v36 = vunpack.i.h.bf16 %v1324_v23 }
 0x2c5   : > { %v901_v27 = vsel %vm519_vm8, %v1325_v24, %v836_v11 }
 0x2c6   : > { %v766_v16 = vpop.permute.xlu1 %765 }
 0x2c7   : > { %853 = vrot.lane.b32.xlu1 %v712_v3, %s1373_s11  ;;  %883 = vrot.lane.b32.xlu0 %v750_v2, %s1373_s11  ;;  %v770_v19 = vsel %vm386_vm7, %v766_v16, %v1321_v15 }
 0x2ca   : > { %v840_v25 = vpop.permute.xlu1 %839 }
 0x2cb   : > { %889 = vrot.lane.b32.xlu1 %v756_v5, %s1373_s11  ;;  %859 = vrot.lane.b32.xlu0 %v716_v50, %s1373_s11  ;;  %v902_v39 = vsel %vm519_vm8, %v1326_v36, %v840_v25 }
 0x2cf   : > { %861 = vrot.lane.b32.xlu1 %v722_v10, %s1373_s11  ;;  %891 = vrot.lane.b32.xlu0 %v760_v9, %s1373_s11 }
 0x2d3   : > { %893 = vrot.lane.b32.xlu1 %v762_v0, %s1373_s11  ;;  %863 = vrot.lane.b32.xlu0 %v720_v6, %s1373_s11  ;;  %v1352_v6 = vld [vmem:[%s1740_s3 + $0x1c] ss:$12 sps:$4 sm:$0xff]  }
 0x2d7   : > { %897 = vrot.lane.b32.xlu1 %v766_v16, %s1373_s11  ;;  %895 = vrot.lane.b32.xlu0 %v769_v17, %s1373_s11 }
 0x2db   : > { %785 = vperm.xlu1 %1286, %v779_v18   ;;  %899 = vrot.lane.b32.xlu0 %v770_v19, %s1373_s11 }
 0x2df   : > { %795 = vperm.xlu1 %1286, %v781_v20   ;;  %790 = vperm.xlu0 %1285, %v780_v21  }
 0x2e3   : > { %800 = vperm.xlu0 %1285, %v782_v22   ;;  %v1041_v22 = vld [vmem:[%s1426_s26 + $0x4] ss:$24 sps:$4 sm:$0xff]  }
 0x311   : > { %v866_v26 = vpop.permute.xlu0 %865 }
 0x312   : > { %1218 = vmatprep.subr.bf16.mxu1 %v866_v26  ;;  %v1042_v26 = vld [vmem:[%s1426_s26 + $0x10] ss:$24 sps:$4 sm:$0xff]  }
 0x313   : > { %1219 = vmatpush3.bf16.msra.mxu1 %v901_v27 }
 0x315   : > { %v870_v28 = vpop.permute.xlu1 %869  ;;  %v844_v29 = vpop.permute.xlu0 %843 }
 0x319   : > { %v878_v30 = vpop.permute.xlu1 %877  ;;  %v852_v31 = vpop.permute.xlu0 %851 }
 0x31d   : > { %v886_v32 = vpop.permute.xlu1 %885  ;;  %v872_v33 = vpop.permute.xlu0 %871 }
 0x31e   : > { %v909_v40 = vsel %vm519_vm8, %v870_v28, %v872_v33 }
 0x321   : > { %v842_v34 = vpop.permute.xlu1 %841  ;;  %v880_v35 = vpop.permute.xlu0 %879 }
 0x322   : > { %v903_v43 = vsel %vm519_vm8, %v842_v34, %v844_v29  ;;  %v911_v50 = vsel %vm519_vm8, %v878_v30, %v880_v35  ;;  %v1043_v30 = vunpack.c.l.bf16 %v1041_v22 }
 0x325   : > { %v850_v37 = vpop.permute.xlu1 %849  ;;  %v868_v38 = vpop.permute.xlu0 %867 }
 0x326   : > { %1220 = vmatprep.subr.bf16.mxu1 %v868_v38  ;;  %v905_v54 = vsel %vm519_vm8, %v850_v37, %v852_v31  ;;  %v1044_v37 = vunpack.c.l.bf16 %v1042_v26 }
 0x327   : > { %1221 = vmatpush3.bf16.msra.mxu1 %v902_v39  ;;  %v1045_v39 = vunpack.c.h.bf16 %v1041_v22 }
 0x328   : > { %1222 = vmatprep.subr.bf16.mxu1 %v909_v40 }
 0x329   : > { %v874_v41 = vpop.permute.xlu1 %873  ;;  %v848_v42 = vpop.permute.xlu0 %847 }
 0x32b   : > { %1223 = vmatpush3.bf16.msra.mxu1 %v903_v43 }
 0x32d   : > { %v882_v44 = vpop.permute.xlu1 %881  ;;  %v856_v45 = vpop.permute.xlu0 %855 }
 0x331   : > { %v846_v46 = vpop.permute.xlu1 %845  ;;  %v876_v47 = vpop.permute.xlu0 %875 }
 0x332   : > { %v904_v48 = vsel %vm519_vm8, %v846_v46, %v848_v42  ;;  %v910_v49 = vsel %vm519_vm8, %v874_v41, %v876_v47  ;;  %v1046_v47 = vunpack.c.h.bf16 %v1042_v26 }
 0x333   : > { %1224 = vmatprep.subr.bf16.mxu1 %v910_v49 }
 0x334   : > { %1225 = vmatpush3.bf16.msra.mxu1 %v904_v48 }
 0x335   : > { %v858_v51 = vpop.permute.xlu1 %857  ;;  %1226 = vmatprep.subr.bf16.mxu1 %v911_v50  ;;  %v888_v52 = vpop.permute.xlu0 %887 }
 0x336   : > { %v913_v59 = vsel %vm519_vm8, %v886_v32, %v888_v52 }
 0x338   : > { %1227 = vmatpush3.bf16.msra.mxu1 %v905_v54 }
 0x339   : > { %v854_v55 = vpop.permute.xlu1 %853  ;;  %v884_v56 = vpop.permute.xlu0 %883 }
 0x33a   : > { %v906_v57 = vsel %vm519_vm8, %v854_v55, %v856_v45  ;;  %v912_v58 = vsel %vm519_vm8, %v882_v44, %v884_v56 }
 0x33b   : > { %1228 = vmatprep.subr.bf16.mxu1 %v912_v58 }
 0x33c   : > { %1229 = vmatpush3.bf16.msra.mxu1 %v906_v57 }
 0x33d   : > { %v890_v60 = vpop.permute.xlu1 %889  ;;  %1230 = vmatprep.subr.bf16.mxu1 %v913_v59  ;;  %v860_v61 = vpop.permute.xlu0 %859 }
 0x33e   : > { %v907_v62 = vsel %vm519_vm8, %v858_v51, %v860_v61 }
 0x340   : > { %1231 = vmatpush3.bf16.msra.mxu1 %v907_v62 }
 0x341   : > { %v862_v63 = vpop.permute.xlu1 %861  ;;  %v892_v0 = vpop.permute.xlu0 %891 }
 0x342   : > { %v914_v1 = vsel %vm519_vm8, %v890_v60, %v892_v0 }
 0x343   : > { %1232 = vmatprep.subr.bf16.mxu1 %v914_v1 }
 0x345   : > { %v864_v2 = vpop.permute.xlu0 %863  ;;  %v894_v5 = vpop.permute.xlu1 %893 }
 0x346   : > { %v908_v3 = vsel %vm519_vm8, %v862_v63, %v864_v2 }
 0x347   : > { %1233 = vmatpush3.bf16.msra.mxu1 %v908_v3 }
 0x349   : > { %v896_v7 = vpop.permute.xlu0 %895  ;;  %v898_v9 = vpop.permute.xlu1 %897 }
 0x34a   : > { %974 = vmatmul.mubr.bf16.vlgmr.msra.gmra.mrb[4].mxu1 %v1349_v4  ;;  %v915_v8 = vsel %vm519_vm8, %v894_v5, %v896_v7 }
 0x34b   : > { %1258 = vmatprep.subr.bf16.mxu0 %v915_v8  ;;  %981 = vmatprep.mubr.bf16.mxu1 %v1352_v6 }
 0x34c   : > { %1259 = vmatpush3.bf16.msra.mxu0 %v915_v8 }
 0x34d   : > { %v900_v10 = vpop.permute.xlu0 %899 }
 0x34e   : > { %v916_v11 = vsel %vm519_vm8, %v898_v9, %v900_v10 }
 0x34f   : > { %1260 = vmatprep.subr.bf16.mxu0 %v916_v11 }
 0x350   : > { %1261 = vmatpush3.bf16.msra.mxu0 %v916_v11 }
 0x352   : > { %982 = vmatmul.mubr.bf16.gmra.mrb[8].mxu1 %v1354_v12 }
 0x353   : > { %1263 = vmatmul.mubr.msk.bf16.vlgmr.msra.gmra.mrb[8].mxu0 %vm554_vm6, %v1356_v14 }
 0x35a   : > { %v786_v17 = vpop.permute.xlu1 %785 }
 0x35e   : > { %v791_v23 = vpop.permute.xlu0 %790  ;;  %v796_v24 = vpop.permute.xlu1 %795 }
 0x362   : > { %v801_v42 = vpop.permute.xlu0 %800 }
 0x41d   : > { %v1234_v15 = vpop.f32.mrb[4].mxu1 }
 0x41e   : > { %v1235_v16 = vpop.f32.mrb[5].mxu1 }
 0x41f   : > { %v1236_v18 = vadd.f32 %v1235_v16, %v1234_v15  ;;  %v1237_v19 = vpop.f32.mrb[6].mxu1 }
 0x420   : > { %v1238_v20 = vpop.f32.mrb[7].mxu1 }
 0x421   : > { %v1239_v21 = vadd.f32 %v1238_v20, %v1237_v19  ;;  %v976_v29 = vadd.f32 %v1236_v18, %v786_v17 }
 0x423   : > { %v979_v36 = vadd.f32 %v1239_v21, %v791_v23 }
 0x425   : > { %v1240_v25 = vpop.f32.mrb[8].mxu1 }
 0x426   : > { %v1241_v27 = vpop.f32.mrb[9].mxu1  ;;  %v1264_v28 = vpop.f32.mrb[8].mxu0 }
 0x427   : > { %v1242_v31 = vadd.f32 %v1241_v27, %v1240_v25  ;;  %v1243_v32 = vpop.f32.mrb[10].mxu1  ;;  %v1024_v33 = vpop.f32.mrb[9].mxu0 }
 0x428   : > { %v1025_v53 = vadd.f32 %v1024_v33, %v976_v29  ;;  %v1244_v34 = vpop.f32.mrb[11].mxu1  ;;  %v1265_v35 = vpop.f32.mrb[10].mxu0 }
 0x429   : > { %v984_v38 = vadd.f32 %v1242_v31, %v796_v24  ;;  %v1245_v40 = vadd.f32 %v1244_v34, %v1243_v32  ;;  %v1027_v41 = vpop.f32.mrb[11].mxu0 }
 0x42a   : > { %v1047_v43 = vadd.f32 %v1043_v30, %v1025_v53  ;;  %v1028_v44 = vadd.f32 %v1027_v41, %v979_v36 }
 0x42b   : > { %v1033_v45 = vadd.f32 %v1264_v28, %v984_v38  ;;  %v987_v46 = vadd.f32 %v1245_v40, %v801_v42 }
 0x42c   : > { %v1051_v48 = vmax.f32 %v1047_v43, 0.0  ;;  %v1048_v49 = vadd.f32 %v1044_v37, %v1028_v44 }
 0x42d   : > { %v1049_v50 = vadd.f32 %v1045_v39, %v1033_v45  ;;  %v1036_v51 = vadd.f32 %v1265_v35, %v987_v46 }
 0x42e   : > { %v1055_v52 = vmul.f32 %v1577_v13, %v1051_v48  ;;  %v1052_v54 = vmax.f32 %v1048_v49, 0.0 }
 0x42f   : > { %v1053_v55 = vmax.f32 %v1049_v50, 0.0  ;;  %v1050_v56 = vadd.f32 %v1046_v47, %v1036_v51 }
 0x430   : > { %v1182_v57 = vpack.c.bf16 %v1055_v52, %v1055_v52  ;;  %v1056_v58 = vmul.f32 %v1577_v13, %v1052_v54 }
 0x431   : > { %v1057_v59 = vmul.f32 %v1577_v13, %v1053_v55  ;;  %v1054_v60 = vmax.f32 %v1050_v56, 0.0 }
 0x432   : > { %1075 = vst [vmem:[%s1706_s29 + $0x4] sm:$0xf] %v1182_v57  ;;  %v1183_v61 = vpack.c.bf16 %v1056_v58, %v1056_v58 }
 0x433   : > { %v1184_v62 = vpack.c.bf16 %v1057_v59, %v1057_v59  ;;  %v1058_v63 = vmul.f32 %v1577_v13, %v1054_v60 }
 0x434   : > { %1076 = vst [vmem:[%s1706_s29 + $0x10] sm:$0xf] %v1183_v61 }
 0x435   : > { %1077 = vst [vmem:[%s1706_s29 + $0x1c] sm:$0xf] %v1184_v62  ;;  %v1185_v0 = vpack.c.bf16 %v1058_v63, %v1058_v63 }
 0x437   : > { %1078 = vst [vmem:[%s1706_s29 + $0x28] sm:$0xf] %v1185_v0 }
 0x438 PF: > { %s16_s21 = sadd.s32 1, %s1363_s21  }
 0x439   : > { %p13_p4 = scmp.ge.s32.totalorder %s16_s21, 4  }
 0x43b   :  { %15 = sbr.rel (!%p13_p4) target bundleno = 1 (0x1), region = 74 }

// kernel: resnet56_forward.50
= control target key start
LH: loop header
LB: loop body
LE: loop exit
PB: predicated region body
PF: predicated region fallthrough
CT: control target
= control target key end

     0   :  { %v662_v1 = vmov 0   ;;  %vm283_vm0 = vcmask 261120   ;;  %s813_s1 = inlined_call_operand.vmem [shape: bf16[288,128], index: 1, kind: input, shape index: {}]   ;;  %s814_s0 = inlined_call_operand.vmem [shape: bf16[64,288], index: 0, kind: input, shape index: {}]   ;;  %s815_s2 = inlined_call_operand.vmem [shape: f32[64,1], index: 2, kind: input, shape index: {}]   ;;  %s816_s3 = inlined_call_operand.vmem [shape: bf16[64,128], index: 3, kind: output, shape index: {}]  }
   0x1   :  { %v628_v0 = vld [vmem:[%s813_s1 + $0x40] sm:$0xff]   ;;  %627 = vset.pattern.permute.xlu1 %v662_v1  ;;  %626 = vset.pattern.permute.xlu0 %v662_v1  ;;  %v630_v3 = vld [vmem:[%s813_s1 + $0x48] sm:$0xff]   ;;  %v632_v5 = vld [vmem:[%s813_s1 + $0x50] sm:$0xff]  }
   0x2   :  { %v629_v2 = vld [vmem:[%s813_s1] sm:$0xff]   ;;  %551 = vmatprep.subr.bf16.mxu0 %v628_v0  ;;  %609 = vmatprep.subr.bf16.mxu1 %v628_v0  ;;  %v631_v4 = vld [vmem:[%s813_s1 + $0x8] sm:$0xff]   ;;  %v633_v6 = vld [vmem:[%s813_s1 + $0x10] sm:$0xff]  }
   0x3   :  { %552 = vmatpush3.bf16.msra.mxu0 %v629_v2  ;;  %617 = vmatpush3.bf16.msra.mxu1 %v629_v2  ;;  %v634_v7 = vld [vmem:[%s813_s1 + $0x58] sm:$0xff]   ;;  %v636_v9 = vld [vmem:[%s813_s1 + $0x60] sm:$0xff]   ;;  %v638_v11 = vld [vmem:[%s813_s1 + $0x68] sm:$0xff]  }
   0x4   :  { %553 = vmatprep.subr.bf16.mxu0 %v630_v3  ;;  %610 = vmatprep.subr.bf16.mxu1 %v630_v3  ;;  %v635_v8 = vld [vmem:[%s813_s1 + $0x18] sm:$0xff]   ;;  %v637_v10 = vld [vmem:[%s813_s1 + $0x20] sm:$0xff]   ;;  %v639_v14 = vld [vmem:[%s813_s1 + $0x28] sm:$0xff]  }
   0x5   :  { %v646_v12 = vld [vmem:[%s814_s0 + $0x4] ss:$12 sps:$4 sm:$0xff]   ;;  %v649_v13 = vld [vmem:[%s814_s0 + $0x4c] ss:$12 sps:$4 sm:$0xff]   ;;  %v647_v23 = vld [vmem:[%s814_s0 + $0x48] ss:$12 sps:$4 sm:$0xff]  }
   0x6   :  { %v640_v15 = vld [vmem:[%s813_s1 + $0x70] sm:$0xff]   ;;  %328 = vmatprep.mubr.bf16.mxu0 %v646_v12  ;;  %352 = vmatprep.mubr.bf16.mxu1 %v649_v13  ;;  %v642_v17 = vld [vmem:[%s813_s1 + $0x78] sm:$0xff]   ;;  %v67_v20 = vld [vmem:[%s815_s2] sm:$0xff] }
   0x7   :  { %554 = vmatpush3.bf16.msra.mxu0 %v631_v4  ;;  %618 = vmatpush3.bf16.msra.mxu1 %v631_v4  ;;  %v641_v16 = vld [vmem:[%s813_s1 + $0x30] sm:$0xff]   ;;  %v643_v18 = vld [vmem:[%s813_s1 + $0x38] sm:$0xff]   ;;  %v650_v21 = vld [vmem:[%s813_s1 + $0x80] sm:$0xff]  }
   0x8   :  { %555 = vmatprep.subr.bf16.mxu0 %v632_v5  ;;  %611 = vmatprep.subr.bf16.mxu1 %v632_v5  ;;  %v69_v19 = vld [vmem:[%s815_s2 + $0x10] sm:$0xff]  ;;  %v644_v22 = vld [vmem:[%s814_s0] ss:$12 sps:$4 sm:$0xff]   ;;  %v70_v24 = vld [vmem:[%s815_s2 + $0x18] sm:$0xff] }
   0x9   :  { %87 = vperm.xlu1 %627, %v69_v19   ;;  %77 = vperm.xlu0 %626, %v67_v20   ;;  %v68_v25 = vld [vmem:[%s815_s2 + $0x8] sm:$0xff]  ;;  %v71_v30 = vld [vmem:[%s815_s2 + $0x20] sm:$0xff]  ;;  %v74_v33 = vld [vmem:[%s815_s2 + $0x38] sm:$0xff] }
   0xa   :  { %v652_v26 = vld [vmem:[%s814_s0 + $0x1c] ss:$12 sps:$4 sm:$0xff]   ;;  %v655_v31 = vld [vmem:[%s814_s0 + $0x18] ss:$12 sps:$4 sm:$0xff]   ;;  %v656_v32 = vld [vmem:[%s814_s0 + $0x20] ss:$12 sps:$4 sm:$0xff]  }
   0xb   :  { %556 = vmatpush3.bf16.msra.mxu0 %v633_v6  ;;  %619 = vmatpush3.bf16.msra.mxu1 %v633_v6  ;;  %v651_v27 = vld [vmem:[%s813_s1 + $0x88] sm:$0xff]   ;;  %v73_v34 = vld [vmem:[%s815_s2 + $0x30] sm:$0xff]  ;;  %v659_v36 = vld [vmem:[%s814_s0 + $0x38] ss:$12 sps:$4 sm:$0xff]  }
   0xc   :  { %557 = vmatprep.subr.bf16.mxu0 %v634_v7  ;;  %612 = vmatprep.subr.bf16.mxu1 %v634_v7  ;;  %v654_v28 = vld [vmem:[%s814_s0 + $0x8] ss:$12 sps:$4 sm:$0xff]   ;;  %v660_v37 = vld [vmem:[%s814_s0 + $0x30] ss:$12 sps:$4 sm:$0xff]  }
   0xd   :  { %92 = vperm.xlu1 %627, %v70_v24   ;;  %82 = vperm.xlu0 %626, %v68_v25   ;;  %v72_v29 = vld [vmem:[%s815_s2 + $0x28] sm:$0xff]  ;;  %v657_v35 = vld [vmem:[%s814_s0 + $0x34] ss:$12 sps:$4 sm:$0xff]   ;;  %v661_v38 = vld [vmem:[%s814_s0 + $0x50] ss:$12 sps:$4 sm:$0xff]  }
   0xf   :  { %558 = vmatpush3.bf16.msra.mxu0 %v635_v8  ;;  %620 = vmatpush3.bf16.msra.mxu1 %v635_v8 }
  0x10   :  { %559 = vmatprep.subr.bf16.mxu0 %v636_v9  ;;  %613 = vmatprep.subr.bf16.mxu1 %v636_v9 }
  0x11   :  { %102 = vperm.xlu1 %627, %v72_v29   ;;  %97 = vperm.xlu0 %626, %v71_v30  }
  0x13   :  { %560 = vmatpush3.bf16.msra.mxu0 %v637_v10  ;;  %621 = vmatpush3.bf16.msra.mxu1 %v637_v10 }
  0x14   :  { %561 = vmatprep.subr.bf16.mxu0 %v638_v11  ;;  %614 = vmatprep.subr.bf16.mxu1 %v638_v11 }
  0x15   :  { %112 = vperm.xlu1 %627, %v74_v33   ;;  %107 = vperm.xlu0 %626, %v73_v34  }
  0x17   :  { %562 = vmatpush3.bf16.msra.mxu0 %v639_v14  ;;  %622 = vmatpush3.bf16.msra.mxu1 %v639_v14 }
  0x18   :  { %563 = vmatprep.subr.bf16.mxu0 %v640_v15  ;;  %615 = vmatprep.subr.bf16.mxu1 %v640_v15 }
  0x1b   :  { %564 = vmatpush3.bf16.msra.mxu0 %v641_v16  ;;  %623 = vmatpush3.bf16.msra.mxu1 %v641_v16 }
  0x1c   :  { %565 = vmatprep.subr.bf16.mxu0 %v642_v17  ;;  %616 = vmatprep.subr.bf16.mxu1 %v642_v17 }
  0x1f   :  { %566 = vmatpush3.bf16.msra.mxu0 %v643_v18  ;;  %624 = vmatpush3.bf16.msra.mxu1 %v643_v18 }
  0x20   :  { %597 = vmatprep.subr.bf16.mxu1 %v650_v21 }
  0x22   :  { %329 = vmatmul.mubr.bf16.vlgmr.msra.gmra.mrb[0].mxu0 %v644_v22  ;;  %353 = vmatmul.mubr.bf16.vlgmr.msra.gmra.mrb[0].mxu1 %v647_v23 }
  0x23   :  { %598 = vmatpush3.bf16.msra.mxu1 %v650_v21  ;;  %336 = vmatprep.mubr.bf16.mxu0 %v652_v26 }
  0x24   :  { %599 = vmatprep.subr.bf16.mxu1 %v651_v27  ;;  %601 = vmatprep.mubr.msk.bf16.mxu1 %vm283_vm0, %v654_v28 }
  0x27   :  { %600 = vmatpush3.bf16.msra.mxu1 %v651_v27 }
  0x2a   :  { %337 = vmatmul.mubr.bf16.gmra.mrb[4].mxu0 %v655_v31  ;;  %602 = vmatmul.mubr.msk.bf16.vlgmr.msra.gmra.mrb[4].mxu1 %vm283_vm0, %v656_v32 }
  0x2b   :  { %344 = vmatprep.mubr.bf16.mxu0 %v657_v35  ;;  %605 = vmatprep.mubr.msk.bf16.mxu1 %vm283_vm0, %v659_v36 }
  0x32   :  { %345 = vmatmul.mubr.bf16.gmra.mrb[8].mxu0 %v660_v37  ;;  %606 = vmatmul.mubr.msk.bf16.gmra.mrb[8].mxu1 %vm283_vm0, %v661_v38 }
  0x88   :  { %v88_v39 = vpop.permute.xlu1 %87  ;;  %v78_v40 = vpop.permute.xlu0 %77 }
  0x8c   :  { %v93_v41 = vpop.permute.xlu1 %92  ;;  %v83_v42 = vpop.permute.xlu0 %82 }
  0x90   :  { %v98_v55 = vpop.permute.xlu0 %97  ;;  %v103_v56 = vpop.permute.xlu1 %102 }
  0x94   :  { %v108_v5 = vpop.permute.xlu0 %107  ;;  %v113_v9 = vpop.permute.xlu1 %112 }
  0xf5   :  { %v567_v43 = vpop.f32.mrb[0].mxu0  ;;  %v585_v44 = vpop.f32.mrb[0].mxu1 }
  0xf6   :  { %v568_v45 = vpop.f32.mrb[1].mxu0  ;;  %v586_v46 = vpop.f32.mrb[1].mxu1 }
  0xf7   :  { %v569_v47 = vadd.f32 %v568_v45, %v567_v43  ;;  %v570_v48 = vpop.f32.mrb[2].mxu0  ;;  %v587_v49 = vadd.f32 %v586_v46, %v585_v44  ;;  %v588_v50 = vpop.f32.mrb[2].mxu1 }
  0xf8   :  { %v571_v51 = vpop.f32.mrb[3].mxu0  ;;  %v589_v52 = vpop.f32.mrb[3].mxu1 }
  0xf9   :  { %v572_v53 = vadd.f32 %v571_v51, %v570_v48  ;;  %v590_v54 = vadd.f32 %v589_v52, %v588_v50  ;;  %v331_v59 = vadd.f32 %v569_v47, %v78_v40  ;;  %v355_v14 = vadd.f32 %v587_v49, %v108_v5 }
  0xfb   :  { %v334_v2 = vadd.f32 %v572_v53, %v83_v42  ;;  %v358_v19 = vadd.f32 %v590_v54, %v113_v9 }
  0xfd   :  { %v573_v57 = vpop.f32.mrb[4].mxu0  ;;  %v603_v58 = vpop.f32.mrb[4].mxu1 }
  0xfe   :  { %v574_v60 = vpop.f32.mrb[5].mxu0  ;;  %v395_v61 = vpop.f32.mrb[5].mxu1 }
  0xff   :  { %v575_v62 = vadd.f32 %v574_v60, %v573_v57  ;;  %v396_v63 = vadd.f32 %v395_v61, %v331_v59  ;;  %v576_v0 = vpop.f32.mrb[6].mxu0  ;;  %v604_v1 = vpop.f32.mrb[6].mxu1 }
 0x100   :  { %v577_v3 = vpop.f32.mrb[7].mxu0  ;;  %v398_v4 = vpop.f32.mrb[7].mxu1 }
 0x101   :  { %v339_v6 = vadd.f32 %v575_v62, %v88_v39  ;;  %v578_v7 = vadd.f32 %v577_v3, %v576_v0  ;;  %v399_v8 = vadd.f32 %v398_v4, %v334_v2  ;;  %v426_v11 = vmax.f32 %v396_v63, 0.0 }
 0x103   :  { %v404_v10 = vadd.f32 %v603_v58, %v339_v6  ;;  %v342_v12 = vadd.f32 %v578_v7, %v93_v41  ;;  %v427_v13 = vmax.f32 %v399_v8, 0.0 }
 0x105   :  { %v407_v15 = vadd.f32 %v604_v1, %v342_v12  ;;  %v531_v16 = vpack.c.bf16 %v427_v13, %v426_v11  ;;  %v579_v17 = vpop.f32.mrb[8].mxu0  ;;  %v607_v18 = vpop.f32.mrb[8].mxu1  ;;  %v428_v23 = vmax.f32 %v404_v10, 0.0 }
 0x106   :  { %v420_v20 = vadd.f32 %v607_v18, %v355_v14  ;;  %v580_v21 = vpop.f32.mrb[9].mxu0  ;;  %v411_v22 = vpop.f32.mrb[9].mxu1 }
 0x107   :  { %v429_v24 = vmax.f32 %v407_v15, 0.0  ;;  %532 = vst [vmem:[%s816_s3] sm:$0xff] %v531_v16   ;;  %v581_v25 = vadd.f32 %v580_v21, %v579_v17  ;;  %v582_v26 = vpop.f32.mrb[10].mxu0  ;;  %v608_v27 = vpop.f32.mrb[10].mxu1 }
 0x108   :  { %v423_v28 = vadd.f32 %v608_v27, %v358_v19  ;;  %v583_v29 = vpop.f32.mrb[11].mxu0  ;;  %v414_v30 = vpop.f32.mrb[11].mxu1  ;;  %v432_v34 = vmax.f32 %v420_v20, 0.0 }
 0x109   :  { %v536_v31 = vpack.c.bf16 %v429_v24, %v428_v23  ;;  %v347_v32 = vadd.f32 %v581_v25, %v98_v55  ;;  %v584_v33 = vadd.f32 %v583_v29, %v582_v26 }
 0x10a   :  { %v433_v35 = vmax.f32 %v423_v28, 0.0 }
 0x10b   :  { %548 = vst [vmem:[%s816_s3 + $0x8] sm:$0xff] %v536_v31   ;;  %v412_v36 = vadd.f32 %v411_v22, %v347_v32  ;;  %v350_v37 = vadd.f32 %v584_v33, %v103_v56 }
 0x10c   :  { %v546_v38 = vpack.c.bf16 %v433_v35, %v432_v34 }
 0x10d   :  { %v415_v39 = vadd.f32 %v414_v30, %v350_v37  ;;  %v430_v40 = vmax.f32 %v412_v36, 0.0 }
 0x10e   :  { %550 = vst [vmem:[%s816_s3 + $0x18] sm:$0xff] %v546_v38  }
 0x10f   :  { %v431_v41 = vmax.f32 %v415_v39, 0.0 }
 0x111   :  { %v541_v42 = vpack.c.bf16 %v431_v41, %v430_v40 }
 0x113   :  { %549 = vst [vmem:[%s816_s3 + $0x10] sm:$0xff] %v541_v42  }

// kernel: resnet56_forward.51
= control target key start
LH: loop header
LB: loop body
LE: loop exit
PB: predicated region body
PF: predicated region fallthrough
CT: control target
= control target key end

     0   :  { %s1587_s18 = smov 0   ;;  %s1990_s0 = inlined_call_operand.vmem [shape: bf16[2,64,384], index: 0, kind: input, shape index: {}]   ;;  %s1991_s1 = inlined_call_operand.vmem [shape: bf16[2,32,384], index: 1, kind: input, shape index: {}]   ;;  %s1992_s2 = inlined_call_operand.vmem [shape: bf16[64,608], index: 2, kind: input, shape index: {}]   ;;  %s1993_s3 = inlined_call_operand.vmem [shape: f32[64,1], index: 3, kind: input, shape index: {}]   ;;  %s1994_s4 = inlined_call_operand.vmem [shape: f32[1,128], index: 4, kind: input, shape index: {}]   ;;  %s1995_s5 = inlined_call_operand.vmem [shape: bf16[2,64,384], index: 5, kind: output, shape index: {}]  }
   0x1 LB: > { %s1264_s19 = sadd.s32 4294967295, %s1545_s18   ;;  %p1268_p0 = scmp.ge.s32.totalorder %s1545_s18, 1  ;;  %s1545_s18 = sphi %s1587_s18, %s15_s18  }
   0x2   : > { %p197_p1 = scmp.lt.s32.totalorder %s1545_s18, 3 }
   0x4   : > { %p198_p2 = pnand %p1268_p0, %p197_p1 }
   0x5   : > { %p230_p3 = scmp.lt.s32.totalorder (!%p198_p2), %s1264_s19, 1  ;;  %s1547_s24 = smov (!%p198_p2), 116   ;;  %vm344_vm0 = vcmask (!%p198_p2), 1031168   ;;  %vm467_vm1 = vcmask (!%p198_p2), 949248   ;;  %vm365_vm2 = vcmask (!%p198_p2), 998400   ;;  %vm488_vm3 = vcmask (!%p198_p2), 941056  }
   0x6   : > { %201 = sbr.rel (%p198_p2) target bundleno = 633 (0x279), region = 40  ;;  %s1548_s25 = smov (!%p198_p2), 126   ;;  %vm323_vm4 = vcmask (!%p198_p2), 1039360   ;;  %vm446_vm5 = vcmask (!%p198_p2), 982016   ;;  %vm840_vm6 = vcmask (!%p198_p2), 56320   ;;  %vm509_vm7 = vcmask (!%p198_p2), 932864  }
   0x7   : > { %s1549_s27 = smov (!%p198_p2), 121   ;;  %s1550_s6 = smov (!%p198_p2), 122   ;;  %vm911_vm8 = vcmask (!%p198_p2), 785408  }
   0x8   : > { %s1551_s7 = smov (!%p198_p2), 115   ;;  %s1552_s8 = smov (!%p198_p2), 127  }
   0x9   : > { %s1553_s9 = smov (!%p198_p2), 120   ;;  %s1554_s10 = smov (!%p198_p2), 114  }
   0xa   : > { %s1555_s11 = smov (!%p198_p2), 7  }
   0xd   : > { %s1997_s19 = smov (!%p230_p3, %s1264_s19), 1 }
   0xe   : > { %s1459_s20 = smul.u32 96, %s1997_s19 }
   0xf   : > { %s1460_s26 = smul.u32 48, %s1997_s19 }
  0x10   : > { %s1603_s23 = scalar_lea.vmem %s1990_s0, %s1459_s20  ;;  %s1942_s29 = scalar_lea.vmem %s1995_s5, %s1459_s20 }
  0x11   : > { %v1606_v0 = vld [vmem:[%s1603_s23 + $0x4] ss:$12 sps:$4 sm:$0xff]   ;;  %v1609_v1 = vld [vmem:[%s1603_s23] ss:$12 sps:$4 sm:$0xff]   ;;  %v1614_v2 = vld [vmem:[%s1603_s23 + $0x8] ss:$12 sps:$4 sm:$0xff]   ;;  %s1642_s30 = scalar_lea.vmem %s1991_s1, %s1460_s26 }
  0x12   : > { %451 = vrot.lane.b32.xlu1 %v1606_v0, %s1547_s24  ;;  %328 = vrot.lane.b32.xlu0 %v1609_v1, %s1548_s25  ;;  %v1619_v3 = vld [vmem:[%s1603_s23 + $0x4] ss:$12 sps:$4 sm:$0xff]   ;;  %v1633_v6 = vld [vmem:[%s1603_s23 + $0x1c] ss:$12 sps:$4 sm:$0xff]  }
  0x13   : > { %v1624_v4 = vld [vmem:[%s1603_s23 + $0x18] ss:$12 sps:$4 sm:$0xff]   ;;  %v1637_v7 = vld [vmem:[%s1603_s23 + $0x1c] ss:$12 sps:$4 sm:$0xff]   ;;  %v1494_v9 = vld [vmem:[%s1603_s23 + $0x20] ss:$12 sps:$4 sm:$0xff]  }
  0x14   : > { %v1489_v5 = vld [vmem:[%s1603_s23 + $0x4] ss:$12 sps:$4 sm:$0xff]   ;;  %v1493_v8 = vld [vmem:[%s1603_s23 + $0x1c] ss:$12 sps:$4 sm:$0xff]   ;;  %v1652_v10 = vld [vmem:[%s1603_s23 + $0x34] ss:$12 sps:$4 sm:$0xff]  }
  0x15   : > { %v1656_v11 = vld [vmem:[%s1603_s23 + $0x30] ss:$12 sps:$4 sm:$0xff]   ;;  %v1498_v12 = vld [vmem:[%s1603_s23 + $0x38] ss:$12 sps:$4 sm:$0xff]   ;;  %v1500_v13 = vld [vmem:[%s1603_s23 + $0x34] ss:$12 sps:$4 sm:$0xff]  }
  0x16   : > { %453 = vrot.lane.b32.xlu1 %v1614_v2, %s1547_s24  ;;  %330 = vrot.lane.b32.xlu0 %v1619_v3, %s1548_s25  ;;  %v1666_v14 = vld [vmem:[%s1603_s23 + $0x48] ss:$12 sps:$4 sm:$0xff]   ;;  %v1504_v16 = vld [vmem:[%s1603_s23 + $0x4c] ss:$12 sps:$4 sm:$0xff]  }
  0x17   : > { %v1503_v15 = vld [vmem:[%s1603_s23 + $0x34] ss:$12 sps:$4 sm:$0xff]   ;;  %v1675_v17 = vld [vmem:[%s1603_s23 + $0x4c] ss:$12 sps:$4 sm:$0xff]   ;;  %v1508_v19 = vld [vmem:[%s1603_s23 + $0x50] ss:$12 sps:$4 sm:$0xff]  }
  0x18   : > { %v1507_v18 = vld [vmem:[%s1603_s23 + $0x4c] ss:$12 sps:$4 sm:$0xff]   ;;  %v1509_v22 = vld [vmem:[%s1642_s30 + $0x4] ss:$12 sps:$4 sm:$0xff]   ;;  %v1510_v33 = vld [vmem:[%s1642_s30 + $0x1c] ss:$12 sps:$4 sm:$0xff]  }
  0x1a   : > { %332 = vrot.lane.b32.xlu1 %v1624_v4, %s1548_s25  ;;  %390 = vrot.lane.b32.xlu0 %v1489_v5, %s1549_s27 }
  0x1e   : > { %455 = vrot.lane.b32.xlu1 %v1633_v6, %s1547_s24  ;;  %334 = vrot.lane.b32.xlu0 %v1637_v7, %s1548_s25 }
  0x22   : > { %392 = vrot.lane.b32.xlu1 %v1493_v8, %s1549_s27  ;;  %457 = vrot.lane.b32.xlu0 %v1494_v9, %s1547_s24 }
  0x26   : > { %338 = vrot.lane.b32.xlu1 %v1652_v10, %s1548_s25  ;;  %336 = vrot.lane.b32.xlu0 %v1656_v11, %s1548_s25 }
  0x2a   : > { %461 = vrot.lane.b32.xlu1 %v1498_v12, %s1547_s24  ;;  %459 = vrot.lane.b32.xlu0 %v1500_v13, %s1547_s24 }
  0x2e   : > { %340 = vrot.lane.b32.xlu1 %v1666_v14, %s1548_s25  ;;  %394 = vrot.lane.b32.xlu0 %v1503_v15, %s1549_s27 }
  0x32   : > { %463 = vrot.lane.b32.xlu1 %v1504_v16, %s1547_s24  ;;  %342 = vrot.lane.b32.xlu0 %v1675_v17, %s1548_s25 }
  0x36   : > { %396 = vrot.lane.b32.xlu1 %v1507_v18, %s1549_s27  ;;  %465 = vrot.lane.b32.xlu0 %v1508_v19, %s1547_s24 }
  0x3a   : > { %351 = vrot.lane.b32.xlu1 %v1619_v3, %s1550_s6  ;;  %349 = vrot.lane.b32.xlu0 %v1609_v1, %s1550_s6 }
  0x3e   : > { %474 = vrot.lane.b32.xlu1 %v1614_v2, %s1551_s7  ;;  %472 = vrot.lane.b32.xlu0 %v1606_v0, %s1551_s7 }
  0x42   : > { %309 = vrot.lane.b32.xlu1 %v1619_v3, %s1552_s8  ;;  %307 = vrot.lane.b32.xlu0 %v1609_v1, %s1552_s8 }
  0x46   : > { %432 = vrot.lane.b32.xlu1 %v1614_v2, %s1553_s9  ;;  %430 = vrot.lane.b32.xlu0 %v1606_v0, %s1553_s9 }
  0x4a   : > { %355 = vrot.lane.b32.xlu1 %v1637_v7, %s1550_s6  ;;  %353 = vrot.lane.b32.xlu0 %v1624_v4, %s1550_s6 }
  0x4e   : > { %478 = vrot.lane.b32.xlu1 %v1494_v9, %s1551_s7  ;;  %476 = vrot.lane.b32.xlu0 %v1633_v6, %s1551_s7 }
  0x52   : > { %313 = vrot.lane.b32.xlu1 %v1637_v7, %s1552_s8  ;;  %311 = vrot.lane.b32.xlu0 %v1624_v4, %s1552_s8 }
  0x56   : > { %436 = vrot.lane.b32.xlu1 %v1494_v9, %s1553_s9  ;;  %434 = vrot.lane.b32.xlu0 %v1633_v6, %s1553_s9 }
  0x5a   : > { %359 = vrot.lane.b32.xlu1 %v1652_v10, %s1550_s6  ;;  %357 = vrot.lane.b32.xlu0 %v1656_v11, %s1550_s6 }
  0x5e   : > { %482 = vrot.lane.b32.xlu1 %v1498_v12, %s1551_s7  ;;  %480 = vrot.lane.b32.xlu0 %v1500_v13, %s1551_s7 }
  0x62   : > { %317 = vrot.lane.b32.xlu1 %v1652_v10, %s1552_s8  ;;  %315 = vrot.lane.b32.xlu0 %v1656_v11, %s1552_s8 }
  0x66   : > { %440 = vrot.lane.b32.xlu1 %v1498_v12, %s1553_s9  ;;  %438 = vrot.lane.b32.xlu0 %v1500_v13, %s1553_s9 }
  0x6a   : > { %363 = vrot.lane.b32.xlu1 %v1675_v17, %s1550_s6  ;;  %361 = vrot.lane.b32.xlu0 %v1666_v14, %s1550_s6 }
  0x6e   : > { %486 = vrot.lane.b32.xlu1 %v1508_v19, %s1551_s7  ;;  %484 = vrot.lane.b32.xlu0 %v1504_v16, %s1551_s7 }
  0x72   : > { %321 = vrot.lane.b32.xlu1 %v1675_v17, %s1552_s8  ;;  %319 = vrot.lane.b32.xlu0 %v1666_v14, %s1552_s8 }
  0x76   : > { %444 = vrot.lane.b32.xlu1 %v1508_v19, %s1553_s9  ;;  %442 = vrot.lane.b32.xlu0 %v1504_v16, %s1553_s9 }
  0x7a   : > { %495 = vrot.lane.b32.xlu1 %v1614_v2, %s1554_s10  ;;  %493 = vrot.lane.b32.xlu0 %v1606_v0, %s1554_s10 }
  0x7e   : > { %499 = vrot.lane.b32.xlu1 %v1494_v9, %s1554_s10  ;;  %497 = vrot.lane.b32.xlu0 %v1633_v6, %s1554_s10 }
  0x82   : > { %503 = vrot.lane.b32.xlu1 %v1498_v12, %s1554_s10  ;;  %501 = vrot.lane.b32.xlu0 %v1500_v13, %s1554_s10 }
  0x84   : > { %v452_v20 = vpop.permute.xlu1 %451  ;;  %v329_v21 = vpop.permute.xlu0 %328 }
  0x86   : > { %507 = vrot.lane.b32.xlu1 %v1508_v19, %s1554_s10  ;;  %505 = vrot.lane.b32.xlu0 %v1504_v16, %s1554_s10 }
  0x88   : > { %v454_v23 = vpop.permute.xlu1 %453  ;;  %v331_v24 = vpop.permute.xlu0 %330 }
  0x89   : > { %v345_v27 = vsel %vm344_vm0, %v329_v21, %v331_v24  ;;  %v468_v30 = vsel %vm467_vm1, %v452_v20, %v454_v23 }
  0x8a   : > { %788 = vrot.lane.b32.xlu1 %v452_v20, %s1555_s11  ;;  %524 = vrot.lane.b32.xlu0 %v1509_v22, %s1549_s27 }
  0x8c   : > { %v333_v25 = vpop.permute.xlu1 %332  ;;  %v391_v26 = vpop.permute.xlu0 %390 }
  0x8e   : > { %732 = vrot.lane.b32.xlu1 %v345_v27, %s1555_s11  ;;  %734 = vrot.lane.b32.xlu0 %v331_v24, %s1555_s11 }
  0x90   : > { %v456_v28 = vpop.permute.xlu1 %455  ;;  %v335_v29 = vpop.permute.xlu0 %334 }
  0x91   : > { %v346_v36 = vsel %vm344_vm0, %v333_v25, %v335_v29 }
  0x92   : > { %700 = vrot.lane.b32.xlu1 %v1609_v1, %s1555_s11  ;;  %790 = vrot.lane.b32.xlu0 %v468_v30, %s1555_s11 }
  0x94   : > { %v393_v31 = vpop.permute.xlu1 %392  ;;  %v458_v32 = vpop.permute.xlu0 %457 }
  0x95   : > { %v469_v41 = vsel %vm467_vm1, %v456_v28, %v458_v32 }
  0x96   : > { %764 = vrot.lane.b32.xlu1 %v391_v26, %s1555_s11  ;;  %702 = vrot.lane.b32.xlu0 %v1619_v3, %s1555_s11 }
  0x98   : > { %v339_v34 = vpop.permute.xlu1 %338  ;;  %v337_v35 = vpop.permute.xlu0 %336 }
  0x99   : > { %v347_v46 = vsel %vm344_vm0, %v337_v35, %v339_v34 }
  0x9a   : > { %736 = vrot.lane.b32.xlu1 %v346_v36, %s1555_s11  ;;  %526 = vrot.lane.b32.xlu0 %v1510_v33, %s1549_s27 }
  0x9c   : > { %v462_v37 = vpop.permute.xlu1 %461  ;;  %v460_v38 = vpop.permute.xlu0 %459 }
  0x9d   : > { %v470_v49 = vsel %vm467_vm1, %v460_v38, %v462_v37 }
  0x9e   : > { %792 = vrot.lane.b32.xlu1 %v456_v28, %s1555_s11  ;;  %738 = vrot.lane.b32.xlu0 %v335_v29, %s1555_s11 }
  0xa0   : > { %v341_v39 = vpop.permute.xlu1 %340  ;;  %v395_v40 = vpop.permute.xlu0 %394 }
  0xa2   : > { %704 = vrot.lane.b32.xlu1 %v1624_v4, %s1555_s11  ;;  %794 = vrot.lane.b32.xlu0 %v469_v41, %s1555_s11 }
  0xa4   : > { %v464_v42 = vpop.permute.xlu1 %463  ;;  %v343_v43 = vpop.permute.xlu0 %342 }
  0xa5   : > { %v348_v54 = vsel %vm344_vm0, %v341_v39, %v343_v43 }
  0xa6   : > { %766 = vrot.lane.b32.xlu1 %v393_v31, %s1555_s11  ;;  %706 = vrot.lane.b32.xlu0 %v1637_v7, %s1555_s11 }
  0xa8   : > { %v397_v44 = vpop.permute.xlu1 %396  ;;  %v466_v45 = vpop.permute.xlu0 %465 }
  0xa9   : > { %v471_v59 = vsel %vm467_vm1, %v464_v42, %v466_v45 }
  0xaa   : > { %742 = vrot.lane.b32.xlu1 %v339_v34, %s1555_s11  ;;  %740 = vrot.lane.b32.xlu0 %v347_v46, %s1555_s11  ;;  %v1513_v34 = vld [vmem:[%s1992_s2 + $0x4] ss:$20 sps:$4 sm:$0xff]  }
  0xab   : > { %956 = vmatprep.mubr.bf16.mxu0 %v1513_v34 }
  0xac   : > { %v352_v47 = vpop.permute.xlu1 %351  ;;  %v350_v48 = vpop.permute.xlu0 %349 }
  0xad   : > { %v366_v0 = vsel %vm365_vm2, %v350_v48, %v352_v47 }
  0xae   : > { %798 = vrot.lane.b32.xlu1 %v470_v49, %s1555_s11  ;;  %796 = vrot.lane.b32.xlu0 %v460_v38, %s1555_s11  ;;  %v1516_v38 = vld [vmem:[%s1992_s2 + $0xc] ss:$20 sps:$4 sm:$0xff]  }
  0xaf   : > { %1021 = vmatprep.mubr.bf16.mxu1 %v1516_v38 }
  0xb0   : > { %v475_v50 = vpop.permute.xlu1 %474  ;;  %v473_v51 = vpop.permute.xlu0 %472 }
  0xb1   : > { %v489_v3 = vsel %vm488_vm3, %v473_v51, %v475_v50 }
  0xb2   : > { %710 = vrot.lane.b32.xlu1 %v1652_v10, %s1555_s11  ;;  %708 = vrot.lane.b32.xlu0 %v1656_v11, %s1555_s11 }
  0xb4   : > { %v310_v52 = vpop.permute.xlu1 %309  ;;  %v308_v53 = vpop.permute.xlu0 %307 }
  0xb5   : > { %v324_v6 = vsel %vm323_vm4, %v308_v53, %v310_v52 }
  0xb6   : > { %744 = vrot.lane.b32.xlu1 %v348_v54, %s1555_s11  ;;  %768 = vrot.lane.b32.xlu0 %v395_v40, %s1555_s11 }
  0xb8   : > { %v433_v55 = vpop.permute.xlu1 %432  ;;  %v431_v56 = vpop.permute.xlu0 %430 }
  0xb9   : > { %v447_v9 = vsel %vm446_vm5, %v431_v56, %v433_v55 }
  0xba   : > { %800 = vrot.lane.b32.xlu1 %v464_v42, %s1555_s11  ;;  %746 = vrot.lane.b32.xlu0 %v343_v43, %s1555_s11 }
  0xbc   : > { %v356_v57 = vpop.permute.xlu1 %355  ;;  %v354_v58 = vpop.permute.xlu0 %353 }
  0xbd   : > { %v367_v12 = vsel %vm365_vm2, %v354_v58, %v356_v57 }
  0xbe   : > { %712 = vrot.lane.b32.xlu1 %v1666_v14, %s1555_s11  ;;  %802 = vrot.lane.b32.xlu0 %v471_v59, %s1555_s11 }
  0xc0   : > { %v479_v60 = vpop.permute.xlu1 %478  ;;  %v477_v61 = vpop.permute.xlu0 %476 }
  0xc1   : > { %v490_v15 = vsel %vm488_vm3, %v477_v61, %v479_v60 }
  0xc2   : > { %770 = vrot.lane.b32.xlu1 %v397_v44, %s1555_s11  ;;  %714 = vrot.lane.b32.xlu0 %v1675_v17, %s1555_s11 }
  0xc4   : > { %v314_v62 = vpop.permute.xlu1 %313  ;;  %v312_v63 = vpop.permute.xlu0 %311 }
  0xc5   : > { %v325_v18 = vsel %vm323_vm4, %v312_v63, %v314_v62 }
  0xc6   : > { %750 = vrot.lane.b32.xlu1 %v352_v47, %s1555_s11  ;;  %748 = vrot.lane.b32.xlu0 %v366_v0, %s1555_s11 }
  0xc8   : > { %v437_v1 = vpop.permute.xlu1 %436  ;;  %v435_v2 = vpop.permute.xlu0 %434 }
  0xc9   : > { %v448_v21 = vsel %vm446_vm5, %v435_v2, %v437_v1 }
  0xca   : > { %806 = vrot.lane.b32.xlu1 %v489_v3, %s1555_s11  ;;  %804 = vrot.lane.b32.xlu0 %v473_v51, %s1555_s11 }
  0xcc   : > { %v360_v4 = vpop.permute.xlu1 %359  ;;  %v358_v5 = vpop.permute.xlu0 %357 }
  0xcd   : > { %v368_v24 = vsel %vm365_vm2, %v358_v5, %v360_v4 }
  0xce   : > { %718 = vrot.lane.b32.xlu1 %v310_v52, %s1555_s11  ;;  %716 = vrot.lane.b32.xlu0 %v324_v6, %s1555_s11  ;;  %v552_v6 = vld [vmem:[%s1993_s3] sm:$0xff] }
  0xd0   : > { %v483_v7 = vpop.permute.xlu1 %482  ;;  %v481_v8 = vpop.permute.xlu0 %480 }
  0xd1   : > { %v491_v27 = vsel %vm488_vm3, %v481_v8, %v483_v7  ;;  %v553_v7 = vld [vmem:[%s1993_s3 + $0x8] sm:$0xff] }
  0xd2   : > { %774 = vrot.lane.b32.xlu1 %v447_v9, %s1555_s11  ;;  %772 = vrot.lane.b32.xlu0 %v431_v56, %s1555_s11 }
  0xd4   : > { %v318_v10 = vpop.permute.xlu1 %317  ;;  %v316_v11 = vpop.permute.xlu0 %315 }
  0xd5   : > { %v326_v30 = vsel %vm323_vm4, %v316_v11, %v318_v10  ;;  %v555_v11 = vld [vmem:[%s1993_s3 + $0x18] sm:$0xff] }
  0xd6   : > { %754 = vrot.lane.b32.xlu1 %v356_v57, %s1555_s11  ;;  %752 = vrot.lane.b32.xlu0 %v367_v12, %s1555_s11 }
  0xd8   : > { %v441_v13 = vpop.permute.xlu1 %440  ;;  %v439_v14 = vpop.permute.xlu0 %438 }
  0xd9   : > { %v449_v32 = vsel %vm446_vm5, %v439_v14, %v441_v13  ;;  %v554_v13 = vld [vmem:[%s1993_s3 + $0x10] sm:$0xff] }
  0xda   : > { %810 = vrot.lane.b32.xlu1 %v490_v15, %s1555_s11  ;;  %808 = vrot.lane.b32.xlu0 %v477_v61, %s1555_s11 }
  0xdc   : > { %v364_v16 = vpop.permute.xlu1 %363  ;;  %v362_v17 = vpop.permute.xlu0 %361 }
  0xdd   : > { %v369_v37 = vsel %vm365_vm2, %v362_v17, %v364_v16 }
  0xde   : > { %722 = vrot.lane.b32.xlu1 %v314_v62, %s1555_s11  ;;  %720 = vrot.lane.b32.xlu0 %v325_v18, %s1555_s11  ;;  %v556_v18 = vld [vmem:[%s1993_s3 + $0x20] sm:$0xff] }
  0xe0   : > { %v487_v19 = vpop.permute.xlu1 %486  ;;  %v485_v20 = vpop.permute.xlu0 %484 }
  0xe1   : > { %v492_v40 = vsel %vm488_vm3, %v485_v20, %v487_v19 }
  0xe2   : > { %778 = vrot.lane.b32.xlu1 %v448_v21, %s1555_s11  ;;  %776 = vrot.lane.b32.xlu0 %v435_v2, %s1555_s11  ;;  %v559_v21 = vld [vmem:[%s1993_s3 + $0x38] sm:$0xff] }
  0xe4   : > { %v322_v22 = vpop.permute.xlu1 %321  ;;  %v320_v23 = vpop.permute.xlu0 %319 }
  0xe5   : > { %v327_v44 = vsel %vm323_vm4, %v320_v23, %v322_v22  ;;  %v558_v23 = vld [vmem:[%s1993_s3 + $0x30] sm:$0xff] }
  0xe6   : > { %758 = vrot.lane.b32.xlu1 %v360_v4, %s1555_s11  ;;  %756 = vrot.lane.b32.xlu0 %v368_v24, %s1555_s11 }
  0xe8   : > { %v445_v25 = vpop.permute.xlu1 %444  ;;  %v443_v26 = vpop.permute.xlu0 %442 }
  0xe9   : > { %v450_v46 = vsel %vm446_vm5, %v443_v26, %v445_v25 }
  0xea   : > { %814 = vrot.lane.b32.xlu1 %v491_v27, %s1555_s11  ;;  %812 = vrot.lane.b32.xlu0 %v481_v8, %s1555_s11  ;;  %v1556_v8 = vmov 0  }
  0xeb   : > { %1479 = vset.pattern.permute.xlu0 %v1556_v8  ;;  %1480 = vset.pattern.permute.xlu1 %v1556_v8  ;;  %1181 = vst [vmem:[%s1942_s29] sm:$0xf] %v1556_v8  ;;  %1182 = vst [vmem:[%s1942_s29 + $0xc] sm:$0xf] %v1556_v8 }
  0xec   : > { %v496_v28 = vpop.permute.xlu1 %495  ;;  %v494_v29 = vpop.permute.xlu0 %493  ;;  %1183 = vst [vmem:[%s1942_s29 + $0x18] sm:$0xf] %v1556_v8  ;;  %1184 = vst [vmem:[%s1942_s29 + $0x24] sm:$0xf] %v1556_v8 }
  0xed   : > { %v510_v50 = vsel %vm509_vm7, %v494_v29, %v496_v28  ;;  %1185 = vst [vmem:[%s1942_s29 + $0x30] sm:$0xf] %v1556_v8  ;;  %1186 = vst [vmem:[%s1942_s29 + $0x3c] sm:$0xf] %v1556_v8 }
  0xee   : > { %726 = vrot.lane.b32.xlu1 %v318_v10, %s1555_s11  ;;  %724 = vrot.lane.b32.xlu0 %v326_v30, %s1555_s11  ;;  %1187 = vst [vmem:[%s1942_s29 + $0x48] sm:$0xf] %v1556_v8  ;;  %1188 = vst [vmem:[%s1942_s29 + $0x54] sm:$0xf] %v1556_v8 }
  0xef   : > { %1189 = vst [vmem:[%s1942_s29 + $0x8] sm:$0xf] %v1556_v8  ;;  %1190 = vst [vmem:[%s1942_s29 + $0x14] sm:$0xf] %v1556_v8 }
  0xf0   : > { %v500_v31 = vpop.permute.xlu1 %499  ;;  %v498_v33 = vpop.permute.xlu0 %497  ;;  %1191 = vst [vmem:[%s1942_s29 + $0x20] sm:$0xf] %v1556_v8  ;;  %1192 = vst [vmem:[%s1942_s29 + $0x2c] sm:$0xf] %v1556_v8 }
  0xf1   : > { %v511_v54 = vsel %vm509_vm7, %v498_v33, %v500_v31  ;;  %1193 = vst [vmem:[%s1942_s29 + $0x38] sm:$0xf] %v1556_v8  ;;  %1194 = vst [vmem:[%s1942_s29 + $0x44] sm:$0xf] %v1556_v8 }
  0xf2   : > { %782 = vrot.lane.b32.xlu1 %v449_v32, %s1555_s11  ;;  %780 = vrot.lane.b32.xlu0 %v439_v14, %s1555_s11  ;;  %1195 = vst [vmem:[%s1942_s29 + $0x50] sm:$0xf] %v1556_v8  ;;  %1196 = vst [vmem:[%s1942_s29 + $0x5c] sm:$0xf] %v1556_v8 }
  0xf4   : > { %v504_v35 = vpop.permute.xlu1 %503  ;;  %v502_v36 = vpop.permute.xlu0 %501 }
  0xf5   : > { %v512_v58 = vsel %vm509_vm7, %v502_v36, %v504_v35 }
  0xf6   : > { %762 = vrot.lane.b32.xlu1 %v364_v16, %s1555_s11  ;;  %760 = vrot.lane.b32.xlu0 %v369_v37, %s1555_s11  ;;  %v557_v16 = vld [vmem:[%s1993_s3 + $0x28] sm:$0xff] }
  0xf8   : > { %v508_v39 = vpop.permute.xlu1 %507  ;;  %v506_v41 = vpop.permute.xlu0 %505 }
  0xf9   : > { %v513_v61 = vsel %vm509_vm7, %v506_v41, %v508_v39 }
  0xfa   : > { %818 = vrot.lane.b32.xlu1 %v492_v40, %s1555_s11  ;;  %816 = vrot.lane.b32.xlu0 %v485_v20, %s1555_s11 }
  0xfc   : > { %v789_v42 = vpop.permute.xlu1 %788  ;;  %v525_v43 = vpop.permute.xlu0 %524 }
  0xfe   : > { %730 = vrot.lane.b32.xlu1 %v322_v22, %s1555_s11  ;;  %728 = vrot.lane.b32.xlu0 %v327_v44, %s1555_s11 }
 0x100   : > { %v733_v45 = vpop.permute.xlu1 %732  ;;  %v735_v47 = vpop.permute.xlu0 %734 }
 0x101   : > { %v849_v48 = vsel %vm840_vm6, %v733_v45, %v735_v47 }
 0x102   : > { %786 = vrot.lane.b32.xlu1 %v450_v46, %s1555_s11  ;;  %784 = vrot.lane.b32.xlu0 %v443_v26, %s1555_s11 }
 0x103   : > { %1337 = vmatprep.subr.bf16.mxu0 %v849_v48 }
 0x104   : > { %v701_v49 = vpop.permute.xlu1 %700  ;;  %v791_v51 = vpop.permute.xlu0 %790 }
 0x105   : > { %v861_v52 = vsel %vm840_vm6, %v789_v42, %v791_v51 }
 0x106   : > { %822 = vrot.lane.b32.xlu1 %v510_v50, %s1555_s11  ;;  %820 = vrot.lane.b32.xlu0 %v494_v29, %s1555_s11 }
 0x107   : > { %1377 = vmatprep.subr.bf16.mxu1 %v861_v52 }
 0x108   : > { %v765_v53 = vpop.permute.xlu1 %764  ;;  %v703_v55 = vpop.permute.xlu0 %702 }
 0x109   : > { %1378 = vmatpush3.bf16.msra.mxu1 %v765_v53  ;;  %v841_v56 = vsel %vm840_vm6, %v701_v49, %v703_v55 }
 0x10a   : > { %826 = vrot.lane.b32.xlu1 %v511_v54, %s1555_s11  ;;  %824 = vrot.lane.b32.xlu0 %v498_v33, %s1555_s11 }
 0x10b   : > { %1338 = vmatpush3.bf16.msra.mxu0 %v841_v56 }
 0x10c   : > { %v737_v57 = vpop.permute.xlu1 %736  ;;  %v527_v59 = vpop.permute.xlu0 %526 }
 0x10e   : > { %830 = vrot.lane.b32.xlu1 %v512_v58, %s1555_s11  ;;  %828 = vrot.lane.b32.xlu0 %v502_v36, %s1555_s11 }
 0x110   : > { %v793_v60 = vpop.permute.xlu1 %792  ;;  %v739_v62 = vpop.permute.xlu0 %738 }
 0x111   : > { %v850_v63 = vsel %vm840_vm6, %v737_v57, %v739_v62 }
 0x112   : > { %834 = vrot.lane.b32.xlu1 %v513_v61, %s1555_s11  ;;  %832 = vrot.lane.b32.xlu0 %v506_v41, %s1555_s11 }
 0x113   : > { %1339 = vmatprep.subr.bf16.mxu0 %v850_v63 }
 0x114   : > { %v705_v0 = vpop.permute.xlu1 %704  ;;  %v795_v1 = vpop.permute.xlu0 %794 }
 0x115   : > { %v862_v2 = vsel %vm840_vm6, %v793_v60, %v795_v1 }
 0x116   : > { %838 = vrot.lane.b32.xlu1 %v527_v59, %s1555_s11  ;;  %836 = vrot.lane.b32.xlu0 %v525_v43, %s1555_s11 }
 0x117   : > { %1379 = vmatprep.subr.bf16.mxu1 %v862_v2 }
 0x118   : > { %v767_v3 = vpop.permute.xlu1 %766  ;;  %v707_v4 = vpop.permute.xlu0 %706 }
 0x119   : > { %1380 = vmatpush3.bf16.msra.mxu1 %v767_v3  ;;  %v842_v5 = vsel %vm840_vm6, %v705_v0, %v707_v4 }
 0x11a   : > { %1340 = vmatpush3.bf16.msra.mxu0 %v842_v5  ;;  %562 = vperm.xlu0 %1479, %v552_v6  }
 0x11b   : > { %567 = vperm.xlu1 %1480, %v553_v7  }
 0x11c   : > { %v743_v9 = vpop.permute.xlu1 %742  ;;  %v741_v10 = vpop.permute.xlu0 %740 }
 0x11d   : > { %v851_v12 = vsel %vm840_vm6, %v741_v10, %v743_v9 }
 0x11e   : > { %1341 = vmatprep.subr.bf16.mxu0 %v851_v12  ;;  %577 = vperm.xlu0 %1479, %v555_v11  }
 0x11f   : > { %572 = vperm.xlu1 %1480, %v554_v13  }
 0x120   : > { %v799_v14 = vpop.permute.xlu1 %798  ;;  %v797_v15 = vpop.permute.xlu0 %796 }
 0x121   : > { %v863_v17 = vsel %vm840_vm6, %v797_v15, %v799_v14 }
 0x122   : > { %1381 = vmatprep.subr.bf16.mxu1 %v863_v17  ;;  %587 = vperm.xlu0 %1479, %v557_v16   ;;  %v1511_v17 = vld [vmem:[%s1992_s2] ss:$20 sps:$4 sm:$0xff]  }
 0x123   : > { %582 = vperm.xlu1 %1480, %v556_v18   ;;  %v1517_v18 = vld [vmem:[%s1992_s2 + $0x2c] ss:$20 sps:$4 sm:$0xff]  }
 0x124   : > { %v711_v19 = vpop.permute.xlu1 %710  ;;  %v709_v20 = vpop.permute.xlu0 %708 }
 0x125   : > { %v843_v22 = vsel %vm840_vm6, %v709_v20, %v711_v19 }
 0x126   : > { %1342 = vmatpush3.bf16.msra.mxu0 %v843_v22  ;;  %597 = vperm.xlu0 %1479, %v559_v21   ;;  %v1514_v22 = vld [vmem:[%s1992_s2 + $0x8] ss:$20 sps:$4 sm:$0xff]  }
 0x127   : > { %592 = vperm.xlu1 %1480, %v558_v23  }
 0x128   : > { %v745_v24 = vpop.permute.xlu1 %744  ;;  %v769_v25 = vpop.permute.xlu0 %768 }
 0x129   : > { %1382 = vmatpush3.bf16.msra.mxu1 %v769_v25  ;;  %v1520_v25 = vld [vmem:[%s1992_s2 + $0x34] ss:$20 sps:$4 sm:$0xff]  }
 0x12c   : > { %v801_v26 = vpop.permute.xlu1 %800  ;;  %v747_v27 = vpop.permute.xlu0 %746 }
 0x12d   : > { %v852_v28 = vsel %vm840_vm6, %v745_v24, %v747_v27  ;;  %v1519_v27 = vld [vmem:[%s1992_s2 + $0x28] ss:$20 sps:$4 sm:$0xff]  }
 0x12e   : > { %1343 = vmatprep.subr.bf16.mxu0 %v852_v28 }
 0x130   : > { %v713_v29 = vpop.permute.xlu1 %712  ;;  %v803_v30 = vpop.permute.xlu0 %802 }
 0x131   : > { %v864_v31 = vsel %vm840_vm6, %v801_v26, %v803_v30  ;;  %v1523_v30 = vld [vmem:[%s1992_s2 + $0x54] ss:$20 sps:$4 sm:$0xff]  }
 0x132   : > { %1383 = vmatprep.subr.bf16.mxu1 %v864_v31 }
 0x134   : > { %v771_v32 = vpop.permute.xlu1 %770  ;;  %v715_v33 = vpop.permute.xlu0 %714 }
 0x135   : > { %1384 = vmatpush3.bf16.msra.mxu1 %v771_v32  ;;  %v844_v34 = vsel %vm840_vm6, %v713_v29, %v715_v33  ;;  %v1522_v32 = vld [vmem:[%s1992_s2 + $0x30] ss:$20 sps:$4 sm:$0xff]  }
 0x136   : > { %1344 = vmatpush3.bf16.msra.mxu0 %v844_v34 }
 0x138   : > { %v751_v35 = vpop.permute.xlu1 %750  ;;  %v749_v36 = vpop.permute.xlu0 %748 }
 0x139   : > { %v853_v37 = vsel %vm840_vm6, %v749_v36, %v751_v35  ;;  %v1526_v35 = vld [vmem:[%s1992_s2 + $0x5c] ss:$20 sps:$4 sm:$0xff]  }
 0x13a   : > { %1345 = vmatprep.subr.bf16.mxu0 %v853_v37  ;;  %v1525_v37 = vld [vmem:[%s1992_s2 + $0x50] ss:$20 sps:$4 sm:$0xff]  }
 0x13c   : > { %v807_v38 = vpop.permute.xlu1 %806  ;;  %v805_v39 = vpop.permute.xlu0 %804 }
 0x13d   : > { %v865_v40 = vsel %vm840_vm6, %v805_v39, %v807_v38 }
 0x13e   : > { %1385 = vmatprep.subr.bf16.mxu1 %v865_v40  ;;  %v1529_v40 = vld [vmem:[%s1992_s2 + $0x7c] ss:$20 sps:$4 sm:$0xff]  }
 0x140   : > { %v719_v41 = vpop.permute.xlu1 %718  ;;  %v717_v42 = vpop.permute.xlu0 %716 }
 0x141   : > { %v845_v43 = vsel %vm840_vm6, %v717_v42, %v719_v41  ;;  %v1528_v42 = vld [vmem:[%s1992_s2 + $0x58] ss:$20 sps:$4 sm:$0xff]  }
 0x142   : > { %1346 = vmatpush3.bf16.msra.mxu0 %v845_v43  ;;  %v1532_v43 = vld [vmem:[%s1992_s2 + $0x84] ss:$20 sps:$4 sm:$0xff]  }
 0x144   : > { %v775_v44 = vpop.permute.xlu1 %774  ;;  %v773_v45 = vpop.permute.xlu0 %772 }
 0x145   : > { %v857_v46 = vsel %vm840_vm6, %v773_v45, %v775_v44  ;;  %v1531_v45 = vld [vmem:[%s1992_s2 + $0x78] ss:$20 sps:$4 sm:$0xff]  }
 0x146   : > { %1386 = vmatpush3.bf16.msra.mxu1 %v857_v46  ;;  %v1535_v46 = vld [vmem:[%s1992_s2 + $0x10] ss:$20 sps:$4 sm:$0xff]  }
 0x148   : > { %v755_v47 = vpop.permute.xlu1 %754  ;;  %v753_v48 = vpop.permute.xlu0 %752 }
 0x149   : > { %v854_v49 = vsel %vm840_vm6, %v753_v48, %v755_v47  ;;  %v1534_v48 = vld [vmem:[%s1992_s2 + $0x80] ss:$20 sps:$4 sm:$0xff]  }
 0x14a   : > { %1347 = vmatprep.subr.bf16.mxu0 %v854_v49  ;;  %v1537_v49 = vld [vmem:[%s1992_s2 + $0x60] ss:$20 sps:$4 sm:$0xff]  }
 0x14c   : > { %v811_v50 = vpop.permute.xlu1 %810  ;;  %v809_v51 = vpop.permute.xlu0 %808 }
 0x14d   : > { %v866_v52 = vsel %vm840_vm6, %v809_v51, %v811_v50  ;;  %v1536_v50 = vld [vmem:[%s1992_s2 + $0x38] ss:$20 sps:$4 sm:$0xff]   ;;  %v1538_v51 = vld [vmem:[%s1992_s2 + $0x88] ss:$20 sps:$4 sm:$0xff]  }
 0x14e   : > { %1387 = vmatprep.subr.bf16.mxu1 %v866_v52 }
 0x150   : > { %v723_v53 = vpop.permute.xlu1 %722  ;;  %v721_v54 = vpop.permute.xlu0 %720 }
 0x151   : > { %v846_v55 = vsel %vm840_vm6, %v721_v54, %v723_v53 }
 0x152   : > { %1348 = vmatpush3.bf16.msra.mxu0 %v846_v55 }
 0x154   : > { %v779_v56 = vpop.permute.xlu1 %778  ;;  %v777_v57 = vpop.permute.xlu0 %776 }
 0x155   : > { %v858_v58 = vsel %vm840_vm6, %v777_v57, %v779_v56 }
 0x156   : > { %1388 = vmatpush3.bf16.msra.mxu1 %v858_v58 }
 0x158   : > { %v759_v59 = vpop.permute.xlu1 %758  ;;  %v757_v60 = vpop.permute.xlu0 %756 }
 0x159   : > { %v855_v61 = vsel %vm840_vm6, %v757_v60, %v759_v59 }
 0x15a   : > { %1349 = vmatprep.subr.bf16.mxu0 %v855_v61 }
 0x15c   : > { %v815_v62 = vpop.permute.xlu1 %814  ;;  %v813_v63 = vpop.permute.xlu0 %812 }
 0x15d   : > { %v867_v0 = vsel %vm840_vm6, %v813_v63, %v815_v62 }
 0x15e   : > { %1389 = vmatprep.subr.bf16.mxu1 %v867_v0 }
 0x160   : > { %v727_v1 = vpop.permute.xlu1 %726  ;;  %v725_v2 = vpop.permute.xlu0 %724 }
 0x161   : > { %v847_v3 = vsel %vm840_vm6, %v725_v2, %v727_v1 }
 0x162   : > { %1350 = vmatpush3.bf16.msra.mxu0 %v847_v3 }
 0x164   : > { %v783_v4 = vpop.permute.xlu1 %782  ;;  %v781_v5 = vpop.permute.xlu0 %780 }
 0x165   : > { %v859_v6 = vsel %vm840_vm6, %v781_v5, %v783_v4 }
 0x166   : > { %1390 = vmatpush3.bf16.msra.mxu1 %v859_v6 }
 0x168   : > { %v763_v7 = vpop.permute.xlu1 %762  ;;  %v761_v9 = vpop.permute.xlu0 %760 }
 0x169   : > { %v856_v10 = vsel %vm840_vm6, %v761_v9, %v763_v7 }
 0x16a   : > { %1351 = vmatprep.subr.bf16.mxu0 %v856_v10 }
 0x16c   : > { %v819_v11 = vpop.permute.xlu1 %818  ;;  %v817_v12 = vpop.permute.xlu0 %816 }
 0x16d   : > { %v868_v13 = vsel %vm840_vm6, %v817_v12, %v819_v11 }
 0x16e   : > { %1391 = vmatprep.subr.bf16.mxu1 %v868_v13 }
 0x170   : > { %v731_v14 = vpop.permute.xlu1 %730  ;;  %v729_v15 = vpop.permute.xlu0 %728 }
 0x171   : > { %v848_v16 = vsel %vm840_vm6, %v729_v15, %v731_v14 }
 0x172   : > { %1352 = vmatpush3.bf16.msra.mxu0 %v848_v16 }
 0x174   : > { %v787_v19 = vpop.permute.xlu1 %786  ;;  %v785_v20 = vpop.permute.xlu0 %784 }
 0x175   : > { %957 = vmatmul.mubr.bf16.vlgmr.msra.gmra.mrb[0].mxu0 %v1511_v17  ;;  %v860_v21 = vsel %vm840_vm6, %v785_v20, %v787_v19 }
 0x176   : > { %1392 = vmatpush3.bf16.msra.mxu1 %v860_v21  ;;  %964 = vmatprep.mubr.bf16.mxu0 %v1517_v18 }
 0x178   : > { %v823_v23 = vpop.permute.xlu1 %822  ;;  %v821_v24 = vpop.permute.xlu0 %820 }
 0x179   : > { %v869_v26 = vsel %vm840_vm6, %v821_v24, %v823_v23  ;;  %1022 = vmatmul.mubr.bf16.vlgmr.msra.gmra.mrb[0].mxu1 %v1514_v22 }
 0x17a   : > { %1427 = vmatprep.subr.bf16.mxu0 %v869_v26  ;;  %1447 = vmatprep.subr.bf16.mxu1 %v869_v26 }
 0x17b   : > { %1428 = vmatpush3.bf16.msra.mxu0 %v869_v26  ;;  %1453 = vmatpush3.bf16.msra.mxu1 %v869_v26 }
 0x17c   : > { %v827_v28 = vpop.permute.xlu1 %826  ;;  %v825_v29 = vpop.permute.xlu0 %824  ;;  %1029 = vmatprep.mubr.bf16.mxu1 %v1520_v25 }
 0x17d   : > { %v870_v31 = vsel %vm840_vm6, %v825_v29, %v827_v28  ;;  %965 = vmatmul.mubr.bf16.gmra.mrb[4].mxu0 %v1519_v27 }
 0x17e   : > { %1429 = vmatprep.subr.bf16.mxu0 %v870_v31  ;;  %1448 = vmatprep.subr.bf16.mxu1 %v870_v31 }
 0x17f   : > { %1430 = vmatpush3.bf16.msra.mxu0 %v870_v31  ;;  %1454 = vmatpush3.bf16.msra.mxu1 %v870_v31 }
 0x180   : > { %v831_v33 = vpop.permute.xlu1 %830  ;;  %v829_v34 = vpop.permute.xlu0 %828  ;;  %972 = vmatprep.mubr.bf16.mxu0 %v1523_v30 }
 0x181   : > { %v871_v36 = vsel %vm840_vm6, %v829_v34, %v831_v33  ;;  %1030 = vmatmul.mubr.bf16.gmra.mrb[4].mxu1 %v1522_v32 }
 0x182   : > { %1431 = vmatprep.subr.bf16.mxu0 %v871_v36  ;;  %1449 = vmatprep.subr.bf16.mxu1 %v871_v36 }
 0x183   : > { %1432 = vmatpush3.bf16.msra.mxu0 %v871_v36  ;;  %1455 = vmatpush3.bf16.msra.mxu1 %v871_v36 }
 0x184   : > { %v835_v38 = vpop.permute.xlu1 %834  ;;  %v833_v39 = vpop.permute.xlu0 %832  ;;  %1037 = vmatprep.mubr.bf16.mxu1 %v1526_v35 }
 0x185   : > { %v872_v41 = vsel %vm840_vm6, %v833_v39, %v835_v38  ;;  %973 = vmatmul.mubr.bf16.gmra.mrb[8].mxu0 %v1525_v37 }
 0x186   : > { %1433 = vmatprep.subr.bf16.mxu0 %v872_v41  ;;  %1450 = vmatprep.subr.bf16.mxu1 %v872_v41 }
 0x187   : > { %1434 = vmatpush3.bf16.msra.mxu0 %v872_v41  ;;  %1456 = vmatpush3.bf16.msra.mxu1 %v872_v41 }
 0x188   : > { %v837_v44 = vpop.permute.xlu0 %836  ;;  %980 = vmatprep.mubr.bf16.mxu0 %v1529_v40  ;;  %v839_v47 = vpop.permute.xlu1 %838 }
 0x189   : > { %1038 = vmatmul.mubr.bf16.gmra.mrb[8].mxu1 %v1528_v42  ;;  %1435 = vmatprep.subr.bf16.mxu0 %v837_v44 }
 0x18a   : > { %1451 = vmatprep.subr.bf16.mxu1 %v837_v44  ;;  %1045 = vmatprep.mubr.bf16.mxu1 %v1532_v43 }
 0x18b   : > { %1436 = vmatpush3.bf16.msra.mxu0 %v837_v44  ;;  %1457 = vmatpush3.bf16.msra.mxu1 %v837_v44 }
 0x18c   : > { %1437 = vmatprep.subr.bf16.mxu0 %v839_v47  ;;  %1452 = vmatprep.subr.bf16.mxu1 %v839_v47 }
 0x18d   : > { %981 = vmatmul.mubr.bf16.gmra.mrb[12].mxu0 %v1531_v45 }
 0x18e   : > { %1439 = vmatprep.mubr.msk.bf16.mxu0 %vm911_vm8, %v1535_v46 }
 0x18f   : > { %1438 = vmatpush3.bf16.msra.mxu0 %v839_v47  ;;  %1458 = vmatpush3.bf16.msra.mxu1 %v839_v47 }
 0x191   : > { %1046 = vmatmul.mubr.bf16.gmra.mrb[12].mxu1 %v1534_v48 }
 0x192   : > { %1443 = vmatprep.mubr.msk.bf16.mxu1 %vm911_vm8, %v1537_v49 }
 0x195   : > { %1440 = vmatmul.mubr.msk.bf16.vlgmr.msra.gmra.mrb[16].mxu0 %vm911_vm8, %v1536_v50 }
 0x199   : > { %1444 = vmatmul.mubr.msk.bf16.vlgmr.msra.gmra.mrb[16].mxu1 %vm911_vm8, %v1538_v51  ;;  %v563_v54 = vpop.permute.xlu0 %562 }
 0x19a   : > { %v568_v58 = vpop.permute.xlu1 %567 }
 0x19d   : > { %v578_v12 = vpop.permute.xlu0 %577 }
 0x19e   : > { %v573_v8 = vpop.permute.xlu1 %572 }
 0x1a1   : > { %v588_v34 = vpop.permute.xlu0 %587 }
 0x1a2   : > { %v583_v28 = vpop.permute.xlu1 %582 }
 0x1a6   : > { %v593_v49 = vpop.permute.xlu1 %592 }
 0x248   : > { %v1353_v52 = vpop.f32.mrb[0].mxu0 }
 0x249   : > { %v1354_v53 = vpop.f32.mrb[1].mxu0 }
 0x24a   : > { %v1355_v55 = vadd.f32 %v1354_v53, %v1353_v52  ;;  %v1356_v56 = vpop.f32.mrb[2].mxu0 }
 0x24b   : > { %v1357_v57 = vpop.f32.mrb[3].mxu0 }
 0x24c   : > { %v1393_v59 = vpop.f32.mrb[0].mxu1  ;;  %v1358_v60 = vadd.f32 %v1357_v57, %v1356_v56  ;;  %v959_v61 = vadd.f32 %v1355_v55, %v563_v54  ;;  %v598_v54 = vpop.permute.xlu0 %597 }
 0x24d   : > { %v1394_v62 = vpop.f32.mrb[1].mxu1 }
 0x24e   : > { %v1395_v63 = vadd.f32 %v1394_v62, %v1393_v59  ;;  %v1396_v0 = vpop.f32.mrb[2].mxu1  ;;  %v962_v1 = vadd.f32 %v1358_v60, %v568_v58  ;;  %v1318_v62 = vld [vmem:[%s1994_s4] ss:$0 sm:$0xff] }
 0x24f   : > { %v1397_v2 = vpop.f32.mrb[3].mxu1 }
 0x250   : > { %v1398_v3 = vadd.f32 %v1397_v2, %v1396_v0  ;;  %v1359_v4 = vpop.f32.mrb[4].mxu0  ;;  %v1024_v5 = vadd.f32 %v1395_v63, %v959_v61 }
 0x251   : > { %v1360_v6 = vpop.f32.mrb[5].mxu0 }
 0x252   : > { %v1361_v7 = vadd.f32 %v1360_v6, %v1359_v4  ;;  %v1362_v9 = vpop.f32.mrb[6].mxu0  ;;  %v1027_v10 = vadd.f32 %v1398_v3, %v962_v1 }
 0x253   : > { %v1363_v11 = vpop.f32.mrb[7].mxu0 }
 0x254   : > { %v1399_v13 = vpop.f32.mrb[4].mxu1  ;;  %v1364_v14 = vadd.f32 %v1363_v11, %v1362_v9  ;;  %v967_v15 = vadd.f32 %v1361_v7, %v573_v8 }
 0x255   : > { %v1400_v16 = vpop.f32.mrb[5].mxu1 }
 0x256   : > { %v1401_v17 = vadd.f32 %v1400_v16, %v1399_v13  ;;  %v1402_v18 = vpop.f32.mrb[6].mxu1  ;;  %v970_v19 = vadd.f32 %v1364_v14, %v578_v12 }
 0x257   : > { %v1403_v20 = vpop.f32.mrb[7].mxu1 }
 0x258   : > { %v1404_v21 = vadd.f32 %v1403_v20, %v1402_v18  ;;  %v1365_v22 = vpop.f32.mrb[8].mxu0  ;;  %v1032_v23 = vadd.f32 %v1401_v17, %v967_v15 }
 0x259   : > { %v1366_v24 = vpop.f32.mrb[9].mxu0 }
 0x25a   : > { %v1367_v25 = vadd.f32 %v1366_v24, %v1365_v22  ;;  %v1368_v26 = vpop.f32.mrb[10].mxu0  ;;  %v1035_v27 = vadd.f32 %v1404_v21, %v970_v19 }
 0x25b   : > { %v1369_v29 = vpop.f32.mrb[11].mxu0 }
 0x25c   : > { %v1405_v30 = vpop.f32.mrb[8].mxu1  ;;  %v975_v31 = vadd.f32 %v1367_v25, %v583_v28  ;;  %v1370_v32 = vadd.f32 %v1369_v29, %v1368_v26 }
 0x25d   : > { %v1406_v33 = vpop.f32.mrb[9].mxu1 }
 0x25e   : > { %v1407_v35 = vadd.f32 %v1406_v33, %v1405_v30  ;;  %v978_v36 = vadd.f32 %v1370_v32, %v588_v34  ;;  %v1408_v37 = vpop.f32.mrb[10].mxu1 }
 0x25f   : > { %v1409_v38 = vpop.f32.mrb[11].mxu1 }
 0x260   : > { %v1410_v39 = vadd.f32 %v1409_v38, %v1408_v37  ;;  %v1371_v40 = vpop.f32.mrb[12].mxu0  ;;  %v1040_v41 = vadd.f32 %v1407_v35, %v975_v31 }
 0x261   : > { %v1372_v42 = vpop.f32.mrb[13].mxu0 }
 0x262   : > { %v1373_v43 = vadd.f32 %v1372_v42, %v1371_v40  ;;  %v1374_v44 = vpop.f32.mrb[14].mxu0  ;;  %v1043_v45 = vadd.f32 %v1410_v39, %v978_v36 }
 0x263   : > { %v1375_v46 = vpop.f32.mrb[15].mxu0 }
 0x264   : > { %v1376_v47 = vadd.f32 %v1375_v46, %v1374_v44  ;;  %v1411_v48 = vpop.f32.mrb[12].mxu1  ;;  %v983_v51 = vadd.f32 %v1373_v43, %v593_v49 }
 0x265   : > { %v1412_v50 = vpop.f32.mrb[13].mxu1 }
 0x266   : > { %v1413_v52 = vadd.f32 %v1412_v50, %v1411_v48  ;;  %v1414_v53 = vpop.f32.mrb[14].mxu1  ;;  %v986_v56 = vadd.f32 %v1376_v47, %v598_v54 }
 0x267   : > { %v1415_v55 = vpop.f32.mrb[15].mxu1 }
 0x268   : > { %v1416_v57 = vadd.f32 %v1415_v55, %v1414_v53  ;;  %v1441_v58 = vpop.f32.mrb[16].mxu0  ;;  %v1048_v59 = vadd.f32 %v1413_v52, %v983_v51 }
 0x269   : > { %v1097_v60 = vadd.f32 %v1441_v58, %v1032_v23  ;;  %v1088_v61 = vpop.f32.mrb[17].mxu0 }
 0x26a   : > { %v1089_v63 = vadd.f32 %v1088_v61, %v1024_v5  ;;  %v1442_v0 = vpop.f32.mrb[18].mxu0  ;;  %v1051_v1 = vadd.f32 %v1416_v57, %v986_v56 }
 0x26b   : > { %v1121_v2 = vmax.f32 %v1097_v60, 0.0  ;;  %v1100_v3 = vadd.f32 %v1442_v0, %v1035_v27  ;;  %v1091_v4 = vpop.f32.mrb[19].mxu0 }
 0x26c   : > { %v1119_v6 = vmax.f32 %v1089_v63, 0.0  ;;  %v1092_v8 = vadd.f32 %v1091_v4, %v1027_v10  ;;  %v1445_v7 = vpop.f32.mrb[16].mxu1 }
 0x26d   : > { %v1135_v9 = vmul.f32 %v1318_v62, %v1121_v2  ;;  %v1122_v11 = vmax.f32 %v1100_v3, 0.0  ;;  %v1113_v12 = vadd.f32 %v1445_v7, %v1048_v59  ;;  %v1104_v13 = vpop.f32.mrb[17].mxu1 }
 0x26e   : > { %v1133_v14 = vmul.f32 %v1318_v62, %v1119_v6  ;;  %v1120_v15 = vmax.f32 %v1092_v8, 0.0  ;;  %v1105_v16 = vadd.f32 %v1104_v13, %v1040_v41  ;;  %v1446_v17 = vpop.f32.mrb[18].mxu1 }
 0x26f   : > { %v1331_v18 = vpack.c.bf16 %v1135_v9, %v1135_v9  ;;  %v1136_v5 = vmul.f32 %v1318_v62, %v1122_v11  ;;  %v1125_v19 = vmax.f32 %v1113_v12, 0.0  ;;  %v1116_v20 = vadd.f32 %v1446_v17, %v1051_v1  ;;  %v1107_v21 = vpop.f32.mrb[19].mxu1 }
 0x270   : > { %v1329_v22 = vpack.c.bf16 %v1133_v14, %v1133_v14  ;;  %v1134_v10 = vmul.f32 %v1318_v62, %v1120_v15  ;;  %v1123_v23 = vmax.f32 %v1105_v16, 0.0  ;;  %v1108_v24 = vadd.f32 %v1107_v21, %v1043_v45 }
 0x271   : > { %1175 = vst [vmem:[%s1942_s29 + $0x1c] sm:$0xf] %v1331_v18  ;;  %v1332_v25 = vpack.c.bf16 %v1136_v5, %v1136_v5  ;;  %v1139_v26 = vmul.f32 %v1318_v62, %v1125_v19  ;;  %v1126_v27 = vmax.f32 %v1116_v20, 0.0 }
 0x272   : > { %1173 = vst [vmem:[%s1942_s29 + $0x4] sm:$0xf] %v1329_v22  ;;  %v1330_v28 = vpack.c.bf16 %v1134_v10, %v1134_v10  ;;  %v1137_v29 = vmul.f32 %v1318_v62, %v1123_v23  ;;  %v1124_v30 = vmax.f32 %v1108_v24, 0.0 }
 0x273   : > { %1176 = vst [vmem:[%s1942_s29 + $0x28] sm:$0xf] %v1332_v25  ;;  %v1335_v31 = vpack.c.bf16 %v1139_v26, %v1139_v26  ;;  %v1140_v32 = vmul.f32 %v1318_v62, %v1126_v27 }
 0x274   : > { %1174 = vst [vmem:[%s1942_s29 + $0x10] sm:$0xf] %v1330_v28  ;;  %v1333_v33 = vpack.c.bf16 %v1137_v29, %v1137_v29  ;;  %v1138_v34 = vmul.f32 %v1318_v62, %v1124_v30 }
 0x275   : > { %1179 = vst [vmem:[%s1942_s29 + $0x4c] sm:$0xf] %v1335_v31  ;;  %v1336_v35 = vpack.c.bf16 %v1140_v32, %v1140_v32 }
 0x276   : > { %1177 = vst [vmem:[%s1942_s29 + $0x34] sm:$0xf] %v1333_v33  ;;  %v1334_v36 = vpack.c.bf16 %v1138_v34, %v1138_v34 }
 0x277   : > { %1180 = vst [vmem:[%s1942_s29 + $0x58] sm:$0xf] %v1336_v35 }
 0x278   : > { %1178 = vst [vmem:[%s1942_s29 + $0x40] sm:$0xf] %v1334_v36 }
 0x279 PF: > { %s15_s18 = sadd.s32 1, %s1545_s18  }
 0x27a   : > { %p12_p4 = scmp.ge.s32.totalorder %s15_s18, 4  }
 0x27c   :  { %14 = sbr.rel (!%p12_p4) target bundleno = 1 (0x1), region = 73 }

// kernel: resnet56_forward.52
= control target key start
LH: loop header
LB: loop body
LE: loop exit
PB: predicated region body
PF: predicated region fallthrough
CT: control target
= control target key end

     0   :  { %s2595_s21 = smov 0   ;;  %s3416_s0 = inlined_call_operand.vmem [shape: bf16[2,64,384], index: 0, kind: input, shape index: {}]   ;;  %s3417_s1 = inlined_call_operand.vmem [shape: bf16[64,576], index: 1, kind: input, shape index: {}]   ;;  %s3418_s2 = inlined_call_operand.vmem [shape: f32[64,1], index: 2, kind: input, shape index: {}]   ;;  %s3419_s3 = inlined_call_operand.vmem [shape: bf16[64,576], index: 3, kind: input, shape index: {}]   ;;  %s3420_s4 = inlined_call_operand.vmem [shape: f32[64,1], index: 4, kind: input, shape index: {}]   ;;  %s3421_s5 = inlined_call_operand.vmem [shape: f32[1,128], index: 5, kind: input, shape index: {}]   ;;  %s3422_s6 = inlined_call_operand.vmem [shape: bf16[2,64,384], index: 6, kind: output, shape index: {}]  }
   0x1 LB: > { %s2054_s22 = sadd.s32 4294967295, %s2548_s21   ;;  %p2058_p0 = scmp.ge.s32.totalorder %s2548_s21, 1  ;;  %s2548_s21 = sphi %s2595_s21, %s16_s21  }
   0x2   : > { %p212_p1 = scmp.lt.s32.totalorder %s2548_s21, 3 }
   0x4   : > { %p213_p2 = pnand %p2058_p0, %p212_p1 }
   0x5   : > { %p242_p3 = scmp.lt.s32.totalorder (!%p213_p2), %s2054_s22, 1  ;;  %s2550_s27 = smov (!%p213_p2), 126   ;;  %vm347_vm0 = vcmask (!%p213_p2), 1031168   ;;  %vm368_vm1 = vcmask (!%p213_p2), 998400   ;;  %vm470_vm2 = vcmask (!%p213_p2), 949248   ;;  %vm326_vm3 = vcmask (!%p213_p2), 1039360  }
   0x6   : > { %216 = sbr.rel (%p213_p2) target bundleno = 1216 (0x4c0), region = 44  ;;  %s2551_s28 = smov (!%p213_p2), 122   ;;  %vm491_vm4 = vcmask (!%p213_p2), 941056   ;;  %vm449_vm5 = vcmask (!%p213_p2), 982016   ;;  %vm512_vm6 = vcmask (!%p213_p2), 932864   ;;  %vm825_vm7 = vcmask (!%p213_p2), 56320  }
   0x7   : > { %s2552_s29 = smov (!%p213_p2), 116   ;;  %s2553_s30 = smov (!%p213_p2), 127   ;;  %vm894_vm8 = vcmask (!%p213_p2), 523264  }
   0x8   : > { %s2554_s7 = smov (!%p213_p2), 121   ;;  %s2555_s8 = smov (!%p213_p2), 115  }
   0x9   : > { %s2556_s9 = smov (!%p213_p2), 120   ;;  %s2557_s10 = smov (!%p213_p2), 114  }
   0xa   : > { %s2558_s11 = smov (!%p213_p2), 7  }
   0xd   : > { %s3424_s22 = smov (!%p242_p3, %s2054_s22), 1 }
   0xe   : > { %s2356_s23 = smul.u32 96, %s3424_s22 }
  0x10   : > { %s2611_s26 = scalar_lea.vmem %s3416_s0, %s2356_s23  ;;  %s3358_s13 = scalar_lea.vmem %s3422_s6, %s2356_s23 }
  0x11   : > { %v2614_v0 = vld [vmem:[%s2611_s26 + $0x18] ss:$12 sps:$4 sm:$0xff]   ;;  %v2617_v1 = vld [vmem:[%s2611_s26] ss:$12 sps:$4 sm:$0xff]   ;;  %v2622_v2 = vld [vmem:[%s2611_s26 + $0x1c] ss:$12 sps:$4 sm:$0xff]  }
  0x12   : > { %335 = vrot.lane.b32.xlu1 %v2614_v0, %s2550_s27  ;;  %331 = vrot.lane.b32.xlu0 %v2617_v1, %s2550_s27  ;;  %v2627_v3 = vld [vmem:[%s2611_s26 + $0x4] ss:$12 sps:$4 sm:$0xff]   ;;  %v2632_v4 = vld [vmem:[%s2611_s26 + $0x34] ss:$12 sps:$4 sm:$0xff]  }
  0x13   : > { %v2637_v5 = vld [vmem:[%s2611_s26 + $0x30] ss:$12 sps:$4 sm:$0xff]   ;;  %v2642_v6 = vld [vmem:[%s2611_s26 + $0x4c] ss:$12 sps:$4 sm:$0xff]   ;;  %v2647_v7 = vld [vmem:[%s2611_s26 + $0x48] ss:$12 sps:$4 sm:$0xff]  }
  0x14   : > { %v2469_v8 = vld [vmem:[%s2611_s26 + $0x8] ss:$12 sps:$4 sm:$0xff]   ;;  %v2471_v9 = vld [vmem:[%s2611_s26 + $0x4] ss:$12 sps:$4 sm:$0xff]   ;;  %v2475_v12 = vld [vmem:[%s2611_s26 + $0x20] ss:$12 sps:$4 sm:$0xff]  }
  0x15   : > { %v2472_v10 = vld [vmem:[%s2611_s26 + $0x4] ss:$12 sps:$4 sm:$0xff]   ;;  %v2473_v11 = vld [vmem:[%s2611_s26 + $0x1c] ss:$12 sps:$4 sm:$0xff]   ;;  %v2479_v15 = vld [vmem:[%s2611_s26 + $0x34] ss:$12 sps:$4 sm:$0xff]  }
  0x16   : > { %337 = vrot.lane.b32.xlu1 %v2622_v2, %s2550_s27  ;;  %333 = vrot.lane.b32.xlu0 %v2627_v3, %s2550_s27  ;;  %v2476_v13 = vld [vmem:[%s2611_s26 + $0x1c] ss:$12 sps:$4 sm:$0xff]   ;;  %v2477_v14 = vld [vmem:[%s2611_s26 + $0x38] ss:$12 sps:$4 sm:$0xff]  }
  0x17   : > { %v2480_v16 = vld [vmem:[%s2611_s26 + $0x34] ss:$12 sps:$4 sm:$0xff]   ;;  %v2481_v17 = vld [vmem:[%s2611_s26 + $0x4c] ss:$12 sps:$4 sm:$0xff]   ;;  %v2483_v18 = vld [vmem:[%s2611_s26 + $0x50] ss:$12 sps:$4 sm:$0xff]  }
  0x18   : > { %v2484_v19 = vld [vmem:[%s2611_s26 + $0x4c] ss:$12 sps:$4 sm:$0xff]  }
  0x1a   : > { %341 = vrot.lane.b32.xlu1 %v2632_v4, %s2550_s27  ;;  %339 = vrot.lane.b32.xlu0 %v2637_v5, %s2550_s27 }
  0x1e   : > { %345 = vrot.lane.b32.xlu1 %v2642_v6, %s2550_s27  ;;  %343 = vrot.lane.b32.xlu0 %v2647_v7, %s2550_s27 }
  0x22   : > { %354 = vrot.lane.b32.xlu1 %v2627_v3, %s2551_s28  ;;  %352 = vrot.lane.b32.xlu0 %v2617_v1, %s2551_s28 }
  0x26   : > { %456 = vrot.lane.b32.xlu1 %v2469_v8, %s2552_s29  ;;  %454 = vrot.lane.b32.xlu0 %v2471_v9, %s2552_s29 }
  0x2a   : > { %312 = vrot.lane.b32.xlu1 %v2627_v3, %s2553_s30  ;;  %310 = vrot.lane.b32.xlu0 %v2617_v1, %s2553_s30 }
  0x2e   : > { %356 = vrot.lane.b32.xlu1 %v2614_v0, %s2551_s28  ;;  %393 = vrot.lane.b32.xlu0 %v2472_v10, %s2554_s7 }
  0x32   : > { %458 = vrot.lane.b32.xlu1 %v2473_v11, %s2552_s29  ;;  %358 = vrot.lane.b32.xlu0 %v2622_v2, %s2551_s28 }
  0x36   : > { %314 = vrot.lane.b32.xlu1 %v2614_v0, %s2553_s30  ;;  %460 = vrot.lane.b32.xlu0 %v2475_v12, %s2552_s29 }
  0x3a   : > { %395 = vrot.lane.b32.xlu1 %v2476_v13, %s2554_s7  ;;  %316 = vrot.lane.b32.xlu0 %v2622_v2, %s2553_s30 }
  0x3e   : > { %362 = vrot.lane.b32.xlu1 %v2632_v4, %s2551_s28  ;;  %360 = vrot.lane.b32.xlu0 %v2637_v5, %s2551_s28 }
  0x42   : > { %464 = vrot.lane.b32.xlu1 %v2477_v14, %s2552_s29  ;;  %462 = vrot.lane.b32.xlu0 %v2479_v15, %s2552_s29 }
  0x46   : > { %320 = vrot.lane.b32.xlu1 %v2632_v4, %s2553_s30  ;;  %318 = vrot.lane.b32.xlu0 %v2637_v5, %s2553_s30 }
  0x4a   : > { %364 = vrot.lane.b32.xlu1 %v2647_v7, %s2551_s28  ;;  %397 = vrot.lane.b32.xlu0 %v2480_v16, %s2554_s7 }
  0x4e   : > { %466 = vrot.lane.b32.xlu1 %v2481_v17, %s2552_s29  ;;  %366 = vrot.lane.b32.xlu0 %v2642_v6, %s2551_s28 }
  0x52   : > { %322 = vrot.lane.b32.xlu1 %v2647_v7, %s2553_s30  ;;  %468 = vrot.lane.b32.xlu0 %v2483_v18, %s2552_s29 }
  0x56   : > { %399 = vrot.lane.b32.xlu1 %v2484_v19, %s2554_s7  ;;  %324 = vrot.lane.b32.xlu0 %v2642_v6, %s2553_s30 }
  0x5a   : > { %477 = vrot.lane.b32.xlu1 %v2469_v8, %s2555_s8  ;;  %475 = vrot.lane.b32.xlu0 %v2471_v9, %s2555_s8 }
  0x5e   : > { %435 = vrot.lane.b32.xlu1 %v2469_v8, %s2556_s9  ;;  %433 = vrot.lane.b32.xlu0 %v2471_v9, %s2556_s9 }
  0x62   : > { %481 = vrot.lane.b32.xlu1 %v2475_v12, %s2555_s8  ;;  %479 = vrot.lane.b32.xlu0 %v2473_v11, %s2555_s8 }
  0x66   : > { %439 = vrot.lane.b32.xlu1 %v2475_v12, %s2556_s9  ;;  %437 = vrot.lane.b32.xlu0 %v2473_v11, %s2556_s9 }
  0x6a   : > { %485 = vrot.lane.b32.xlu1 %v2477_v14, %s2555_s8  ;;  %483 = vrot.lane.b32.xlu0 %v2479_v15, %s2555_s8 }
  0x6e   : > { %443 = vrot.lane.b32.xlu1 %v2477_v14, %s2556_s9  ;;  %441 = vrot.lane.b32.xlu0 %v2479_v15, %s2556_s9 }
  0x72   : > { %489 = vrot.lane.b32.xlu1 %v2483_v18, %s2555_s8  ;;  %487 = vrot.lane.b32.xlu0 %v2481_v17, %s2555_s8 }
  0x76   : > { %447 = vrot.lane.b32.xlu1 %v2483_v18, %s2556_s9  ;;  %445 = vrot.lane.b32.xlu0 %v2481_v17, %s2556_s9 }
  0x7a   : > { %498 = vrot.lane.b32.xlu1 %v2469_v8, %s2557_s10  ;;  %496 = vrot.lane.b32.xlu0 %v2471_v9, %s2557_s10 }
  0x7e   : > { %502 = vrot.lane.b32.xlu1 %v2475_v12, %s2557_s10  ;;  %500 = vrot.lane.b32.xlu0 %v2473_v11, %s2557_s10 }
  0x82   : > { %506 = vrot.lane.b32.xlu1 %v2477_v14, %s2557_s10  ;;  %504 = vrot.lane.b32.xlu0 %v2479_v15, %s2557_s10 }
  0x84   : > { %v336_v20 = vpop.permute.xlu1 %335  ;;  %v332_v21 = vpop.permute.xlu0 %331 }
  0x86   : > { %510 = vrot.lane.b32.xlu1 %v2483_v18, %s2557_s10  ;;  %508 = vrot.lane.b32.xlu0 %v2481_v17, %s2557_s10 }
  0x88   : > { %v338_v22 = vpop.permute.xlu1 %337  ;;  %v334_v23 = vpop.permute.xlu0 %333 }
  0x89   : > { %v348_v26 = vsel %vm347_vm0, %v332_v21, %v334_v23  ;;  %v349_v29 = vsel %vm347_vm0, %v336_v20, %v338_v22  ;;  %v2487_v21 = vld [vmem:[%s3417_s1 + $0x4] ss:$20 sps:$4 sm:$0xff]  }
  0x8a   : > { %691 = vrot.lane.b32.xlu1 %v2627_v3, %s2558_s11  ;;  %689 = vrot.lane.b32.xlu0 %v2617_v1, %s2558_s11 }
  0x8b   : > { %939 = vmatprep.mubr.bf16.mxu0 %v2487_v21 }
  0x8c   : > { %v342_v24 = vpop.permute.xlu1 %341  ;;  %v340_v25 = vpop.permute.xlu0 %339 }
  0x8d   : > { %v350_v34 = vsel %vm347_vm0, %v340_v25, %v342_v24 }
  0x8e   : > { %723 = vrot.lane.b32.xlu1 %v334_v23, %s2558_s11  ;;  %721 = vrot.lane.b32.xlu0 %v348_v26, %s2558_s11 }
  0x90   : > { %v346_v27 = vpop.permute.xlu1 %345  ;;  %v344_v28 = vpop.permute.xlu0 %343 }
  0x91   : > { %v351_v39 = vsel %vm347_vm0, %v344_v28, %v346_v27 }
  0x92   : > { %727 = vrot.lane.b32.xlu1 %v338_v22, %s2558_s11  ;;  %725 = vrot.lane.b32.xlu0 %v349_v29, %s2558_s11 }
  0x94   : > { %v355_v30 = vpop.permute.xlu1 %354  ;;  %v353_v31 = vpop.permute.xlu0 %352 }
  0x95   : > { %v369_v44 = vsel %vm368_vm1, %v353_v31, %v355_v30 }
  0x96   : > { %695 = vrot.lane.b32.xlu1 %v2622_v2, %s2558_s11  ;;  %693 = vrot.lane.b32.xlu0 %v2614_v0, %s2558_s11 }
  0x98   : > { %v457_v32 = vpop.permute.xlu1 %456  ;;  %v455_v33 = vpop.permute.xlu0 %454 }
  0x99   : > { %v471_v47 = vsel %vm470_vm2, %v455_v33, %v457_v32 }
  0x9a   : > { %731 = vrot.lane.b32.xlu1 %v342_v24, %s2558_s11  ;;  %729 = vrot.lane.b32.xlu0 %v350_v34, %s2558_s11  ;;  %v2493_v34 = vld [vmem:[%s3417_s1 + $0xc] ss:$20 sps:$4 sm:$0xff]  }
  0x9b   : > { %1004 = vmatprep.mubr.bf16.mxu1 %v2493_v34 }
  0x9c   : > { %v313_v35 = vpop.permute.xlu1 %312  ;;  %v311_v36 = vpop.permute.xlu0 %310 }
  0x9d   : > { %v327_v50 = vsel %vm326_vm3, %v311_v36, %v313_v35 }
  0x9e   : > { %699 = vrot.lane.b32.xlu1 %v2632_v4, %s2558_s11  ;;  %697 = vrot.lane.b32.xlu0 %v2637_v5, %s2558_s11 }
  0xa0   : > { %v357_v37 = vpop.permute.xlu1 %356  ;;  %v394_v38 = vpop.permute.xlu0 %393 }
  0xa2   : > { %735 = vrot.lane.b32.xlu1 %v346_v27, %s2558_s11  ;;  %733 = vrot.lane.b32.xlu0 %v351_v39, %s2558_s11 }
  0xa4   : > { %v459_v40 = vpop.permute.xlu1 %458  ;;  %v359_v41 = vpop.permute.xlu0 %358 }
  0xa5   : > { %v370_v53 = vsel %vm368_vm1, %v357_v37, %v359_v41 }
  0xa6   : > { %703 = vrot.lane.b32.xlu1 %v2642_v6, %s2558_s11  ;;  %701 = vrot.lane.b32.xlu0 %v2647_v7, %s2558_s11 }
  0xa8   : > { %v315_v42 = vpop.permute.xlu1 %314  ;;  %v461_v43 = vpop.permute.xlu0 %460 }
  0xa9   : > { %v472_v59 = vsel %vm470_vm2, %v459_v40, %v461_v43 }
  0xaa   : > { %739 = vrot.lane.b32.xlu1 %v355_v30, %s2558_s11  ;;  %737 = vrot.lane.b32.xlu0 %v369_v44, %s2558_s11 }
  0xac   : > { %v396_v45 = vpop.permute.xlu1 %395  ;;  %v317_v46 = vpop.permute.xlu0 %316 }
  0xad   : > { %v328_v58 = vsel %vm326_vm3, %v315_v42, %v317_v46 }
  0xae   : > { %779 = vrot.lane.b32.xlu1 %v471_v47, %s2558_s11  ;;  %777 = vrot.lane.b32.xlu0 %v455_v33, %s2558_s11 }
  0xb0   : > { %v363_v48 = vpop.permute.xlu1 %362  ;;  %v361_v49 = vpop.permute.xlu0 %360 }
  0xb1   : > { %v371_v0 = vsel %vm368_vm1, %v361_v49, %v363_v48 }
  0xb2   : > { %707 = vrot.lane.b32.xlu1 %v313_v35, %s2558_s11  ;;  %705 = vrot.lane.b32.xlu0 %v327_v50, %s2558_s11 }
  0xb4   : > { %v465_v51 = vpop.permute.xlu1 %464  ;;  %v463_v52 = vpop.permute.xlu0 %462 }
  0xb5   : > { %v473_v3 = vsel %vm470_vm2, %v463_v52, %v465_v51 }
  0xb6   : > { %741 = vrot.lane.b32.xlu1 %v370_v53, %s2558_s11  ;;  %753 = vrot.lane.b32.xlu0 %v394_v38, %s2558_s11 }
  0xb8   : > { %v321_v54 = vpop.permute.xlu1 %320  ;;  %v319_v55 = vpop.permute.xlu0 %318 }
  0xb9   : > { %v329_v6 = vsel %vm326_vm3, %v319_v55, %v321_v54 }
  0xba   : > { %781 = vrot.lane.b32.xlu1 %v459_v40, %s2558_s11  ;;  %743 = vrot.lane.b32.xlu0 %v359_v41, %s2558_s11 }
  0xbc   : > { %v365_v56 = vpop.permute.xlu1 %364  ;;  %v398_v57 = vpop.permute.xlu0 %397 }
  0xbe   : > { %709 = vrot.lane.b32.xlu1 %v328_v58, %s2558_s11  ;;  %783 = vrot.lane.b32.xlu0 %v472_v59, %s2558_s11 }
  0xc0   : > { %v467_v60 = vpop.permute.xlu1 %466  ;;  %v367_v61 = vpop.permute.xlu0 %366 }
  0xc1   : > { %v372_v9 = vsel %vm368_vm1, %v365_v56, %v367_v61 }
  0xc2   : > { %755 = vrot.lane.b32.xlu1 %v396_v45, %s2558_s11  ;;  %711 = vrot.lane.b32.xlu0 %v317_v46, %s2558_s11 }
  0xc4   : > { %v323_v62 = vpop.permute.xlu1 %322  ;;  %v469_v63 = vpop.permute.xlu0 %468 }
  0xc5   : > { %v474_v15 = vsel %vm470_vm2, %v467_v60, %v469_v63  ;;  %v2559_v63 = vmov 0  }
  0xc6   : > { %747 = vrot.lane.b32.xlu1 %v363_v48, %s2558_s11  ;;  %745 = vrot.lane.b32.xlu0 %v371_v0, %s2558_s11  ;;  %v541_v0 = vld [vmem:[%s3418_s2] sm:$0xff]  ;;  %1983 = vst [vmem:[%s3358_s13] sm:$0xf] %v2559_v63 }
  0xc7   : > { %2376 = vset.pattern.permute.xlu1 %v2559_v63  ;;  %2375 = vset.pattern.permute.xlu0 %v2559_v63  ;;  %1984 = vst [vmem:[%s3358_s13 + $0xc] sm:$0xf] %v2559_v63  ;;  %1985 = vst [vmem:[%s3358_s13 + $0x18] sm:$0xf] %v2559_v63 }
  0xc8   : > { %v400_v1 = vpop.permute.xlu1 %399  ;;  %v325_v2 = vpop.permute.xlu0 %324  ;;  %1986 = vst [vmem:[%s3358_s13 + $0x24] sm:$0xf] %v2559_v63  ;;  %1987 = vst [vmem:[%s3358_s13 + $0x30] sm:$0xf] %v2559_v63 }
  0xc9   : > { %v330_v14 = vsel %vm326_vm3, %v323_v62, %v325_v2  ;;  %1988 = vst [vmem:[%s3358_s13 + $0x3c] sm:$0xf] %v2559_v63  ;;  %1989 = vst [vmem:[%s3358_s13 + $0x48] sm:$0xf] %v2559_v63 }
  0xca   : > { %787 = vrot.lane.b32.xlu1 %v473_v3, %s2558_s11  ;;  %785 = vrot.lane.b32.xlu0 %v463_v52, %s2558_s11  ;;  %v543_v3 = vld [vmem:[%s3418_s2 + $0x10] sm:$0xff]  ;;  %1990 = vst [vmem:[%s3358_s13 + $0x54] sm:$0xf] %v2559_v63 }
  0xcb   : > { %1991 = vst [vmem:[%s3358_s13 + $0x8] sm:$0xf] %v2559_v63  ;;  %1992 = vst [vmem:[%s3358_s13 + $0x14] sm:$0xf] %v2559_v63 }
  0xcc   : > { %v478_v4 = vpop.permute.xlu1 %477  ;;  %v476_v5 = vpop.permute.xlu0 %475  ;;  %1993 = vst [vmem:[%s3358_s13 + $0x20] sm:$0xf] %v2559_v63  ;;  %1994 = vst [vmem:[%s3358_s13 + $0x2c] sm:$0xf] %v2559_v63 }
  0xcd   : > { %v492_v20 = vsel %vm491_vm4, %v476_v5, %v478_v4  ;;  %1995 = vst [vmem:[%s3358_s13 + $0x38] sm:$0xf] %v2559_v63  ;;  %1996 = vst [vmem:[%s3358_s13 + $0x44] sm:$0xf] %v2559_v63 }
  0xce   : > { %715 = vrot.lane.b32.xlu1 %v321_v54, %s2558_s11  ;;  %713 = vrot.lane.b32.xlu0 %v329_v6, %s2558_s11  ;;  %1997 = vst [vmem:[%s3358_s13 + $0x50] sm:$0xf] %v2559_v63  ;;  %1998 = vst [vmem:[%s3358_s13 + $0x5c] sm:$0xf] %v2559_v63 }
  0xd0   : > { %v436_v7 = vpop.permute.xlu1 %435  ;;  %v434_v8 = vpop.permute.xlu0 %433 }
  0xd1   : > { %v450_v24 = vsel %vm449_vm5, %v434_v8, %v436_v7 }
  0xd2   : > { %749 = vrot.lane.b32.xlu1 %v372_v9, %s2558_s11  ;;  %757 = vrot.lane.b32.xlu0 %v398_v57, %s2558_s11 }
  0xd4   : > { %v482_v10 = vpop.permute.xlu1 %481  ;;  %v480_v11 = vpop.permute.xlu0 %479 }
  0xd5   : > { %v493_v27 = vsel %vm491_vm4, %v480_v11, %v482_v10  ;;  %v546_v10 = vld [vmem:[%s3418_s2 + $0x28] sm:$0xff] }
  0xd6   : > { %789 = vrot.lane.b32.xlu1 %v467_v60, %s2558_s11  ;;  %751 = vrot.lane.b32.xlu0 %v367_v61, %s2558_s11  ;;  %v542_v61 = vld [vmem:[%s3418_s2 + $0x8] sm:$0xff] }
  0xd8   : > { %v440_v12 = vpop.permute.xlu1 %439  ;;  %v438_v13 = vpop.permute.xlu0 %437 }
  0xd9   : > { %v451_v30 = vsel %vm449_vm5, %v438_v13, %v440_v12 }
  0xda   : > { %717 = vrot.lane.b32.xlu1 %v330_v14, %s2558_s11  ;;  %791 = vrot.lane.b32.xlu0 %v474_v15, %s2558_s11  ;;  %v548_v15 = vld [vmem:[%s3418_s2 + $0x38] sm:$0xff] }
  0xdc   : > { %v486_v16 = vpop.permute.xlu1 %485  ;;  %v484_v17 = vpop.permute.xlu0 %483 }
  0xdd   : > { %v494_v33 = vsel %vm491_vm4, %v484_v17, %v486_v16 }
  0xde   : > { %759 = vrot.lane.b32.xlu1 %v400_v1, %s2558_s11  ;;  %719 = vrot.lane.b32.xlu0 %v325_v2, %s2558_s11 }
  0xe0   : > { %v444_v18 = vpop.permute.xlu1 %443  ;;  %v442_v19 = vpop.permute.xlu0 %441 }
  0xe1   : > { %v452_v37 = vsel %vm449_vm5, %v442_v19, %v444_v18 }
  0xe2   : > { %795 = vrot.lane.b32.xlu1 %v492_v20, %s2558_s11  ;;  %793 = vrot.lane.b32.xlu0 %v476_v5, %s2558_s11  ;;  %v544_v5 = vld [vmem:[%s3418_s2 + $0x18] sm:$0xff] }
  0xe4   : > { %v490_v22 = vpop.permute.xlu1 %489  ;;  %v488_v23 = vpop.permute.xlu0 %487 }
  0xe5   : > { %v495_v40 = vsel %vm491_vm4, %v488_v23, %v490_v22 }
  0xe6   : > { %763 = vrot.lane.b32.xlu1 %v450_v24, %s2558_s11  ;;  %761 = vrot.lane.b32.xlu0 %v434_v8, %s2558_s11  ;;  %v545_v8 = vld [vmem:[%s3418_s2 + $0x20] sm:$0xff] }
  0xe8   : > { %v448_v25 = vpop.permute.xlu1 %447  ;;  %v446_v26 = vpop.permute.xlu0 %445 }
  0xe9   : > { %v453_v43 = vsel %vm449_vm5, %v446_v26, %v448_v25 }
  0xea   : > { %799 = vrot.lane.b32.xlu1 %v493_v27, %s2558_s11  ;;  %797 = vrot.lane.b32.xlu0 %v480_v11, %s2558_s11 }
  0xec   : > { %v499_v28 = vpop.permute.xlu1 %498  ;;  %v497_v29 = vpop.permute.xlu0 %496 }
  0xed   : > { %v513_v46 = vsel %vm512_vm6, %v497_v29, %v499_v28 }
  0xee   : > { %767 = vrot.lane.b32.xlu1 %v451_v30, %s2558_s11  ;;  %765 = vrot.lane.b32.xlu0 %v438_v13, %s2558_s11  ;;  %v547_v13 = vld [vmem:[%s3418_s2 + $0x30] sm:$0xff] }
  0xf0   : > { %v503_v31 = vpop.permute.xlu1 %502  ;;  %v501_v32 = vpop.permute.xlu0 %500 }
  0xf1   : > { %v514_v51 = vsel %vm512_vm6, %v501_v32, %v503_v31 }
  0xf2   : > { %803 = vrot.lane.b32.xlu1 %v494_v33, %s2558_s11  ;;  %801 = vrot.lane.b32.xlu0 %v484_v17, %s2558_s11 }
  0xf4   : > { %v507_v35 = vpop.permute.xlu1 %506  ;;  %v505_v36 = vpop.permute.xlu0 %504 }
  0xf5   : > { %v515_v55 = vsel %vm512_vm6, %v505_v36, %v507_v35 }
  0xf6   : > { %771 = vrot.lane.b32.xlu1 %v452_v37, %s2558_s11  ;;  %769 = vrot.lane.b32.xlu0 %v442_v19, %s2558_s11 }
  0xf8   : > { %v511_v38 = vpop.permute.xlu1 %510  ;;  %v509_v39 = vpop.permute.xlu0 %508 }
  0xf9   : > { %v516_v59 = vsel %vm512_vm6, %v509_v39, %v511_v38 }
  0xfa   : > { %807 = vrot.lane.b32.xlu1 %v495_v40, %s2558_s11  ;;  %805 = vrot.lane.b32.xlu0 %v488_v23, %s2558_s11 }
  0xfc   : > { %v692_v41 = vpop.permute.xlu1 %691  ;;  %v690_v42 = vpop.permute.xlu0 %689 }
  0xfd   : > { %v826_v48 = vsel %vm825_vm7, %v690_v42, %v692_v41 }
  0xfe   : > { %775 = vrot.lane.b32.xlu1 %v453_v43, %s2558_s11  ;;  %773 = vrot.lane.b32.xlu0 %v446_v26, %s2558_s11 }
 0x100   : > { %v724_v44 = vpop.permute.xlu1 %723  ;;  %v722_v45 = vpop.permute.xlu0 %721 }
 0x101   : > { %v834_v47 = vsel %vm825_vm7, %v722_v45, %v724_v44 }
 0x102   : > { %811 = vrot.lane.b32.xlu1 %v513_v46, %s2558_s11  ;;  %809 = vrot.lane.b32.xlu0 %v497_v29, %s2558_s11 }
 0x103   : > { %2148 = vmatprep.subr.bf16.mxu0 %v834_v47 }
 0x104   : > { %2149 = vmatpush3.bf16.msra.mxu0 %v826_v48  ;;  %v728_v49 = vpop.permute.xlu1 %727  ;;  %v726_v50 = vpop.permute.xlu0 %725 }
 0x105   : > { %v835_v52 = vsel %vm825_vm7, %v726_v50, %v728_v49 }
 0x106   : > { %815 = vrot.lane.b32.xlu1 %v514_v51, %s2558_s11  ;;  %813 = vrot.lane.b32.xlu0 %v501_v32, %s2558_s11 }
 0x107   : > { %2150 = vmatprep.subr.bf16.mxu0 %v835_v52 }
 0x108   : > { %v696_v53 = vpop.permute.xlu1 %695  ;;  %v694_v54 = vpop.permute.xlu0 %693 }
 0x109   : > { %v827_v56 = vsel %vm825_vm7, %v694_v54, %v696_v53 }
 0x10a   : > { %819 = vrot.lane.b32.xlu1 %v515_v55, %s2558_s11  ;;  %817 = vrot.lane.b32.xlu0 %v505_v36, %s2558_s11  ;;  %v2485_v55 = vld [vmem:[%s3417_s1] ss:$20 sps:$4 sm:$0xff]  }
 0x10b   : > { %2151 = vmatpush3.bf16.msra.mxu0 %v827_v56  ;;  %v2488_v56 = vld [vmem:[%s3417_s1 + $0x2c] ss:$20 sps:$4 sm:$0xff]  }
 0x10c   : > { %v732_v57 = vpop.permute.xlu1 %731  ;;  %v730_v58 = vpop.permute.xlu0 %729 }
 0x10d   : > { %v836_v60 = vsel %vm825_vm7, %v730_v58, %v732_v57 }
 0x10e   : > { %823 = vrot.lane.b32.xlu1 %v516_v59, %s2558_s11  ;;  %821 = vrot.lane.b32.xlu0 %v509_v39, %s2558_s11 }
 0x10f   : > { %2152 = vmatprep.subr.bf16.mxu0 %v836_v60 }
 0x110   : > { %v700_v62 = vpop.permute.xlu1 %699  ;;  %v698_v1 = vpop.permute.xlu0 %697 }
 0x111   : > { %v828_v2 = vsel %vm825_vm7, %v698_v1, %v700_v62  ;;  %v2494_v1 = vld [vmem:[%s3417_s1 + $0x54] ss:$20 sps:$4 sm:$0xff]  }
 0x112   : > { %556 = vperm.xlu1 %2376, %v542_v61   ;;  %2153 = vmatpush3.bf16.msra.mxu0 %v828_v2 }
 0x113   : > { %551 = vperm.xlu0 %2375, %v541_v0   ;;  %v2490_v0 = vld [vmem:[%s3417_s1 + $0x28] ss:$20 sps:$4 sm:$0xff]  }
 0x114   : > { %v736_v4 = vpop.permute.xlu1 %735  ;;  %v734_v6 = vpop.permute.xlu0 %733 }
 0x115   : > { %v837_v7 = vsel %vm825_vm7, %v734_v6, %v736_v4 }
 0x116   : > { %561 = vperm.xlu1 %2376, %v543_v3   ;;  %2154 = vmatprep.subr.bf16.mxu0 %v837_v7 }
 0x117   : > { %566 = vperm.xlu0 %2375, %v544_v5  }
 0x118   : > { %v704_v9 = vpop.permute.xlu1 %703  ;;  %v702_v11 = vpop.permute.xlu0 %701 }
 0x119   : > { %v829_v12 = vsel %vm825_vm7, %v702_v11, %v704_v9  ;;  %v2499_v9 = vld [vmem:[%s3417_s1 + $0x7c] ss:$20 sps:$4 sm:$0xff]  }
 0x11a   : > { %571 = vperm.xlu1 %2376, %v545_v8   ;;  %2155 = vmatpush3.bf16.msra.mxu0 %v829_v12  ;;  %v2496_v8 = vld [vmem:[%s3417_s1 + $0x50] ss:$20 sps:$4 sm:$0xff]  }
 0x11b   : > { %576 = vperm.xlu0 %2375, %v546_v10  }
 0x11c   : > { %v740_v14 = vpop.permute.xlu1 %739  ;;  %v738_v16 = vpop.permute.xlu0 %737 }
 0x11d   : > { %v838_v17 = vsel %vm825_vm7, %v738_v16, %v740_v14  ;;  %v2502_v16 = vld [vmem:[%s3417_s1 + $0x78] ss:$20 sps:$4 sm:$0xff]  }
 0x11e   : > { %581 = vperm.xlu1 %2376, %v547_v13   ;;  %2156 = vmatprep.subr.bf16.mxu0 %v838_v17  ;;  %v2506_v17 = vld [vmem:[%s3417_s1 + $0x10] ss:$20 sps:$4 sm:$0xff]  }
 0x11f   : > { %586 = vperm.xlu0 %2375, %v548_v15  }
 0x120   : > { %v780_v18 = vpop.permute.xlu1 %779  ;;  %v778_v19 = vpop.permute.xlu0 %777 }
 0x121   : > { %v846_v20 = vsel %vm825_vm7, %v778_v19, %v780_v18 }
 0x122   : > { %2188 = vmatprep.subr.bf16.mxu1 %v846_v20  ;;  %2378 = vrot.lane.b32.xlu1 %v2559_v63, %s2550_s27 }
 0x123   : > { %2383 = vrot.lane.b32.xlu0 %v2559_v63, %s2550_s27 }
 0x124   : > { %v708_v21 = vpop.permute.xlu1 %707  ;;  %v706_v22 = vpop.permute.xlu0 %705 }
 0x125   : > { %v830_v23 = vsel %vm825_vm7, %v706_v22, %v708_v21 }
 0x126   : > { %2157 = vmatpush3.bf16.msra.mxu0 %v830_v23  ;;  %2398 = vrot.lane.b32.xlu1 %v2559_v63, %s2553_s30 }
 0x127   : > { %2388 = vrot.lane.b32.xlu0 %v2559_v63, %s2552_s29 }
 0x128   : > { %v742_v24 = vpop.permute.xlu1 %741  ;;  %v754_v25 = vpop.permute.xlu0 %753 }
 0x129   : > { %2189 = vmatpush3.bf16.msra.mxu1 %v754_v25  ;;  %v2497_v25 = vld [vmem:[%s3417_s1 + $0x34] ss:$20 sps:$4 sm:$0xff]  }
 0x12a   : > { %2408 = vrot.lane.b32.xlu1 %v2559_v63, %s2551_s28 }
 0x12b   : > { %2393 = vrot.lane.b32.xlu0 %v2559_v63, %s2551_s28 }
 0x12c   : > { %v782_v26 = vpop.permute.xlu1 %781  ;;  %v744_v27 = vpop.permute.xlu0 %743 }
 0x12d   : > { %v839_v28 = vsel %vm825_vm7, %v742_v24, %v744_v27  ;;  %v2491_v24 = vld [vmem:[%s3417_s1 + $0x8] ss:$20 sps:$4 sm:$0xff]  }
 0x12e   : > { %2158 = vmatprep.subr.bf16.mxu0 %v839_v28  ;;  %2418 = vrot.lane.b32.xlu1 %v2559_v63, %s2555_s8 }
 0x12f   : > { %2403 = vrot.lane.b32.xlu0 %v2559_v63, %s2552_s29 }
 0x130   : > { %v710_v29 = vpop.permute.xlu1 %709  ;;  %v784_v30 = vpop.permute.xlu0 %783 }
 0x131   : > { %v847_v31 = vsel %vm825_vm7, %v782_v26, %v784_v30 }
 0x132   : > { %2190 = vmatprep.subr.bf16.mxu1 %v847_v31  ;;  %2443 = vrot.lane.b32.xlu1 %v2559_v63, %s2557_s10 }
 0x133   : > { %2413 = vrot.lane.b32.xlu0 %v2559_v63, %s2553_s30 }
 0x134   : > { %v756_v32 = vpop.permute.xlu1 %755  ;;  %v712_v33 = vpop.permute.xlu0 %711 }
 0x135   : > { %2191 = vmatpush3.bf16.msra.mxu1 %v756_v32  ;;  %v831_v34 = vsel %vm825_vm7, %v710_v29, %v712_v33  ;;  %v2501_v32 = vld [vmem:[%s3417_s1 + $0x30] ss:$20 sps:$4 sm:$0xff]  }
 0x136   : > { %2159 = vmatpush3.bf16.msra.mxu0 %v831_v34  ;;  %v2503_v33 = vld [vmem:[%s3417_s1 + $0x5c] ss:$20 sps:$4 sm:$0xff]   ;;  %2448 = vrot.lane.b32.xlu1 %v2559_v63, %s2558_s11 }
 0x137   : > { %2423 = vrot.lane.b32.xlu0 %v2559_v63, %s2556_s9 }
 0x138   : > { %v748_v35 = vpop.permute.xlu1 %747  ;;  %v746_v36 = vpop.permute.xlu0 %745 }
 0x139   : > { %v840_v37 = vsel %vm825_vm7, %v746_v36, %v748_v35 }
 0x13a   : > { %2160 = vmatprep.subr.bf16.mxu0 %v840_v37 }
 0x13b   : > { %2428 = vrot.lane.b32.xlu0 %v2559_v63, %s2555_s8 }
 0x13c   : > { %v788_v38 = vpop.permute.xlu1 %787  ;;  %v786_v39 = vpop.permute.xlu0 %785 }
 0x13d   : > { %v848_v40 = vsel %vm825_vm7, %v786_v39, %v788_v38 }
 0x13e   : > { %2192 = vmatprep.subr.bf16.mxu1 %v848_v40  ;;  %v2505_v40 = vld [vmem:[%s3417_s1 + $0x58] ss:$20 sps:$4 sm:$0xff]  }
 0x13f   : > { %2433 = vrot.lane.b32.xlu0 %v2559_v63, %s2556_s9 }
 0x140   : > { %v716_v41 = vpop.permute.xlu1 %715  ;;  %v714_v42 = vpop.permute.xlu0 %713 }
 0x141   : > { %v832_v43 = vsel %vm825_vm7, %v714_v42, %v716_v41  ;;  %v2507_v41 = vld [vmem:[%s3417_s1 + $0x38] ss:$20 sps:$4 sm:$0xff]  }
 0x142   : > { %2161 = vmatpush3.bf16.msra.mxu0 %v832_v43  ;;  %v2508_v42 = vld [vmem:[%s3417_s1 + $0x84] ss:$20 sps:$4 sm:$0xff]   ;;  %v2511_v43 = vld [vmem:[%s3417_s1 + $0x60] ss:$20 sps:$4 sm:$0xff]  }
 0x143   : > { %2438 = vrot.lane.b32.xlu0 %v2559_v63, %s2557_s10 }
 0x144   : > { %v750_v44 = vpop.permute.xlu1 %749  ;;  %v758_v45 = vpop.permute.xlu0 %757 }
 0x145   : > { %2193 = vmatpush3.bf16.msra.mxu1 %v758_v45  ;;  %v2512_v45 = vld [vmem:[%s3417_s1 + $0x88] ss:$20 sps:$4 sm:$0xff]  }
 0x147   : > { %2453 = vrot.lane.b32.xlu0 %v2559_v63, %s2558_s11 }
 0x148   : > { %v790_v46 = vpop.permute.xlu1 %789  ;;  %v752_v47 = vpop.permute.xlu0 %751 }
 0x149   : > { %v841_v48 = vsel %vm825_vm7, %v750_v44, %v752_v47  ;;  %v2510_v44 = vld [vmem:[%s3417_s1 + $0x80] ss:$20 sps:$4 sm:$0xff]  }
 0x14a   : > { %2162 = vmatprep.subr.bf16.mxu0 %v841_v48 }
 0x14c   : > { %v718_v49 = vpop.permute.xlu1 %717  ;;  %v792_v50 = vpop.permute.xlu0 %791 }
 0x14d   : > { %v849_v51 = vsel %vm825_vm7, %v790_v46, %v792_v50 }
 0x14e   : > { %2194 = vmatprep.subr.bf16.mxu1 %v849_v51 }
 0x150   : > { %v760_v52 = vpop.permute.xlu1 %759  ;;  %v720_v53 = vpop.permute.xlu0 %719 }
 0x151   : > { %2195 = vmatpush3.bf16.msra.mxu1 %v760_v52  ;;  %v833_v54 = vsel %vm825_vm7, %v718_v49, %v720_v53 }
 0x152   : > { %2163 = vmatpush3.bf16.msra.mxu0 %v833_v54 }
 0x154   : > { %v796_v57 = vpop.permute.xlu1 %795  ;;  %v794_v58 = vpop.permute.xlu0 %793 }
 0x155   : > { %v850_v59 = vsel %vm825_vm7, %v794_v58, %v796_v57  ;;  %940 = vmatmul.mubr.bf16.vlgmr.msra.gmra.mrb[0].mxu0 %v2485_v55 }
 0x156   : > { %2196 = vmatprep.subr.bf16.mxu1 %v850_v59  ;;  %947 = vmatprep.mubr.bf16.mxu0 %v2488_v56 }
 0x158   : > { %v764_v60 = vpop.permute.xlu1 %763  ;;  %v762_v61 = vpop.permute.xlu0 %761 }
 0x159   : > { %v842_v62 = vsel %vm825_vm7, %v762_v61, %v764_v60 }
 0x15a   : > { %2197 = vmatpush3.bf16.msra.mxu1 %v842_v62 }
 0x15c   : > { %v800_v2 = vpop.permute.xlu1 %799  ;;  %v798_v3 = vpop.permute.xlu0 %797 }
 0x15d   : > { %v851_v4 = vsel %vm825_vm7, %v798_v3, %v800_v2  ;;  %948 = vmatmul.mubr.bf16.gmra.mrb[4].mxu0 %v2490_v0 }
 0x15e   : > { %2198 = vmatprep.subr.bf16.mxu1 %v851_v4  ;;  %955 = vmatprep.mubr.bf16.mxu0 %v2494_v1 }
 0x160   : > { %v768_v5 = vpop.permute.xlu1 %767  ;;  %v766_v6 = vpop.permute.xlu0 %765 }
 0x161   : > { %v843_v7 = vsel %vm825_vm7, %v766_v6, %v768_v5 }
 0x162   : > { %2199 = vmatpush3.bf16.msra.mxu1 %v843_v7 }
 0x164   : > { %v804_v10 = vpop.permute.xlu1 %803  ;;  %v802_v11 = vpop.permute.xlu0 %801 }
 0x165   : > { %v852_v12 = vsel %vm825_vm7, %v802_v11, %v804_v10  ;;  %956 = vmatmul.mubr.bf16.gmra.mrb[8].mxu0 %v2496_v8 }
 0x166   : > { %2200 = vmatprep.subr.bf16.mxu1 %v852_v12  ;;  %963 = vmatprep.mubr.bf16.mxu0 %v2499_v9 }
 0x168   : > { %v772_v13 = vpop.permute.xlu1 %771  ;;  %v770_v14 = vpop.permute.xlu0 %769 }
 0x169   : > { %v844_v15 = vsel %vm825_vm7, %v770_v14, %v772_v13 }
 0x16a   : > { %2201 = vmatpush3.bf16.msra.mxu1 %v844_v15 }
 0x16c   : > { %v808_v18 = vpop.permute.xlu1 %807  ;;  %v806_v19 = vpop.permute.xlu0 %805 }
 0x16d   : > { %v853_v20 = vsel %vm825_vm7, %v806_v19, %v808_v18  ;;  %964 = vmatmul.mubr.bf16.gmra.mrb[12].mxu0 %v2502_v16 }
 0x16e   : > { %2202 = vmatprep.subr.bf16.mxu1 %v853_v20  ;;  %2332 = vmatprep.mubr.msk.bf16.mxu0 %vm894_vm8, %v2506_v17 }
 0x170   : > { %v776_v21 = vpop.permute.xlu1 %775  ;;  %v774_v22 = vpop.permute.xlu0 %773 }
 0x171   : > { %v845_v23 = vsel %vm825_vm7, %v774_v22, %v776_v21 }
 0x172   : > { %2203 = vmatpush3.bf16.msra.mxu1 %v845_v23 }
 0x174   : > { %v812_v26 = vpop.permute.xlu1 %811  ;;  %v810_v27 = vpop.permute.xlu0 %809 }
 0x175   : > { %1005 = vmatmul.mubr.bf16.vlgmr.msra.gmra.mrb[0].mxu1 %v2491_v24  ;;  %v854_v28 = vsel %vm825_vm7, %v810_v27, %v812_v26 }
 0x176   : > { %2324 = vmatprep.subr.bf16.mxu0 %v854_v28  ;;  %1012 = vmatprep.mubr.bf16.mxu1 %v2497_v25 }
 0x177   : > { %2325 = vmatpush3.bf16.msra.mxu0 %v854_v28 }
 0x178   : > { %v816_v29 = vpop.permute.xlu1 %815  ;;  %v814_v30 = vpop.permute.xlu0 %813 }
 0x179   : > { %v855_v31 = vsel %vm825_vm7, %v814_v30, %v816_v29 }
 0x17a   : > { %2326 = vmatprep.subr.bf16.mxu0 %v855_v31 }
 0x17b   : > { %2327 = vmatpush3.bf16.msra.mxu0 %v855_v31 }
 0x17c   : > { %v820_v34 = vpop.permute.xlu1 %819  ;;  %v818_v35 = vpop.permute.xlu0 %817 }
 0x17d   : > { %1013 = vmatmul.mubr.bf16.gmra.mrb[4].mxu1 %v2501_v32  ;;  %v856_v36 = vsel %vm825_vm7, %v818_v35, %v820_v34 }
 0x17e   : > { %2328 = vmatprep.subr.bf16.mxu0 %v856_v36  ;;  %1020 = vmatprep.mubr.bf16.mxu1 %v2503_v33 }
 0x17f   : > { %2329 = vmatpush3.bf16.msra.mxu0 %v856_v36 }
 0x180   : > { %v824_v37 = vpop.permute.xlu1 %823  ;;  %v822_v38 = vpop.permute.xlu0 %821 }
 0x181   : > { %v857_v39 = vsel %vm825_vm7, %v822_v38, %v824_v37 }
 0x182   : > { %2330 = vmatprep.subr.bf16.mxu0 %v857_v39 }
 0x183   : > { %2331 = vmatpush3.bf16.msra.mxu0 %v857_v39 }
 0x185   : > { %1021 = vmatmul.mubr.bf16.gmra.mrb[8].mxu1 %v2505_v40 }
 0x186   : > { %2333 = vmatmul.mubr.msk.bf16.vlgmr.msra.gmra.mrb[16].mxu0 %vm894_vm8, %v2507_v41  ;;  %1028 = vmatprep.mubr.bf16.mxu1 %v2508_v42 }
 0x187   : > { %2336 = vmatprep.mubr.msk.bf16.mxu0 %vm894_vm8, %v2511_v43 }
 0x18d   : > { %1029 = vmatmul.mubr.bf16.gmra.mrb[12].mxu1 %v2510_v44 }
 0x18e   : > { %2337 = vmatmul.mubr.msk.bf16.gmra.mrb[20].mxu0 %vm894_vm8, %v2512_v45 }
 0x191   : > { %v557_v9 = vpop.permute.xlu1 %556 }
 0x192   : > { %v552_v7 = vpop.permute.xlu0 %551 }
 0x195   : > { %v562_v19 = vpop.permute.xlu1 %561 }
 0x196   : > { %v567_v21 = vpop.permute.xlu0 %566 }
 0x199   : > { %v572_v31 = vpop.permute.xlu1 %571 }
 0x19a   : > { %v577_v32 = vpop.permute.xlu0 %576 }
 0x228   : > { %v2164_v46 = vpop.f32.mrb[0].mxu0 }
 0x229   : > { %v2165_v47 = vpop.f32.mrb[1].mxu0 }
 0x22a   : > { %v2166_v48 = vadd.f32 %v2165_v47, %v2164_v46  ;;  %v2167_v49 = vpop.f32.mrb[2].mxu0 }
 0x22b   : > { %v2168_v50 = vpop.f32.mrb[3].mxu0 }
 0x22c   : > { %v2169_v51 = vadd.f32 %v2168_v50, %v2167_v49  ;;  %v942_v11 = vadd.f32 %v2166_v48, %v552_v7  ;;  %v2105_v50 = vld [vmem:[%s3421_s5] ss:$0 sm:$0xff] }
 0x22e   : > { %v945_v15 = vadd.f32 %v2169_v51, %v557_v9 }
 0x230   : > { %v2170_v52 = vpop.f32.mrb[4].mxu0 }
 0x231   : > { %v2171_v53 = vpop.f32.mrb[5].mxu0 }
 0x232   : > { %v2172_v54 = vadd.f32 %v2171_v53, %v2170_v52  ;;  %v2173_v55 = vpop.f32.mrb[6].mxu0 }
 0x233   : > { %v2174_v56 = vpop.f32.mrb[7].mxu0 }
 0x234   : > { %v2175_v57 = vadd.f32 %v2174_v56, %v2173_v55  ;;  %v950_v23 = vadd.f32 %v2172_v54, %v562_v19  ;;  %v582_v55 = vpop.permute.xlu1 %581 }
 0x236   : > { %v953_v27 = vadd.f32 %v2175_v57, %v567_v21  ;;  %v587_v57 = vpop.permute.xlu0 %586 }
 0x238   : > { %v2176_v58 = vpop.f32.mrb[8].mxu0 }
 0x239   : > { %v2177_v59 = vpop.f32.mrb[9].mxu0 }
 0x23a   : > { %v2178_v60 = vadd.f32 %v2177_v59, %v2176_v58  ;;  %v2179_v61 = vpop.f32.mrb[10].mxu0 }
 0x23b   : > { %v2180_v62 = vpop.f32.mrb[11].mxu0 }
 0x23c   : > { %v2181_v0 = vadd.f32 %v2180_v62, %v2179_v61  ;;  %v958_v36 = vadd.f32 %v2178_v60, %v572_v31 }
 0x23e   : > { %v961_v41 = vadd.f32 %v2181_v0, %v577_v32 }
 0x240   : > { %v2182_v1 = vpop.f32.mrb[12].mxu0 }
 0x241   : > { %v2183_v2 = vpop.f32.mrb[13].mxu0 }
 0x242   : > { %v2184_v3 = vadd.f32 %v2183_v2, %v2182_v1  ;;  %v2185_v4 = vpop.f32.mrb[14].mxu0 }
 0x243   : > { %v2186_v5 = vpop.f32.mrb[15].mxu0 }
 0x244   : > { %v2991_v6 = vadd.f32 %v2186_v5, %v2185_v4  ;;  %v966_v2 = vadd.f32 %v2184_v3, %v582_v55 }
 0x248   : > { %v2204_v8 = vpop.f32.mrb[0].mxu1 }
 0x249   : > { %v2205_v10 = vpop.f32.mrb[1].mxu1 }
 0x24a   : > { %v2206_v12 = vadd.f32 %v2205_v10, %v2204_v8  ;;  %v2207_v13 = vpop.f32.mrb[2].mxu1 }
 0x24b   : > { %v2208_v14 = vpop.f32.mrb[3].mxu1 }
 0x24c   : > { %v2209_v16 = vadd.f32 %v2208_v14, %v2207_v13  ;;  %v1007_v17 = vadd.f32 %v2206_v12, %v942_v11  ;;  %v969_v13 = vadd.f32 %v2991_v6, %v587_v57 }
 0x24e   : > { %v1010_v18 = vadd.f32 %v2209_v16, %v945_v15 }
 0x250   : > { %v2210_v20 = vpop.f32.mrb[4].mxu1 }
 0x251   : > { %v2211_v22 = vpop.f32.mrb[5].mxu1 }
 0x252   : > { %v2212_v24 = vadd.f32 %v2211_v22, %v2210_v20  ;;  %v2213_v25 = vpop.f32.mrb[6].mxu1 }
 0x253   : > { %v2214_v26 = vpop.f32.mrb[7].mxu1 }
 0x254   : > { %v2215_v28 = vadd.f32 %v2214_v26, %v2213_v25  ;;  %v1015_v29 = vadd.f32 %v2212_v24, %v950_v23 }
 0x256   : > { %v1018_v30 = vadd.f32 %v2215_v28, %v953_v27 }
 0x258   : > { %v2216_v33 = vpop.f32.mrb[8].mxu1 }
 0x259   : > { %v2217_v34 = vpop.f32.mrb[9].mxu1  ;;  %v2334_v35 = vpop.f32.mrb[16].mxu0 }
 0x25a   : > { %v2218_v37 = vadd.f32 %v2217_v34, %v2216_v33  ;;  %v1080_v38 = vadd.f32 %v2334_v35, %v1015_v29  ;;  %v2219_v39 = vpop.f32.mrb[10].mxu1  ;;  %v1071_v40 = vpop.f32.mrb[17].mxu0 }
 0x25b   : > { %v1072_v42 = vadd.f32 %v1071_v40, %v1007_v17  ;;  %v2220_v43 = vpop.f32.mrb[11].mxu1  ;;  %v2335_v44 = vpop.f32.mrb[18].mxu0 }
 0x25c   : > { %v1104_v45 = vmax.f32 %v1080_v38, 0.0  ;;  %v2221_v46 = vadd.f32 %v2220_v43, %v2219_v39  ;;  %v1083_v47 = vadd.f32 %v2335_v44, %v1018_v30  ;;  %v1074_v48 = vpop.f32.mrb[19].mxu0  ;;  %v1023_v49 = vadd.f32 %v2218_v37, %v958_v36  ;;  %v3025_v29 = vpop.permute.xlu0 %2383 }
 0x25d   : > { %v1102_v51 = vmax.f32 %v1072_v42, 0.0  ;;  %v1075_v52 = vadd.f32 %v1074_v48, %v1010_v18  ;;  %v2379_v33 = vpop.permute.xlu1 %2378 }
 0x25e   : > { %v1105_v53 = vmax.f32 %v1083_v47, 0.0  ;;  %v1026_v54 = vadd.f32 %v2221_v46, %v961_v41  ;;  %v1118_v58 = vmul.f32 %v2105_v50, %v1104_v45 }
 0x25f   : > { %v1103_v56 = vmax.f32 %v1075_v52, 0.0  ;;  %v1116_v61 = vmul.f32 %v2105_v50, %v1102_v51 }
 0x260   : > { %v1119_v59 = vmul.f32 %v2105_v50, %v1105_v53  ;;  %v2222_v60 = vpop.f32.mrb[12].mxu1  ;;  %v3031_v30 = vpop.permute.xlu0 %2388 }
 0x261   : > { %v1117_v62 = vmul.f32 %v2105_v50, %v1103_v56  ;;  %v2223_v0 = vpop.f32.mrb[13].mxu1  ;;  %v2338_v1 = vpop.f32.mrb[20].mxu0 }
 0x262   : > { %v1125_v4 = vpack.c.bf16 %v1119_v59, %v1118_v58  ;;  %v2224_v5 = vadd.f32 %v2223_v0, %v2222_v60  ;;  %v2225_v7 = vpop.f32.mrb[14].mxu1  ;;  %v1087_v8 = vpop.f32.mrb[21].mxu0  ;;  %v2380_v59 = vunpack.i.l.bf16 %v2379_v33 }
 0x263   : > { %v1124_v9 = vpack.c.bf16 %v1117_v62, %v1116_v61  ;;  %v1088_v10 = vadd.f32 %v1087_v8, %v1023_v49  ;;  %v2226_v11 = vpop.f32.mrb[15].mxu1  ;;  %v2339_v12 = vpop.f32.mrb[22].mxu0 }
 0x264   : > { %v1031_v14 = vadd.f32 %v2224_v5, %v966_v2  ;;  %v2227_v15 = vadd.f32 %v2226_v11, %v2225_v7  ;;  %v1090_v16 = vpop.f32.mrb[23].mxu0  ;;  %1264 = vrot.lane.b32.xlu0 %v1125_v4, %s2552_s29  ;;  %1190 = vrot.lane.b32.xlu1 %v1125_v4, %s2550_s27  ;;  %v3034_v31 = vpop.permute.xlu0 %2393  ;;  %v2391_v5 = vunpack.i.h.bf16 %v3031_v30 }
 0x265   : > { %v1106_v17 = vmax.f32 %v1088_v10, 0.0  ;;  %v1091_v18 = vadd.f32 %v1090_v16, %v1026_v54  ;;  %v3043_v35 = vpop.permute.xlu1 %2398  ;;  %v2381_v54 = vunpack.i.h.bf16 %v2379_v33  ;;  %v2395_v0 = vunpack.i.l.bf16 %v3034_v31 }
 0x266   : > { %v1096_v3 = vadd.f32 %v2338_v1, %v1031_v14  ;;  %v1034_v19 = vadd.f32 %v2227_v15, %v969_v13  ;;  %v2400_v7 = vunpack.i.l.bf16 %v3043_v35  ;;  %v2396_v14 = vunpack.i.h.bf16 %v3034_v31 }
 0x267   : > { %v1107_v20 = vmax.f32 %v1091_v18, 0.0  ;;  %v1120_v23 = vmul.f32 %v2105_v50, %v1106_v17 }
 0x268   : > { %v1108_v21 = vmax.f32 %v1096_v3, 0.0  ;;  %v1099_v22 = vadd.f32 %v2339_v12, %v1034_v19  ;;  %1210 = vrot.lane.b32.xlu0 %v1125_v4, %s2551_s28  ;;  %1226 = vrot.lane.b32.xlu1 %v1125_v4, %s2554_s7  ;;  %v3038_v32 = vpop.permute.xlu0 %2403  ;;  %v2401_v19 = vunpack.i.h.bf16 %v3043_v35 }
 0x269   : > { %v1121_v6 = vmul.f32 %v2105_v50, %v1107_v20  ;;  %v3047_v37 = vpop.permute.xlu1 %2408 }
 0x26a   : > { %v1109_v24 = vmax.f32 %v1099_v22, 0.0  ;;  %v1122_v26 = vmul.f32 %v2105_v50, %v1108_v21 }
 0x26b   : > { %v1126_v25 = vpack.c.bf16 %v1121_v6, %v1120_v23 }
 0x26c   : > { %v1123_v27 = vmul.f32 %v2105_v50, %v1109_v24  ;;  %1244 = vrot.lane.b32.xlu0 %v1125_v4, %s2556_s9  ;;  %1170 = vrot.lane.b32.xlu1 %v1125_v4, %s2553_s30  ;;  %v3041_v34 = vpop.permute.xlu0 %2413  ;;  %v2390_v24 = vunpack.i.l.bf16 %v3031_v30  ;;  %v2385_v30 = vunpack.i.l.bf16 %v3025_v29 }
 0x26d   : > { %v3051_v39 = vpop.permute.xlu1 %2418 }
 0x26e   : > { %v1127_v28 = vpack.c.bf16 %v1123_v27, %v1122_v26  ;;  %v2420_v12 = vunpack.i.l.bf16 %v3051_v39 }
 0x270   : > { %1186 = vrot.lane.b32.xlu0 %v1124_v9, %s2550_s27  ;;  %1284 = vrot.lane.b32.xlu1 %v1125_v4, %s2555_s8  ;;  %v3045_v36 = vpop.permute.xlu0 %2423 }
 0x271   : > { %v3055_v41 = vpop.permute.xlu1 %2443  ;;  %v2425_v16 = vunpack.i.l.bf16 %v3045_v36 }
 0x274   : > { %1166 = vrot.lane.b32.xlu0 %v1124_v9, %s2553_s30  ;;  %1304 = vrot.lane.b32.xlu1 %v1125_v4, %s2557_s10  ;;  %v3049_v38 = vpop.permute.xlu0 %2428 }
 0x275   : > { %v3059_v43 = vpop.permute.xlu1 %2448 }
 0x278   : > { %1280 = vrot.lane.b32.xlu0 %v1124_v9, %s2555_s8  ;;  %1498 = vrot.lane.b32.xlu1 %v1125_v4, %s2558_s11  ;;  %v3053_v40 = vpop.permute.xlu0 %2433 }
 0x27c   : > { %1494 = vrot.lane.b32.xlu0 %v1124_v9, %s2558_s11  ;;  %1260 = vrot.lane.b32.xlu1 %v1124_v9, %s2552_s29  ;;  %v3057_v42 = vpop.permute.xlu0 %2438 }
 0x280   : > { %1224 = vrot.lane.b32.xlu1 %v1124_v9, %s2554_s7  ;;  %1198 = vrot.lane.b32.xlu0 %v1127_v28, %s2550_s27  ;;  %v3061_v44 = vpop.permute.xlu0 %2453 }
 0x284   : > { %1206 = vrot.lane.b32.xlu1 %v1124_v9, %s2551_s28  ;;  %1230 = vrot.lane.b32.xlu0 %v1127_v28, %s2554_s7 }
 0x288   : > { %1240 = vrot.lane.b32.xlu1 %v1124_v9, %s2556_s9  ;;  %1178 = vrot.lane.b32.xlu0 %v1127_v28, %s2553_s30 }
 0x28c   : > { %1300 = vrot.lane.b32.xlu1 %v1124_v9, %s2557_s10  ;;  %1252 = vrot.lane.b32.xlu0 %v1127_v28, %s2556_s9 }
 0x290   : > { %1272 = vrot.lane.b32.xlu1 %v1127_v28, %s2552_s29  ;;  %1312 = vrot.lane.b32.xlu0 %v1127_v28, %s2557_s10 }
 0x294   : > { %1218 = vrot.lane.b32.xlu1 %v1127_v28, %s2551_s28  ;;  %1506 = vrot.lane.b32.xlu0 %v1127_v28, %s2558_s11 }
 0x298   : > { %1292 = vrot.lane.b32.xlu1 %v1127_v28, %s2555_s8  ;;  %1228 = vrot.lane.b32.xlu0 %v1126_v25, %s2554_s7  ;;  %v2386_v28 = vunpack.i.h.bf16 %v3025_v29  ;;  %v2426_v29 = vunpack.i.h.bf16 %v3045_v36  ;;  %v2410_v36 = vunpack.i.l.bf16 %v3047_v37 }
 0x29c   : > { %1194 = vrot.lane.b32.xlu1 %v1126_v25, %s2550_s27  ;;  %1214 = vrot.lane.b32.xlu0 %v1126_v25, %s2551_s28 }
 0x2a0   : > { %1268 = vrot.lane.b32.xlu1 %v1126_v25, %s2552_s29  ;;  %1308 = vrot.lane.b32.xlu0 %v1126_v25, %s2557_s10 }
 0x2a4   : > { %1174 = vrot.lane.b32.xlu1 %v1126_v25, %s2553_s30 }
 0x2a8   : > { %1288 = vrot.lane.b32.xlu1 %v1126_v25, %s2555_s8 }
 0x2ac   : > { %1248 = vrot.lane.b32.xlu1 %v1126_v25, %s2556_s9 }
 0x2b0   : > { %1502 = vrot.lane.b32.xlu1 %v1126_v25, %s2558_s11 }
 0x2d6   : > { %v1191_v45 = vpop.permute.xlu1 %1190  ;;  %v1265_v46 = vpop.permute.xlu0 %1264 }
 0x2d7   : > { %1530 = vrot.lane.b32.xlu0 %v1191_v45, %s2558_s11  ;;  %v1201_v57 = vsel %vm347_vm0, %v2381_v54, %v1191_v45  ;;  %v1277_v9 = vsel %vm470_vm2, %v1265_v46, %v2391_v5 }
 0x2da   : > { %v1227_v47 = vpop.permute.xlu1 %1226  ;;  %v1211_v48 = vpop.permute.xlu0 %1210 }
 0x2db   : > { %1584 = vrot.lane.b32.xlu0 %v1265_v46, %s2558_s11  ;;  %v1221_v17 = vsel %vm368_vm1, %v2396_v14, %v1211_v48  ;;  %v2421_v46 = vunpack.i.h.bf16 %v3051_v39  ;;  %v2405_v39 = vunpack.i.l.bf16 %v3038_v32  ;;  %v2440_v14 = vunpack.i.l.bf16 %v3057_v42 }
 0x2de   : > { %v1171_v49 = vpop.permute.xlu1 %1170  ;;  %v3065_v50 = vpop.permute.xlu0 %1244 }
 0x2df   : > { %1558 = vrot.lane.b32.xlu0 %v1227_v47, %s2558_s11  ;;  %v1181_v21 = vsel %vm326_vm3, %v2401_v19, %v1171_v49 }
 0x2e2   : > { %v3068_v51 = vpop.permute.xlu1 %1284  ;;  %v1187_v52 = vpop.permute.xlu0 %1186 }
 0x2e3   : > { %1600 = vrot.lane.b32.xlu1 %v3068_v51, %s2558_s11  ;;  %1546 = vrot.lane.b32.xlu0 %v1211_v48, %s2558_s11  ;;  %v1200_v61 = vsel %vm347_vm0, %v2380_v59, %v1187_v52  ;;  %v1297_v48 = vsel %vm491_vm4, %v3068_v51, %v2421_v46  ;;  %v2406_v51 = vunpack.i.h.bf16 %v3038_v32  ;;  %v2515_v59 = vld [vmem:[%s3419_s3 + $0x4] ss:$20 sps:$4 sm:$0xff]   ;;  %v2450_v46 = vunpack.i.l.bf16 %v3059_v43 }
 0x2e4   : > { %1740 = vmatprep.mubr.bf16.mxu1 %v2515_v59 }
 0x2e6   : > { %v3073_v53 = vpop.permute.xlu1 %1304  ;;  %v1167_v55 = vpop.permute.xlu0 %1166 }
 0x2e7   : > { %1514 = vrot.lane.b32.xlu0 %v1171_v49, %s2558_s11  ;;  %1526 = vrot.lane.b32.xlu1 %v1187_v52, %s2558_s11  ;;  %v1180_v10 = vsel %vm326_vm3, %v2400_v7, %v1167_v55  ;;  %v1257_v52 = vsel %vm449_vm5, %v3065_v50, %v2426_v29  ;;  %v2416_v7 = vunpack.i.h.bf16 %v3041_v34 }
 0x2ea   : > { %v3077_v56 = vpop.permute.xlu1 %1498  ;;  %v1281_v60 = vpop.permute.xlu0 %1280 }
 0x2eb   : > { %1528 = vrot.lane.b32.xlu1 %v1201_v57, %s2558_s11  ;;  %v1296_v13 = vsel %vm491_vm4, %v1281_v60, %v2420_v12 }
 0x2ee   : > { %v1261_v58 = vpop.permute.xlu1 %1260  ;;  %v3086_v1 = vpop.permute.xlu0 %1494 }
 0x2ef   : > { %1580 = vrot.lane.b32.xlu0 %v1261_v58, %s2558_s11  ;;  %v1276_v25 = vsel %vm470_vm2, %v1261_v58, %v2390_v24  ;;  %v1347_v24 = vld [vmem:[%s3420_s4 + $0x18] sm:$0xff]  ;;  %v1628_v29 = vsel %vm825_vm7, %v2450_v46, %v3086_v1 }
 0x2f2   : > { %v1225_v62 = vpop.permute.xlu1 %1224  ;;  %v1199_v11 = vpop.permute.xlu0 %1198 }
 0x2f3   : > { %1524 = vrot.lane.b32.xlu0 %v1200_v61, %s2558_s11  ;;  %1556 = vrot.lane.b32.xlu1 %v1225_v62, %s2558_s11  ;;  %v1203_v31 = vsel %vm347_vm0, %v2386_v28, %v1199_v11  ;;  %v2415_v61 = vunpack.i.l.bf16 %v3041_v34  ;;  %v2411_v62 = vunpack.i.h.bf16 %v3047_v37  ;;  %v2436_v34 = vunpack.i.h.bf16 %v3053_v40 }
 0x2f6   : > { %v1207_v2 = vpop.permute.xlu1 %1206  ;;  %v1231_v18 = vpop.permute.xlu0 %1230 }
 0x2f7   : > { %v1220_v4 = vsel %vm368_vm1, %v2395_v0, %v1207_v2  ;;  %1542 = vrot.lane.b32.xlu1 %v1207_v2, %s2558_s11  ;;  %v2431_v0 = vunpack.i.h.bf16 %v3049_v38 }
 0x2f8   : > { %1540 = vrot.lane.b32.xlu0 %v1220_v4, %s2558_s11 }
 0x2fa   : > { %v1241_v8 = vpop.permute.xlu1 %1240  ;;  %v1179_v22 = vpop.permute.xlu0 %1178 }
 0x2fb   : > { %1586 = vrot.lane.b32.xlu1 %v1277_v9, %s2558_s11  ;;  %v1256_v3 = vsel %vm449_vm5, %v1241_v8, %v2425_v16  ;;  %v1183_v37 = vsel %vm326_vm3, %v2416_v7, %v1179_v22 }
 0x2fc   : > { %1508 = vrot.lane.b32.xlu0 %v1180_v10, %s2558_s11 }
 0x2fe   : > { %v3101_v15 = vpop.permute.xlu1 %1300  ;;  %v3115_v6 = vpop.permute.xlu0 %1252 }
 0x2ff   : > { %1510 = vrot.lane.b32.xlu1 %v1167_v55, %s2558_s11 }
 0x300   : > { %1598 = vrot.lane.b32.xlu0 %v1296_v13, %s2558_s11  ;;  %v2524_v13 = vld [vmem:[%s3419_s3 + $0xc] ss:$20 sps:$4 sm:$0xff]  }
 0x301   : > { %1805 = vmatprep.mubr.bf16.mxu0 %v2524_v13 }
 0x302   : > { %v1273_v20 = vpop.permute.xlu1 %1272  ;;  %v3124_v27 = vpop.permute.xlu0 %1312 }
 0x303   : > { %1544 = vrot.lane.b32.xlu1 %v1221_v17, %s2558_s11  ;;  %v1279_v57 = vsel %vm470_vm2, %v1273_v20, %v2406_v51 }
 0x304   : > { %1566 = vrot.lane.b32.xlu0 %v1256_v3, %s2558_s11 }
 0x306   : > { %v1219_v23 = vpop.permute.xlu1 %1218  ;;  %v3132_v35 = vpop.permute.xlu0 %1506 }
 0x307   : > { %1512 = vrot.lane.b32.xlu1 %v1181_v21, %s2558_s11  ;;  %v1223_v2 = vsel %vm368_vm1, %v2411_v62, %v1219_v23 }
 0x308   : > { %1592 = vrot.lane.b32.xlu0 %v1273_v20, %s2558_s11 }
 0x30a   : > { %v3121_v26 = vpop.permute.xlu1 %1292  ;;  %v1229_v49 = vpop.permute.xlu0 %1228 }
 0x30b   : > { %1596 = vrot.lane.b32.xlu1 %v1281_v60, %s2558_s11  ;;  %v1299_v5 = vsel %vm491_vm4, %v3121_v26, %v2431_v0 }
 0x30c   : > { %1562 = vrot.lane.b32.xlu0 %v1231_v18, %s2558_s11  ;;  %v2445_v18 = vunpack.i.l.bf16 %v3055_v41 }
 0x30e   : > { %v1195_v33 = vpop.permute.xlu1 %1194  ;;  %v1215_v54 = vpop.permute.xlu0 %1214 }
 0x30f   : > { %1564 = vrot.lane.b32.xlu1 %v1241_v8, %s2558_s11  ;;  %v1202_v45 = vsel %vm347_vm0, %v2385_v30, %v1195_v33  ;;  %v1222_v58 = vsel %vm368_vm1, %v2410_v36, %v1215_v54  ;;  %v2430_v8 = vunpack.i.l.bf16 %v3049_v38  ;;  %v1259_v38 = vsel %vm449_vm5, %v3115_v6, %v2436_v34 }
 0x310   : > { %1554 = vrot.lane.b32.xlu0 %v1219_v23, %s2558_s11 }
 0x312   : > { %v1269_v47 = vpop.permute.xlu1 %1268  ;;  %v1309_v16 = vpop.permute.xlu0 %1308 }
 0x313   : > { %1582 = vrot.lane.b32.xlu1 %v1276_v25, %s2558_s11  ;;  %v1278_v55 = vsel %vm470_vm2, %v1269_v47, %v2405_v39  ;;  %v1318_v19 = vsel %vm512_vm6, %v1309_v16, %v2445_v18  ;;  %v1349_v25 = vld [vmem:[%s3420_s4 + $0x28] sm:$0xff]  ;;  %v1350_v39 = vld [vmem:[%s3420_s4 + $0x30] sm:$0xff] }
 0x314   : > { %1522 = vrot.lane.b32.xlu0 %v1179_v22, %s2558_s11 }
 0x316   : > { %v1175_v60 = vpop.permute.xlu1 %1174 }
 0x317   : > { %1538 = vrot.lane.b32.xlu1 %v1199_v11, %s2558_s11  ;;  %v1182_v32 = vsel %vm326_vm3, %v2415_v61, %v1175_v60  ;;  %v2435_v11 = vunpack.i.l.bf16 %v3053_v40  ;;  %v2441_v40 = vunpack.i.h.bf16 %v3057_v42  ;;  %v2446_v42 = vunpack.i.h.bf16 %v3055_v41 }
 0x318   : > { %1536 = vrot.lane.b32.xlu0 %v1203_v31, %s2558_s11  ;;  %v1351_v31 = vld [vmem:[%s3420_s4 + $0x38] sm:$0xff] }
 0x319   : > { %v1317_v17 = vsel %vm512_vm6, %v3073_v53, %v2441_v40  ;;  %v1319_v21 = vsel %vm512_vm6, %v3124_v27, %v2446_v42 }
 0x31a   : > { %v1289_v4 = vpop.permute.xlu1 %1288 }
 0x31b   : > { %1534 = vrot.lane.b32.xlu1 %v1195_v33, %s2558_s11  ;;  %v1298_v9 = vsel %vm491_vm4, %v1289_v4, %v2430_v8  ;;  %v1346_v33 = vld [vmem:[%s3420_s4 + $0x10] sm:$0xff] }
 0x31c   : > { %1532 = vrot.lane.b32.xlu0 %v1202_v45, %s2558_s11 }
 0x31e   : > { %v1249_v10 = vpop.permute.xlu1 %1248 }
 0x31f   : > { %1588 = vrot.lane.b32.xlu1 %v1269_v47, %s2558_s11  ;;  %v1258_v12 = vsel %vm449_vm5, %v1249_v10, %v2435_v11  ;;  %v2455_v11 = vunpack.i.l.bf16 %v3061_v44 }
 0x320   : > { %1602 = vrot.lane.b32.xlu0 %v1297_v48, %s2558_s11 }
 0x322   : > { %v3214_v22 = vpop.permute.xlu1 %1502 }
 0x323   : > { %1560 = vrot.lane.b32.xlu1 %v1229_v49, %s2558_s11 }
 0x324   : > { %1570 = vrot.lane.b32.xlu0 %v1257_v52, %s2558_s11 }
 0x327   : > { %1550 = vrot.lane.b32.xlu1 %v1215_v54, %s2558_s11  ;;  %v2451_v54 = vunpack.i.h.bf16 %v3059_v43 }
 0x328   : > { %1590 = vrot.lane.b32.xlu0 %v1278_v55, %s2558_s11 }
 0x329   : > { %v1629_v36 = vsel %vm825_vm7, %v2451_v54, %v3077_v56 }
 0x32b   : > { %1594 = vrot.lane.b32.xlu1 %v1279_v57, %s2558_s11 }
 0x32c   : > { %1548 = vrot.lane.b32.xlu0 %v1222_v58, %s2558_s11 }
 0x32f   : > { %1518 = vrot.lane.b32.xlu1 %v1175_v60, %s2558_s11 }
 0x330   : > { %1516 = vrot.lane.b32.xlu0 %v1182_v32, %s2558_s11 }
 0x333   : > { %1552 = vrot.lane.b32.xlu1 %v1223_v2, %s2558_s11 }
 0x334   : > { %1610 = vrot.lane.b32.xlu0 %v1299_v5, %s2558_s11 }
 0x337   : > { %1520 = vrot.lane.b32.xlu1 %v1183_v37, %s2558_s11 }
 0x338   : > { %1606 = vrot.lane.b32.xlu0 %v1298_v9, %s2558_s11 }
 0x33b   : > { %1568 = vrot.lane.b32.xlu1 %v3065_v50, %s2558_s11  ;;  %v1316_v50 = vsel %vm512_vm6, %v3101_v15, %v2440_v14 }
 0x33c   : > { %1574 = vrot.lane.b32.xlu0 %v1258_v12, %s2558_s11 }
 0x33f   : > { %1604 = vrot.lane.b32.xlu1 %v1289_v4, %s2558_s11 }
 0x340   : > { %1578 = vrot.lane.b32.xlu0 %v1259_v38, %s2558_s11  ;;  %v1630_v38 = vsel %vm825_vm7, %v2455_v11, %v3214_v22 }
 0x343   : > { %1572 = vrot.lane.b32.xlu1 %v1249_v10, %s2558_s11 }
 0x344   : > { %1614 = vrot.lane.b32.xlu0 %v1316_v50, %s2558_s11  ;;  %v2456_v50 = vunpack.i.h.bf16 %v3061_v44 }
 0x347   : > { %1608 = vrot.lane.b32.xlu1 %v3121_v26, %s2558_s11 }
 0x348   : > { %1618 = vrot.lane.b32.xlu0 %v1317_v17, %s2558_s11 }
 0x349   : > { %v1531_v3 = vpop.permute.xlu0 %1530 }
 0x34b   : > { %1576 = vrot.lane.b32.xlu1 %v3115_v6, %s2558_s11  ;;  %v1345_v6 = vld [vmem:[%s3420_s4 + $0x8] sm:$0xff] }
 0x34c   : > { %1622 = vrot.lane.b32.xlu0 %v1318_v19, %s2558_s11 }
 0x34d   : > { %v3207_v20 = vpop.permute.xlu0 %1584 }
 0x34f   : > { %1612 = vrot.lane.b32.xlu1 %v3101_v15, %s2558_s11 }
 0x350   : > { %1626 = vrot.lane.b32.xlu0 %v1319_v21, %s2558_s11 }
 0x351   : > { %v1559_v23 = vpop.permute.xlu0 %1558 }
 0x353   : > { %1616 = vrot.lane.b32.xlu1 %v3073_v53, %s2558_s11  ;;  %v1344_v53 = vld [vmem:[%s3420_s4] sm:$0xff] }
 0x354   : > { %1359 = vperm.xlu0 %2375, %v1345_v6  }
 0x355   : > { %v3221_v41 = vpop.permute.xlu1 %1600  ;;  %v3226_v15 = vpop.permute.xlu0 %1546 }
 0x357   : > { %1620 = vrot.lane.b32.xlu1 %v1309_v16, %s2558_s11  ;;  %v1631_v16 = vsel %vm825_vm7, %v2456_v50, %v3132_v35 }
 0x358   : > { %1369 = vperm.xlu0 %2375, %v1347_v24  }
 0x359   : > { %v1527_v26 = vpop.permute.xlu1 %1526  ;;  %v3237_v28 = vpop.permute.xlu0 %1514 }
 0x35b   : > { %1624 = vrot.lane.b32.xlu1 %v3124_v27, %s2558_s11  ;;  %v1348_v27 = vld [vmem:[%s3420_s4 + $0x20] sm:$0xff] }
 0x35c   : > { %1379 = vperm.xlu0 %2375, %v1349_v25  }
 0x35d   : > { %v1529_v30 = vpop.permute.xlu1 %1528 }
 0x35e   : > { %v1637_v52 = vsel %vm825_vm7, %v1529_v30, %v1531_v3 }
 0x35f   : > { %1354 = vperm.xlu1 %2376, %v1344_v53  }
 0x360   : > { %1389 = vperm.xlu0 %2375, %v1351_v31  }
 0x361   : > { %v1581_v45 = vpop.permute.xlu0 %1580 }
 0x363   : > { %1364 = vperm.xlu1 %2376, %v1346_v33  }
 0x365   : > { %v1557_v47 = vpop.permute.xlu1 %1556  ;;  %v1525_v48 = vpop.permute.xlu0 %1524 }
 0x366   : > { %v1636_v49 = vsel %vm825_vm7, %v1525_v48, %v1527_v26  ;;  %v2513_v48 = vld [vmem:[%s3419_s3] ss:$20 sps:$4 sm:$0xff]  }
 0x367   : > { %2236 = vmatprep.subr.bf16.mxu1 %v1636_v49  ;;  %1374 = vperm.xlu1 %2376, %v1348_v27   ;;  %v2516_v49 = vld [vmem:[%s3419_s3 + $0x2c] ss:$20 sps:$4 sm:$0xff]  }
 0x368   : > { %2237 = vmatpush3.bf16.msra.mxu1 %v1628_v29 }
 0x369   : > { %v1543_v55 = vpop.permute.xlu1 %1542  ;;  %2238 = vmatprep.subr.bf16.mxu1 %v1637_v52 }
 0x36a   : > { %v1541_v51 = vpop.permute.xlu0 %1540 }
 0x36b   : > { %1384 = vperm.xlu1 %2376, %v1350_v39   ;;  %v1640_v18 = vsel %vm825_vm7, %v1541_v51, %v1543_v55  ;;  %v2518_v55 = vld [vmem:[%s3419_s3 + $0x28] ss:$20 sps:$4 sm:$0xff]  }
 0x36c   : > { %2239 = vmatpush3.bf16.msra.mxu1 %v1629_v36  ;;  %v2519_v51 = vld [vmem:[%s3419_s3 + $0x54] ss:$20 sps:$4 sm:$0xff]  }
 0x36d   : > { %v1587_v1 = vpop.permute.xlu1 %1586 }
 0x36e   : > { %v1509_v57 = vpop.permute.xlu0 %1508  ;;  %v1649_v56 = vsel %vm825_vm7, %v3207_v20, %v1587_v1 }
 0x371   : > { %v1511_v58 = vpop.permute.xlu1 %1510 }
 0x372   : > { %v1599_v59 = vpop.permute.xlu0 %1598  ;;  %v1632_v19 = vsel %vm825_vm7, %v1509_v57, %v1511_v58 }
 0x375   : > { %v1545_v60 = vpop.permute.xlu1 %1544 }
 0x376   : > { %v1567_v61 = vpop.permute.xlu0 %1566  ;;  %v1641_v20 = vsel %vm825_vm7, %v1545_v60, %v3226_v15  ;;  %v2521_v60 = vld [vmem:[%s3419_s3 + $0x50] ss:$20 sps:$4 sm:$0xff]  }
 0x379   : > { %v1513_v32 = vpop.permute.xlu1 %1512 }
 0x37a   : > { %v1593_v62 = vpop.permute.xlu0 %1592  ;;  %v1633_v35 = vsel %vm825_vm7, %v1513_v32, %v3237_v28  ;;  %v2525_v32 = vld [vmem:[%s3419_s3 + $0x7c] ss:$20 sps:$4 sm:$0xff]  }
 0x37d   : > { %v1597_v0 = vpop.permute.xlu1 %1596 }
 0x37e   : > { %v1563_v2 = vpop.permute.xlu0 %1562  ;;  %v1652_v15 = vsel %vm825_vm7, %v1597_v0, %v1599_v59 }
 0x381   : > { %v1565_v4 = vpop.permute.xlu1 %1564 }
 0x382   : > { %v1555_v43 = vpop.permute.xlu0 %1554  ;;  %v1644_v28 = vsel %vm825_vm7, %v1565_v4, %v1567_v61  ;;  %v2528_v4 = vld [vmem:[%s3419_s3 + $0x34] ss:$20 sps:$4 sm:$0xff]  }
 0x385   : > { %v1583_v5 = vpop.permute.xlu1 %1582 }
 0x386   : > { %v1523_v7 = vpop.permute.xlu0 %1522  ;;  %v1648_v8 = vsel %vm825_vm7, %v1581_v45, %v1583_v5 }
 0x387   : > { %2276 = vmatprep.subr.bf16.mxu0 %v1648_v8  ;;  %v2527_v8 = vld [vmem:[%s3419_s3 + $0x78] ss:$20 sps:$4 sm:$0xff]  }
 0x388   : > { %2277 = vmatpush3.bf16.msra.mxu0 %v1557_v47 }
 0x389   : > { %2278 = vmatprep.subr.bf16.mxu0 %v1649_v56  ;;  %v1539_v37 = vpop.permute.xlu1 %1538  ;;  %v2534_v56 = vld [vmem:[%s3419_s3 + $0x10] ss:$20 sps:$4 sm:$0xff]  }
 0x38a   : > { %v1537_v9 = vpop.permute.xlu0 %1536 }
 0x38b   : > { %v1639_v14 = vsel %vm825_vm7, %v1537_v9, %v1539_v37 }
 0x38c   : > { %2279 = vmatpush3.bf16.msra.mxu0 %v1559_v23 }
 0x38d   : > { %v1535_v10 = vpop.permute.xlu1 %1534 }
 0x38e   : > { %v1533_v12 = vpop.permute.xlu0 %1532 }
 0x38f   : > { %v1638_v34 = vsel %vm825_vm7, %v1533_v12, %v1535_v10  ;;  %v2530_v10 = vld [vmem:[%s3419_s3 + $0x30] ss:$20 sps:$4 sm:$0xff]  }
 0x390   : > { %2240 = vmatprep.subr.bf16.mxu1 %v1638_v34  ;;  %v2531_v12 = vld [vmem:[%s3419_s3 + $0x5c] ss:$20 sps:$4 sm:$0xff]  }
 0x391   : > { %v1589_v13 = vpop.permute.xlu1 %1588  ;;  %2241 = vmatpush3.bf16.msra.mxu1 %v1630_v38 }
 0x392   : > { %2242 = vmatprep.subr.bf16.mxu1 %v1639_v14  ;;  %v1603_v40 = vpop.permute.xlu0 %1602 }
 0x393   : > { %v1653_v33 = vsel %vm825_vm7, %v3221_v41, %v1603_v40  ;;  %v2533_v40 = vld [vmem:[%s3419_s3 + $0x58] ss:$20 sps:$4 sm:$0xff]  }
 0x395   : > { %v1561_v17 = vpop.permute.xlu1 %1560  ;;  %2243 = vmatpush3.bf16.msra.mxu1 %v1631_v16  ;;  %v2535_v16 = vld [vmem:[%s3419_s3 + $0x38] ss:$20 sps:$4 sm:$0xff]  }
 0x396   : > { %2244 = vmatprep.subr.bf16.mxu1 %v1640_v18  ;;  %v1571_v3 = vpop.permute.xlu0 %1570  ;;  %v2539_v18 = vld [vmem:[%s3419_s3 + $0x60] ss:$20 sps:$4 sm:$0xff]  }
 0x399   : > { %v1551_v42 = vpop.permute.xlu1 %1550  ;;  %2245 = vmatpush3.bf16.msra.mxu1 %v1632_v19  ;;  %v2540_v19 = vld [vmem:[%s3419_s3 + $0x88] ss:$20 sps:$4 sm:$0xff]  }
 0x39a   : > { %2246 = vmatprep.subr.bf16.mxu1 %v1641_v20  ;;  %v1591_v44 = vpop.permute.xlu0 %1590 }
 0x39b   : > { %v1650_v21 = vsel %vm825_vm7, %v1589_v13, %v1591_v44 }
 0x39c   : > { %2280 = vmatprep.subr.bf16.mxu0 %v1650_v21 }
 0x39d   : > { %v1595_v22 = vpop.permute.xlu1 %1594  ;;  %2247 = vmatpush3.bf16.msra.mxu1 %v1633_v35  ;;  %2281 = vmatpush3.bf16.msra.mxu0 %v1561_v17  ;;  %v2536_v17 = vld [vmem:[%s3419_s3 + $0x84] ss:$20 sps:$4 sm:$0xff]  }
 0x39e   : > { %v1549_v23 = vpop.permute.xlu0 %1548  ;;  %v1651_v6 = vsel %vm825_vm7, %v1593_v62, %v1595_v22 }
 0x39f   : > { %2282 = vmatprep.subr.bf16.mxu0 %v1651_v6  ;;  %v1642_v24 = vsel %vm825_vm7, %v1549_v23, %v1551_v42 }
 0x3a0   : > { %2248 = vmatprep.subr.bf16.mxu1 %v1642_v24 }
 0x3a1   : > { %v1519_v25 = vpop.permute.xlu1 %1518  ;;  %2283 = vmatpush3.bf16.msra.mxu0 %v1563_v2  ;;  %v2522_v2 = vld [vmem:[%s3419_s3 + $0x8] ss:$20 sps:$4 sm:$0xff]  }
 0x3a2   : > { %2284 = vmatprep.subr.bf16.mxu0 %v1652_v15  ;;  %v1517_v26 = vpop.permute.xlu0 %1516 }
 0x3a3   : > { %v1634_v53 = vsel %vm825_vm7, %v1517_v26, %v1519_v25 }
 0x3a4   : > { %2249 = vmatpush3.bf16.msra.mxu1 %v1634_v53 }
 0x3a5   : > { %v1553_v31 = vpop.permute.xlu1 %1552  ;;  %2285 = vmatpush3.bf16.msra.mxu0 %v1644_v28 }
 0x3a6   : > { %2286 = vmatprep.subr.bf16.mxu0 %v1653_v33  ;;  %v1611_v30 = vpop.permute.xlu0 %1610  ;;  %v1643_v45 = vsel %vm825_vm7, %v1553_v31, %v1555_v43 }
 0x3a7   : > { %2250 = vmatprep.subr.bf16.mxu1 %v1643_v45 }
 0x3a9   : > { %v1521_v27 = vpop.permute.xlu1 %1520 }
 0x3aa   : > { %v1635_v46 = vsel %vm825_vm7, %v1521_v27, %v1523_v7  ;;  %v1607_v47 = vpop.permute.xlu0 %1606 }
 0x3ab   : > { %2251 = vmatpush3.bf16.msra.mxu1 %v1635_v46 }
 0x3ad   : > { %v1569_v29 = vpop.permute.xlu1 %1568 }
 0x3ae   : > { %v1645_v41 = vsel %vm825_vm7, %v1569_v29, %v1571_v3  ;;  %1741 = vmatmul.mubr.bf16.vlgmr.msra.gmra.mrb[16].mxu1 %v2513_v48  ;;  %v1575_v52 = vpop.permute.xlu0 %1574  ;;  %v2538_v3 = vld [vmem:[%s3419_s3 + $0x80] ss:$20 sps:$4 sm:$0xff]  }
 0x3af   : > { %2287 = vmatpush3.bf16.msra.mxu0 %v1645_v41  ;;  %1748 = vmatprep.mubr.bf16.mxu1 %v2516_v49 }
 0x3b1   : > { %v1605_v39 = vpop.permute.xlu1 %1604 }
 0x3b2   : > { %v1654_v54 = vsel %vm825_vm7, %v1605_v39, %v1607_v47  ;;  %v1579_v36 = vpop.permute.xlu0 %1578 }
 0x3b3   : > { %2288 = vmatprep.subr.bf16.mxu0 %v1654_v54 }
 0x3b5   : > { %v1573_v1 = vpop.permute.xlu1 %1572 }
 0x3b6   : > { %v1646_v57 = vsel %vm825_vm7, %v1573_v1, %v1575_v52  ;;  %1749 = vmatmul.mubr.bf16.gmra.mrb[20].mxu1 %v2518_v55  ;;  %v1615_v61 = vpop.permute.xlu0 %1614 }
 0x3b7   : > { %2289 = vmatpush3.bf16.msra.mxu0 %v1646_v57  ;;  %1756 = vmatprep.mubr.bf16.mxu1 %v2519_v51 }
 0x3b9   : > { %v1609_v58 = vpop.permute.xlu1 %1608 }
 0x3ba   : > { %v1655_v59 = vsel %vm825_vm7, %v1609_v58, %v1611_v30  ;;  %v1619_v43 = vpop.permute.xlu0 %1618 }
 0x3bb   : > { %2290 = vmatprep.subr.bf16.mxu0 %v1655_v59 }
 0x3bd   : > { %v1577_v62 = vpop.permute.xlu1 %1576 }
 0x3be   : > { %v1647_v0 = vsel %vm825_vm7, %v1577_v62, %v1579_v36  ;;  %1757 = vmatmul.mubr.bf16.gmra.mrb[24].mxu1 %v2521_v60  ;;  %v1623_v11 = vpop.permute.xlu0 %1622 }
 0x3bf   : > { %2291 = vmatpush3.bf16.msra.mxu0 %v1647_v0  ;;  %1764 = vmatprep.mubr.bf16.mxu1 %v2525_v32 }
 0x3c1   : > { %v1613_v5 = vpop.permute.xlu1 %1612 }
 0x3c2   : > { %1806 = vmatmul.mubr.bf16.vlgmr.msra.gmra.mrb[24].mxu0 %v2522_v2  ;;  %v1656_v7 = vsel %vm825_vm7, %v1613_v5, %v1615_v61  ;;  %v1627_v13 = vpop.permute.xlu0 %1626 }
 0x3c3   : > { %2340 = vmatprep.subr.bf16.mxu1 %v1656_v7  ;;  %1813 = vmatprep.mubr.bf16.mxu0 %v2528_v4 }
 0x3c4   : > { %2341 = vmatpush3.bf16.msra.mxu1 %v1656_v7 }
 0x3c5   : > { %v1617_v37 = vpop.permute.xlu1 %1616 }
 0x3c6   : > { %1765 = vmatmul.mubr.bf16.gmra.mrb[28].mxu1 %v2527_v8  ;;  %v1657_v9 = vsel %vm825_vm7, %v1617_v37, %v1619_v43 }
 0x3c7   : > { %2342 = vmatprep.subr.bf16.mxu1 %v1657_v9  ;;  %2348 = vmatprep.mubr.msk.bf16.mxu1 %vm894_vm8, %v2534_v56  ;;  %v1905_v56 = vld [vmem:[%s2611_s26 + $0x4] ss:$24 sps:$4 sm:$0xff]  }
 0x3c8   : > { %2343 = vmatpush3.bf16.msra.mxu1 %v1657_v9 }
 0x3c9   : > { %v1621_v34 = vpop.permute.xlu1 %1620 }
 0x3ca   : > { %1814 = vmatmul.mubr.bf16.gmra.mrb[28].mxu0 %v2530_v10  ;;  %v1658_v38 = vsel %vm825_vm7, %v1621_v34, %v1623_v11  ;;  %v1906_v10 = vld [vmem:[%s2611_s26 + $0x10] ss:$24 sps:$4 sm:$0xff]   ;;  %v1913_v34 = vunpack.c.h.bf16 %v1905_v56 }
 0x3cb   : > { %2344 = vmatprep.subr.bf16.mxu1 %v1658_v38  ;;  %1821 = vmatprep.mubr.bf16.mxu0 %v2531_v12 }
 0x3cc   : > { %2345 = vmatpush3.bf16.msra.mxu1 %v1658_v38 }
 0x3cd   : > { %v1625_v14 = vpop.permute.xlu1 %1624 }
 0x3ce   : > { %v1659_v50 = vsel %vm825_vm7, %v1625_v14, %v1627_v13  ;;  %v1911_v14 = vunpack.c.l.bf16 %v1905_v56 }
 0x3cf   : > { %2346 = vmatprep.subr.bf16.mxu1 %v1659_v50 }
 0x3d0   : > { %2347 = vmatpush3.bf16.msra.mxu1 %v1659_v50 }
 0x3d2   : > { %1822 = vmatmul.mubr.bf16.gmra.mrb[32].mxu0 %v2533_v40 }
 0x3d3   : > { %2349 = vmatmul.mubr.msk.bf16.vlgmr.msra.gmra.mrb[32].mxu1 %vm894_vm8, %v2535_v16  ;;  %1829 = vmatprep.mubr.bf16.mxu0 %v2536_v17  ;;  %v1360_v47 = vpop.permute.xlu0 %1359 }
 0x3d4   : > { %2352 = vmatprep.mubr.msk.bf16.mxu1 %vm894_vm8, %v2539_v18 }
 0x3d7   : > { %v1370_v59 = vpop.permute.xlu0 %1369 }
 0x3da   : > { %1830 = vmatmul.mubr.bf16.gmra.mrb[36].mxu0 %v2538_v3  ;;  %v1914_v3 = vunpack.c.h.bf16 %v1906_v10 }
 0x3db   : > { %2353 = vmatmul.mubr.msk.bf16.gmra.mrb[36].mxu1 %vm894_vm8, %v2540_v19  ;;  %v1380_v9 = vpop.permute.xlu0 %1379 }
 0x3de   : > { %v1355_v63 = vpop.permute.xlu1 %1354 }
 0x3e2   : > { %v1365_v32 = vpop.permute.xlu1 %1364 }
 0x3e6   : > { %v1375_v11 = vpop.permute.xlu1 %1374 }
 0x481   : > { %v2252_v42 = vpop.f32.mrb[16].mxu1 }
 0x482   : > { %v2253_v20 = vpop.f32.mrb[17].mxu1 }
 0x483   : > { %v2254_v44 = vadd.f32 %v2253_v20, %v2252_v42  ;;  %v2255_v21 = vpop.f32.mrb[18].mxu1 }
 0x484   : > { %v2256_v35 = vpop.f32.mrb[19].mxu1 }
 0x485   : > { %v2257_v22 = vadd.f32 %v2256_v35, %v2255_v21  ;;  %v1743_v48 = vadd.f32 %v2254_v44, %v1355_v63  ;;  %v1912_v21 = vunpack.c.l.bf16 %v1906_v10 }
 0x487   : > { %v1746_v52 = vadd.f32 %v2257_v22, %v1360_v47 }
 0x489   : > { %v2258_v23 = vpop.f32.mrb[20].mxu1 }
 0x48a   : > { %v2259_v6 = vpop.f32.mrb[21].mxu1 }
 0x48b   : > { %v2260_v24 = vadd.f32 %v2259_v6, %v2258_v23  ;;  %v2261_v25 = vpop.f32.mrb[22].mxu1 }
 0x48c   : > { %v2262_v15 = vpop.f32.mrb[23].mxu1 }
 0x48d   : > { %v2263_v26 = vadd.f32 %v2262_v15, %v2261_v25  ;;  %v1751_v0 = vadd.f32 %v2260_v24, %v1365_v32 }
 0x48f   : > { %v1754_v5 = vadd.f32 %v2263_v26, %v1370_v59 }
 0x491   : > { %v2264_v53 = vpop.f32.mrb[24].mxu1 }
 0x492   : > { %v2265_v28 = vpop.f32.mrb[25].mxu1 }
 0x493   : > { %v2266_v31 = vadd.f32 %v2265_v28, %v2264_v53  ;;  %v2267_v33 = vpop.f32.mrb[26].mxu1  ;;  %v1909_v28 = vld [vmem:[%s2611_s26 + $0x34] ss:$24 sps:$4 sm:$0xff]  }
 0x494   : > { %v2268_v30 = vpop.f32.mrb[27].mxu1 }
 0x495   : > { %v2269_v45 = vadd.f32 %v2268_v30, %v2267_v33  ;;  %v2292_v27 = vpop.f32.mrb[24].mxu0  ;;  %v1759_v50 = vadd.f32 %v2266_v31, %v1375_v11  ;;  %v1910_v31 = vld [vmem:[%s2611_s26 + $0x40] ss:$24 sps:$4 sm:$0xff]   ;;  %v1390_v30 = vpop.permute.xlu0 %1389 }
 0x496   : > { %v2293_v46 = vpop.f32.mrb[25].mxu0 }
 0x497   : > { %v2294_v49 = vadd.f32 %v2293_v46, %v2292_v27  ;;  %v2295_v29 = vpop.f32.mrb[26].mxu0  ;;  %v1762_v19 = vadd.f32 %v2269_v45, %v1380_v9  ;;  %v1385_v45 = vpop.permute.xlu1 %1384  ;;  %v2541_v46 = vld [vmem:[%s3421_s5] ss:$0 sm:$0xff] }
 0x498   : > { %v2296_v41 = vpop.f32.mrb[27].mxu0 }
 0x499   : > { %v2297_v39 = vadd.f32 %v2296_v41, %v2295_v29  ;;  %v2270_v54 = vpop.f32.mrb[28].mxu1  ;;  %v1808_v55 = vadd.f32 %v2294_v49, %v1743_v48 }
 0x49a   : > { %v2271_v51 = vpop.f32.mrb[29].mxu1 }
 0x49b   : > { %v3392_v36 = vadd.f32 %v2271_v51, %v2270_v54  ;;  %v2273_v1 = vpop.f32.mrb[30].mxu1  ;;  %v1811_v57 = vadd.f32 %v2297_v39, %v1746_v52  ;;  %v1915_v54 = vunpack.c.l.bf16 %v1909_v28 }
 0x49c   : > { %v2274_v58 = vpop.f32.mrb[31].mxu1 }
 0x49d   : > { %v3394_v60 = vadd.f32 %v2274_v58, %v2273_v1  ;;  %v2298_v61 = vpop.f32.mrb[28].mxu0  ;;  %v1767_v51 = vadd.f32 %v3392_v36, %v1385_v45 }
 0x49e   : > { %v2299_v62 = vpop.f32.mrb[29].mxu0 }
 0x49f   : > { %v2300_v2 = vadd.f32 %v2299_v62, %v2298_v61  ;;  %v2301_v4 = vpop.f32.mrb[30].mxu0 }
 0x4a0   : > { %v2302_v43 = vpop.f32.mrb[31].mxu0 }
 0x4a1   : > { %v2303_v7 = vadd.f32 %v2302_v43, %v2301_v4  ;;  %v1816_v8 = vadd.f32 %v2300_v2, %v1751_v0  ;;  %v1917_v0 = vunpack.c.h.bf16 %v1909_v28 }
 0x4a3   : > { %v1819_v37 = vadd.f32 %v2303_v7, %v1754_v5  ;;  %v1770_v5 = vadd.f32 %v3394_v60, %v1390_v30 }
 0x4a5   : > { %v2304_v12 = vpop.f32.mrb[32].mxu0 }
 0x4a6   : > { %v2305_v38 = vpop.f32.mrb[33].mxu0  ;;  %v2350_v13 = vpop.f32.mrb[32].mxu1 }
 0x4a7   : > { %v2306_v40 = vadd.f32 %v2305_v38, %v2304_v12  ;;  %v1881_v16 = vadd.f32 %v2350_v13, %v1816_v8  ;;  %v2307_v17 = vpop.f32.mrb[34].mxu0  ;;  %v1872_v18 = vpop.f32.mrb[33].mxu1 }
 0x4a8   : > { %v1873_v42 = vadd.f32 %v1872_v18, %v1808_v55  ;;  %v2308_v20 = vpop.f32.mrb[35].mxu0  ;;  %v2351_v44 = vpop.f32.mrb[34].mxu1  ;;  %v1916_v55 = vunpack.c.l.bf16 %v1910_v31 }
 0x4a9   : > { %v1921_v35 = vadd.f32 %v1913_v34, %v1881_v16  ;;  %v2309_v22 = vadd.f32 %v2308_v20, %v2307_v17  ;;  %v1884_v23 = vadd.f32 %v2351_v44, %v1819_v37  ;;  %v1875_v6 = vpop.f32.mrb[35].mxu1  ;;  %v1824_v24 = vadd.f32 %v2306_v40, %v1759_v50 }
 0x4aa   : > { %v1919_v25 = vadd.f32 %v1911_v14, %v1873_v42  ;;  %v1876_v15 = vadd.f32 %v1875_v6, %v1811_v57  ;;  %v1918_v34 = vunpack.c.h.bf16 %v1910_v31 }
 0x4ab   : > { %v1929_v26 = vmax.f32 %v1921_v35, 0.0  ;;  %v1922_v53 = vadd.f32 %v1914_v3, %v1884_v23  ;;  %v1827_v33 = vadd.f32 %v2309_v22, %v1762_v19 }
 0x4ac   : > { %v1927_v27 = vmax.f32 %v1919_v25, 0.0  ;;  %v1920_v63 = vadd.f32 %v1912_v21, %v1876_v15 }
 0x4ad   : > { %v1937_v47 = vmul.f32 %v2541_v46, %v1929_v26  ;;  %v1930_v48 = vmax.f32 %v1922_v53, 0.0  ;;  %v2310_v49 = vpop.f32.mrb[36].mxu0 }
 0x4ae   : > { %v1935_v29 = vmul.f32 %v2541_v46, %v1927_v27  ;;  %v1928_v41 = vmax.f32 %v1920_v63, 0.0  ;;  %v2311_v52 = vpop.f32.mrb[37].mxu0  ;;  %v2354_v39 = vpop.f32.mrb[36].mxu1 }
 0x4af   : > { %v2142_v1 = vpack.c.bf16 %v1937_v47, %v1937_v47  ;;  %v1938_v57 = vmul.f32 %v2541_v46, %v1930_v48  ;;  %v2312_v58 = vadd.f32 %v2311_v52, %v2310_v49  ;;  %v2313_v59 = vpop.f32.mrb[38].mxu0  ;;  %v1888_v61 = vpop.f32.mrb[37].mxu1 }
 0x4b0   : > { %v2140_v32 = vpack.c.bf16 %v1935_v29, %v1935_v29  ;;  %v1936_v62 = vmul.f32 %v2541_v46, %v1928_v41  ;;  %v1889_v2 = vadd.f32 %v1888_v61, %v1824_v24  ;;  %v2314_v4 = vpop.f32.mrb[39].mxu0  ;;  %v2355_v43 = vpop.f32.mrb[38].mxu1 }
 0x4b1   : > { %1977 = vst [vmem:[%s3358_s13 + $0x1c] sm:$0xf] %v2142_v1  ;;  %v2143_v7 = vpack.c.bf16 %v1938_v57, %v1938_v57  ;;  %v1832_v8 = vadd.f32 %v2312_v58, %v1767_v51  ;;  %v2315_v36 = vadd.f32 %v2314_v4, %v2313_v59  ;;  %v1891_v56 = vpop.f32.mrb[39].mxu1 }
 0x4b2   : > { %1975 = vst [vmem:[%s3358_s13 + $0x4] sm:$0xf] %v2140_v32  ;;  %v2141_v37 = vpack.c.bf16 %v1936_v62, %v1936_v62  ;;  %v1923_v9 = vadd.f32 %v1915_v54, %v1889_v2  ;;  %v1892_v10 = vadd.f32 %v1891_v56, %v1827_v33 }
 0x4b3   : > { %1978 = vst [vmem:[%s3358_s13 + $0x28] sm:$0xf] %v2143_v7  ;;  %v1897_v11 = vadd.f32 %v2354_v39, %v1832_v8  ;;  %v1835_v12 = vadd.f32 %v2315_v36, %v1770_v5 }
 0x4b4   : > { %1976 = vst [vmem:[%s3358_s13 + $0x10] sm:$0xf] %v2141_v37  ;;  %v1931_v38 = vmax.f32 %v1923_v9, 0.0  ;;  %v1924_v13 = vadd.f32 %v1916_v55, %v1892_v10 }
 0x4b5   : > { %v1925_v60 = vadd.f32 %v1917_v0, %v1897_v11  ;;  %v1900_v14 = vadd.f32 %v2355_v43, %v1835_v12 }
 0x4b6   : > { %v1939_v50 = vmul.f32 %v2541_v46, %v1931_v38  ;;  %v1932_v40 = vmax.f32 %v1924_v13, 0.0 }
 0x4b7   : > { %v1933_v16 = vmax.f32 %v1925_v60, 0.0  ;;  %v1926_v17 = vadd.f32 %v1918_v34, %v1900_v14 }
 0x4b8   : > { %v2144_v18 = vpack.c.bf16 %v1939_v50, %v1939_v50  ;;  %v1940_v3 = vmul.f32 %v2541_v46, %v1932_v40 }
 0x4b9   : > { %v1941_v19 = vmul.f32 %v2541_v46, %v1933_v16  ;;  %v1934_v42 = vmax.f32 %v1926_v17, 0.0 }
 0x4ba   : > { %1979 = vst [vmem:[%s3358_s13 + $0x34] sm:$0xf] %v2144_v18  ;;  %v2145_v20 = vpack.c.bf16 %v1940_v3, %v1940_v3 }
 0x4bb   : > { %v2146_v44 = vpack.c.bf16 %v1941_v19, %v1941_v19  ;;  %v1942_v21 = vmul.f32 %v2541_v46, %v1934_v42 }
 0x4bc   : > { %1980 = vst [vmem:[%s3358_s13 + $0x40] sm:$0xf] %v2145_v20 }
 0x4bd   : > { %1981 = vst [vmem:[%s3358_s13 + $0x4c] sm:$0xf] %v2146_v44  ;;  %v2147_v35 = vpack.c.bf16 %v1942_v21, %v1942_v21 }
 0x4bf   : > { %1982 = vst [vmem:[%s3358_s13 + $0x58] sm:$0xf] %v2147_v35 }
 0x4c0 PF: > { %s16_s21 = sadd.s32 1, %s2548_s21  }
 0x4c1   : > { %p13_p4 = scmp.ge.s32.totalorder %s16_s21, 4  }
 0x4c3   :  { %15 = sbr.rel (!%p13_p4) target bundleno = 1 (0x1), region = 74 }

</bundles_post_ra>
